<compile_context>
chip_gen: v7x
topology: tpu7x:2x2x1
jax: 0.10.0
libtpu: 0.0.40
codegen_flags: <defaults>
</compile_context>

<pallas_src>
import functools

import jax
import jax.numpy as jnp
from jax.experimental import pallas as pl
from jax.experimental.pallas import tpu as pltpu


def _round_up(x, m):
    return (x + m - 1) // m * m


def _vmem_limit_bytes():
    # generation-aware: ~half of physical VMEM (v7x: 64 MiB phys -> 32 MiB,
    # v5e/v6e: 128 MiB phys -> 64 MiB), capped at 100 MiB.
    cap = 64 * 1024 * 1024
    try:
        cap = int(getattr(pltpu.get_tpu_info(), "vmem_capacity_bytes", cap))
    except Exception:
        pass
    return int(min(max(cap // 2, 32 * 1024 * 1024), 100 * 1024 * 1024))


_VMEM_LIMIT = _vmem_limit_bytes()


# ------------------------- fused, tiled matmul kernel ------------------------

def _make_matmul_kernel(n_ops, acts, has_affine, k_steps, compute_stats):
    n_aff = sum(has_affine)

    def kernel(*refs):
        a_refs = refs[:n_ops]
        st_refs = refs[n_ops:n_ops + 2 * n_aff]
        b_refs = refs[n_ops + 2 * n_aff: 2 * n_ops + 2 * n_aff]
        pos = 2 * n_ops + 2 * n_aff
        o_ref = refs[pos]
        pos += 1
        if compute_stats:
            ssum_ref = refs[pos]
            ssq_ref = refs[pos + 1]
            pos += 2
        acc_ref = refs[pos] if k_steps > 1 else None

        # prologue: deferred BatchNorm affine (per input channel) + activation,
        # done in f32 (v5e has no bf16 VPU); bf16 operands feed the MXU.
        aff = 0
        contrib = None
        for q in range(n_ops):
            a = a_refs[q][...]                       # bf16 tile
            if has_affine[q]:
                s = st_refs[2 * aff][...]
                t = st_refs[2 * aff + 1][...]
                aff += 1
                a = a.astype(jnp.float32) * s + t
            if acts[q] == "relu":
                a = jnp.maximum(a.astype(jnp.float32), 0.0)
            elif acts[q] == "lrelu":
                af = a.astype(jnp.float32)
                a = jnp.where(af > 0, af, 0.2 * af)
            d = jnp.dot(a.astype(jnp.bfloat16), b_refs[q][...],
                        preferred_element_type=jnp.float32)
            contrib = d if contrib is None else contrib + d

        def _emit(total):
            o_ref[...] = total
            if compute_stats:
                shp = (ssum_ref.shape[0], total.shape[1])
                ssum_ref[...] = jnp.broadcast_to(
                    jnp.sum(total, axis=0, keepdims=True), shp)
                ssq_ref[...] = jnp.broadcast_to(
                    jnp.sum(total * total, axis=0, keepdims=True), shp)

        if k_steps == 1:
            _emit(contrib)
        else:
            @pl.when(pl.program_id(2) == 0)
            def _first():
                acc_ref[...] = contrib

            @pl.when(pl.program_id(2) > 0)
            def _accum():
                acc_ref[...] += contrib

            @pl.when(pl.program_id(2) == k_steps - 1)
            def _finalize():
                _emit(acc_ref[...])

    return kernel


def _matmul_tiles(M, Nc, K):
    def dim(d, align, tmax):
        if d > tmax:
            return _round_up(d, tmax), tmax
        p = _round_up(d, align)
        return p, p

    # M aligned to 16 so bf16 A tiles hit the native (16,128) sublane tiling;
    # large tn (512) keeps the big activation A tile from being re-read too
    # often and keeps output stores lane-dense.
    Mp, tm = dim(M, 16, 256)
    Np, tn = dim(Nc, 128, 512)
    Kp, tk = dim(K, 128, 512)
    # give v7x's two TensorCores at least two 'parallel' grid tiles when feasible
    if (Mp // tm) * (Np // tn) == 1 and Np % 256 == 0:
        tn = Np // 2
    return Mp, tm, Np, tn, Kp, tk


def fused_matmul(a_list, b_list, acts, scales=None, shifts=None,
                 compute_stats=False):
    """sum_i  act_i(a_i * scale_i + shift_i) @ b_i  ->  [M, N] float32.

    a_i: [M, K_i], b_i: [K_i, N].  A and B are stored/DMA'd in bfloat16; the
    prologue math and the accumulator are float32.  Zero padding contributes
    nothing (relu/lrelu/none map 0->0, padded B rows are zero).  With
    compute_stats=True (only allowed when no affine prologue is used, so padded
    rows stay exactly zero) the kernel also emits per-row-tile column sums and
    sums of squares, so BatchNorm stats of the output cost no extra HBM pass.
    """
    n_ops = len(a_list)
    if scales is None:
        scales = (None,) * n_ops
    if shifts is None:
        shifts = (None,) * n_ops
    has_affine = tuple(s is not None for s in scales)
    assert not (compute_stats and any(has_affine))

    M = a_list[0].shape[0]
    Nc = b_list[0].shape[1]
    K = max(a.shape[1] for a in a_list)
    Mp, tm, Np, tn, Kp, tk = _matmul_tiles(M, Nc, K)
    itiles, jtiles, ktiles = Mp // tm, Np // tn, Kp // tk

    a_pad, b_pad, st_ops = [], [], []
    for q in range(n_ops):
        a, b = a_list[q], b_list[q]
        ka = a.shape[1]
        a_pad.append(jnp.pad(a.astype(jnp.bfloat16), ((0, Mp - M), (0, Kp - ka))))
        b_pad.append(jnp.pad(b.astype(jnp.bfloat16),
                             ((0, Kp - b.shape[0]), (0, Np - Nc))))
        if has_affine[q]:
            st_ops.append(
                (jnp.pad(scales[q].astype(jnp.float32), (0, Kp - ka)).reshape(1, Kp),
                 jnp.pad(shifts[q].astype(jnp.float32), (0, Kp - ka)).reshape(1, Kp)))

    operands = list(a_pad)
    in_specs = [pl.BlockSpec((tm, tk), lambda i, j, k: (i, k))
                for _ in range(n_ops)]
    for (s, t) in st_ops:
        operands += [s, t]
        in_specs += [pl.BlockSpec((1, tk), lambda i, j, k: (0, k))] * 2
    operands += list(b_pad)
    in_specs += [pl.BlockSpec((tk, tn), lambda i, j, k: (k, j))
                 for _ in range(n_ops)]

    out_shape = [jax.ShapeDtypeStruct((Mp, Np), jnp.float32)]
    out_specs = [pl.BlockSpec((tm, tn), lambda i, j, k: (i, j))]
    if compute_stats:
        out_shape += [jax.ShapeDtypeStruct((itiles * 8, Np), jnp.float32)] * 2
        out_specs += [pl.BlockSpec((8, tn), lambda i, j, k: (i, j))] * 2

    scratch = [pltpu.VMEM((tm, tn), jnp.float32)] if ktiles > 1 else []
    kernel = _make_matmul_kernel(n_ops, tuple(acts), has_affine, ktiles,
                                 compute_stats)
    res = pl.pallas_call(
        kernel,
        out_shape=tuple(out_shape),
        grid=(itiles, jtiles, ktiles),
        in_specs=in_specs,
        out_specs=tuple(out_specs),
        scratch_shapes=scratch,
        compiler_params=pltpu.CompilerParams(
            dimension_semantics=("parallel", "parallel", "arbitrary"),
            vmem_limit_bytes=_VMEM_LIMIT),
    )(*operands)

    if compute_stats:
        out, ssum, ssq = res
        colsum = jnp.sum(ssum.reshape(itiles, 8, Np)[:, 0, :Nc], axis=0)
        colsq = jnp.sum(ssq.reshape(itiles, 8, Np)[:, 0, :Nc], axis=0)
        return out[:M, :Nc], (colsum, colsq)
    return res[0][:M, :Nc], None


# ----------------------- BatchNorm helpers & rowwise kernels ------------------

def _bn_from_sums(colsum, colsq, count, gamma, beta, eps=1e-5):
    # training-mode batch stats, biased variance, folded into y = x*scale + shift
    mean = colsum / count
    var = jnp.maximum(colsq / count - mean * mean, 0.0)
    scale = gamma * jax.lax.rsqrt(var + eps)
    shift = beta - mean * scale
    return scale, shift


def _pack_factor(M, C, target=128):
    # pack g rows per vreg row so the lane dim is >=128 even for small C
    g = min(max(1, target // C), M)
    while g > 1 and M % g:
        g -= 1
    return g


def _row_tiling(R, lane):
    # ~2 MiB row tiles instead of a fixed row count
    budget = max(8, (2 * 1024 * 1024 // (4 * lane)) // 8 * 8)
    Rp = _round_up(R, 8)
    if Rp <= budget:
        return Rp, Rp
    return _round_up(R, budget), budget


def _bn_stats_kernel(x_ref, s_ref, q_ref):
    @pl.when(pl.program_id(0) == 0)
    def _init():
        s_ref[...] = jnp.zeros_like(s_ref)
        q_ref[...] = jnp.zeros_like(q_ref)

    x = x_ref[...]
    s_ref[...] += jnp.sum(x, axis=0, keepdims=True)
    q_ref[...] += jnp.sum(x * x, axis=0, keepdims=True)


def bn_scale_shift(x_nhwc, gamma, beta, eps=1e-5):
    """BatchNorm2d stats (for tensors whose stats cannot be fused into a matmul
    epilogue, i.e. the post-col2im up-conv outputs), as a tiled lane-packed
    accumulation kernel."""
    C = x_nhwc.shape[-1]
    f = x_nhwc.reshape(-1, C)
    M = f.shape[0]
    g = _pack_factor(M, C)
    lane = g * C
    R = M // g
    Rp, tr = _row_tiling(R, lane)
    fp = jnp.pad(f.reshape(R, lane), ((0, Rp - R), (0, 0)))
    s, q = pl.pallas_call(
        _bn_stats_kernel,
        out_shape=(jax.ShapeDtypeStruct((1, lane), jnp.float32),
                   jax.ShapeDtypeStruct((1, lane), jnp.float32)),
        grid=(Rp // tr,),
        in_specs=[pl.BlockSpec((tr, lane), lambda i: (i, 0))],
        out_specs=(pl.BlockSpec((1, lane), lambda i: (0, 0)),
                   pl.BlockSpec((1, lane), lambda i: (0, 0))),
        compiler_params=pltpu.CompilerParams(
            dimension_semantics=("arbitrary",), vmem_limit_bytes=_VMEM_LIMIT),
    )(fp)
    colsum = jnp.sum(s.reshape(g, C), axis=0)
    colsq = jnp.sum(q.reshape(g, C), axis=0)
    return _bn_from_sums(colsum, colsq, M, gamma, beta, eps)


def _bias_tanh_kernel(x_ref, b_ref, o_ref):
    o_ref[...] = jnp.tanh(x_ref[...] + b_ref[...])


def bias_tanh(x_nhwc, bias):
    shp = x_nhwc.shape
    C = shp[-1]
    f = x_nhwc.reshape(-1, C)
    M = f.shape[0]
    g = _pack_factor(M, C)
    lane = g * C
    R = M // g
    Rp, tr = _row_tiling(R, lane)
    fp = jnp.pad(f.reshape(R, lane), ((0, Rp - R), (0, 0)))
    b = jnp.tile(bias, g).reshape(1, lane)
    out = pl.pallas_call(
        _bias_tanh_kernel,
        out_shape=jax.ShapeDtypeStruct((Rp, lane), jnp.float32),
        grid=(Rp // tr,),
        in_specs=[pl.BlockSpec((tr, lane), lambda i: (i, 0)),
                  pl.BlockSpec((1, lane), lambda i: (0, 0))],
        out_specs=pl.BlockSpec((tr, lane), lambda i: (i, 0)),
        compiler_params=pltpu.CompilerParams(
            dimension_semantics=("parallel",), vmem_limit_bytes=_VMEM_LIMIT),
    )(fp, b)
    return out[:R].reshape(M, C).reshape(shp)


# --------------------------- conv / conv-transpose ---------------------------

def conv_down_4x4_s2(x, w, act, pre_scale=None, pre_shift=None, bn=None,
                     eps=1e-5):
    """Conv2d(kernel=4, stride=2, padding=1, bias=False).  The preceding
    activation `act` and (optionally) the parent's deferred BatchNorm affine are
    fused: the affine is applied in f32 before the spatial zero-padding (so the
    in-kernel LeakyReLU still maps padded taps to exactly 0), the activation in
    the matmul prologue.  If `bn` is given, per-channel sum / sum-of-squares of
    the conv output are produced by the matmul epilogue (no extra stats pass).
    x: [N,H,W,Cin] NHWC; w: torch [Cout, Cin, 4, 4]."""
    N, H, W, Cin = x.shape
    Cout = w.shape[0]
    Ho, Wo = H // 2, W // 2
    if pre_scale is not None:
        x = x * pre_scale + pre_shift          # fused by XLA into the im2col below
    xp = jnp.pad(x.astype(jnp.bfloat16), ((0, 0), (1, 1), (1, 1), (0, 0)))
    # im2col in (tap, cin) order -> only the tiny weight is transposed, not the
    # big activation tensor.
    taps = [xp[:, kh:kh + 2 * Ho:2, kw:kw + 2 * Wo:2, :]
            for kh in range(4) for kw in range(4)]
    patches = jnp.stack(taps, axis=3).reshape(N * Ho * Wo, 16 * Cin)
    # TODO(synk): fold the 16 taps into the matmul K grid axis (4 parity planes
    # + shifted windows) instead of materializing the 16x patches tensor in HBM.
    w_mat = jnp.transpose(w, (2, 3, 1, 0)).reshape(16 * Cin, Cout)
    out, stats = fused_matmul([patches], [w_mat], acts=(act,),
                              compute_stats=(bn is not None))
    out = out.reshape(N, Ho, Wo, Cout)
    if bn is None:
        return out, None, None
    gamma, beta = bn
    scale, shift = _bn_from_sums(stats[0], stats[1], N * Ho * Wo, gamma, beta, eps)
    return out, scale, shift


def conv_transpose_4x4_s2(a_ops, w, acts, scales=None, shifts=None):
    """ConvTranspose2d(kernel=4, stride=2, padding=1, bias=False) applied to the
    (virtual) channel-concatenation of `a_ops` — the concat is never built: the
    weight is split per operand and all operands accumulate into the same f32
    accumulator.  Deferred BatchNorm affines + ReLU are fused as prologues.
    a_ops: list of [N,H,W,Ci]; w: torch [sum(Ci), Cout, 4, 4]."""
    N, H, W, _ = a_ops[0].shape
    Cout = w.shape[1]
    a_list, b_list = [], []
    off = 0
    for a in a_ops:
        ci = a.shape[-1]
        a_list.append(a.reshape(N * H * W, ci))
        # tap-major / channel-minor weight (ci, kh, kw, cout) so every tap slice
        # of the matmul output is a contiguous, lane-dense Cout chunk.
        b_list.append(jnp.transpose(w[off:off + ci], (0, 2, 3, 1)).reshape(ci, 16 * Cout))
        off += ci
    cols, _ = fused_matmul(a_list, b_list, acts=acts, scales=scales, shifts=shifts)
    cols = cols.reshape(N, H, W, 4, 4, Cout)

    # col2im via parity planes + pixel shuffle: output parity class (oh%2, ow%2)
    # receives exactly 4 of the 16 taps, so the naive 16 full-size scatter
    # passes collapse into 4 gathered adds per quarter-size plane.
    # TODO(synk): move this col2im (and the up-path BN stats) into a Pallas
    # epilogue kernel to cut the remaining XLA HBM round trips.
    def shift_h(t, d):
        if d == 0:
            return t
        if d == -1:
            return jnp.pad(t, ((0, 0), (1, 0), (0, 0), (0, 0)))[:, :H]
        return jnp.pad(t, ((0, 0), (0, 1), (0, 0), (0, 0)))[:, 1:]

    def shift_w(t, d):
        if d == 0:
            return t
        if d == -1:
            return jnp.pad(t, ((0, 0), (0, 0), (1, 0), (0, 0)))[:, :, :W]
        return jnp.pad(t, ((0, 0), (0, 0), (0, 1), (0, 0)))[:, :, 1:]

    taps_for_parity = {0: ((1, 0), (3, -1)), 1: ((2, 0), (0, 1))}
    planes = []
    for p in (0, 1):
        row = []
        for q in (0, 1):
            acc = None
            for kh, dh in taps_for_parity[p]:
                for kw, dw in taps_for_parity[q]:
                    term = shift_w(shift_h(cols[:, :, :, kh, kw, :], dh), dw)
                    acc = term if acc is None else acc + term
            row.append(acc)
        planes.append(jnp.stack(row, axis=0))
    pq = jnp.stack(planes, axis=0)                 # [2, 2, N, H, W, Cout]
    out = jnp.transpose(pq, (2, 3, 0, 4, 1, 5))    # [N, H, 2, W, 2, Cout]
    return out.reshape(N, 2 * H, 2 * W, Cout)


# ------------------------------ UNet structure --------------------------------

def build_unet_params(key, input_nc, output_nc, num_downs, ngf):
    keys = iter(jax.random.split(key, 4 * (num_downs + 4)))

    def nk():
        return next(keys)

    def conv_w(cout, cin):
        return 0.02 * jax.random.normal(nk(), (cout, cin, 4, 4), jnp.float32)

    def convT_w(cin, cout):
        return 0.02 * jax.random.normal(nk(), (cin, cout, 4, 4), jnp.float32)

    def bn(c):
        return (jnp.ones((c,), jnp.float32), jnp.zeros((c,), jnp.float32))

    # innermost block: (outer_nc=ngf*8, inner_nc=ngf*8)
    blk = {
        "type": "innermost",
        "down_w": conv_w(ngf * 8, ngf * 8),
        "up_w": convT_w(ngf * 8, ngf * 8),
        "up_bn": bn(ngf * 8),
    }
    # intermediate ngf*8 blocks
    for _ in range(num_downs - 5):
        blk = {
            "type": "middle",
            "down_w": conv_w(ngf * 8, ngf * 8),
            "down_bn": bn(ngf * 8),
            "up_w": convT_w(ngf * 8 * 2, ngf * 8),
            "up_bn": bn(ngf * 8),
            "sub": blk,
        }
    # gradually reduce channel counts
    for outer, inner in [(ngf * 4, ngf * 8), (ngf * 2, ngf * 4), (ngf, ngf * 2)]:
        blk = {
            "type": "middle",
            "down_w": conv_w(inner, outer),
            "down_bn": bn(inner),
            "up_w": convT_w(inner * 2, outer),
            "up_bn": bn(outer),
            "sub": blk,
        }
    # outermost block (upconv has bias=True; Tanh at the end)
    blk = {
        "type": "outermost",
        "down_w": conv_w(ngf, input_nc),
        "up_w": convT_w(ngf * 2, output_nc),
        "up_b": 0.02 * jax.random.normal(nk(), (output_nc,), jnp.float32),
        "sub": blk,
    }
    return blk


def _run_block(p, x, xs=None, xt=None):
    """Runs one UNet block.  The block's effective input is x*xs + xt (the
    parent's deferred BatchNorm affine); middle/innermost blocks return
    (u_raw, bn_scale, bn_shift): the up-conv output *before* BatchNorm, whose
    affine is fused into the parent's up-conv prologue.  The skip connection
    (torch.cat([x, h])) is realized by giving the parent's up-conv multiple
    operands with the weight split per half — the concat is never materialized."""
    t = p["type"]
    if t == "innermost":
        d, _, _ = conv_down_4x4_s2(x, p["down_w"], act="lrelu",
                                   pre_scale=xs, pre_shift=xt)
        u_raw = conv_transpose_4x4_s2([d], p["up_w"], acts=("relu",))
        s, sh = bn_scale_shift(u_raw, *p["up_bn"])
        return u_raw, s, sh
    if t == "middle":
        d_raw, ds, dt = conv_down_4x4_s2(x, p["down_w"], act="lrelu",
                                         pre_scale=xs, pre_shift=xt,
                                         bn=p["down_bn"])
        u_sub, ss, st = _run_block(p["sub"], d_raw, ds, dt)
        u_raw = conv_transpose_4x4_s2(
            [d_raw, u_sub], p["up_w"], acts=("relu", "relu"),
            scales=(ds, ss), shifts=(dt, st))
        s, sh = bn_scale_shift(u_raw, *p["up_bn"])
        return u_raw, s, sh
    # outermost: down = [downconv] (no act, no norm); up = [relu, upconvT(+bias), tanh]
    d, _, _ = conv_down_4x4_s2(x, p["down_w"], act="none")
    u_sub, ss, st = _run_block(p["sub"], d)
    u = conv_transpose_4x4_s2(
        [d, u_sub], p["up_w"], acts=("relu", "relu"),
        scales=(None, ss), shifts=(None, st))
    return bias_tanh(u, p["up_b"])


def unet_apply(params, x_nchw):
    x = jnp.transpose(x_nchw, (0, 2, 3, 1))      # NCHW -> NHWC
    y = _run_block(params, x)
    return jnp.transpose(y, (0, 3, 1, 2))        # NHWC -> NCHW


# TODO(synk): nn.Dropout path is unused (use_dropout defaults to False), so it is
# intentionally not implemented; BatchNorm running-stats buffers (training-mode
# bookkeeping, not part of the forward output) are likewise not modeled.

if __name__ == "__main__":
    key = jax.random.PRNGKey(0)
    pkey, xkey = jax.random.split(key)
    input_nc, output_nc, num_downs, ngf = 3, 3, 6, 8
    params = build_unet_params(pkey, input_nc, output_nc, num_downs, ngf)
    # spatial = 2**num_downs so the bottleneck reaches 1x1, like the PyTorch model.
    x = jax.random.normal(xkey, (2, input_nc, 64, 64), jnp.float32)

    fwd = jax.jit(functools.partial(unet_apply, params))
    y = fwd(x)
    jax.block_until_ready(y)
    assert y.shape == (2, output_nc, 64, 64), y.shape
    assert bool(jnp.all(jnp.isfinite(y)))
    print("KERNEL_OK")
</pallas_src>

<mosaic_0001>
module attributes {stable_mosaic.version = 11 : i64} {
  func.func @kernel(%arg0: i32, %arg1: i32, %arg2: i32, %arg3: memref<256x128xbf16, #tpu.memory_space<vmem>>, %arg4: memref<128x128xbf16, #tpu.memory_space<vmem>>, %arg5: memref<256x128xf32, #tpu.memory_space<vmem>>) attributes {dimension_semantics = [#tpu.dimension_semantics<parallel>, #tpu.dimension_semantics<parallel>, #tpu.dimension_semantics<arbitrary>], iteration_bounds = array<i64: 8, 1, 1>, scalar_prefetch = 0 : i64, scratch_operands = 0 : i64, tpu.core_type = #tpu.core_type<tc>, window_params = [{transform_indices = @transform_0, window_bounds = array<i64: 256, 128>}, {transform_indices = @transform_1, window_bounds = array<i64: 128, 128>}, {transform_indices = @transform_2, window_bounds = array<i64: 256, 128>}]} {
    %c0 = arith.constant 0 : index
    %c0_0 = arith.constant 0 : index
    %0 = vector.load %arg3[%c0, %c0_0] : memref<256x128xbf16, #tpu.memory_space<vmem>>, vector<256x128xbf16>
    %c0_1 = arith.constant 0 : index
    %c0_2 = arith.constant 0 : index
    %1 = vector.load %arg4[%c0_1, %c0_2] : memref<128x128xbf16, #tpu.memory_space<vmem>>, vector<128x128xbf16>
    %cst = arith.constant dense<0.000000e+00> : vector<256x128xf32>
    %2 = tpu.matmul %0, %1, %cst {dimension_numbers = #tpu.dot_dimension_numbers<[1], [0], [0], [1], [0, 0, 1, 1], [], []>} : vector<256x128xbf16>, vector<128x128xbf16>, vector<256x128xf32> -> vector<256x128xf32>
    %c0_3 = arith.constant 0 : index
    %c0_4 = arith.constant 0 : index
    %3 = vector.load %arg5[%c0_3, %c0_4] : memref<256x128xf32, #tpu.memory_space<vmem>>, vector<256x128xf32>
    tpu.vector_store %arg5[%c0_3, %c0_4], %2 {strides = array<i32>} : memref<256x128xf32, #tpu.memory_space<vmem>>, vector<256x128xf32>,
    return
  }
  func.func @transform_0(%arg0: i32, %arg1: i32, %arg2: i32) -> (i32, i32) {
    %c0_i32 = arith.constant 0 : i32
    return %arg0, %arg2 : i32, i32
  }
  func.func @transform_1(%arg0: i32, %arg1: i32, %arg2: i32) -> (i32, i32) {
    %c0_i32 = arith.constant 0 : i32
    return %arg2, %arg1 : i32, i32
  }
  func.func @transform_2(%arg0: i32, %arg1: i32, %arg2: i32) -> (i32, i32) {
    %c0_i32 = arith.constant 0 : i32
    return %arg0, %arg1 : i32, i32
  }
}

module attributes {stable_mosaic.version = 11 : i64} {
  func.func @kernel(%arg0: i32, %arg1: i32, %arg2: i32, %arg3: memref<256x128xbf16, #tpu.memory_space<vmem>>, %arg4: memref<128x128xbf16, #tpu.memory_space<vmem>>, %arg5: memref<256x128xf32, #tpu.memory_space<vmem>>, %arg6: memref<8x128xf32, #tpu.memory_space<vmem>>, %arg7: memref<8x128xf32, #tpu.memory_space<vmem>>) attributes {dimension_semantics = [#tpu.dimension_semantics<parallel>, #tpu.dimension_semantics<parallel>, #tpu.dimension_semantics<arbitrary>], iteration_bounds = array<i64: 2, 1, 1>, scalar_prefetch = 0 : i64, scratch_operands = 0 : i64, tpu.core_type = #tpu.core_type<tc>, window_params = [{transform_indices = @transform_0, window_bounds = array<i64: 256, 128>}, {transform_indices = @transform_1, window_bounds = array<i64: 128, 128>}, {transform_indices = @transform_2, window_bounds = array<i64: 256, 128>}, {transform_indices = @transform_3, window_bounds = array<i64: 8, 128>}, {transform_indices = @transform_4, window_bounds = array<i64: 8, 128>}]} {
    %c0 = arith.constant 0 : index
    %c0_0 = arith.constant 0 : index
    %0 = vector.load %arg3[%c0, %c0_0] : memref<256x128xbf16, #tpu.memory_space<vmem>>, vector<256x128xbf16>
    %1 = arith.extf %0 : vector<256x128xbf16> to vector<256x128xf32>
    %cst = arith.constant 0.000000e+00 : f32
    %2 = vector.broadcast %cst : f32 to vector<256x128xf32>
    %3 = arith.cmpf ogt, %1, %2 : vector<256x128xf32>
    %cst_1 = arith.constant 2.000000e-01 : f32
    %4 = vector.broadcast %cst_1 : f32 to vector<256x128xf32>
    %5 = arith.mulf %4, %1 : vector<256x128xf32>
    %6 = arith.select %3, %1, %5 : vector<256x128xi1>, vector<256x128xf32>
    %7 = arith.truncf %6 : vector<256x128xf32> to vector<256x128xbf16>
    %c0_2 = arith.constant 0 : index
    %c0_3 = arith.constant 0 : index
    %8 = vector.load %arg4[%c0_2, %c0_3] : memref<128x128xbf16, #tpu.memory_space<vmem>>, vector<128x128xbf16>
    %cst_4 = arith.constant dense<0.000000e+00> : vector<256x128xf32>
    %9 = tpu.matmul %7, %8, %cst_4 {dimension_numbers = #tpu.dot_dimension_numbers<[1], [0], [0], [1], [0, 0, 1, 1], [], []>} : vector<256x128xbf16>, vector<128x128xbf16>, vector<256x128xf32> -> vector<256x128xf32>
    %c0_5 = arith.constant 0 : index
    %c0_6 = arith.constant 0 : index
    %10 = vector.load %arg5[%c0_5, %c0_6] : memref<256x128xf32, #tpu.memory_space<vmem>>, vector<256x128xf32>
    tpu.vector_store %arg5[%c0_5, %c0_6], %9 {strides = array<i32>} : memref<256x128xf32, #tpu.memory_space<vmem>>, vector<256x128xf32>,
    %cst_7 = arith.constant dense<0.000000e+00> : vector<128xf32>
    %11 = vector.multi_reduction <add>, %9, %cst_7 [0] : vector<256x128xf32> to vector<128xf32>
    %12 = vector.shape_cast %11 : vector<128xf32> to vector<1x128xf32>
    %13 = vector.shape_cast %12 : vector<1x128xf32> to vector<1x128xf32>
    %14 = vector.broadcast %13 : vector<1x128xf32> to vector<8x128xf32>
    %c0_8 = arith.constant 0 : index
    %c0_9 = arith.constant 0 : index
    %15 = vector.load %arg6[%c0_8, %c0_9] : memref<8x128xf32, #tpu.memory_space<vmem>>, vector<8x128xf32>
    tpu.vector_store %arg6[%c0_8, %c0_9], %14 {strides = array<i32>} : memref<8x128xf32, #tpu.memory_space<vmem>>, vector<8x128xf32>,
    %16 = arith.mulf %9, %9 : vector<256x128xf32>
    %cst_10 = arith.constant dense<0.000000e+00> : vector<128xf32>
    %17 = vector.multi_reduction <add>, %16, %cst_10 [0] : vector<256x128xf32> to vector<128xf32>
    %18 = vector.shape_cast %17 : vector<128xf32> to vector<1x128xf32>
    %19 = vector.shape_cast %18 : vector<1x128xf32> to vector<1x128xf32>
    %20 = vector.broadcast %19 : vector<1x128xf32> to vector<8x128xf32>
    %c0_11 = arith.constant 0 : index
    %c0_12 = arith.constant 0 : index
    %21 = vector.load %arg7[%c0_11, %c0_12] : memref<8x128xf32, #tpu.memory_space<vmem>>, vector<8x128xf32>
    tpu.vector_store %arg7[%c0_11, %c0_12], %20 {strides = array<i32>} : memref<8x128xf32, #tpu.memory_space<vmem>>, vector<8x128xf32>,
    return
  }
  func.func @transform_0(%arg0: i32, %arg1: i32, %arg2: i32) -> (i32, i32) {
    %c0_i32 = arith.constant 0 : i32
    return %arg0, %arg2 : i32, i32
  }
  func.func @transform_1(%arg0: i32, %arg1: i32, %arg2: i32) -> (i32, i32) {
    %c0_i32 = arith.constant 0 : i32
    return %arg2, %arg1 : i32, i32
  }
  func.func @transform_2(%arg0: i32, %arg1: i32, %arg2: i32) -> (i32, i32) {
    %c0_i32 = arith.constant 0 : i32
    return %arg0, %arg1 : i32, i32
  }
  func.func @transform_3(%arg0: i32, %arg1: i32, %arg2: i32) -> (i32, i32) {
    %c0_i32 = arith.constant 0 : i32
    return %arg0, %arg1 : i32, i32
  }
  func.func @transform_4(%arg0: i32, %arg1: i32, %arg2: i32) -> (i32, i32) {
    %c0_i32 = arith.constant 0 : i32
    return %arg0, %arg1 : i32, i32
  }
}

module attributes {stable_mosaic.version = 11 : i64} {
  func.func @kernel(%arg0: i32, %arg1: i32, %arg2: i32, %arg3: memref<128x256xbf16, #tpu.memory_space<vmem>>, %arg4: memref<256x128xbf16, #tpu.memory_space<vmem>>, %arg5: memref<128x128xf32, #tpu.memory_space<vmem>>, %arg6: memref<8x128xf32, #tpu.memory_space<vmem>>, %arg7: memref<8x128xf32, #tpu.memory_space<vmem>>) attributes {dimension_semantics = [#tpu.dimension_semantics<parallel>, #tpu.dimension_semantics<parallel>, #tpu.dimension_semantics<arbitrary>], iteration_bounds = array<i64: 1, 1, 1>, scalar_prefetch = 0 : i64, scratch_operands = 0 : i64, tpu.core_type = #tpu.core_type<tc>, window_params = [{transform_indices = @transform_0, window_bounds = array<i64: 128, 256>}, {transform_indices = @transform_1, window_bounds = array<i64: 256, 128>}, {transform_indices = @transform_2, window_bounds = array<i64: 128, 128>}, {transform_indices = @transform_3, window_bounds = array<i64: 8, 128>}, {transform_indices = @transform_4, window_bounds = array<i64: 8, 128>}]} {
    %c0 = arith.constant 0 : index
    %c0_0 = arith.constant 0 : index
    %0 = vector.load %arg3[%c0, %c0_0] : memref<128x256xbf16, #tpu.memory_space<vmem>>, vector<128x256xbf16>
    %1 = arith.extf %0 : vector<128x256xbf16> to vector<128x256xf32>
    %cst = arith.constant 0.000000e+00 : f32
    %2 = vector.broadcast %cst : f32 to vector<128x256xf32>
    %3 = arith.cmpf ogt, %1, %2 : vector<128x256xf32>
    %cst_1 = arith.constant 2.000000e-01 : f32
    %4 = vector.broadcast %cst_1 : f32 to vector<128x256xf32>
    %5 = arith.mulf %4, %1 : vector<128x256xf32>
    %6 = arith.select %3, %1, %5 : vector<128x256xi1>, vector<128x256xf32>
    %7 = arith.truncf %6 : vector<128x256xf32> to vector<128x256xbf16>
    %c0_2 = arith.constant 0 : index
    %c0_3 = arith.constant 0 : index
    %8 = vector.load %arg4[%c0_2, %c0_3] : memref<256x128xbf16, #tpu.memory_space<vmem>>, vector<256x128xbf16>
    %cst_4 = arith.constant dense<0.000000e+00> : vector<128x128xf32>
    %9 = tpu.matmul %7, %8, %cst_4 {dimension_numbers = #tpu.dot_dimension_numbers<[1], [0], [0], [1], [0, 0, 1, 1], [], []>} : vector<128x256xbf16>, vector<256x128xbf16>, vector<128x128xf32> -> vector<128x128xf32>
    %c0_5 = arith.constant 0 : index
    %c0_6 = arith.constant 0 : index
    %10 = vector.load %arg5[%c0_5, %c0_6] : memref<128x128xf32, #tpu.memory_space<vmem>>, vector<128x128xf32>
    tpu.vector_store %arg5[%c0_5, %c0_6], %9 {strides = array<i32>} : memref<128x128xf32, #tpu.memory_space<vmem>>, vector<128x128xf32>,
    %cst_7 = arith.constant dense<0.000000e+00> : vector<128xf32>
    %11 = vector.multi_reduction <add>, %9, %cst_7 [0] : vector<128x128xf32> to vector<128xf32>
    %12 = vector.shape_cast %11 : vector<128xf32> to vector<1x128xf32>
    %13 = vector.shape_cast %12 : vector<1x128xf32> to vector<1x128xf32>
    %14 = vector.broadcast %13 : vector<1x128xf32> to vector<8x128xf32>
    %c0_8 = arith.constant 0 : index
    %c0_9 = arith.constant 0 : index
    %15 = vector.load %arg6[%c0_8, %c0_9] : memref<8x128xf32, #tpu.memory_space<vmem>>, vector<8x128xf32>
    tpu.vector_store %arg6[%c0_8, %c0_9], %14 {strides = array<i32>} : memref<8x128xf32, #tpu.memory_space<vmem>>, vector<8x128xf32>,
    %16 = arith.mulf %9, %9 : vector<128x128xf32>
    %cst_10 = arith.constant dense<0.000000e+00> : vector<128xf32>
    %17 = vector.multi_reduction <add>, %16, %cst_10 [0] : vector<128x128xf32> to vector<128xf32>
    %18 = vector.shape_cast %17 : vector<128xf32> to vector<1x128xf32>
    %19 = vector.shape_cast %18 : vector<1x128xf32> to vector<1x128xf32>
    %20 = vector.broadcast %19 : vector<1x128xf32> to vector<8x128xf32>
    %c0_11 = arith.constant 0 : index
    %c0_12 = arith.constant 0 : index
    %21 = vector.load %arg7[%c0_11, %c0_12] : memref<8x128xf32, #tpu.memory_space<vmem>>, vector<8x128xf32>
    tpu.vector_store %arg7[%c0_11, %c0_12], %20 {strides = array<i32>} : memref<8x128xf32, #tpu.memory_space<vmem>>, vector<8x128xf32>,
    return
  }
  func.func @transform_0(%arg0: i32, %arg1: i32, %arg2: i32) -> (i32, i32) {
    %c0_i32 = arith.constant 0 : i32
    return %arg0, %arg2 : i32, i32
  }
  func.func @transform_1(%arg0: i32, %arg1: i32, %arg2: i32) -> (i32, i32) {
    %c0_i32 = arith.constant 0 : i32
    return %arg2, %arg1 : i32, i32
  }
  func.func @transform_2(%arg0: i32, %arg1: i32, %arg2: i32) -> (i32, i32) {
    %c0_i32 = arith.constant 0 : i32
    return %arg0, %arg1 : i32, i32
  }
  func.func @transform_3(%arg0: i32, %arg1: i32, %arg2: i32) -> (i32, i32) {
    %c0_i32 = arith.constant 0 : i32
    return %arg0, %arg1 : i32, i32
  }
  func.func @transform_4(%arg0: i32, %arg1: i32, %arg2: i32) -> (i32, i32) {
    %c0_i32 = arith.constant 0 : i32
    return %arg0, %arg1 : i32, i32
  }
}

module attributes {stable_mosaic.version = 11 : i64} {
  func.func @kernel(%arg0: i32, %arg1: i32, %arg2: i32, %arg3: memref<32x512xbf16, #tpu.memory_space<vmem>>, %arg4: memref<512x128xbf16, #tpu.memory_space<vmem>>, %arg5: memref<32x128xf32, #tpu.memory_space<vmem>>, %arg6: memref<8x128xf32, #tpu.memory_space<vmem>>, %arg7: memref<8x128xf32, #tpu.memory_space<vmem>>) attributes {dimension_semantics = [#tpu.dimension_semantics<parallel>, #tpu.dimension_semantics<parallel>, #tpu.dimension_semantics<arbitrary>], iteration_bounds = array<i64: 1, 1, 1>, scalar_prefetch = 0 : i64, scratch_operands = 0 : i64, tpu.core_type = #tpu.core_type<tc>, window_params = [{transform_indices = @transform_0, window_bounds = array<i64: 32, 512>}, {transform_indices = @transform_1, window_bounds = array<i64: 512, 128>}, {transform_indices = @transform_2, window_bounds = array<i64: 32, 128>}, {transform_indices = @transform_3, window_bounds = array<i64: 8, 128>}, {transform_indices = @transform_4, window_bounds = array<i64: 8, 128>}]} {
    %c0 = arith.constant 0 : index
    %c0_0 = arith.constant 0 : index
    %0 = vector.load %arg3[%c0, %c0_0] : memref<32x512xbf16, #tpu.memory_space<vmem>>, vector<32x512xbf16>
    %1 = arith.extf %0 : vector<32x512xbf16> to vector<32x512xf32>
    %cst = arith.constant 0.000000e+00 : f32
    %2 = vector.broadcast %cst : f32 to vector<32x512xf32>
    %3 = arith.cmpf ogt, %1, %2 : vector<32x512xf32>
    %cst_1 = arith.constant 2.000000e-01 : f32
    %4 = vector.broadcast %cst_1 : f32 to vector<32x512xf32>
    %5 = arith.mulf %4, %1 : vector<32x512xf32>
    %6 = arith.select %3, %1, %5 : vector<32x512xi1>, vector<32x512xf32>
    %7 = arith.truncf %6 : vector<32x512xf32> to vector<32x512xbf16>
    %c0_2 = arith.constant 0 : index
    %c0_3 = arith.constant 0 : index
    %8 = vector.load %arg4[%c0_2, %c0_3] : memref<512x128xbf16, #tpu.memory_space<vmem>>, vector<512x128xbf16>
    %cst_4 = arith.constant dense<0.000000e+00> : vector<32x128xf32>
    %9 = tpu.matmul %7, %8, %cst_4 {dimension_numbers = #tpu.dot_dimension_numbers<[1], [0], [0], [1], [0, 0, 1, 1], [], []>} : vector<32x512xbf16>, vector<512x128xbf16>, vector<32x128xf32> -> vector<32x128xf32>
    %c0_5 = arith.constant 0 : index
    %c0_6 = arith.constant 0 : index
    %10 = vector.load %arg5[%c0_5, %c0_6] : memref<32x128xf32, #tpu.memory_space<vmem>>, vector<32x128xf32>
    tpu.vector_store %arg5[%c0_5, %c0_6], %9 {strides = array<i32>} : memref<32x128xf32, #tpu.memory_space<vmem>>, vector<32x128xf32>,
    %cst_7 = arith.constant dense<0.000000e+00> : vector<128xf32>
    %11 = vector.multi_reduction <add>, %9, %cst_7 [0] : vector<32x128xf32> to vector<128xf32>
    %12 = vector.shape_cast %11 : vector<128xf32> to vector<1x128xf32>
    %13 = vector.shape_cast %12 : vector<1x128xf32> to vector<1x128xf32>
    %14 = vector.broadcast %13 : vector<1x128xf32> to vector<8x128xf32>
    %c0_8 = arith.constant 0 : index
    %c0_9 = arith.constant 0 : index
    %15 = vector.load %arg6[%c0_8, %c0_9] : memref<8x128xf32, #tpu.memory_space<vmem>>, vector<8x128xf32>
    tpu.vector_store %arg6[%c0_8, %c0_9], %14 {strides = array<i32>} : memref<8x128xf32, #tpu.memory_space<vmem>>, vector<8x128xf32>,
    %16 = arith.mulf %9, %9 : vector<32x128xf32>
    %cst_10 = arith.constant dense<0.000000e+00> : vector<128xf32>
    %17 = vector.multi_reduction <add>, %16, %cst_10 [0] : vector<32x128xf32> to vector<128xf32>
    %18 = vector.shape_cast %17 : vector<128xf32> to vector<1x128xf32>
    %19 = vector.shape_cast %18 : vector<1x128xf32> to vector<1x128xf32>
    %20 = vector.broadcast %19 : vector<1x128xf32> to vector<8x128xf32>
    %c0_11 = arith.constant 0 : index
    %c0_12 = arith.constant 0 : index
    %21 = vector.load %arg7[%c0_11, %c0_12] : memref<8x128xf32, #tpu.memory_space<vmem>>, vector<8x128xf32>
    tpu.vector_store %arg7[%c0_11, %c0_12], %20 {strides = array<i32>} : memref<8x128xf32, #tpu.memory_space<vmem>>, vector<8x128xf32>,
    return
  }
  func.func @transform_0(%arg0: i32, %arg1: i32, %arg2: i32) -> (i32, i32) {
    %c0_i32 = arith.constant 0 : i32
    return %arg0, %arg2 : i32, i32
  }
  func.func @transform_1(%arg0: i32, %arg1: i32, %arg2: i32) -> (i32, i32) {
    %c0_i32 = arith.constant 0 : i32
    return %arg2, %arg1 : i32, i32
  }
  func.func @transform_2(%arg0: i32, %arg1: i32, %arg2: i32) -> (i32, i32) {
    %c0_i32 = arith.constant 0 : i32
    return %arg0, %arg1 : i32, i32
  }
  func.func @transform_3(%arg0: i32, %arg1: i32, %arg2: i32) -> (i32, i32) {
    %c0_i32 = arith.constant 0 : i32
    return %arg0, %arg1 : i32, i32
  }
  func.func @transform_4(%arg0: i32, %arg1: i32, %arg2: i32) -> (i32, i32) {
    %c0_i32 = arith.constant 0 : i32
    return %arg0, %arg1 : i32, i32
  }
}

module attributes {stable_mosaic.version = 11 : i64} {
  func.func @kernel(%arg0: i32, %arg1: i32, %arg2: i32, %arg3: memref<16x512xbf16, #tpu.memory_space<vmem>>, %arg4: memref<512x128xbf16, #tpu.memory_space<vmem>>, %arg5: memref<16x128xf32, #tpu.memory_space<vmem>>, %arg6: memref<8x128xf32, #tpu.memory_space<vmem>>, %arg7: memref<8x128xf32, #tpu.memory_space<vmem>>, %arg8: memref<16x128xf32, #tpu.memory_space<vmem>>) attributes {dimension_semantics = [#tpu.dimension_semantics<parallel>, #tpu.dimension_semantics<parallel>, #tpu.dimension_semantics<arbitrary>], iteration_bounds = array<i64: 1, 1, 2>, scalar_prefetch = 0 : i64, scratch_operands = 1 : i64, tpu.core_type = #tpu.core_type<tc>, window_params = [{transform_indices = @transform_0, window_bounds = array<i64: 16, 512>}, {transform_indices = @transform_1, window_bounds = array<i64: 512, 128>}, {transform_indices = @transform_2, window_bounds = array<i64: 16, 128>}, {transform_indices = @transform_3, window_bounds = array<i64: 8, 128>}, {transform_indices = @transform_4, window_bounds = array<i64: 8, 128>}]} {
    %c0 = arith.constant 0 : index
    %c0_0 = arith.constant 0 : index
    %0 = vector.load %arg3[%c0, %c0_0] : memref<16x512xbf16, #tpu.memory_space<vmem>>, vector<16x512xbf16>
    %1 = arith.extf %0 : vector<16x512xbf16> to vector<16x512xf32>
    %cst = arith.constant 0.000000e+00 : f32
    %2 = vector.broadcast %cst : f32 to vector<16x512xf32>
    %3 = arith.cmpf ogt, %1, %2 : vector<16x512xf32>
    %cst_1 = arith.constant 2.000000e-01 : f32
    %4 = vector.broadcast %cst_1 : f32 to vector<16x512xf32>
    %5 = arith.mulf %4, %1 : vector<16x512xf32>
    %6 = arith.select %3, %1, %5 : vector<16x512xi1>, vector<16x512xf32>
    %7 = arith.truncf %6 : vector<16x512xf32> to vector<16x512xbf16>
    %c0_2 = arith.constant 0 : index
    %c0_3 = arith.constant 0 : index
    %8 = vector.load %arg4[%c0_2, %c0_3] : memref<512x128xbf16, #tpu.memory_space<vmem>>, vector<512x128xbf16>
    %cst_4 = arith.constant dense<0.000000e+00> : vector<16x128xf32>
    %9 = tpu.matmul %7, %8, %cst_4 {dimension_numbers = #tpu.dot_dimension_numbers<[1], [0], [0], [1], [0, 0, 1, 1], [], []>} : vector<16x512xbf16>, vector<512x128xbf16>, vector<16x128xf32> -> vector<16x128xf32>
    %c0_i32 = arith.constant 0 : i32
    %10 = arith.cmpi eq, %arg2, %c0_i32 : i32
    %11 = arith.extui %10 : i1 to i32
    %c0_i32_5 = arith.constant 0 : i32
    %12 = arith.cmpi ne, %11, %c0_i32_5 : i32
    scf.if %12 {
      %c0_9 = arith.constant 0 : index
      %c0_10 = arith.constant 0 : index
      %19 = vector.load %arg8[%c0_9, %c0_10] : memref<16x128xf32, #tpu.memory_space<vmem>>, vector<16x128xf32>
      tpu.vector_store %arg8[%c0_9, %c0_10], %9 {strides = array<i32>} : memref<16x128xf32, #tpu.memory_space<vmem>>, vector<16x128xf32>,
    } else {
    }
    %c0_i32_6 = arith.constant 0 : i32
    %13 = arith.cmpi sgt, %arg2, %c0_i32_6 : i32
    %14 = arith.extui %13 : i1 to i32
    %c0_i32_7 = arith.constant 0 : i32
    %15 = arith.cmpi ne, %14, %c0_i32_7 : i32
    scf.if %15 {
      %c0_9 = arith.constant 0 : index
      %c0_10 = arith.constant 0 : index
      %19 = vector.load %arg8[%c0_9, %c0_10] : memref<16x128xf32, #tpu.memory_space<vmem>>, vector<16x128xf32>
      %20 = arith.addf %19, %9 : vector<16x128xf32>
      %c0_11 = arith.constant 0 : index
      %c0_12 = arith.constant 0 : index
      %21 = vector.load %arg8[%c0_11, %c0_12] : memref<16x128xf32, #tpu.memory_space<vmem>>, vector<16x128xf32>
      tpu.vector_store %arg8[%c0_11, %c0_12], %20 {strides = array<i32>} : memref<16x128xf32, #tpu.memory_space<vmem>>, vector<16x128xf32>,
    } else {
    }
    %c1_i32 = arith.constant 1 : i32
    %16 = arith.cmpi eq, %arg2, %c1_i32 : i32
    %17 = arith.extui %16 : i1 to i32
    %c0_i32_8 = arith.constant 0 : i32
    %18 = arith.cmpi ne, %17, %c0_i32_8 : i32
    scf.if %18 {
      %c0_9 = arith.constant 0 : index
      %c0_10 = arith.constant 0 : index
      %19 = vector.load %arg8[%c0_9, %c0_10] : memref<16x128xf32, #tpu.memory_space<vmem>>, vector<16x128xf32>
      %c0_11 = arith.constant 0 : index
      %c0_12 = arith.constant 0 : index
      %20 = vector.load %arg5[%c0_11, %c0_12] : memref<16x128xf32, #tpu.memory_space<vmem>>, vector<16x128xf32>
      tpu.vector_store %arg5[%c0_11, %c0_12], %19 {strides = array<i32>} : memref<16x128xf32, #tpu.memory_space<vmem>>, vector<16x128xf32>,
      %cst_13 = arith.constant dense<0.000000e+00> : vector<128xf32>
      %21 = vector.multi_reduction <add>, %19, %cst_13 [0] : vector<16x128xf32> to vector<128xf32>
      %22 = vector.shape_cast %21 : vector<128xf32> to vector<1x128xf32>
      %23 = vector.shape_cast %22 : vector<1x128xf32> to vector<1x128xf32>
      %24 = vector.broadcast %23 : vector<1x128xf32> to vector<8x128xf32>
      %c0_14 = arith.constant 0 : index
      %c0_15 = arith.constant 0 : index
      %25 = vector.load %arg6[%c0_14, %c0_15] : memref<8x128xf32, #tpu.memory_space<vmem>>, vector<8x128xf32>
      tpu.vector_store %arg6[%c0_14, %c0_15], %24 {strides = array<i32>} : memref<8x128xf32, #tpu.memory_space<vmem>>, vector<8x128xf32>,
      %26 = arith.mulf %19, %19 : vector<16x128xf32>
      %cst_16 = arith.constant dense<0.000000e+00> : vector<128xf32>
      %27 = vector.multi_reduction <add>, %26, %cst_16 [0] : vector<16x128xf32> to vector<128xf32>
      %28 = vector.shape_cast %27 : vector<128xf32> to vector<1x128xf32>
      %29 = vector.shape_cast %28 : vector<1x128xf32> to vector<1x128xf32>
      %30 = vector.broadcast %29 : vector<1x128xf32> to vector<8x128xf32>
      %c0_17 = arith.constant 0 : index
      %c0_18 = arith.constant 0 : index
      %31 = vector.load %arg7[%c0_17, %c0_18] : memref<8x128xf32, #tpu.memory_space<vmem>>, vector<8x128xf32>
      tpu.vector_store %arg7[%c0_17, %c0_18], %30 {strides = array<i32>} : memref<8x128xf32, #tpu.memory_space<vmem>>, vector<8x128xf32>,
    } else {
    }
    return
  }
  func.func @transform_0(%arg0: i32, %arg1: i32, %arg2: i32) -> (i32, i32) {
    %c0_i32 = arith.constant 0 : i32
    return %arg0, %arg2 : i32, i32
  }
  func.func @transform_1(%arg0: i32, %arg1: i32, %arg2: i32) -> (i32, i32) {
    %c0_i32 = arith.constant 0 : i32
    return %arg2, %arg1 : i32, i32
  }
  func.func @transform_2(%arg0: i32, %arg1: i32, %arg2: i32) -> (i32, i32) {
    %c0_i32 = arith.constant 0 : i32
    return %arg0, %arg1 : i32, i32
  }
  func.func @transform_3(%arg0: i32, %arg1: i32, %arg2: i32) -> (i32, i32) {
    %c0_i32 = arith.constant 0 : i32
    return %arg0, %arg1 : i32, i32
  }
  func.func @transform_4(%arg0: i32, %arg1: i32, %arg2: i32) -> (i32, i32) {
    %c0_i32 = arith.constant 0 : i32
    return %arg0, %arg1 : i32, i32
  }
}

module attributes {stable_mosaic.version = 11 : i64} {
  func.func @kernel(%arg0: i32, %arg1: i32, %arg2: i32, %arg3: memref<16x128xbf16, #tpu.memory_space<vmem>>, %arg4: memref<128x512xbf16, #tpu.memory_space<vmem>>, %arg5: memref<16x512xf32, #tpu.memory_space<vmem>>) attributes {dimension_semantics = [#tpu.dimension_semantics<parallel>, #tpu.dimension_semantics<parallel>, #tpu.dimension_semantics<arbitrary>], iteration_bounds = array<i64: 1, 2, 1>, scalar_prefetch = 0 : i64, scratch_operands = 0 : i64, tpu.core_type = #tpu.core_type<tc>, window_params = [{transform_indices = @transform_0, window_bounds = array<i64: 16, 128>}, {transform_indices = @transform_1, window_bounds = array<i64: 128, 512>}, {transform_indices = @transform_2, window_bounds = array<i64: 16, 512>}]} {
    %c0 = arith.constant 0 : index
    %c0_0 = arith.constant 0 : index
    %0 = vector.load %arg3[%c0, %c0_0] : memref<16x128xbf16, #tpu.memory_space<vmem>>, vector<16x128xbf16>
    %1 = arith.extf %0 : vector<16x128xbf16> to vector<16x128xf32>
    %cst = arith.constant 0.000000e+00 : f32
    %2 = vector.broadcast %cst : f32 to vector<16x128xf32>
    %3 = arith.maximumf %1, %2 : vector<16x128xf32>
    %4 = arith.truncf %3 : vector<16x128xf32> to vector<16x128xbf16>
    %c0_1 = arith.constant 0 : index
    %c0_2 = arith.constant 0 : index
    %5 = vector.load %arg4[%c0_1, %c0_2] : memref<128x512xbf16, #tpu.memory_space<vmem>>, vector<128x512xbf16>
    %cst_3 = arith.constant dense<0.000000e+00> : vector<16x512xf32>
    %6 = tpu.matmul %4, %5, %cst_3 {dimension_numbers = #tpu.dot_dimension_numbers<[1], [0], [0], [1], [0, 0, 1, 1], [], []>} : vector<16x128xbf16>, vector<128x512xbf16>, vector<16x512xf32> -> vector<16x512xf32>
    %c0_4 = arith.constant 0 : index
    %c0_5 = arith.constant 0 : index
    %7 = vector.load %arg5[%c0_4, %c0_5] : memref<16x512xf32, #tpu.memory_space<vmem>>, vector<16x512xf32>
    tpu.vector_store %arg5[%c0_4, %c0_5], %6 {strides = array<i32>} : memref<16x512xf32, #tpu.memory_space<vmem>>, vector<16x512xf32>,
    return
  }
  func.func @transform_0(%arg0: i32, %arg1: i32, %arg2: i32) -> (i32, i32) {
    %c0_i32 = arith.constant 0 : i32
    return %arg0, %arg2 : i32, i32
  }
  func.func @transform_1(%arg0: i32, %arg1: i32, %arg2: i32) -> (i32, i32) {
    %c0_i32 = arith.constant 0 : i32
    return %arg2, %arg1 : i32, i32
  }
  func.func @transform_2(%arg0: i32, %arg1: i32, %arg2: i32) -> (i32, i32) {
    %c0_i32 = arith.constant 0 : i32
    return %arg0, %arg1 : i32, i32
  }
}

module attributes {stable_mosaic.version = 11 : i64} {
  func.func @kernel(%arg0: i32, %arg1: i32, %arg2: i32, %arg3: memref<16x512xbf16, #tpu.memory_space<vmem>>, %arg4: memref<512x128xbf16, #tpu.memory_space<vmem>>, %arg5: memref<16x128xf32, #tpu.memory_space<vmem>>, %arg6: memref<16x128xf32, #tpu.memory_space<vmem>>) attributes {dimension_semantics = [#tpu.dimension_semantics<parallel>, #tpu.dimension_semantics<parallel>, #tpu.dimension_semantics<arbitrary>], iteration_bounds = array<i64: 1, 1, 2>, scalar_prefetch = 0 : i64, scratch_operands = 1 : i64, tpu.core_type = #tpu.core_type<tc>, window_params = [{transform_indices = @transform_0, window_bounds = array<i64: 16, 512>}, {transform_indices = @transform_1, window_bounds = array<i64: 512, 128>}, {transform_indices = @transform_2, window_bounds = array<i64: 16, 128>}]} {
    %c0 = arith.constant 0 : index
    %c0_0 = arith.constant 0 : index
    %0 = vector.load %arg3[%c0, %c0_0] : memref<16x512xbf16, #tpu.memory_space<vmem>>, vector<16x512xbf16>
    %1 = arith.extf %0 : vector<16x512xbf16> to vector<16x512xf32>
    %cst = arith.constant 0.000000e+00 : f32
    %2 = vector.broadcast %cst : f32 to vector<16x512xf32>
    %3 = arith.cmpf ogt, %1, %2 : vector<16x512xf32>
    %cst_1 = arith.constant 2.000000e-01 : f32
    %4 = vector.broadcast %cst_1 : f32 to vector<16x512xf32>
    %5 = arith.mulf %4, %1 : vector<16x512xf32>
    %6 = arith.select %3, %1, %5 : vector<16x512xi1>, vector<16x512xf32>
    %7 = arith.truncf %6 : vector<16x512xf32> to vector<16x512xbf16>
    %c0_2 = arith.constant 0 : index
    %c0_3 = arith.constant 0 : index
    %8 = vector.load %arg4[%c0_2, %c0_3] : memref<512x128xbf16, #tpu.memory_space<vmem>>, vector<512x128xbf16>
    %cst_4 = arith.constant dense<0.000000e+00> : vector<16x128xf32>
    %9 = tpu.matmul %7, %8, %cst_4 {dimension_numbers = #tpu.dot_dimension_numbers<[1], [0], [0], [1], [0, 0, 1, 1], [], []>} : vector<16x512xbf16>, vector<512x128xbf16>, vector<16x128xf32> -> vector<16x128xf32>
    %c0_i32 = arith.constant 0 : i32
    %10 = arith.cmpi eq, %arg2, %c0_i32 : i32
    %11 = arith.extui %10 : i1 to i32
    %c0_i32_5 = arith.constant 0 : i32
    %12 = arith.cmpi ne, %11, %c0_i32_5 : i32
    scf.if %12 {
      %c0_9 = arith.constant 0 : index
      %c0_10 = arith.constant 0 : index
      %19 = vector.load %arg6[%c0_9, %c0_10] : memref<16x128xf32, #tpu.memory_space<vmem>>, vector<16x128xf32>
      tpu.vector_store %arg6[%c0_9, %c0_10], %9 {strides = array<i32>} : memref<16x128xf32, #tpu.memory_space<vmem>>, vector<16x128xf32>,
    } else {
    }
    %c0_i32_6 = arith.constant 0 : i32
    %13 = arith.cmpi sgt, %arg2, %c0_i32_6 : i32
    %14 = arith.extui %13 : i1 to i32
    %c0_i32_7 = arith.constant 0 : i32
    %15 = arith.cmpi ne, %14, %c0_i32_7 : i32
    scf.if %15 {
      %c0_9 = arith.constant 0 : index
      %c0_10 = arith.constant 0 : index
      %19 = vector.load %arg6[%c0_9, %c0_10] : memref<16x128xf32, #tpu.memory_space<vmem>>, vector<16x128xf32>
      %20 = arith.addf %19, %9 : vector<16x128xf32>
      %c0_11 = arith.constant 0 : index
      %c0_12 = arith.constant 0 : index
      %21 = vector.load %arg6[%c0_11, %c0_12] : memref<16x128xf32, #tpu.memory_space<vmem>>, vector<16x128xf32>
      tpu.vector_store %arg6[%c0_11, %c0_12], %20 {strides = array<i32>} : memref<16x128xf32, #tpu.memory_space<vmem>>, vector<16x128xf32>,
    } else {
    }
    %c1_i32 = arith.constant 1 : i32
    %16 = arith.cmpi eq, %arg2, %c1_i32 : i32
    %17 = arith.extui %16 : i1 to i32
    %c0_i32_8 = arith.constant 0 : i32
    %18 = arith.cmpi ne, %17, %c0_i32_8 : i32
    scf.if %18 {
      %c0_9 = arith.constant 0 : index
      %c0_10 = arith.constant 0 : index
      %19 = vector.load %arg6[%c0_9, %c0_10] : memref<16x128xf32, #tpu.memory_space<vmem>>, vector<16x128xf32>
      %c0_11 = arith.constant 0 : index
      %c0_12 = arith.constant 0 : index
      %20 = vector.load %arg5[%c0_11, %c0_12] : memref<16x128xf32, #tpu.memory_space<vmem>>, vector<16x128xf32>
      tpu.vector_store %arg5[%c0_11, %c0_12], %19 {strides = array<i32>} : memref<16x128xf32, #tpu.memory_space<vmem>>, vector<16x128xf32>,
    } else {
    }
    return
  }
  func.func @transform_0(%arg0: i32, %arg1: i32, %arg2: i32) -> (i32, i32) {
    %c0_i32 = arith.constant 0 : i32
    return %arg0, %arg2 : i32, i32
  }
  func.func @transform_1(%arg0: i32, %arg1: i32, %arg2: i32) -> (i32, i32) {
    %c0_i32 = arith.constant 0 : i32
    return %arg2, %arg1 : i32, i32
  }
  func.func @transform_2(%arg0: i32, %arg1: i32, %arg2: i32) -> (i32, i32) {
    %c0_i32 = arith.constant 0 : i32
    return %arg0, %arg1 : i32, i32
  }
}

module attributes {stable_mosaic.version = 11 : i64} {
  func.func @_bn_stats_kernel(%arg0: i32, %arg1: memref<8x128xf32, #tpu.memory_space<vmem>>, %arg2: memref<1x128xf32, #tpu.memory_space<vmem>>, %arg3: memref<1x128xf32, #tpu.memory_space<vmem>>) attributes {dimension_semantics = [#tpu.dimension_semantics<arbitrary>], iteration_bounds = array<i64: 1>, scalar_prefetch = 0 : i64, scratch_operands = 0 : i64, tpu.core_type = #tpu.core_type<tc>, window_params = [{transform_indices = @transform_0, window_bounds = array<i64: 8, 128>}, {pipeline_mode = #tpu.pipeline_mode<synchronous>, transform_indices = @transform_1, window_bounds = array<i64: 1, 128>}, {pipeline_mode = #tpu.pipeline_mode<synchronous>, transform_indices = @transform_2, window_bounds = array<i64: 1, 128>}]} {
    %c0_i32 = arith.constant 0 : i32
    %0 = arith.cmpi eq, %arg0, %c0_i32 : i32
    %1 = arith.extui %0 : i1 to i32
    %c0_i32_0 = arith.constant 0 : i32
    %2 = arith.cmpi ne, %1, %c0_i32_0 : i32
    scf.if %2 {
      %cst_11 = arith.constant 0.000000e+00 : f32
      %15 = vector.broadcast %cst_11 : f32 to vector<1x128xf32>
      %c0_12 = arith.constant 0 : index
      %c0_13 = arith.constant 0 : index
      %16 = vector.load %arg2[%c0_12, %c0_13] : memref<1x128xf32, #tpu.memory_space<vmem>>, vector<1x128xf32>
      tpu.vector_store %arg2[%c0_12, %c0_13], %15 {strides = array<i32>} : memref<1x128xf32, #tpu.memory_space<vmem>>, vector<1x128xf32>,
      %cst_14 = arith.constant 0.000000e+00 : f32
      %17 = vector.broadcast %cst_14 : f32 to vector<1x128xf32>
      %c0_15 = arith.constant 0 : index
      %c0_16 = arith.constant 0 : index
      %18 = vector.load %arg3[%c0_15, %c0_16] : memref<1x128xf32, #tpu.memory_space<vmem>>, vector<1x128xf32>
      tpu.vector_store %arg3[%c0_15, %c0_16], %17 {strides = array<i32>} : memref<1x128xf32, #tpu.memory_space<vmem>>, vector<1x128xf32>,
    } else {
    }
    %c0 = arith.constant 0 : index
    %c0_1 = arith.constant 0 : index
    %3 = vector.load %arg1[%c0, %c0_1] : memref<8x128xf32, #tpu.memory_space<vmem>>, vector<8x128xf32>
    %c0_2 = arith.constant 0 : index
    %c0_3 = arith.constant 0 : index
    %4 = vector.load %arg2[%c0_2, %c0_3] : memref<1x128xf32, #tpu.memory_space<vmem>>, vector<1x128xf32>
    %cst = arith.constant dense<0.000000e+00> : vector<128xf32>
    %5 = vector.multi_reduction <add>, %3, %cst [0] : vector<8x128xf32> to vector<128xf32>
    %6 = vector.shape_cast %5 : vector<128xf32> to vector<1x128xf32>
    %7 = arith.addf %4, %6 : vector<1x128xf32>
    %c0_4 = arith.constant 0 : index
    %c0_5 = arith.constant 0 : index
    %8 = vector.load %arg2[%c0_4, %c0_5] : memref<1x128xf32, #tpu.memory_space<vmem>>, vector<1x128xf32>
    tpu.vector_store %arg2[%c0_4, %c0_5], %7 {strides = array<i32>} : memref<1x128xf32, #tpu.memory_space<vmem>>, vector<1x128xf32>,
    %c0_6 = arith.constant 0 : index
    %c0_7 = arith.constant 0 : index
    %9 = vector.load %arg3[%c0_6, %c0_7] : memref<1x128xf32, #tpu.memory_space<vmem>>, vector<1x128xf32>
    %10 = arith.mulf %3, %3 : vector<8x128xf32>
    %cst_8 = arith.constant dense<0.000000e+00> : vector<128xf32>
    %11 = vector.multi_reduction <add>, %10, %cst_8 [0] : vector<8x128xf32> to vector<128xf32>
    %12 = vector.shape_cast %11 : vector<128xf32> to vector<1x128xf32>
    %13 = arith.addf %9, %12 : vector<1x128xf32>
    %c0_9 = arith.constant 0 : index
    %c0_10 = arith.constant 0 : index
    %14 = vector.load %arg3[%c0_9, %c0_10] : memref<1x128xf32, #tpu.memory_space<vmem>>, vector<1x128xf32>
    tpu.vector_store %arg3[%c0_9, %c0_10], %13 {strides = array<i32>} : memref<1x128xf32, #tpu.memory_space<vmem>>, vector<1x128xf32>,
    return
  }
  func.func @transform_0(%arg0: i32) -> (i32, i32) {
    %c0_i32 = arith.constant 0 : i32
    %c0_i32_0 = arith.constant 0 : i32
    return %arg0, %c0_i32 : i32, i32
  }
  func.func @transform_1(%arg0: i32) -> (i32, i32) {
    %c0_i32 = arith.constant 0 : i32
    %c0_i32_0 = arith.constant 0 : i32
    %c0_i32_1 = arith.constant 0 : i32
    return %c0_i32, %c0_i32_0 : i32, i32
  }
  func.func @transform_2(%arg0: i32) -> (i32, i32) {
    %c0_i32 = arith.constant 0 : i32
    %c0_i32_0 = arith.constant 0 : i32
    %c0_i32_1 = arith.constant 0 : i32
    return %c0_i32, %c0_i32_0 : i32, i32
  }
}

module attributes {stable_mosaic.version = 11 : i64} {
  func.func @kernel(%arg0: i32, %arg1: i32, %arg2: i32, %arg3: memref<16x128xbf16, #tpu.memory_space<vmem>>, %arg4: memref<16x128xbf16, #tpu.memory_space<vmem>>, %arg5: memref<1x128xf32, #tpu.memory_space<vmem>>, %arg6: memref<1x128xf32, #tpu.memory_space<vmem>>, %arg7: memref<1x128xf32, #tpu.memory_space<vmem>>, %arg8: memref<1x128xf32, #tpu.memory_space<vmem>>, %arg9: memref<128x512xbf16, #tpu.memory_space<vmem>>, %arg10: memref<128x512xbf16, #tpu.memory_space<vmem>>, %arg11: memref<16x512xf32, #tpu.memory_space<vmem>>) attributes {dimension_semantics = [#tpu.dimension_semantics<parallel>, #tpu.dimension_semantics<parallel>, #tpu.dimension_semantics<arbitrary>], iteration_bounds = array<i64: 1, 2, 1>, scalar_prefetch = 0 : i64, scratch_operands = 0 : i64, tpu.core_type = #tpu.core_type<tc>, window_params = [{transform_indices = @transform_0, window_bounds = array<i64: 16, 128>}, {transform_indices = @transform_1, window_bounds = array<i64: 16, 128>}, {transform_indices = @transform_2, window_bounds = array<i64: 1, 128>}, {transform_indices = @transform_3, window_bounds = array<i64: 1, 128>}, {transform_indices = @transform_4, window_bounds = array<i64: 1, 128>}, {transform_indices = @transform_5, window_bounds = array<i64: 1, 128>}, {transform_indices = @transform_6, window_bounds = array<i64: 128, 512>}, {transform_indices = @transform_7, window_bounds = array<i64: 128, 512>}, {transform_indices = @transform_8, window_bounds = array<i64: 16, 512>}]} {
    %c0 = arith.constant 0 : index
    %c0_0 = arith.constant 0 : index
    %0 = vector.load %arg3[%c0, %c0_0] : memref<16x128xbf16, #tpu.memory_space<vmem>>, vector<16x128xbf16>
    %c0_1 = arith.constant 0 : index
    %c0_2 = arith.constant 0 : index
    %1 = vector.load %arg5[%c0_1, %c0_2] : memref<1x128xf32, #tpu.memory_space<vmem>>, vector<1x128xf32>
    %c0_3 = arith.constant 0 : index
    %c0_4 = arith.constant 0 : index
    %2 = vector.load %arg6[%c0_3, %c0_4] : memref<1x128xf32, #tpu.memory_space<vmem>>, vector<1x128xf32>
    %3 = arith.extf %0 : vector<16x128xbf16> to vector<16x128xf32>
    %4 = vector.broadcast %1 : vector<1x128xf32> to vector<16x128xf32>
    %5 = arith.mulf %3, %4 : vector<16x128xf32>
    %6 = vector.broadcast %2 : vector<1x128xf32> to vector<16x128xf32>
    %7 = arith.addf %5, %6 : vector<16x128xf32>
    %cst = arith.constant 0.000000e+00 : f32
    %8 = vector.broadcast %cst : f32 to vector<16x128xf32>
    %9 = arith.maximumf %7, %8 : vector<16x128xf32>
    %10 = arith.truncf %9 : vector<16x128xf32> to vector<16x128xbf16>
    %c0_5 = arith.constant 0 : index
    %c0_6 = arith.constant 0 : index
    %11 = vector.load %arg9[%c0_5, %c0_6] : memref<128x512xbf16, #tpu.memory_space<vmem>>, vector<128x512xbf16>
    %cst_7 = arith.constant dense<0.000000e+00> : vector<16x512xf32>
    %12 = tpu.matmul %10, %11, %cst_7 {dimension_numbers = #tpu.dot_dimension_numbers<[1], [0], [0], [1], [0, 0, 1, 1], [], []>} : vector<16x128xbf16>, vector<128x512xbf16>, vector<16x512xf32> -> vector<16x512xf32>
    %c0_8 = arith.constant 0 : index
    %c0_9 = arith.constant 0 : index
    %13 = vector.load %arg4[%c0_8, %c0_9] : memref<16x128xbf16, #tpu.memory_space<vmem>>, vector<16x128xbf16>
    %c0_10 = arith.constant 0 : index
    %c0_11 = arith.constant 0 : index
    %14 = vector.load %arg7[%c0_10, %c0_11] : memref<1x128xf32, #tpu.memory_space<vmem>>, vector<1x128xf32>
    %c0_12 = arith.constant 0 : index
    %c0_13 = arith.constant 0 : index
    %15 = vector.load %arg8[%c0_12, %c0_13] : memref<1x128xf32, #tpu.memory_space<vmem>>, vector<1x128xf32>
    %16 = arith.extf %13 : vector<16x128xbf16> to vector<16x128xf32>
    %17 = vector.broadcast %14 : vector<1x128xf32> to vector<16x128xf32>
    %18 = arith.mulf %16, %17 : vector<16x128xf32>
    %19 = vector.broadcast %15 : vector<1x128xf32> to vector<16x128xf32>
    %20 = arith.addf %18, %19 : vector<16x128xf32>
    %cst_14 = arith.constant 0.000000e+00 : f32
    %21 = vector.broadcast %cst_14 : f32 to vector<16x128xf32>
    %22 = arith.maximumf %20, %21 : vector<16x128xf32>
    %23 = arith.truncf %22 : vector<16x128xf32> to vector<16x128xbf16>
    %c0_15 = arith.constant 0 : index
    %c0_16 = arith.constant 0 : index
    %24 = vector.load %arg10[%c0_15, %c0_16] : memref<128x512xbf16, #tpu.memory_space<vmem>>, vector<128x512xbf16>
    %cst_17 = arith.constant dense<0.000000e+00> : vector<16x512xf32>
    %25 = tpu.matmul %23, %24, %cst_17 {dimension_numbers = #tpu.dot_dimension_numbers<[1], [0], [0], [1], [0, 0, 1, 1], [], []>} : vector<16x128xbf16>, vector<128x512xbf16>, vector<16x512xf32> -> vector<16x512xf32>
    %26 = arith.addf %12, %25 : vector<16x512xf32>
    %c0_18 = arith.constant 0 : index
    %c0_19 = arith.constant 0 : index
    %27 = vector.load %arg11[%c0_18, %c0_19] : memref<16x512xf32, #tpu.memory_space<vmem>>, vector<16x512xf32>
    tpu.vector_store %arg11[%c0_18, %c0_19], %26 {strides = array<i32>} : memref<16x512xf32, #tpu.memory_space<vmem>>, vector<16x512xf32>,
    return
  }
  func.func @transform_0(%arg0: i32, %arg1: i32, %arg2: i32) -> (i32, i32) {
    %c0_i32 = arith.constant 0 : i32
    return %arg0, %arg2 : i32, i32
  }
  func.func @transform_1(%arg0: i32, %arg1: i32, %arg2: i32) -> (i32, i32) {
    %c0_i32 = arith.constant 0 : i32
    return %arg0, %arg2 : i32, i32
  }
  func.func @transform_2(%arg0: i32, %arg1: i32, %arg2: i32) -> (i32, i32) {
    %c0_i32 = arith.constant 0 : i32
    %c0_i32_0 = arith.constant 0 : i32
    return %c0_i32, %arg2 : i32, i32
  }
  func.func @transform_3(%arg0: i32, %arg1: i32, %arg2: i32) -> (i32, i32) {
    %c0_i32 = arith.constant 0 : i32
    %c0_i32_0 = arith.constant 0 : i32
    return %c0_i32, %arg2 : i32, i32
  }
  func.func @transform_4(%arg0: i32, %arg1: i32, %arg2: i32) -> (i32, i32) {
    %c0_i32 = arith.constant 0 : i32
    %c0_i32_0 = arith.constant 0 : i32
    return %c0_i32, %arg2 : i32, i32
  }
  func.func @transform_5(%arg0: i32, %arg1: i32, %arg2: i32) -> (i32, i32) {
    %c0_i32 = arith.constant 0 : i32
    %c0_i32_0 = arith.constant 0 : i32
    return %c0_i32, %arg2 : i32, i32
  }
  func.func @transform_6(%arg0: i32, %arg1: i32, %arg2: i32) -> (i32, i32) {
    %c0_i32 = arith.constant 0 : i32
    return %arg2, %arg1 : i32, i32
  }
  func.func @transform_7(%arg0: i32, %arg1: i32, %arg2: i32) -> (i32, i32) {
    %c0_i32 = arith.constant 0 : i32
    return %arg2, %arg1 : i32, i32
  }
  func.func @transform_8(%arg0: i32, %arg1: i32, %arg2: i32) -> (i32, i32) {
    %c0_i32 = arith.constant 0 : i32
    return %arg0, %arg1 : i32, i32
  }
}

module attributes {stable_mosaic.version = 11 : i64} {
  func.func @_bn_stats_kernel(%arg0: i32, %arg1: memref<16x128xf32, #tpu.memory_space<vmem>>, %arg2: memref<1x128xf32, #tpu.memory_space<vmem>>, %arg3: memref<1x128xf32, #tpu.memory_space<vmem>>) attributes {dimension_semantics = [#tpu.dimension_semantics<arbitrary>], iteration_bounds = array<i64: 1>, scalar_prefetch = 0 : i64, scratch_operands = 0 : i64, tpu.core_type = #tpu.core_type<tc>, window_params = [{transform_indices = @transform_0, window_bounds = array<i64: 16, 128>}, {pipeline_mode = #tpu.pipeline_mode<synchronous>, transform_indices = @transform_1, window_bounds = array<i64: 1, 128>}, {pipeline_mode = #tpu.pipeline_mode<synchronous>, transform_indices = @transform_2, window_bounds = array<i64: 1, 128>}]} {
    %c0_i32 = arith.constant 0 : i32
    %0 = arith.cmpi eq, %arg0, %c0_i32 : i32
    %1 = arith.extui %0 : i1 to i32
    %c0_i32_0 = arith.constant 0 : i32
    %2 = arith.cmpi ne, %1, %c0_i32_0 : i32
    scf.if %2 {
      %cst_11 = arith.constant 0.000000e+00 : f32
      %15 = vector.broadcast %cst_11 : f32 to vector<1x128xf32>
      %c0_12 = arith.constant 0 : index
      %c0_13 = arith.constant 0 : index
      %16 = vector.load %arg2[%c0_12, %c0_13] : memref<1x128xf32, #tpu.memory_space<vmem>>, vector<1x128xf32>
      tpu.vector_store %arg2[%c0_12, %c0_13], %15 {strides = array<i32>} : memref<1x128xf32, #tpu.memory_space<vmem>>, vector<1x128xf32>,
      %cst_14 = arith.constant 0.000000e+00 : f32
      %17 = vector.broadcast %cst_14 : f32 to vector<1x128xf32>
      %c0_15 = arith.constant 0 : index
      %c0_16 = arith.constant 0 : index
      %18 = vector.load %arg3[%c0_15, %c0_16] : memref<1x128xf32, #tpu.memory_space<vmem>>, vector<1x128xf32>
      tpu.vector_store %arg3[%c0_15, %c0_16], %17 {strides = array<i32>} : memref<1x128xf32, #tpu.memory_space<vmem>>, vector<1x128xf32>,
    } else {
    }
    %c0 = arith.constant 0 : index
    %c0_1 = arith.constant 0 : index
    %3 = vector.load %arg1[%c0, %c0_1] : memref<16x128xf32, #tpu.memory_space<vmem>>, vector<16x128xf32>
    %c0_2 = arith.constant 0 : index
    %c0_3 = arith.constant 0 : index
    %4 = vector.load %arg2[%c0_2, %c0_3] : memref<1x128xf32, #tpu.memory_space<vmem>>, vector<1x128xf32>
    %cst = arith.constant dense<0.000000e+00> : vector<128xf32>
    %5 = vector.multi_reduction <add>, %3, %cst [0] : vector<16x128xf32> to vector<128xf32>
    %6 = vector.shape_cast %5 : vector<128xf32> to vector<1x128xf32>
    %7 = arith.addf %4, %6 : vector<1x128xf32>
    %c0_4 = arith.constant 0 : index
    %c0_5 = arith.constant 0 : index
    %8 = vector.load %arg2[%c0_4, %c0_5] : memref<1x128xf32, #tpu.memory_space<vmem>>, vector<1x128xf32>
    tpu.vector_store %arg2[%c0_4, %c0_5], %7 {strides = array<i32>} : memref<1x128xf32, #tpu.memory_space<vmem>>, vector<1x128xf32>,
    %c0_6 = arith.constant 0 : index
    %c0_7 = arith.constant 0 : index
    %9 = vector.load %arg3[%c0_6, %c0_7] : memref<1x128xf32, #tpu.memory_space<vmem>>, vector<1x128xf32>
    %10 = arith.mulf %3, %3 : vector<16x128xf32>
    %cst_8 = arith.constant dense<0.000000e+00> : vector<128xf32>
    %11 = vector.multi_reduction <add>, %10, %cst_8 [0] : vector<16x128xf32> to vector<128xf32>
    %12 = vector.shape_cast %11 : vector<128xf32> to vector<1x128xf32>
    %13 = arith.addf %9, %12 : vector<1x128xf32>
    %c0_9 = arith.constant 0 : index
    %c0_10 = arith.constant 0 : index
    %14 = vector.load %arg3[%c0_9, %c0_10] : memref<1x128xf32, #tpu.memory_space<vmem>>, vector<1x128xf32>
    tpu.vector_store %arg3[%c0_9, %c0_10], %13 {strides = array<i32>} : memref<1x128xf32, #tpu.memory_space<vmem>>, vector<1x128xf32>,
    return
  }
  func.func @transform_0(%arg0: i32) -> (i32, i32) {
    %c0_i32 = arith.constant 0 : i32
    %c0_i32_0 = arith.constant 0 : i32
    return %arg0, %c0_i32 : i32, i32
  }
  func.func @transform_1(%arg0: i32) -> (i32, i32) {
    %c0_i32 = arith.constant 0 : i32
    %c0_i32_0 = arith.constant 0 : i32
    %c0_i32_1 = arith.constant 0 : i32
    return %c0_i32, %c0_i32_0 : i32, i32
  }
  func.func @transform_2(%arg0: i32) -> (i32, i32) {
    %c0_i32 = arith.constant 0 : i32
    %c0_i32_0 = arith.constant 0 : i32
    %c0_i32_1 = arith.constant 0 : i32
    return %c0_i32, %c0_i32_0 : i32, i32
  }
}

module attributes {stable_mosaic.version = 11 : i64} {
  func.func @kernel(%arg0: i32, %arg1: i32, %arg2: i32, %arg3: memref<32x128xbf16, #tpu.memory_space<vmem>>, %arg4: memref<32x128xbf16, #tpu.memory_space<vmem>>, %arg5: memref<1x128xf32, #tpu.memory_space<vmem>>, %arg6: memref<1x128xf32, #tpu.memory_space<vmem>>, %arg7: memref<1x128xf32, #tpu.memory_space<vmem>>, %arg8: memref<1x128xf32, #tpu.memory_space<vmem>>, %arg9: memref<128x256xbf16, #tpu.memory_space<vmem>>, %arg10: memref<128x256xbf16, #tpu.memory_space<vmem>>, %arg11: memref<32x256xf32, #tpu.memory_space<vmem>>) attributes {dimension_semantics = [#tpu.dimension_semantics<parallel>, #tpu.dimension_semantics<parallel>, #tpu.dimension_semantics<arbitrary>], iteration_bounds = array<i64: 1, 2, 1>, scalar_prefetch = 0 : i64, scratch_operands = 0 : i64, tpu.core_type = #tpu.core_type<tc>, window_params = [{transform_indices = @transform_0, window_bounds = array<i64: 32, 128>}, {transform_indices = @transform_1, window_bounds = array<i64: 32, 128>}, {transform_indices = @transform_2, window_bounds = array<i64: 1, 128>}, {transform_indices = @transform_3, window_bounds = array<i64: 1, 128>}, {transform_indices = @transform_4, window_bounds = array<i64: 1, 128>}, {transform_indices = @transform_5, window_bounds = array<i64: 1, 128>}, {transform_indices = @transform_6, window_bounds = array<i64: 128, 256>}, {transform_indices = @transform_7, window_bounds = array<i64: 128, 256>}, {transform_indices = @transform_8, window_bounds = array<i64: 32, 256>}]} {
    %c0 = arith.constant 0 : index
    %c0_0 = arith.constant 0 : index
    %0 = vector.load %arg3[%c0, %c0_0] : memref<32x128xbf16, #tpu.memory_space<vmem>>, vector<32x128xbf16>
    %c0_1 = arith.constant 0 : index
    %c0_2 = arith.constant 0 : index
    %1 = vector.load %arg5[%c0_1, %c0_2] : memref<1x128xf32, #tpu.memory_space<vmem>>, vector<1x128xf32>
    %c0_3 = arith.constant 0 : index
    %c0_4 = arith.constant 0 : index
    %2 = vector.load %arg6[%c0_3, %c0_4] : memref<1x128xf32, #tpu.memory_space<vmem>>, vector<1x128xf32>
    %3 = arith.extf %0 : vector<32x128xbf16> to vector<32x128xf32>
    %4 = vector.broadcast %1 : vector<1x128xf32> to vector<32x128xf32>
    %5 = arith.mulf %3, %4 : vector<32x128xf32>
    %6 = vector.broadcast %2 : vector<1x128xf32> to vector<32x128xf32>
    %7 = arith.addf %5, %6 : vector<32x128xf32>
    %cst = arith.constant 0.000000e+00 : f32
    %8 = vector.broadcast %cst : f32 to vector<32x128xf32>
    %9 = arith.maximumf %7, %8 : vector<32x128xf32>
    %10 = arith.truncf %9 : vector<32x128xf32> to vector<32x128xbf16>
    %c0_5 = arith.constant 0 : index
    %c0_6 = arith.constant 0 : index
    %11 = vector.load %arg9[%c0_5, %c0_6] : memref<128x256xbf16, #tpu.memory_space<vmem>>, vector<128x256xbf16>
    %cst_7 = arith.constant dense<0.000000e+00> : vector<32x256xf32>
    %12 = tpu.matmul %10, %11, %cst_7 {dimension_numbers = #tpu.dot_dimension_numbers<[1], [0], [0], [1], [0, 0, 1, 1], [], []>} : vector<32x128xbf16>, vector<128x256xbf16>, vector<32x256xf32> -> vector<32x256xf32>
    %c0_8 = arith.constant 0 : index
    %c0_9 = arith.constant 0 : index
    %13 = vector.load %arg4[%c0_8, %c0_9] : memref<32x128xbf16, #tpu.memory_space<vmem>>, vector<32x128xbf16>
    %c0_10 = arith.constant 0 : index
    %c0_11 = arith.constant 0 : index
    %14 = vector.load %arg7[%c0_10, %c0_11] : memref<1x128xf32, #tpu.memory_space<vmem>>, vector<1x128xf32>
    %c0_12 = arith.constant 0 : index
    %c0_13 = arith.constant 0 : index
    %15 = vector.load %arg8[%c0_12, %c0_13] : memref<1x128xf32, #tpu.memory_space<vmem>>, vector<1x128xf32>
    %16 = arith.extf %13 : vector<32x128xbf16> to vector<32x128xf32>
    %17 = vector.broadcast %14 : vector<1x128xf32> to vector<32x128xf32>
    %18 = arith.mulf %16, %17 : vector<32x128xf32>
    %19 = vector.broadcast %15 : vector<1x128xf32> to vector<32x128xf32>
    %20 = arith.addf %18, %19 : vector<32x128xf32>
    %cst_14 = arith.constant 0.000000e+00 : f32
    %21 = vector.broadcast %cst_14 : f32 to vector<32x128xf32>
    %22 = arith.maximumf %20, %21 : vector<32x128xf32>
    %23 = arith.truncf %22 : vector<32x128xf32> to vector<32x128xbf16>
    %c0_15 = arith.constant 0 : index
    %c0_16 = arith.constant 0 : index
    %24 = vector.load %arg10[%c0_15, %c0_16] : memref<128x256xbf16, #tpu.memory_space<vmem>>, vector<128x256xbf16>
    %cst_17 = arith.constant dense<0.000000e+00> : vector<32x256xf32>
    %25 = tpu.matmul %23, %24, %cst_17 {dimension_numbers = #tpu.dot_dimension_numbers<[1], [0], [0], [1], [0, 0, 1, 1], [], []>} : vector<32x128xbf16>, vector<128x256xbf16>, vector<32x256xf32> -> vector<32x256xf32>
    %26 = arith.addf %12, %25 : vector<32x256xf32>
    %c0_18 = arith.constant 0 : index
    %c0_19 = arith.constant 0 : index
    %27 = vector.load %arg11[%c0_18, %c0_19] : memref<32x256xf32, #tpu.memory_space<vmem>>, vector<32x256xf32>
    tpu.vector_store %arg11[%c0_18, %c0_19], %26 {strides = array<i32>} : memref<32x256xf32, #tpu.memory_space<vmem>>, vector<32x256xf32>,
    return
  }
  func.func @transform_0(%arg0: i32, %arg1: i32, %arg2: i32) -> (i32, i32) {
    %c0_i32 = arith.constant 0 : i32
    return %arg0, %arg2 : i32, i32
  }
  func.func @transform_1(%arg0: i32, %arg1: i32, %arg2: i32) -> (i32, i32) {
    %c0_i32 = arith.constant 0 : i32
    return %arg0, %arg2 : i32, i32
  }
  func.func @transform_2(%arg0: i32, %arg1: i32, %arg2: i32) -> (i32, i32) {
    %c0_i32 = arith.constant 0 : i32
    %c0_i32_0 = arith.constant 0 : i32
    return %c0_i32, %arg2 : i32, i32
  }
  func.func @transform_3(%arg0: i32, %arg1: i32, %arg2: i32) -> (i32, i32) {
    %c0_i32 = arith.constant 0 : i32
    %c0_i32_0 = arith.constant 0 : i32
    return %c0_i32, %arg2 : i32, i32
  }
  func.func @transform_4(%arg0: i32, %arg1: i32, %arg2: i32) -> (i32, i32) {
    %c0_i32 = arith.constant 0 : i32
    %c0_i32_0 = arith.constant 0 : i32
    return %c0_i32, %arg2 : i32, i32
  }
  func.func @transform_5(%arg0: i32, %arg1: i32, %arg2: i32) -> (i32, i32) {
    %c0_i32 = arith.constant 0 : i32
    %c0_i32_0 = arith.constant 0 : i32
    return %c0_i32, %arg2 : i32, i32
  }
  func.func @transform_6(%arg0: i32, %arg1: i32, %arg2: i32) -> (i32, i32) {
    %c0_i32 = arith.constant 0 : i32
    return %arg2, %arg1 : i32, i32
  }
  func.func @transform_7(%arg0: i32, %arg1: i32, %arg2: i32) -> (i32, i32) {
    %c0_i32 = arith.constant 0 : i32
    return %arg2, %arg1 : i32, i32
  }
  func.func @transform_8(%arg0: i32, %arg1: i32, %arg2: i32) -> (i32, i32) {
    %c0_i32 = arith.constant 0 : i32
    return %arg0, %arg1 : i32, i32
  }
}

module attributes {stable_mosaic.version = 11 : i64} {
  func.func @_bn_stats_kernel(%arg0: i32, %arg1: memref<32x128xf32, #tpu.memory_space<vmem>>, %arg2: memref<1x128xf32, #tpu.memory_space<vmem>>, %arg3: memref<1x128xf32, #tpu.memory_space<vmem>>) attributes {dimension_semantics = [#tpu.dimension_semantics<arbitrary>], iteration_bounds = array<i64: 1>, scalar_prefetch = 0 : i64, scratch_operands = 0 : i64, tpu.core_type = #tpu.core_type<tc>, window_params = [{transform_indices = @transform_0, window_bounds = array<i64: 32, 128>}, {pipeline_mode = #tpu.pipeline_mode<synchronous>, transform_indices = @transform_1, window_bounds = array<i64: 1, 128>}, {pipeline_mode = #tpu.pipeline_mode<synchronous>, transform_indices = @transform_2, window_bounds = array<i64: 1, 128>}]} {
    %c0_i32 = arith.constant 0 : i32
    %0 = arith.cmpi eq, %arg0, %c0_i32 : i32
    %1 = arith.extui %0 : i1 to i32
    %c0_i32_0 = arith.constant 0 : i32
    %2 = arith.cmpi ne, %1, %c0_i32_0 : i32
    scf.if %2 {
      %cst_11 = arith.constant 0.000000e+00 : f32
      %15 = vector.broadcast %cst_11 : f32 to vector<1x128xf32>
      %c0_12 = arith.constant 0 : index
      %c0_13 = arith.constant 0 : index
      %16 = vector.load %arg2[%c0_12, %c0_13] : memref<1x128xf32, #tpu.memory_space<vmem>>, vector<1x128xf32>
      tpu.vector_store %arg2[%c0_12, %c0_13], %15 {strides = array<i32>} : memref<1x128xf32, #tpu.memory_space<vmem>>, vector<1x128xf32>,
      %cst_14 = arith.constant 0.000000e+00 : f32
      %17 = vector.broadcast %cst_14 : f32 to vector<1x128xf32>
      %c0_15 = arith.constant 0 : index
      %c0_16 = arith.constant 0 : index
      %18 = vector.load %arg3[%c0_15, %c0_16] : memref<1x128xf32, #tpu.memory_space<vmem>>, vector<1x128xf32>
      tpu.vector_store %arg3[%c0_15, %c0_16], %17 {strides = array<i32>} : memref<1x128xf32, #tpu.memory_space<vmem>>, vector<1x128xf32>,
    } else {
    }
    %c0 = arith.constant 0 : index
    %c0_1 = arith.constant 0 : index
    %3 = vector.load %arg1[%c0, %c0_1] : memref<32x128xf32, #tpu.memory_space<vmem>>, vector<32x128xf32>
    %c0_2 = arith.constant 0 : index
    %c0_3 = arith.constant 0 : index
    %4 = vector.load %arg2[%c0_2, %c0_3] : memref<1x128xf32, #tpu.memory_space<vmem>>, vector<1x128xf32>
    %cst = arith.constant dense<0.000000e+00> : vector<128xf32>
    %5 = vector.multi_reduction <add>, %3, %cst [0] : vector<32x128xf32> to vector<128xf32>
    %6 = vector.shape_cast %5 : vector<128xf32> to vector<1x128xf32>
    %7 = arith.addf %4, %6 : vector<1x128xf32>
    %c0_4 = arith.constant 0 : index
    %c0_5 = arith.constant 0 : index
    %8 = vector.load %arg2[%c0_4, %c0_5] : memref<1x128xf32, #tpu.memory_space<vmem>>, vector<1x128xf32>
    tpu.vector_store %arg2[%c0_4, %c0_5], %7 {strides = array<i32>} : memref<1x128xf32, #tpu.memory_space<vmem>>, vector<1x128xf32>,
    %c0_6 = arith.constant 0 : index
    %c0_7 = arith.constant 0 : index
    %9 = vector.load %arg3[%c0_6, %c0_7] : memref<1x128xf32, #tpu.memory_space<vmem>>, vector<1x128xf32>
    %10 = arith.mulf %3, %3 : vector<32x128xf32>
    %cst_8 = arith.constant dense<0.000000e+00> : vector<128xf32>
    %11 = vector.multi_reduction <add>, %10, %cst_8 [0] : vector<32x128xf32> to vector<128xf32>
    %12 = vector.shape_cast %11 : vector<128xf32> to vector<1x128xf32>
    %13 = arith.addf %9, %12 : vector<1x128xf32>
    %c0_9 = arith.constant 0 : index
    %c0_10 = arith.constant 0 : index
    %14 = vector.load %arg3[%c0_9, %c0_10] : memref<1x128xf32, #tpu.memory_space<vmem>>, vector<1x128xf32>
    tpu.vector_store %arg3[%c0_9, %c0_10], %13 {strides = array<i32>} : memref<1x128xf32, #tpu.memory_space<vmem>>, vector<1x128xf32>,
    return
  }
  func.func @transform_0(%arg0: i32) -> (i32, i32) {
    %c0_i32 = arith.constant 0 : i32
    %c0_i32_0 = arith.constant 0 : i32
    return %arg0, %c0_i32 : i32, i32
  }
  func.func @transform_1(%arg0: i32) -> (i32, i32) {
    %c0_i32 = arith.constant 0 : i32
    %c0_i32_0 = arith.constant 0 : i32
    %c0_i32_1 = arith.constant 0 : i32
    return %c0_i32, %c0_i32_0 : i32, i32
  }
  func.func @transform_2(%arg0: i32) -> (i32, i32) {
    %c0_i32 = arith.constant 0 : i32
    %c0_i32_0 = arith.constant 0 : i32
    %c0_i32_1 = arith.constant 0 : i32
    return %c0_i32, %c0_i32_0 : i32, i32
  }
}

module attributes {stable_mosaic.version = 11 : i64} {
  func.func @kernel(%arg0: i32, %arg1: i32, %arg2: i32, %arg3: memref<128x128xbf16, #tpu.memory_space<vmem>>, %arg4: memref<128x128xbf16, #tpu.memory_space<vmem>>, %arg5: memref<1x128xf32, #tpu.memory_space<vmem>>, %arg6: memref<1x128xf32, #tpu.memory_space<vmem>>, %arg7: memref<1x128xf32, #tpu.memory_space<vmem>>, %arg8: memref<1x128xf32, #tpu.memory_space<vmem>>, %arg9: memref<128x128xbf16, #tpu.memory_space<vmem>>, %arg10: memref<128x128xbf16, #tpu.memory_space<vmem>>, %arg11: memref<128x128xf32, #tpu.memory_space<vmem>>) attributes {dimension_semantics = [#tpu.dimension_semantics<parallel>, #tpu.dimension_semantics<parallel>, #tpu.dimension_semantics<arbitrary>], iteration_bounds = array<i64: 1, 2, 1>, scalar_prefetch = 0 : i64, scratch_operands = 0 : i64, tpu.core_type = #tpu.core_type<tc>, window_params = [{transform_indices = @transform_0, window_bounds = array<i64: 128, 128>}, {transform_indices = @transform_1, window_bounds = array<i64: 128, 128>}, {transform_indices = @transform_2, window_bounds = array<i64: 1, 128>}, {transform_indices = @transform_3, window_bounds = array<i64: 1, 128>}, {transform_indices = @transform_4, window_bounds = array<i64: 1, 128>}, {transform_indices = @transform_5, window_bounds = array<i64: 1, 128>}, {transform_indices = @transform_6, window_bounds = array<i64: 128, 128>}, {transform_indices = @transform_7, window_bounds = array<i64: 128, 128>}, {transform_indices = @transform_8, window_bounds = array<i64: 128, 128>}]} {
    %c0 = arith.constant 0 : index
    %c0_0 = arith.constant 0 : index
    %0 = vector.load %arg3[%c0, %c0_0] : memref<128x128xbf16, #tpu.memory_space<vmem>>, vector<128x128xbf16>
    %c0_1 = arith.constant 0 : index
    %c0_2 = arith.constant 0 : index
    %1 = vector.load %arg5[%c0_1, %c0_2] : memref<1x128xf32, #tpu.memory_space<vmem>>, vector<1x128xf32>
    %c0_3 = arith.constant 0 : index
    %c0_4 = arith.constant 0 : index
    %2 = vector.load %arg6[%c0_3, %c0_4] : memref<1x128xf32, #tpu.memory_space<vmem>>, vector<1x128xf32>
    %3 = arith.extf %0 : vector<128x128xbf16> to vector<128x128xf32>
    %4 = vector.broadcast %1 : vector<1x128xf32> to vector<128x128xf32>
    %5 = arith.mulf %3, %4 : vector<128x128xf32>
    %6 = vector.broadcast %2 : vector<1x128xf32> to vector<128x128xf32>
    %7 = arith.addf %5, %6 : vector<128x128xf32>
    %cst = arith.constant 0.000000e+00 : f32
    %8 = vector.broadcast %cst : f32 to vector<128x128xf32>
    %9 = arith.maximumf %7, %8 : vector<128x128xf32>
    %10 = arith.truncf %9 : vector<128x128xf32> to vector<128x128xbf16>
    %c0_5 = arith.constant 0 : index
    %c0_6 = arith.constant 0 : index
    %11 = vector.load %arg9[%c0_5, %c0_6] : memref<128x128xbf16, #tpu.memory_space<vmem>>, vector<128x128xbf16>
    %cst_7 = arith.constant dense<0.000000e+00> : vector<128x128xf32>
    %12 = tpu.matmul %10, %11, %cst_7 {dimension_numbers = #tpu.dot_dimension_numbers<[1], [0], [0], [1], [0, 0, 1, 1], [], []>} : vector<128x128xbf16>, vector<128x128xbf16>, vector<128x128xf32> -> vector<128x128xf32>
    %c0_8 = arith.constant 0 : index
    %c0_9 = arith.constant 0 : index
    %13 = vector.load %arg4[%c0_8, %c0_9] : memref<128x128xbf16, #tpu.memory_space<vmem>>, vector<128x128xbf16>
    %c0_10 = arith.constant 0 : index
    %c0_11 = arith.constant 0 : index
    %14 = vector.load %arg7[%c0_10, %c0_11] : memref<1x128xf32, #tpu.memory_space<vmem>>, vector<1x128xf32>
    %c0_12 = arith.constant 0 : index
    %c0_13 = arith.constant 0 : index
    %15 = vector.load %arg8[%c0_12, %c0_13] : memref<1x128xf32, #tpu.memory_space<vmem>>, vector<1x128xf32>
    %16 = arith.extf %13 : vector<128x128xbf16> to vector<128x128xf32>
    %17 = vector.broadcast %14 : vector<1x128xf32> to vector<128x128xf32>
    %18 = arith.mulf %16, %17 : vector<128x128xf32>
    %19 = vector.broadcast %15 : vector<1x128xf32> to vector<128x128xf32>
    %20 = arith.addf %18, %19 : vector<128x128xf32>
    %cst_14 = arith.constant 0.000000e+00 : f32
    %21 = vector.broadcast %cst_14 : f32 to vector<128x128xf32>
    %22 = arith.maximumf %20, %21 : vector<128x128xf32>
    %23 = arith.truncf %22 : vector<128x128xf32> to vector<128x128xbf16>
    %c0_15 = arith.constant 0 : index
    %c0_16 = arith.constant 0 : index
    %24 = vector.load %arg10[%c0_15, %c0_16] : memref<128x128xbf16, #tpu.memory_space<vmem>>, vector<128x128xbf16>
    %cst_17 = arith.constant dense<0.000000e+00> : vector<128x128xf32>
    %25 = tpu.matmul %23, %24, %cst_17 {dimension_numbers = #tpu.dot_dimension_numbers<[1], [0], [0], [1], [0, 0, 1, 1], [], []>} : vector<128x128xbf16>, vector<128x128xbf16>, vector<128x128xf32> -> vector<128x128xf32>
    %26 = arith.addf %12, %25 : vector<128x128xf32>
    %c0_18 = arith.constant 0 : index
    %c0_19 = arith.constant 0 : index
    %27 = vector.load %arg11[%c0_18, %c0_19] : memref<128x128xf32, #tpu.memory_space<vmem>>, vector<128x128xf32>
    tpu.vector_store %arg11[%c0_18, %c0_19], %26 {strides = array<i32>} : memref<128x128xf32, #tpu.memory_space<vmem>>, vector<128x128xf32>,
    return
  }
  func.func @transform_0(%arg0: i32, %arg1: i32, %arg2: i32) -> (i32, i32) {
    %c0_i32 = arith.constant 0 : i32
    return %arg0, %arg2 : i32, i32
  }
  func.func @transform_1(%arg0: i32, %arg1: i32, %arg2: i32) -> (i32, i32) {
    %c0_i32 = arith.constant 0 : i32
    return %arg0, %arg2 : i32, i32
  }
  func.func @transform_2(%arg0: i32, %arg1: i32, %arg2: i32) -> (i32, i32) {
    %c0_i32 = arith.constant 0 : i32
    %c0_i32_0 = arith.constant 0 : i32
    return %c0_i32, %arg2 : i32, i32
  }
  func.func @transform_3(%arg0: i32, %arg1: i32, %arg2: i32) -> (i32, i32) {
    %c0_i32 = arith.constant 0 : i32
    %c0_i32_0 = arith.constant 0 : i32
    return %c0_i32, %arg2 : i32, i32
  }
  func.func @transform_4(%arg0: i32, %arg1: i32, %arg2: i32) -> (i32, i32) {
    %c0_i32 = arith.constant 0 : i32
    %c0_i32_0 = arith.constant 0 : i32
    return %c0_i32, %arg2 : i32, i32
  }
  func.func @transform_5(%arg0: i32, %arg1: i32, %arg2: i32) -> (i32, i32) {
    %c0_i32 = arith.constant 0 : i32
    %c0_i32_0 = arith.constant 0 : i32
    return %c0_i32, %arg2 : i32, i32
  }
  func.func @transform_6(%arg0: i32, %arg1: i32, %arg2: i32) -> (i32, i32) {
    %c0_i32 = arith.constant 0 : i32
    return %arg2, %arg1 : i32, i32
  }
  func.func @transform_7(%arg0: i32, %arg1: i32, %arg2: i32) -> (i32, i32) {
    %c0_i32 = arith.constant 0 : i32
    return %arg2, %arg1 : i32, i32
  }
  func.func @transform_8(%arg0: i32, %arg1: i32, %arg2: i32) -> (i32, i32) {
    %c0_i32 = arith.constant 0 : i32
    return %arg0, %arg1 : i32, i32
  }
}

module attributes {stable_mosaic.version = 11 : i64} {
  func.func @_bn_stats_kernel(%arg0: i32, %arg1: memref<64x128xf32, #tpu.memory_space<vmem>>, %arg2: memref<1x128xf32, #tpu.memory_space<vmem>>, %arg3: memref<1x128xf32, #tpu.memory_space<vmem>>) attributes {dimension_semantics = [#tpu.dimension_semantics<arbitrary>], iteration_bounds = array<i64: 1>, scalar_prefetch = 0 : i64, scratch_operands = 0 : i64, tpu.core_type = #tpu.core_type<tc>, window_params = [{transform_indices = @transform_0, window_bounds = array<i64: 64, 128>}, {pipeline_mode = #tpu.pipeline_mode<synchronous>, transform_indices = @transform_1, window_bounds = array<i64: 1, 128>}, {pipeline_mode = #tpu.pipeline_mode<synchronous>, transform_indices = @transform_2, window_bounds = array<i64: 1, 128>}]} {
    %c0_i32 = arith.constant 0 : i32
    %0 = arith.cmpi eq, %arg0, %c0_i32 : i32
    %1 = arith.extui %0 : i1 to i32
    %c0_i32_0 = arith.constant 0 : i32
    %2 = arith.cmpi ne, %1, %c0_i32_0 : i32
    scf.if %2 {
      %cst_11 = arith.constant 0.000000e+00 : f32
      %15 = vector.broadcast %cst_11 : f32 to vector<1x128xf32>
      %c0_12 = arith.constant 0 : index
      %c0_13 = arith.constant 0 : index
      %16 = vector.load %arg2[%c0_12, %c0_13] : memref<1x128xf32, #tpu.memory_space<vmem>>, vector<1x128xf32>
      tpu.vector_store %arg2[%c0_12, %c0_13], %15 {strides = array<i32>} : memref<1x128xf32, #tpu.memory_space<vmem>>, vector<1x128xf32>,
      %cst_14 = arith.constant 0.000000e+00 : f32
      %17 = vector.broadcast %cst_14 : f32 to vector<1x128xf32>
      %c0_15 = arith.constant 0 : index
      %c0_16 = arith.constant 0 : index
      %18 = vector.load %arg3[%c0_15, %c0_16] : memref<1x128xf32, #tpu.memory_space<vmem>>, vector<1x128xf32>
      tpu.vector_store %arg3[%c0_15, %c0_16], %17 {strides = array<i32>} : memref<1x128xf32, #tpu.memory_space<vmem>>, vector<1x128xf32>,
    } else {
    }
    %c0 = arith.constant 0 : index
    %c0_1 = arith.constant 0 : index
    %3 = vector.load %arg1[%c0, %c0_1] : memref<64x128xf32, #tpu.memory_space<vmem>>, vector<64x128xf32>
    %c0_2 = arith.constant 0 : index
    %c0_3 = arith.constant 0 : index
    %4 = vector.load %arg2[%c0_2, %c0_3] : memref<1x128xf32, #tpu.memory_space<vmem>>, vector<1x128xf32>
    %cst = arith.constant dense<0.000000e+00> : vector<128xf32>
    %5 = vector.multi_reduction <add>, %3, %cst [0] : vector<64x128xf32> to vector<128xf32>
    %6 = vector.shape_cast %5 : vector<128xf32> to vector<1x128xf32>
    %7 = arith.addf %4, %6 : vector<1x128xf32>
    %c0_4 = arith.constant 0 : index
    %c0_5 = arith.constant 0 : index
    %8 = vector.load %arg2[%c0_4, %c0_5] : memref<1x128xf32, #tpu.memory_space<vmem>>, vector<1x128xf32>
    tpu.vector_store %arg2[%c0_4, %c0_5], %7 {strides = array<i32>} : memref<1x128xf32, #tpu.memory_space<vmem>>, vector<1x128xf32>,
    %c0_6 = arith.constant 0 : index
    %c0_7 = arith.constant 0 : index
    %9 = vector.load %arg3[%c0_6, %c0_7] : memref<1x128xf32, #tpu.memory_space<vmem>>, vector<1x128xf32>
    %10 = arith.mulf %3, %3 : vector<64x128xf32>
    %cst_8 = arith.constant dense<0.000000e+00> : vector<128xf32>
    %11 = vector.multi_reduction <add>, %10, %cst_8 [0] : vector<64x128xf32> to vector<128xf32>
    %12 = vector.shape_cast %11 : vector<128xf32> to vector<1x128xf32>
    %13 = arith.addf %9, %12 : vector<1x128xf32>
    %c0_9 = arith.constant 0 : index
    %c0_10 = arith.constant 0 : index
    %14 = vector.load %arg3[%c0_9, %c0_10] : memref<1x128xf32, #tpu.memory_space<vmem>>, vector<1x128xf32>
    tpu.vector_store %arg3[%c0_9, %c0_10], %13 {strides = array<i32>} : memref<1x128xf32, #tpu.memory_space<vmem>>, vector<1x128xf32>,
    return
  }
  func.func @transform_0(%arg0: i32) -> (i32, i32) {
    %c0_i32 = arith.constant 0 : i32
    %c0_i32_0 = arith.constant 0 : i32
    return %arg0, %c0_i32 : i32, i32
  }
  func.func @transform_1(%arg0: i32) -> (i32, i32) {
    %c0_i32 = arith.constant 0 : i32
    %c0_i32_0 = arith.constant 0 : i32
    %c0_i32_1 = arith.constant 0 : i32
    return %c0_i32, %c0_i32_0 : i32, i32
  }
  func.func @transform_2(%arg0: i32) -> (i32, i32) {
    %c0_i32 = arith.constant 0 : i32
    %c0_i32_0 = arith.constant 0 : i32
    %c0_i32_1 = arith.constant 0 : i32
    return %c0_i32, %c0_i32_0 : i32, i32
  }
}

module attributes {stable_mosaic.version = 11 : i64} {
  func.func @kernel(%arg0: i32, %arg1: i32, %arg2: i32, %arg3: memref<256x128xbf16, #tpu.memory_space<vmem>>, %arg4: memref<256x128xbf16, #tpu.memory_space<vmem>>, %arg5: memref<1x128xf32, #tpu.memory_space<vmem>>, %arg6: memref<1x128xf32, #tpu.memory_space<vmem>>, %arg7: memref<1x128xf32, #tpu.memory_space<vmem>>, %arg8: memref<1x128xf32, #tpu.memory_space<vmem>>, %arg9: memref<128x128xbf16, #tpu.memory_space<vmem>>, %arg10: memref<128x128xbf16, #tpu.memory_space<vmem>>, %arg11: memref<256x128xf32, #tpu.memory_space<vmem>>) attributes {dimension_semantics = [#tpu.dimension_semantics<parallel>, #tpu.dimension_semantics<parallel>, #tpu.dimension_semantics<arbitrary>], iteration_bounds = array<i64: 2, 1, 1>, scalar_prefetch = 0 : i64, scratch_operands = 0 : i64, tpu.core_type = #tpu.core_type<tc>, window_params = [{transform_indices = @transform_0, window_bounds = array<i64: 256, 128>}, {transform_indices = @transform_1, window_bounds = array<i64: 256, 128>}, {transform_indices = @transform_2, window_bounds = array<i64: 1, 128>}, {transform_indices = @transform_3, window_bounds = array<i64: 1, 128>}, {transform_indices = @transform_4, window_bounds = array<i64: 1, 128>}, {transform_indices = @transform_5, window_bounds = array<i64: 1, 128>}, {transform_indices = @transform_6, window_bounds = array<i64: 128, 128>}, {transform_indices = @transform_7, window_bounds = array<i64: 128, 128>}, {transform_indices = @transform_8, window_bounds = array<i64: 256, 128>}]} {
    %c0 = arith.constant 0 : index
    %c0_0 = arith.constant 0 : index
    %0 = vector.load %arg3[%c0, %c0_0] : memref<256x128xbf16, #tpu.memory_space<vmem>>, vector<256x128xbf16>
    %c0_1 = arith.constant 0 : index
    %c0_2 = arith.constant 0 : index
    %1 = vector.load %arg5[%c0_1, %c0_2] : memref<1x128xf32, #tpu.memory_space<vmem>>, vector<1x128xf32>
    %c0_3 = arith.constant 0 : index
    %c0_4 = arith.constant 0 : index
    %2 = vector.load %arg6[%c0_3, %c0_4] : memref<1x128xf32, #tpu.memory_space<vmem>>, vector<1x128xf32>
    %3 = arith.extf %0 : vector<256x128xbf16> to vector<256x128xf32>
    %4 = vector.broadcast %1 : vector<1x128xf32> to vector<256x128xf32>
    %5 = arith.mulf %3, %4 : vector<256x128xf32>
    %6 = vector.broadcast %2 : vector<1x128xf32> to vector<256x128xf32>
    %7 = arith.addf %5, %6 : vector<256x128xf32>
    %cst = arith.constant 0.000000e+00 : f32
    %8 = vector.broadcast %cst : f32 to vector<256x128xf32>
    %9 = arith.maximumf %7, %8 : vector<256x128xf32>
    %10 = arith.truncf %9 : vector<256x128xf32> to vector<256x128xbf16>
    %c0_5 = arith.constant 0 : index
    %c0_6 = arith.constant 0 : index
    %11 = vector.load %arg9[%c0_5, %c0_6] : memref<128x128xbf16, #tpu.memory_space<vmem>>, vector<128x128xbf16>
    %cst_7 = arith.constant dense<0.000000e+00> : vector<256x128xf32>
    %12 = tpu.matmul %10, %11, %cst_7 {dimension_numbers = #tpu.dot_dimension_numbers<[1], [0], [0], [1], [0, 0, 1, 1], [], []>} : vector<256x128xbf16>, vector<128x128xbf16>, vector<256x128xf32> -> vector<256x128xf32>
    %c0_8 = arith.constant 0 : index
    %c0_9 = arith.constant 0 : index
    %13 = vector.load %arg4[%c0_8, %c0_9] : memref<256x128xbf16, #tpu.memory_space<vmem>>, vector<256x128xbf16>
    %c0_10 = arith.constant 0 : index
    %c0_11 = arith.constant 0 : index
    %14 = vector.load %arg7[%c0_10, %c0_11] : memref<1x128xf32, #tpu.memory_space<vmem>>, vector<1x128xf32>
    %c0_12 = arith.constant 0 : index
    %c0_13 = arith.constant 0 : index
    %15 = vector.load %arg8[%c0_12, %c0_13] : memref<1x128xf32, #tpu.memory_space<vmem>>, vector<1x128xf32>
    %16 = arith.extf %13 : vector<256x128xbf16> to vector<256x128xf32>
    %17 = vector.broadcast %14 : vector<1x128xf32> to vector<256x128xf32>
    %18 = arith.mulf %16, %17 : vector<256x128xf32>
    %19 = vector.broadcast %15 : vector<1x128xf32> to vector<256x128xf32>
    %20 = arith.addf %18, %19 : vector<256x128xf32>
    %cst_14 = arith.constant 0.000000e+00 : f32
    %21 = vector.broadcast %cst_14 : f32 to vector<256x128xf32>
    %22 = arith.maximumf %20, %21 : vector<256x128xf32>
    %23 = arith.truncf %22 : vector<256x128xf32> to vector<256x128xbf16>
    %c0_15 = arith.constant 0 : index
    %c0_16 = arith.constant 0 : index
    %24 = vector.load %arg10[%c0_15, %c0_16] : memref<128x128xbf16, #tpu.memory_space<vmem>>, vector<128x128xbf16>
    %cst_17 = arith.constant dense<0.000000e+00> : vector<256x128xf32>
    %25 = tpu.matmul %23, %24, %cst_17 {dimension_numbers = #tpu.dot_dimension_numbers<[1], [0], [0], [1], [0, 0, 1, 1], [], []>} : vector<256x128xbf16>, vector<128x128xbf16>, vector<256x128xf32> -> vector<256x128xf32>
    %26 = arith.addf %12, %25 : vector<256x128xf32>
    %c0_18 = arith.constant 0 : index
    %c0_19 = arith.constant 0 : index
    %27 = vector.load %arg11[%c0_18, %c0_19] : memref<256x128xf32, #tpu.memory_space<vmem>>, vector<256x128xf32>
    tpu.vector_store %arg11[%c0_18, %c0_19], %26 {strides = array<i32>} : memref<256x128xf32, #tpu.memory_space<vmem>>, vector<256x128xf32>,
    return
  }
  func.func @transform_0(%arg0: i32, %arg1: i32, %arg2: i32) -> (i32, i32) {
    %c0_i32 = arith.constant 0 : i32
    return %arg0, %arg2 : i32, i32
  }
  func.func @transform_1(%arg0: i32, %arg1: i32, %arg2: i32) -> (i32, i32) {
    %c0_i32 = arith.constant 0 : i32
    return %arg0, %arg2 : i32, i32
  }
  func.func @transform_2(%arg0: i32, %arg1: i32, %arg2: i32) -> (i32, i32) {
    %c0_i32 = arith.constant 0 : i32
    %c0_i32_0 = arith.constant 0 : i32
    return %c0_i32, %arg2 : i32, i32
  }
  func.func @transform_3(%arg0: i32, %arg1: i32, %arg2: i32) -> (i32, i32) {
    %c0_i32 = arith.constant 0 : i32
    %c0_i32_0 = arith.constant 0 : i32
    return %c0_i32, %arg2 : i32, i32
  }
  func.func @transform_4(%arg0: i32, %arg1: i32, %arg2: i32) -> (i32, i32) {
    %c0_i32 = arith.constant 0 : i32
    %c0_i32_0 = arith.constant 0 : i32
    return %c0_i32, %arg2 : i32, i32
  }
  func.func @transform_5(%arg0: i32, %arg1: i32, %arg2: i32) -> (i32, i32) {
    %c0_i32 = arith.constant 0 : i32
    %c0_i32_0 = arith.constant 0 : i32
    return %c0_i32, %arg2 : i32, i32
  }
  func.func @transform_6(%arg0: i32, %arg1: i32, %arg2: i32) -> (i32, i32) {
    %c0_i32 = arith.constant 0 : i32
    return %arg2, %arg1 : i32, i32
  }
  func.func @transform_7(%arg0: i32, %arg1: i32, %arg2: i32) -> (i32, i32) {
    %c0_i32 = arith.constant 0 : i32
    return %arg2, %arg1 : i32, i32
  }
  func.func @transform_8(%arg0: i32, %arg1: i32, %arg2: i32) -> (i32, i32) {
    %c0_i32 = arith.constant 0 : i32
    return %arg0, %arg1 : i32, i32
  }
}

module attributes {stable_mosaic.version = 11 : i64} {
  func.func @_bn_stats_kernel(%arg0: i32, %arg1: memref<128x128xf32, #tpu.memory_space<vmem>>, %arg2: memref<1x128xf32, #tpu.memory_space<vmem>>, %arg3: memref<1x128xf32, #tpu.memory_space<vmem>>) attributes {dimension_semantics = [#tpu.dimension_semantics<arbitrary>], iteration_bounds = array<i64: 1>, scalar_prefetch = 0 : i64, scratch_operands = 0 : i64, tpu.core_type = #tpu.core_type<tc>, window_params = [{transform_indices = @transform_0, window_bounds = array<i64: 128, 128>}, {pipeline_mode = #tpu.pipeline_mode<synchronous>, transform_indices = @transform_1, window_bounds = array<i64: 1, 128>}, {pipeline_mode = #tpu.pipeline_mode<synchronous>, transform_indices = @transform_2, window_bounds = array<i64: 1, 128>}]} {
    %c0_i32 = arith.constant 0 : i32
    %0 = arith.cmpi eq, %arg0, %c0_i32 : i32
    %1 = arith.extui %0 : i1 to i32
    %c0_i32_0 = arith.constant 0 : i32
    %2 = arith.cmpi ne, %1, %c0_i32_0 : i32
    scf.if %2 {
      %cst_11 = arith.constant 0.000000e+00 : f32
      %15 = vector.broadcast %cst_11 : f32 to vector<1x128xf32>
      %c0_12 = arith.constant 0 : index
      %c0_13 = arith.constant 0 : index
      %16 = vector.load %arg2[%c0_12, %c0_13] : memref<1x128xf32, #tpu.memory_space<vmem>>, vector<1x128xf32>
      tpu.vector_store %arg2[%c0_12, %c0_13], %15 {strides = array<i32>} : memref<1x128xf32, #tpu.memory_space<vmem>>, vector<1x128xf32>,
      %cst_14 = arith.constant 0.000000e+00 : f32
      %17 = vector.broadcast %cst_14 : f32 to vector<1x128xf32>
      %c0_15 = arith.constant 0 : index
      %c0_16 = arith.constant 0 : index
      %18 = vector.load %arg3[%c0_15, %c0_16] : memref<1x128xf32, #tpu.memory_space<vmem>>, vector<1x128xf32>
      tpu.vector_store %arg3[%c0_15, %c0_16], %17 {strides = array<i32>} : memref<1x128xf32, #tpu.memory_space<vmem>>, vector<1x128xf32>,
    } else {
    }
    %c0 = arith.constant 0 : index
    %c0_1 = arith.constant 0 : index
    %3 = vector.load %arg1[%c0, %c0_1] : memref<128x128xf32, #tpu.memory_space<vmem>>, vector<128x128xf32>
    %c0_2 = arith.constant 0 : index
    %c0_3 = arith.constant 0 : index
    %4 = vector.load %arg2[%c0_2, %c0_3] : memref<1x128xf32, #tpu.memory_space<vmem>>, vector<1x128xf32>
    %cst = arith.constant dense<0.000000e+00> : vector<128xf32>
    %5 = vector.multi_reduction <add>, %3, %cst [0] : vector<128x128xf32> to vector<128xf32>
    %6 = vector.shape_cast %5 : vector<128xf32> to vector<1x128xf32>
    %7 = arith.addf %4, %6 : vector<1x128xf32>
    %c0_4 = arith.constant 0 : index
    %c0_5 = arith.constant 0 : index
    %8 = vector.load %arg2[%c0_4, %c0_5] : memref<1x128xf32, #tpu.memory_space<vmem>>, vector<1x128xf32>
    tpu.vector_store %arg2[%c0_4, %c0_5], %7 {strides = array<i32>} : memref<1x128xf32, #tpu.memory_space<vmem>>, vector<1x128xf32>,
    %c0_6 = arith.constant 0 : index
    %c0_7 = arith.constant 0 : index
    %9 = vector.load %arg3[%c0_6, %c0_7] : memref<1x128xf32, #tpu.memory_space<vmem>>, vector<1x128xf32>
    %10 = arith.mulf %3, %3 : vector<128x128xf32>
    %cst_8 = arith.constant dense<0.000000e+00> : vector<128xf32>
    %11 = vector.multi_reduction <add>, %10, %cst_8 [0] : vector<128x128xf32> to vector<128xf32>
    %12 = vector.shape_cast %11 : vector<128xf32> to vector<1x128xf32>
    %13 = arith.addf %9, %12 : vector<1x128xf32>
    %c0_9 = arith.constant 0 : index
    %c0_10 = arith.constant 0 : index
    %14 = vector.load %arg3[%c0_9, %c0_10] : memref<1x128xf32, #tpu.memory_space<vmem>>, vector<1x128xf32>
    tpu.vector_store %arg3[%c0_9, %c0_10], %13 {strides = array<i32>} : memref<1x128xf32, #tpu.memory_space<vmem>>, vector<1x128xf32>,
    return
  }
  func.func @transform_0(%arg0: i32) -> (i32, i32) {
    %c0_i32 = arith.constant 0 : i32
    %c0_i32_0 = arith.constant 0 : i32
    return %arg0, %c0_i32 : i32, i32
  }
  func.func @transform_1(%arg0: i32) -> (i32, i32) {
    %c0_i32 = arith.constant 0 : i32
    %c0_i32_0 = arith.constant 0 : i32
    %c0_i32_1 = arith.constant 0 : i32
    return %c0_i32, %c0_i32_0 : i32, i32
  }
  func.func @transform_2(%arg0: i32) -> (i32, i32) {
    %c0_i32 = arith.constant 0 : i32
    %c0_i32_0 = arith.constant 0 : i32
    %c0_i32_1 = arith.constant 0 : i32
    return %c0_i32, %c0_i32_0 : i32, i32
  }
}

module attributes {stable_mosaic.version = 11 : i64} {
  func.func @kernel(%arg0: i32, %arg1: i32, %arg2: i32, %arg3: memref<256x128xbf16, #tpu.memory_space<vmem>>, %arg4: memref<256x128xbf16, #tpu.memory_space<vmem>>, %arg5: memref<1x128xf32, #tpu.memory_space<vmem>>, %arg6: memref<1x128xf32, #tpu.memory_space<vmem>>, %arg7: memref<128x128xbf16, #tpu.memory_space<vmem>>, %arg8: memref<128x128xbf16, #tpu.memory_space<vmem>>, %arg9: memref<256x128xf32, #tpu.memory_space<vmem>>) attributes {dimension_semantics = [#tpu.dimension_semantics<parallel>, #tpu.dimension_semantics<parallel>, #tpu.dimension_semantics<arbitrary>], iteration_bounds = array<i64: 8, 1, 1>, scalar_prefetch = 0 : i64, scratch_operands = 0 : i64, tpu.core_type = #tpu.core_type<tc>, window_params = [{transform_indices = @transform_0, window_bounds = array<i64: 256, 128>}, {transform_indices = @transform_1, window_bounds = array<i64: 256, 128>}, {transform_indices = @transform_2, window_bounds = array<i64: 1, 128>}, {transform_indices = @transform_3, window_bounds = array<i64: 1, 128>}, {transform_indices = @transform_4, window_bounds = array<i64: 128, 128>}, {transform_indices = @transform_5, window_bounds = array<i64: 128, 128>}, {transform_indices = @transform_6, window_bounds = array<i64: 256, 128>}]} {
    %c0 = arith.constant 0 : index
    %c0_0 = arith.constant 0 : index
    %0 = vector.load %arg3[%c0, %c0_0] : memref<256x128xbf16, #tpu.memory_space<vmem>>, vector<256x128xbf16>
    %1 = arith.extf %0 : vector<256x128xbf16> to vector<256x128xf32>
    %cst = arith.constant 0.000000e+00 : f32
    %2 = vector.broadcast %cst : f32 to vector<256x128xf32>
    %3 = arith.maximumf %1, %2 : vector<256x128xf32>
    %4 = arith.truncf %3 : vector<256x128xf32> to vector<256x128xbf16>
    %c0_1 = arith.constant 0 : index
    %c0_2 = arith.constant 0 : index
    %5 = vector.load %arg7[%c0_1, %c0_2] : memref<128x128xbf16, #tpu.memory_space<vmem>>, vector<128x128xbf16>
    %cst_3 = arith.constant dense<0.000000e+00> : vector<256x128xf32>
    %6 = tpu.matmul %4, %5, %cst_3 {dimension_numbers = #tpu.dot_dimension_numbers<[1], [0], [0], [1], [0, 0, 1, 1], [], []>} : vector<256x128xbf16>, vector<128x128xbf16>, vector<256x128xf32> -> vector<256x128xf32>
    %c0_4 = arith.constant 0 : index
    %c0_5 = arith.constant 0 : index
    %7 = vector.load %arg4[%c0_4, %c0_5] : memref<256x128xbf16, #tpu.memory_space<vmem>>, vector<256x128xbf16>
    %c0_6 = arith.constant 0 : index
    %c0_7 = arith.constant 0 : index
    %8 = vector.load %arg5[%c0_6, %c0_7] : memref<1x128xf32, #tpu.memory_space<vmem>>, vector<1x128xf32>
    %c0_8 = arith.constant 0 : index
    %c0_9 = arith.constant 0 : index
    %9 = vector.load %arg6[%c0_8, %c0_9] : memref<1x128xf32, #tpu.memory_space<vmem>>, vector<1x128xf32>
    %10 = arith.extf %7 : vector<256x128xbf16> to vector<256x128xf32>
    %11 = vector.broadcast %8 : vector<1x128xf32> to vector<256x128xf32>
    %12 = arith.mulf %10, %11 : vector<256x128xf32>
    %13 = vector.broadcast %9 : vector<1x128xf32> to vector<256x128xf32>
    %14 = arith.addf %12, %13 : vector<256x128xf32>
    %cst_10 = arith.constant 0.000000e+00 : f32
    %15 = vector.broadcast %cst_10 : f32 to vector<256x128xf32>
    %16 = arith.maximumf %14, %15 : vector<256x128xf32>
    %17 = arith.truncf %16 : vector<256x128xf32> to vector<256x128xbf16>
    %c0_11 = arith.constant 0 : index
    %c0_12 = arith.constant 0 : index
    %18 = vector.load %arg8[%c0_11, %c0_12] : memref<128x128xbf16, #tpu.memory_space<vmem>>, vector<128x128xbf16>
    %cst_13 = arith.constant dense<0.000000e+00> : vector<256x128xf32>
    %19 = tpu.matmul %17, %18, %cst_13 {dimension_numbers = #tpu.dot_dimension_numbers<[1], [0], [0], [1], [0, 0, 1, 1], [], []>} : vector<256x128xbf16>, vector<128x128xbf16>, vector<256x128xf32> -> vector<256x128xf32>
    %20 = arith.addf %6, %19 : vector<256x128xf32>
    %c0_14 = arith.constant 0 : index
    %c0_15 = arith.constant 0 : index
    %21 = vector.load %arg9[%c0_14, %c0_15] : memref<256x128xf32, #tpu.memory_space<vmem>>, vector<256x128xf32>
    tpu.vector_store %arg9[%c0_14, %c0_15], %20 {strides = array<i32>} : memref<256x128xf32, #tpu.memory_space<vmem>>, vector<256x128xf32>,
    return
  }
  func.func @transform_0(%arg0: i32, %arg1: i32, %arg2: i32) -> (i32, i32) {
    %c0_i32 = arith.constant 0 : i32
    return %arg0, %arg2 : i32, i32
  }
  func.func @transform_1(%arg0: i32, %arg1: i32, %arg2: i32) -> (i32, i32) {
    %c0_i32 = arith.constant 0 : i32
    return %arg0, %arg2 : i32, i32
  }
  func.func @transform_2(%arg0: i32, %arg1: i32, %arg2: i32) -> (i32, i32) {
    %c0_i32 = arith.constant 0 : i32
    %c0_i32_0 = arith.constant 0 : i32
    return %c0_i32, %arg2 : i32, i32
  }
  func.func @transform_3(%arg0: i32, %arg1: i32, %arg2: i32) -> (i32, i32) {
    %c0_i32 = arith.constant 0 : i32
    %c0_i32_0 = arith.constant 0 : i32
    return %c0_i32, %arg2 : i32, i32
  }
  func.func @transform_4(%arg0: i32, %arg1: i32, %arg2: i32) -> (i32, i32) {
    %c0_i32 = arith.constant 0 : i32
    return %arg2, %arg1 : i32, i32
  }
  func.func @transform_5(%arg0: i32, %arg1: i32, %arg2: i32) -> (i32, i32) {
    %c0_i32 = arith.constant 0 : i32
    return %arg2, %arg1 : i32, i32
  }
  func.func @transform_6(%arg0: i32, %arg1: i32, %arg2: i32) -> (i32, i32) {
    %c0_i32 = arith.constant 0 : i32
    return %arg0, %arg1 : i32, i32
  }
}

module attributes {stable_mosaic.version = 11 : i64} {
  func.func @_bias_tanh_kernel(%arg0: i32, %arg1: memref<256x96xf32, #tpu.memory_space<vmem>>, %arg2: memref<1x96xf32, #tpu.memory_space<vmem>>, %arg3: memref<256x96xf32, #tpu.memory_space<vmem>>) attributes {dimension_semantics = [#tpu.dimension_semantics<parallel>], iteration_bounds = array<i64: 1>, scalar_prefetch = 0 : i64, scratch_operands = 0 : i64, tpu.core_type = #tpu.core_type<tc>, window_params = [{transform_indices = @transform_0, window_bounds = array<i64: 256, 96>}, {pipeline_mode = #tpu.pipeline_mode<synchronous>, transform_indices = @transform_1, window_bounds = array<i64: 1, 96>}, {transform_indices = @transform_2, window_bounds = array<i64: 256, 96>}]} {
    %c0 = arith.constant 0 : index
    %c0_0 = arith.constant 0 : index
    %0 = vector.load %arg1[%c0, %c0_0] : memref<256x96xf32, #tpu.memory_space<vmem>>, vector<256x96xf32>
    %c0_1 = arith.constant 0 : index
    %c0_2 = arith.constant 0 : index
    %1 = vector.load %arg2[%c0_1, %c0_2] : memref<1x96xf32, #tpu.memory_space<vmem>>, vector<1x96xf32>
    %2 = vector.broadcast %1 : vector<1x96xf32> to vector<256x96xf32>
    %3 = arith.addf %0, %2 : vector<256x96xf32>
    %4 = math.tanh %3 : vector<256x96xf32>
    %c0_3 = arith.constant 0 : index
    %c0_4 = arith.constant 0 : index
    %5 = vector.load %arg3[%c0_3, %c0_4] : memref<256x96xf32, #tpu.memory_space<vmem>>, vector<256x96xf32>
    tpu.vector_store %arg3[%c0_3, %c0_4], %4 {strides = array<i32>} : memref<256x96xf32, #tpu.memory_space<vmem>>, vector<256x96xf32>,
    return
  }
  func.func @transform_0(%arg0: i32) -> (i32, i32) {
    %c0_i32 = arith.constant 0 : i32
    %c0_i32_0 = arith.constant 0 : i32
    return %arg0, %c0_i32 : i32, i32
  }
  func.func @transform_1(%arg0: i32) -> (i32, i32) {
    %c0_i32 = arith.constant 0 : i32
    %c0_i32_0 = arith.constant 0 : i32
    %c0_i32_1 = arith.constant 0 : i32
    return %c0_i32, %c0_i32_0 : i32, i32
  }
  func.func @transform_2(%arg0: i32) -> (i32, i32) {
    %c0_i32 = arith.constant 0 : i32
    %c0_i32_0 = arith.constant 0 : i32
    return %arg0, %c0_i32 : i32, i32
  }
}

</mosaic_0001>

<bundles_post_ra>
// kernel: unet_apply.18
= control target key start
LH: loop header
LB: loop body
LE: loop exit
PB: predicated region body
PF: predicated region fallthrough
CT: control target
= control target key end

     0   :  { %s914_s9 = smov 0   ;;  %s916_s10 = smov 0   ;;  %s1027_s0 = inlined_call_operand.vmem [shape: bf16[2048,128], index: 0, kind: input, shape index: {}]   ;;  %s1028_s1 = inlined_call_operand.vmem [shape: bf16[128,128], index: 1, kind: input, shape index: {}]   ;;  %s1029_s2 = inlined_call_operand.vmem [shape: f32[2048,128], index: 2, kind: output, shape index: {}]  }
   0x1   :  { %s918_s11 = smov 0  }
   0x2 LB: > { %s31_s12 = sadd.s32 1, %s893_s10  ;;  %p708_p0 = scmp.ge.s32.totalorder %s897_s11, 1  ;;  %s897_s11 = sphi %s918_s11, %s12_s11   ;;  %s893_s10 = sphi %s916_s10, %s1031_s10   ;;  %s889_s9 = sphi %s914_s9, %s1030_s9  }
   0x3   : > { %p33_p1 = scmp.ge.s32.totalorder %s31_s12, 8  ;;  %p155_p2 = scmp.lt.s32.totalorder %s897_s11, 9 }
   0x5   : > { %s1033_s12 = smov (%p33_p1, %s31_s12), 0  ;;  %p156_p3 = pnand %p708_p0, %p155_p2 }
   0x6   : > { %v851_v0 = vld [vmem:[%s1028_s1] sm:$0xff] (!%p156_p3)   ;;  %s709_s15 = sshll.u32 (!%p156_p3), %s889_s9, 5  ;;  %v852_v1 = vld [vmem:[%s1028_s1 + $0x8] sm:$0xff] (!%p156_p3)   ;;  %v853_v2 = vld [vmem:[%s1028_s1 + $0x10] sm:$0xff] (!%p156_p3)  }
   0x7   : > { %159 = sbr.rel (%p156_p3) target bundleno = 279 (0x117), region = 28  ;;  %p192_p4 = scmp.lt.s32.totalorder (!%p156_p3), %s709_s15, 255  ;;  %763 = vmatprep.subr.bf16.mxu0 (!%p156_p3), %v851_v0  ;;  %811 = vmatprep.subr.bf16.mxu1 (!%p156_p3), %v851_v0  ;;  %v854_v3 = vld [vmem:[%s1028_s1 + $0x18] sm:$0xff] (!%p156_p3)   ;;  %v855_v6 = vld [vmem:[%s1028_s1 + $0x20] sm:$0xff] (!%p156_p3)   ;;  %v856_v7 = vld [vmem:[%s1028_s1 + $0x28] sm:$0xff] (!%p156_p3)  }
   0x8   : > { %764 = vmatpush3.bf16.msra.mxu0 (!%p156_p3), %v851_v0  ;;  %819 = vmatpush3.bf16.msra.mxu1 (!%p156_p3), %v851_v0  ;;  %v857_v8 = vld [vmem:[%s1028_s1 + $0x30] sm:$0xff] (!%p156_p3)   ;;  %v858_v9 = vld [vmem:[%s1028_s1 + $0x38] sm:$0xff] (!%p156_p3)  }
   0x9   : > { %765 = vmatprep.subr.bf16.mxu0 (!%p156_p3), %v852_v1  ;;  %812 = vmatprep.subr.bf16.mxu1 (!%p156_p3), %v852_v1 }
   0xc   : > { %766 = vmatpush3.bf16.msra.mxu0 (!%p156_p3), %v852_v1  ;;  %820 = vmatpush3.bf16.msra.mxu1 (!%p156_p3), %v852_v1 }
   0xd   : > { %767 = vmatprep.subr.bf16.mxu0 (!%p156_p3), %v853_v2  ;;  %813 = vmatprep.subr.bf16.mxu1 (!%p156_p3), %v853_v2 }
   0xe   : > { %s1035_s15 = smov (!%p192_p4, %s709_s15), 255 }
   0xf   : > { %s710_s20 = sshll.u32 %s1035_s15, 2  ;;  %s712_s6 = sshll.u32 %s1035_s15, 3 }
  0x10   : > { %s947_s23 = scalar_lea.vmem %s1027_s0, %s710_s20  ;;  %768 = vmatpush3.bf16.msra.mxu0 %v853_v2  ;;  %821 = vmatpush3.bf16.msra.mxu1 %v853_v2  ;;  %s984_s9 = scalar_lea.vmem %s1029_s2, %s712_s6 }
  0x11   : > { %v859_v4 = vld [vmem:[%s947_s23] sm:$0xff]   ;;  %769 = vmatprep.subr.bf16.mxu0 %v854_v3  ;;  %814 = vmatprep.subr.bf16.mxu1 %v854_v3  ;;  %v861_v10 = vld [vmem:[%s947_s23 + $0x8] sm:$0xff]   ;;  %v863_v12 = vld [vmem:[%s947_s23 + $0x10] sm:$0xff]  }
  0x12   : > { %v860_v5 = vld [vmem:[%s947_s23 + $0x40] sm:$0xff]   ;;  %779 = vmatprep.mubr.bf16.mxu0 %v859_v4  ;;  %v862_v11 = vld [vmem:[%s947_s23 + $0x48] sm:$0xff]   ;;  %v864_v13 = vld [vmem:[%s947_s23 + $0x50] sm:$0xff]  }
  0x13   : > { %795 = vmatprep.mubr.bf16.mxu1 %v860_v5  ;;  %v865_v14 = vld [vmem:[%s947_s23 + $0x18] sm:$0xff]   ;;  %v867_v16 = vld [vmem:[%s947_s23 + $0x20] sm:$0xff]   ;;  %v869_v18 = vld [vmem:[%s947_s23 + $0x28] sm:$0xff]  }
  0x14   : > { %770 = vmatpush3.bf16.msra.mxu0 %v854_v3  ;;  %822 = vmatpush3.bf16.msra.mxu1 %v854_v3  ;;  %v866_v15 = vld [vmem:[%s947_s23 + $0x58] sm:$0xff]   ;;  %v868_v17 = vld [vmem:[%s947_s23 + $0x60] sm:$0xff]   ;;  %v870_v19 = vld [vmem:[%s947_s23 + $0x68] sm:$0xff]  }
  0x15   : > { %771 = vmatprep.subr.bf16.mxu0 %v855_v6  ;;  %815 = vmatprep.subr.bf16.mxu1 %v855_v6  ;;  %v871_v20 = vld [vmem:[%s947_s23 + $0x30] sm:$0xff]   ;;  %v873_v22 = vld [vmem:[%s947_s23 + $0x38] sm:$0xff]  }
  0x16   : > { %v872_v21 = vld [vmem:[%s947_s23 + $0x70] sm:$0xff]   ;;  %v874_v23 = vld [vmem:[%s947_s23 + $0x78] sm:$0xff]  }
  0x18   : > { %772 = vmatpush3.bf16.msra.mxu0 %v855_v6  ;;  %823 = vmatpush3.bf16.msra.mxu1 %v855_v6 }
  0x19   : > { %773 = vmatprep.subr.bf16.mxu0 %v856_v7  ;;  %816 = vmatprep.subr.bf16.mxu1 %v856_v7 }
  0x1c   : > { %774 = vmatpush3.bf16.msra.mxu0 %v856_v7  ;;  %824 = vmatpush3.bf16.msra.mxu1 %v856_v7 }
  0x1d   : > { %775 = vmatprep.subr.bf16.mxu0 %v857_v8  ;;  %817 = vmatprep.subr.bf16.mxu1 %v857_v8 }
  0x20   : > { %776 = vmatpush3.bf16.msra.mxu0 %v857_v8  ;;  %825 = vmatpush3.bf16.msra.mxu1 %v857_v8 }
  0x21   : > { %777 = vmatprep.subr.bf16.mxu0 %v858_v9  ;;  %818 = vmatprep.subr.bf16.mxu1 %v858_v9 }
  0x24   : > { %778 = vmatpush3.bf16.msra.mxu0 %v858_v9  ;;  %826 = vmatpush3.bf16.msra.mxu1 %v858_v9 }
  0x27   : > { %780 = vmatmul.mubr.bf16.vlgmr.msra.gmra.mrb[0].mxu0 %v861_v10  ;;  %796 = vmatmul.mubr.bf16.vlgmr.msra.gmra.mrb[0].mxu1 %v862_v11 }
  0x28   : > { %783 = vmatprep.mubr.bf16.mxu0 %v863_v12  ;;  %799 = vmatprep.mubr.bf16.mxu1 %v864_v13 }
  0x2f   : > { %784 = vmatmul.mubr.bf16.gmra.mrb[4].mxu0 %v865_v14  ;;  %800 = vmatmul.mubr.bf16.gmra.mrb[4].mxu1 %v866_v15 }
  0x30   : > { %787 = vmatprep.mubr.bf16.mxu0 %v867_v16  ;;  %803 = vmatprep.mubr.bf16.mxu1 %v868_v17 }
  0x37   : > { %788 = vmatmul.mubr.bf16.gmra.mrb[8].mxu0 %v869_v18  ;;  %804 = vmatmul.mubr.bf16.gmra.mrb[8].mxu1 %v870_v19 }
  0x38   : > { %791 = vmatprep.mubr.bf16.mxu0 %v871_v20  ;;  %807 = vmatprep.mubr.bf16.mxu1 %v872_v21 }
  0x3f   : > { %792 = vmatmul.mubr.bf16.gmra.mrb[12].mxu0 %v873_v22  ;;  %808 = vmatmul.mubr.bf16.gmra.mrb[12].mxu1 %v874_v23 }
  0xfa   : > { %v781_v24 = vpop.f32.mrb[0].mxu0  ;;  %v797_v25 = vpop.f32.mrb[0].mxu1 }
  0xfb   : > { %574 = vst [vmem:[%s984_s9 + $0x10] sm:$0xff] %v781_v24  ;;  %590 = vst [vmem:[%s984_s9 + $0x90] sm:$0xff] %v797_v25  ;;  %v445_v26 = vpop.f32.mrb[1].mxu0  ;;  %v509_v27 = vpop.f32.mrb[1].mxu1 }
  0xfc   : > { %572 = vst [vmem:[%s984_s9] sm:$0xff] %v445_v26  ;;  %588 = vst [vmem:[%s984_s9 + $0x80] sm:$0xff] %v509_v27  ;;  %v782_v28 = vpop.f32.mrb[2].mxu0  ;;  %v798_v29 = vpop.f32.mrb[2].mxu1 }
  0xfd   : > { %575 = vst [vmem:[%s984_s9 + $0x18] sm:$0xff] %v782_v28  ;;  %591 = vst [vmem:[%s984_s9 + $0x98] sm:$0xff] %v798_v29  ;;  %v448_v30 = vpop.f32.mrb[3].mxu0  ;;  %v512_v31 = vpop.f32.mrb[3].mxu1 }
  0xfe   : > { %573 = vst [vmem:[%s984_s9 + $0x8] sm:$0xff] %v448_v30  ;;  %589 = vst [vmem:[%s984_s9 + $0x88] sm:$0xff] %v512_v31 }
 0x102   : > { %v785_v32 = vpop.f32.mrb[4].mxu0  ;;  %v801_v33 = vpop.f32.mrb[4].mxu1 }
 0x103   : > { %578 = vst [vmem:[%s984_s9 + $0x30] sm:$0xff] %v785_v32  ;;  %594 = vst [vmem:[%s984_s9 + $0xb0] sm:$0xff] %v801_v33  ;;  %v461_v34 = vpop.f32.mrb[5].mxu0  ;;  %v525_v35 = vpop.f32.mrb[5].mxu1 }
 0x104   : > { %576 = vst [vmem:[%s984_s9 + $0x20] sm:$0xff] %v461_v34  ;;  %592 = vst [vmem:[%s984_s9 + $0xa0] sm:$0xff] %v525_v35  ;;  %v786_v36 = vpop.f32.mrb[6].mxu0  ;;  %v802_v37 = vpop.f32.mrb[6].mxu1 }
 0x105   : > { %579 = vst [vmem:[%s984_s9 + $0x38] sm:$0xff] %v786_v36  ;;  %595 = vst [vmem:[%s984_s9 + $0xb8] sm:$0xff] %v802_v37  ;;  %v464_v38 = vpop.f32.mrb[7].mxu0  ;;  %v528_v39 = vpop.f32.mrb[7].mxu1 }
 0x106   : > { %577 = vst [vmem:[%s984_s9 + $0x28] sm:$0xff] %v464_v38  ;;  %593 = vst [vmem:[%s984_s9 + $0xa8] sm:$0xff] %v528_v39 }
 0x10a   : > { %v789_v40 = vpop.f32.mrb[8].mxu0  ;;  %v805_v41 = vpop.f32.mrb[8].mxu1 }
 0x10b   : > { %582 = vst [vmem:[%s984_s9 + $0x50] sm:$0xff] %v789_v40  ;;  %598 = vst [vmem:[%s984_s9 + $0xd0] sm:$0xff] %v805_v41  ;;  %v477_v42 = vpop.f32.mrb[9].mxu0  ;;  %v541_v43 = vpop.f32.mrb[9].mxu1 }
 0x10c   : > { %580 = vst [vmem:[%s984_s9 + $0x40] sm:$0xff] %v477_v42  ;;  %596 = vst [vmem:[%s984_s9 + $0xc0] sm:$0xff] %v541_v43  ;;  %v790_v44 = vpop.f32.mrb[10].mxu0  ;;  %v806_v45 = vpop.f32.mrb[10].mxu1 }
 0x10d   : > { %583 = vst [vmem:[%s984_s9 + $0x58] sm:$0xff] %v790_v44  ;;  %599 = vst [vmem:[%s984_s9 + $0xd8] sm:$0xff] %v806_v45  ;;  %v480_v46 = vpop.f32.mrb[11].mxu0  ;;  %v544_v47 = vpop.f32.mrb[11].mxu1 }
 0x10e   : > { %581 = vst [vmem:[%s984_s9 + $0x48] sm:$0xff] %v480_v46  ;;  %597 = vst [vmem:[%s984_s9 + $0xc8] sm:$0xff] %v544_v47 }
 0x112   : > { %v793_v48 = vpop.f32.mrb[12].mxu0  ;;  %v809_v49 = vpop.f32.mrb[12].mxu1 }
 0x113   : > { %586 = vst [vmem:[%s984_s9 + $0x70] sm:$0xff] %v793_v48  ;;  %602 = vst [vmem:[%s984_s9 + $0xf0] sm:$0xff] %v809_v49  ;;  %v493_v50 = vpop.f32.mrb[13].mxu0  ;;  %v557_v51 = vpop.f32.mrb[13].mxu1 }
 0x114   : > { %584 = vst [vmem:[%s984_s9 + $0x60] sm:$0xff] %v493_v50  ;;  %600 = vst [vmem:[%s984_s9 + $0xe0] sm:$0xff] %v557_v51  ;;  %v794_v52 = vpop.f32.mrb[14].mxu0  ;;  %v810_v53 = vpop.f32.mrb[14].mxu1 }
 0x115   : > { %587 = vst [vmem:[%s984_s9 + $0x78] sm:$0xff] %v794_v52  ;;  %603 = vst [vmem:[%s984_s9 + $0xf8] sm:$0xff] %v810_v53  ;;  %v496_v54 = vpop.f32.mrb[15].mxu0  ;;  %v560_v55 = vpop.f32.mrb[15].mxu1 }
 0x116   : > { %585 = vst [vmem:[%s984_s9 + $0x68] sm:$0xff] %v496_v54  ;;  %601 = vst [vmem:[%s984_s9 + $0xe8] sm:$0xff] %v560_v55 }
 0x117 PF: > { %s12_s11 = sadd.s32 1, %s897_s11   ;;  %s1030_s9 = smov %s893_s10 }
 0x118   : > { %p9_p5 = scmp.ge.s32.totalorder %s12_s11, 10   ;;  %s1031_s10 = smov %s1033_s12 }
 0x11a   :  { %11 = sbr.rel (!%p9_p5) target bundleno = 2 (0x2), region = 61 }

// kernel: unet_apply.19
= control target key start
LH: loop header
LB: loop body
LE: loop exit
PB: predicated region body
PF: predicated region fallthrough
CT: control target
= control target key end

     0   :  { %s1302_s15 = smov 0   ;;  %s1304_s16 = smov 0   ;;  %s1570_s0 = inlined_call_operand.vmem [shape: bf16[512,128], index: 0, kind: input, shape index: {}]   ;;  %s1571_s1 = inlined_call_operand.vmem [shape: bf16[128,128], index: 1, kind: input, shape index: {}]   ;;  %s1572_s2 = inlined_call_operand.vmem [shape: f32[512,128], index: 2, kind: output, shape index: {0}]   ;;  %s1573_s3 = inlined_call_operand.vmem [shape: f32[16,128], index: 3, kind: output, shape index: {1}]   ;;  %s1574_s4 = inlined_call_operand.vmem [shape: f32[16,128], index: 4, kind: output, shape index: {2}]  }
   0x1   :  { %s1306_s17 = smov 0  }
   0x2 LB: > { %s34_s18 = sadd.s32 1, %s1271_s16  ;;  %p1037_p0 = scmp.ge.s32.totalorder %s1275_s17, 1  ;;  %s1275_s17 = sphi %s1306_s17, %s15_s17   ;;  %s1271_s16 = sphi %s1304_s16, %s1576_s16   ;;  %s1267_s15 = sphi %s1302_s15, %s1575_s15  }
   0x3   : > { %p36_p1 = scmp.ge.s32.totalorder %s34_s18, 2  ;;  %p214_p2 = scmp.lt.s32.totalorder %s1275_s17, 3 }
   0x5   : > { %s1578_s18 = smov (%p36_p1, %s34_s18), 0  ;;  %p215_p3 = pnand %p1037_p0, %p214_p2 }
   0x6   : > { %v1245_v0 = vld [vmem:[%s1571_s1] sm:$0xff] (!%p215_p3)   ;;  %s1038_s21 = sshll.u32 (!%p215_p3), %s1267_s15, 5  ;;  %v1246_v1 = vld [vmem:[%s1571_s1 + $0x8] sm:$0xff] (!%p215_p3)   ;;  %v1247_v2 = vld [vmem:[%s1571_s1 + $0x10] sm:$0xff] (!%p215_p3)   ;;  %p295_p5 = scmp.lt.s32.totalorder (!%p215_p3), %s1267_s15, 1 }
   0x7   : > { %218 = sbr.rel (%p215_p3) target bundleno = 331 (0x14b), region = 28  ;;  %p269_p4 = scmp.lt.s32.totalorder (!%p215_p3), %s1038_s21, 63  ;;  %1157 = vmatprep.subr.bf16.mxu0 (!%p215_p3), %v1245_v0  ;;  %1205 = vmatprep.subr.bf16.mxu1 (!%p215_p3), %v1245_v0  ;;  %v1248_v3 = vld [vmem:[%s1571_s1 + $0x18] sm:$0xff] (!%p215_p3)   ;;  %v1249_v11 = vld [vmem:[%s1571_s1 + $0x20] sm:$0xff] (!%p215_p3)   ;;  %v1250_v23 = vld [vmem:[%s1571_s1 + $0x28] sm:$0xff] (!%p215_p3)  }
   0x8   : > { %1158 = vmatpush3.bf16.msra.mxu0 (!%p215_p3), %v1245_v0  ;;  %1213 = vmatpush3.bf16.msra.mxu1 (!%p215_p3), %v1245_v0  ;;  %v1251_v33 = vld [vmem:[%s1571_s1 + $0x30] sm:$0xff] (!%p215_p3)   ;;  %v1252_v46 = vld [vmem:[%s1571_s1 + $0x38] sm:$0xff] (!%p215_p3)  }
   0x9   : > { %1159 = vmatprep.subr.bf16.mxu0 (!%p215_p3), %v1246_v1  ;;  %1206 = vmatprep.subr.bf16.mxu1 (!%p215_p3), %v1246_v1 }
   0xc   : > { %1160 = vmatpush3.bf16.msra.mxu0 (!%p215_p3), %v1246_v1  ;;  %1214 = vmatpush3.bf16.msra.mxu1 (!%p215_p3), %v1246_v1 }
   0xd   : > { %1161 = vmatprep.subr.bf16.mxu0 (!%p215_p3), %v1247_v2  ;;  %1207 = vmatprep.subr.bf16.mxu1 (!%p215_p3), %v1247_v2 }
   0xe   : > { %s1580_s21 = smov (!%p269_p4, %s1038_s21), 63  ;;  %s1582_s15 = smov (!%p295_p5, %s1267_s15), 1 }
   0xf   : > { %s1039_s26 = sshll.u32 %s1580_s21, 2  ;;  %s1041_s14 = sshll.u32 %s1580_s21, 3 }
  0x10   : > { %s1338_s29 = scalar_lea.vmem %s1570_s0, %s1039_s26  ;;  %1162 = vmatpush3.bf16.msra.mxu0 %v1247_v2  ;;  %1215 = vmatpush3.bf16.msra.mxu1 %v1247_v2  ;;  %s1441_s22 = scalar_lea.vmem %s1572_s2, %s1041_s14 }
  0x11   : > { %v1055_v4 = vld [vmem:[%s1338_s29] sm:$0xff]   ;;  %v1118_v7 = vld [vmem:[%s1338_s29 + $0x8] sm:$0xff]   ;;  %v1119_v8 = vld [vmem:[%s1338_s29 + $0x10] sm:$0xff]   ;;  %1163 = vmatprep.subr.bf16.mxu0 %v1248_v3  ;;  %1208 = vmatprep.subr.bf16.mxu1 %v1248_v3  ;;  %s1042_s21 = sshll.u32 %s1582_s15, 3 }
  0x12   : > { %v1056_v5 = vunpack.c.l.bf16 %v1055_v4  ;;  %v1057_v6 = vunpack.c.h.bf16 %v1055_v4  ;;  %v1060_v12 = vunpack.c.l.bf16 %v1118_v7  ;;  %v1120_v13 = vld [vmem:[%s1338_s29 + $0x18] sm:$0xff]   ;;  %v1061_v16 = vunpack.c.h.bf16 %v1118_v7  ;;  %v1121_v22 = vld [vmem:[%s1338_s29 + $0x20] sm:$0xff]   ;;  %v1122_v32 = vld [vmem:[%s1338_s29 + $0x28] sm:$0xff]   ;;  %s301_s25 = scalar_lea.vmem %s1573_s3, %s1042_s21  ;;  %s308_s28 = scalar_lea.vmem %s1574_s4, %s1042_s21 }
  0x13   : > { %v1064_v17 = vunpack.c.l.bf16 %v1119_v8  ;;  %v1065_v19 = vunpack.c.h.bf16 %v1119_v8  ;;  %v1068_v20 = vunpack.c.l.bf16 %v1120_v13  ;;  %v1069_v21 = vunpack.c.h.bf16 %v1120_v13  ;;  %v1125_v41 = vld [vmem:[%s1338_s29 + $0x40] sm:$0xff]   ;;  %v1126_v42 = vld [vmem:[%s1338_s29 + $0x48] sm:$0xff]   ;;  %v1123_v49 = vld [vmem:[%s1338_s29 + $0x30] sm:$0xff]  }
  0x14   : > { %vm374_vm0 = vcmp.gt.f32.partialorder %v1056_v5, 0.0  ;;  %vm375_vm1 = vcmp.gt.f32.partialorder %v1057_v6, 0.0  ;;  %v406_v9 = vmul.f32 0.2, %v1056_v5  ;;  %v407_v10 = vmul.f32 0.2, %v1057_v6  ;;  %1164 = vmatpush3.bf16.msra.mxu0 %v1248_v3  ;;  %1216 = vmatpush3.bf16.msra.mxu1 %v1248_v3 }
  0x15   : > { %1165 = vmatprep.subr.bf16.mxu0 %v1249_v11  ;;  %vm376_vm2 = vcmp.gt.f32.partialorder %v1060_v12, 0.0  ;;  %v408_v24 = vmul.f32 0.2, %v1060_v12  ;;  %v409_v25 = vmul.f32 0.2, %v1061_v16  ;;  %1209 = vmatprep.subr.bf16.mxu1 %v1249_v11  ;;  %vm377_vm3 = vcmp.gt.f32.partialorder %v1061_v16, 0.0 }
  0x16   : > { %v438_v14 = vsel %vm374_vm0, %v1056_v5, %v406_v9  ;;  %v439_v15 = vsel %vm375_vm1, %v1057_v6, %v407_v10  ;;  %v410_v26 = vmul.f32 0.2, %v1064_v17  ;;  %vm378_vm4 = vcmp.gt.f32.partialorder %v1064_v17, 0.0  ;;  %v1127_v57 = vld [vmem:[%s1338_s29 + $0x50] sm:$0xff]   ;;  %v1128_v3 = vld [vmem:[%s1338_s29 + $0x58] sm:$0xff]   ;;  %v1129_v7 = vld [vmem:[%s1338_s29 + $0x60] sm:$0xff]  }
  0x17   : > { %v470_v18 = vpack.c.bf16 %v439_v15, %v438_v14  ;;  %v411_v27 = vmul.f32 0.2, %v1065_v19  ;;  %v1072_v28 = vunpack.c.l.bf16 %v1121_v22  ;;  %vm379_vm5 = vcmp.gt.f32.partialorder %v1065_v19, 0.0 }
  0x18   : > { %1166 = vmatpush3.bf16.msra.mxu0 %v1249_v11  ;;  %v412_v29 = vmul.f32 0.2, %v1068_v20  ;;  %v413_v30 = vmul.f32 0.2, %v1069_v21  ;;  %1217 = vmatpush3.bf16.msra.mxu1 %v1249_v11  ;;  %v1073_v31 = vunpack.c.h.bf16 %v1121_v22  ;;  %vm380_vm6 = vcmp.gt.f32.partialorder %v1068_v20, 0.0  ;;  %v1131_v22 = vld [vmem:[%s1338_s29 + $0x70] sm:$0xff]  }
  0x19   : > { %1173 = vmatprep.mubr.bf16.mxu0 %v470_v18  ;;  %1167 = vmatprep.subr.bf16.mxu0 %v1250_v23  ;;  %vm381_vm7 = vcmp.gt.f32.partialorder %v1069_v21, 0.0  ;;  %v1359_v34 = vsel %vm376_vm2, %v1060_v12, %v408_v24  ;;  %v1362_v35 = vsel %vm377_vm3, %v1061_v16, %v409_v25  ;;  %v1365_v36 = vsel %vm378_vm4, %v1064_v17, %v410_v26 }
  0x1a   : > { %1210 = vmatprep.subr.bf16.mxu1 %v1250_v23  ;;  %v1367_v37 = vsel %vm379_vm5, %v1065_v19, %v411_v27  ;;  %v414_v38 = vmul.f32 0.2, %v1072_v28  ;;  %v1369_v39 = vunpack.c.l.bf16 %v1122_v32  ;;  %v1371_v40 = vunpack.c.h.bf16 %v1122_v32 }
  0x1b   : > { %v1375_v43 = vsel %vm380_vm6, %v1068_v20, %v412_v29  ;;  %v1377_v44 = vsel %vm381_vm7, %v1069_v21, %v413_v30  ;;  %vm382_vm8 = vcmp.gt.f32.partialorder %v1072_v28, 0.0  ;;  %v415_v45 = vmul.f32 0.2, %v1073_v31  ;;  %v1130_v21 = vld [vmem:[%s1338_s29 + $0x68] sm:$0xff]  }
  0x1c   : > { %1168 = vmatpush3.bf16.msra.mxu0 %v1250_v23  ;;  %1218 = vmatpush3.bf16.msra.mxu1 %v1250_v23  ;;  %v471_v47 = vpack.c.bf16 %v1362_v35, %v1359_v34  ;;  %vm383_vm9 = vcmp.gt.f32.partialorder %v1073_v31, 0.0  ;;  %v472_v48 = vpack.c.bf16 %v1367_v37, %v1365_v36  ;;  %v1088_v50 = vunpack.c.l.bf16 %v1125_v41 }
  0x1d   : > { %1169 = vmatprep.subr.bf16.mxu0 %v1251_v33  ;;  %1211 = vmatprep.subr.bf16.mxu1 %v1251_v33  ;;  %v1089_v51 = vunpack.c.h.bf16 %v1125_v41  ;;  %v1092_v52 = vunpack.c.l.bf16 %v1126_v42  ;;  %v473_v53 = vpack.c.bf16 %v1377_v44, %v1375_v43  ;;  %v1389_v54 = vsel %vm382_vm8, %v1072_v28, %v414_v38  ;;  %v1124_v38 = vld [vmem:[%s1338_s29 + $0x38] sm:$0xff]  }
  0x1e   : > { %v1392_v55 = vmul.f32 0.2, %v1369_v39  ;;  %v1395_v56 = vmul.f32 0.2, %v1371_v40  ;;  %v1398_v58 = vsel %vm383_vm9, %v1073_v31, %v415_v45  ;;  %vm390_vm10 = vcmp.gt.f32.partialorder %v1088_v50, 0.0 }
  0x1f   : > { %vm391_vm11 = vcmp.gt.f32.partialorder %v1089_v51, 0.0  ;;  %v422_v59 = vmul.f32 0.2, %v1088_v50  ;;  %v1400_v60 = vunpack.c.l.bf16 %v1123_v49  ;;  %v423_v61 = vmul.f32 0.2, %v1089_v51 }
  0x20   : > { %1170 = vmatpush3.bf16.msra.mxu0 %v1251_v33  ;;  %1219 = vmatpush3.bf16.msra.mxu1 %v1251_v33  ;;  %v1093_v62 = vunpack.c.h.bf16 %v1126_v42  ;;  %vm392_vm12 = vcmp.gt.f32.partialorder %v1092_v52, 0.0  ;;  %v1402_v63 = vunpack.c.h.bf16 %v1123_v49  ;;  %v424_v1 = vmul.f32 0.2, %v1092_v52 }
  0x21   : > { %1171 = vmatprep.subr.bf16.mxu0 %v1252_v46  ;;  %1212 = vmatprep.subr.bf16.mxu1 %v1252_v46  ;;  %v454_v0 = vsel %vm390_vm10, %v1088_v50, %v422_v59  ;;  %v1096_v2 = vunpack.c.l.bf16 %v1127_v57  ;;  %v455_v4 = vsel %vm391_vm11, %v1089_v51, %v423_v61  ;;  %v1097_v6 = vunpack.c.h.bf16 %v1127_v57 }
  0x22   : > { %vm393_vm13 = vcmp.gt.f32.partialorder %v1093_v62, 0.0  ;;  %v425_v5 = vmul.f32 0.2, %v1093_v62  ;;  %vm384_vm14 = vcmp.gt.f32.partialorder %v1369_v39, 0.0  ;;  %v478_v8 = vpack.c.bf16 %v455_v4, %v454_v0 }
  0x23   : > { %v456_v9 = vsel %vm392_vm12, %v1092_v52, %v424_v1  ;;  %vm394_vm15 = vcmp.gt.f32.partialorder %v1096_v2, 0.0  ;;  %v426_v10 = vmul.f32 0.2, %v1096_v2  ;;  %vm385_vm0 = vcmp.gt.f32.partialorder %v1371_v40, 0.0 }
  0x24   : > { %1172 = vmatpush3.bf16.msra.mxu0 %v1252_v46  ;;  %1220 = vmatpush3.bf16.msra.mxu1 %v1252_v46  ;;  %v457_v11 = vsel %vm393_vm13, %v1093_v62, %v425_v5  ;;  %vm395_vm1 = vcmp.gt.f32.partialorder %v1097_v6, 0.0  ;;  %v427_v12 = vmul.f32 0.2, %v1097_v6  ;;  %v1100_v13 = vunpack.c.l.bf16 %v1128_v3 }
  0x25   : > { %1189 = vmatprep.mubr.bf16.mxu1 %v478_v8  ;;  %v479_v14 = vpack.c.bf16 %v457_v11, %v456_v9  ;;  %v458_v15 = vsel %vm394_vm15, %v1096_v2, %v426_v10  ;;  %v1101_v16 = vunpack.c.h.bf16 %v1128_v3  ;;  %v1104_v17 = vunpack.c.l.bf16 %v1129_v7 }
  0x26   : > { %v459_v18 = vsel %vm395_vm1, %v1097_v6, %v427_v12  ;;  %vm396_vm2 = vcmp.gt.f32.partialorder %v1100_v13, 0.0  ;;  %v428_v19 = vmul.f32 0.2, %v1100_v13  ;;  %v1105_v20 = vunpack.c.h.bf16 %v1129_v7 }
  0x27   : > { %1174 = vmatmul.mubr.bf16.vlgmr.msra.gmra.mrb[0].mxu0 %v471_v47  ;;  %1190 = vmatmul.mubr.bf16.vlgmr.msra.gmra.mrb[0].mxu1 %v479_v14  ;;  %v480_v23 = vpack.c.bf16 %v459_v18, %v458_v15  ;;  %vm397_vm3 = vcmp.gt.f32.partialorder %v1101_v16, 0.0  ;;  %v429_v24 = vmul.f32 0.2, %v1101_v16  ;;  %vm398_vm4 = vcmp.gt.f32.partialorder %v1104_v17, 0.0  ;;  %v1132_v47 = vld [vmem:[%s1338_s29 + $0x78] sm:$0xff]  }
  0x28   : > { %1177 = vmatprep.mubr.bf16.mxu0 %v472_v48  ;;  %v460_v25 = vsel %vm396_vm2, %v1100_v13, %v428_v19  ;;  %vm399_vm5 = vcmp.gt.f32.partialorder %v1105_v20, 0.0  ;;  %v430_v26 = vmul.f32 0.2, %v1104_v17  ;;  %v431_v27 = vmul.f32 0.2, %v1105_v20 }
  0x29   : > { %1193 = vmatprep.mubr.bf16.mxu1 %v480_v23  ;;  %v461_v28 = vsel %vm397_vm3, %v1101_v16, %v429_v24  ;;  %v1108_v29 = vunpack.c.l.bf16 %v1130_v21  ;;  %v1109_v30 = vunpack.c.h.bf16 %v1130_v21  ;;  %v1112_v31 = vunpack.c.l.bf16 %v1131_v22 }
  0x2a   : > { %v474_v32 = vpack.c.bf16 %v1398_v58, %v1389_v54  ;;  %v462_v33 = vsel %vm398_vm4, %v1104_v17, %v430_v26  ;;  %v463_v34 = vsel %vm399_vm5, %v1105_v20, %v431_v27  ;;  %v1113_v35 = vunpack.c.h.bf16 %v1131_v22 }
  0x2b   : > { %vm386_vm6 = vcmp.gt.f32.partialorder %v1400_v60, 0.0  ;;  %v418_v36 = vmul.f32 0.2, %v1400_v60  ;;  %v419_v37 = vmul.f32 0.2, %v1402_v63  ;;  %v481_v41 = vpack.c.bf16 %v461_v28, %v460_v25 }
  0x2c   : > { %vm387_vm7 = vcmp.gt.f32.partialorder %v1402_v63, 0.0  ;;  %v482_v42 = vpack.c.bf16 %v463_v34, %v462_v33  ;;  %v432_v45 = vmul.f32 0.2, %v1108_v29  ;;  %v433_v46 = vmul.f32 0.2, %v1109_v30 }
  0x2d   : > { %vm400_vm8 = vcmp.gt.f32.partialorder %v1108_v29, 0.0  ;;  %vm401_vm9 = vcmp.gt.f32.partialorder %v1109_v30, 0.0  ;;  %v434_v48 = vmul.f32 0.2, %v1112_v31  ;;  %v435_v49 = vmul.f32 0.2, %v1113_v35 }
  0x2e   : > { %v448_v50 = vsel %vm384_vm14, %v1369_v39, %v1392_v55  ;;  %v1084_v51 = vunpack.c.l.bf16 %v1124_v38  ;;  %vm402_vm10 = vcmp.gt.f32.partialorder %v1112_v31, 0.0  ;;  %vm403_vm11 = vcmp.gt.f32.partialorder %v1113_v35, 0.0 }
  0x2f   : > { %1178 = vmatmul.mubr.bf16.gmra.mrb[4].mxu0 %v473_v53  ;;  %v449_v52 = vsel %vm385_vm0, %v1371_v40, %v1395_v56  ;;  %v450_v54 = vsel %vm386_vm6, %v1400_v60, %v418_v36  ;;  %v451_v43 = vsel %vm387_vm7, %v1402_v63, %v419_v37  ;;  %v1085_v44 = vunpack.c.h.bf16 %v1124_v38  ;;  %1194 = vmatmul.mubr.bf16.gmra.mrb[4].mxu1 %v481_v41 }
  0x30   : > { %1181 = vmatprep.mubr.bf16.mxu0 %v474_v32  ;;  %1197 = vmatprep.mubr.bf16.mxu1 %v482_v42  ;;  %v464_v39 = vsel %vm400_vm8, %v1108_v29, %v432_v45  ;;  %v465_v53 = vsel %vm401_vm9, %v1109_v30, %v433_v46  ;;  %v1116_v55 = vunpack.c.l.bf16 %v1132_v47  ;;  %v1117_v57 = vunpack.c.h.bf16 %v1132_v47 }
  0x31   : > { %v466_v58 = vsel %vm402_vm10, %v1112_v31, %v434_v48  ;;  %v467_v59 = vsel %vm403_vm11, %v1113_v35, %v435_v49  ;;  %v475_v40 = vpack.c.bf16 %v449_v52, %v448_v50  ;;  %vm388_vm12 = vcmp.gt.f32.partialorder %v1084_v51, 0.0 }
  0x32   : > { %v476_v56 = vpack.c.bf16 %v451_v43, %v450_v54  ;;  %v420_v61 = vmul.f32 0.2, %v1084_v51  ;;  %v421_v60 = vmul.f32 0.2, %v1085_v44  ;;  %v483_v62 = vpack.c.bf16 %v465_v53, %v464_v39 }
  0x33   : > { %vm389_vm13 = vcmp.gt.f32.partialorder %v1085_v44, 0.0  ;;  %v484_v0 = vpack.c.bf16 %v467_v59, %v466_v58  ;;  %v436_v63 = vmul.f32 0.2, %v1116_v55  ;;  %v437_v1 = vmul.f32 0.2, %v1117_v57 }
  0x34   : > { %vm404_vm14 = vcmp.gt.f32.partialorder %v1116_v55, 0.0  ;;  %vm405_vm15 = vcmp.gt.f32.partialorder %v1117_v57, 0.0  ;;  %v452_v2 = vsel %vm388_vm12, %v1084_v51, %v420_v61  ;;  %v453_v3 = vsel %vm389_vm13, %v1085_v44, %v421_v60 }
  0x35   : > { %v468_v4 = vsel %vm404_vm14, %v1116_v55, %v436_v63  ;;  %v469_v5 = vsel %vm405_vm15, %v1117_v57, %v437_v1  ;;  %v477_v6 = vpack.c.bf16 %v453_v3, %v452_v2 }
  0x36   : > { %v485_v7 = vpack.c.bf16 %v469_v5, %v468_v4 }
  0x37   : > { %1182 = vmatmul.mubr.bf16.gmra.mrb[8].mxu0 %v475_v40  ;;  %1198 = vmatmul.mubr.bf16.gmra.mrb[8].mxu1 %v483_v62 }
  0x38   : > { %1185 = vmatprep.mubr.bf16.mxu0 %v476_v56  ;;  %1201 = vmatprep.mubr.bf16.mxu1 %v484_v0 }
  0x3f   : > { %1186 = vmatmul.mubr.bf16.gmra.mrb[12].mxu0 %v477_v6  ;;  %1202 = vmatmul.mubr.bf16.gmra.mrb[12].mxu1 %v485_v7 }
  0xfa   : > { %v1175_v8 = vpop.f32.mrb[0].mxu0  ;;  %v1444_v10 = vpop.f32.mrb[0].mxu1 }
  0xfb   : > { %713 = vst [vmem:[%s1441_s22 + $0x10] sm:$0xff] %v1175_v8  ;;  %v584_v9 = vpop.f32.mrb[1].mxu0  ;;  %729 = vst [vmem:[%s1441_s22 + $0x90] sm:$0xff] %v1444_v10  ;;  %v1449_v12 = vpop.f32.mrb[1].mxu1  ;;  %v783_v19 = vmul.f32 %v1175_v8, %v1175_v8 }
  0xfc   : > { %711 = vst [vmem:[%s1441_s22] sm:$0xff] %v584_v9  ;;  %v1176_v11 = vpop.f32.mrb[2].mxu0  ;;  %727 = vst [vmem:[%s1441_s22 + $0x80] sm:$0xff] %v1449_v12  ;;  %v1454_v14 = vpop.f32.mrb[2].mxu1  ;;  %v781_v15 = vmul.f32 %v584_v9, %v584_v9 }
  0xfd   : > { %714 = vst [vmem:[%s1441_s22 + $0x18] sm:$0xff] %v1176_v11  ;;  %v587_v13 = vpop.f32.mrb[3].mxu0  ;;  %730 = vst [vmem:[%s1441_s22 + $0x98] sm:$0xff] %v1454_v14  ;;  %v1459_v18 = vpop.f32.mrb[3].mxu1  ;;  %v784_v22 = vmul.f32 %v1176_v11, %v1176_v11 }
  0xfe   : > { %712 = vst [vmem:[%s1441_s22 + $0x8] sm:$0xff] %v587_v13  ;;  %v743_v16 = vadd.f32 %v587_v13, %v584_v9  ;;  %v782_v17 = vmul.f32 %v587_v13, %v587_v13  ;;  %728 = vst [vmem:[%s1441_s22 + $0x88] sm:$0xff] %v1459_v18 }
 0x100   : > { %v744_v20 = vadd.f32 %v1175_v8, %v743_v16  ;;  %v813_v21 = vadd.f32 %v782_v17, %v781_v15 }
 0x102   : > { %v814_v23 = vadd.f32 %v813_v21, %v783_v19  ;;  %v1179_v24 = vpop.f32.mrb[4].mxu0  ;;  %v745_v25 = vadd.f32 %v1176_v11, %v744_v20  ;;  %v1464_v27 = vpop.f32.mrb[4].mxu1 }
 0x103   : > { %717 = vst [vmem:[%s1441_s22 + $0x30] sm:$0xff] %v1179_v24  ;;  %v600_v26 = vpop.f32.mrb[5].mxu0  ;;  %733 = vst [vmem:[%s1441_s22 + $0xb0] sm:$0xff] %v1464_v27  ;;  %v1469_v32 = vpop.f32.mrb[5].mxu1  ;;  %v787_v41 = vmul.f32 %v1179_v24, %v1179_v24 }
 0x104   : > { %715 = vst [vmem:[%s1441_s22 + $0x20] sm:$0xff] %v600_v26  ;;  %v746_v28 = vadd.f32 %v745_v25, %v600_v26  ;;  %v785_v29 = vmul.f32 %v600_v26, %v600_v26  ;;  %v815_v30 = vadd.f32 %v814_v23, %v784_v22  ;;  %v1180_v31 = vpop.f32.mrb[6].mxu0  ;;  %731 = vst [vmem:[%s1441_s22 + $0xa0] sm:$0xff] %v1469_v32  ;;  %v1474_v34 = vpop.f32.mrb[6].mxu1 }
 0x105   : > { %718 = vst [vmem:[%s1441_s22 + $0x38] sm:$0xff] %v1180_v31  ;;  %v603_v33 = vpop.f32.mrb[7].mxu0  ;;  %734 = vst [vmem:[%s1441_s22 + $0xb8] sm:$0xff] %v1474_v34  ;;  %v1479_v38 = vpop.f32.mrb[7].mxu1  ;;  %v788_v46 = vmul.f32 %v1180_v31, %v1180_v31  ;;  %v797_v25 = vmul.f32 %v1449_v12, %v1449_v12 }
 0x106   : > { %v816_v35 = vadd.f32 %v815_v30, %v785_v29  ;;  %716 = vst [vmem:[%s1441_s22 + $0x28] sm:$0xff] %v603_v33  ;;  %v747_v36 = vadd.f32 %v746_v28, %v603_v33  ;;  %v786_v37 = vmul.f32 %v603_v33, %v603_v33  ;;  %732 = vst [vmem:[%s1441_s22 + $0xa8] sm:$0xff] %v1479_v38 }
 0x107   : > { %v799_v33 = vmul.f32 %v1444_v10, %v1444_v10 }
 0x108   : > { %v748_v42 = vadd.f32 %v1179_v24, %v747_v36  ;;  %v817_v45 = vadd.f32 %v816_v35, %v786_v37  ;;  %v800_v37 = vmul.f32 %v1454_v14, %v1454_v14 }
 0x10a   : > { %v818_v47 = vadd.f32 %v817_v45, %v787_v41  ;;  %v1183_v48 = vpop.f32.mrb[8].mxu0  ;;  %v749_v49 = vadd.f32 %v1180_v31, %v748_v42  ;;  %v1484_v51 = vpop.f32.mrb[8].mxu1  ;;  %v798_v31 = vmul.f32 %v1459_v18, %v1459_v18 }
 0x10b   : > { %721 = vst [vmem:[%s1441_s22 + $0x50] sm:$0xff] %v1183_v48  ;;  %v616_v50 = vpop.f32.mrb[9].mxu0  ;;  %737 = vst [vmem:[%s1441_s22 + $0xd0] sm:$0xff] %v1484_v51  ;;  %v1489_v39 = vpop.f32.mrb[9].mxu1  ;;  %v791_v56 = vmul.f32 %v1183_v48, %v1183_v48 }
 0x10c   : > { %719 = vst [vmem:[%s1441_s22 + $0x40] sm:$0xff] %v616_v50  ;;  %v750_v52 = vadd.f32 %v749_v49, %v616_v50  ;;  %v789_v54 = vmul.f32 %v616_v50, %v616_v50  ;;  %v819_v43 = vadd.f32 %v818_v47, %v788_v46  ;;  %v1184_v44 = vpop.f32.mrb[10].mxu0  ;;  %735 = vst [vmem:[%s1441_s22 + $0xc0] sm:$0xff] %v1489_v39  ;;  %v1494_v55 = vpop.f32.mrb[10].mxu1 }
 0x10d   : > { %722 = vst [vmem:[%s1441_s22 + $0x58] sm:$0xff] %v1184_v44  ;;  %v619_v53 = vpop.f32.mrb[11].mxu0  ;;  %738 = vst [vmem:[%s1441_s22 + $0xd8] sm:$0xff] %v1494_v55  ;;  %v1499_v40 = vpop.f32.mrb[11].mxu1  ;;  %v792_v62 = vmul.f32 %v1184_v44, %v1184_v44 }
 0x10e   : > { %v820_v57 = vadd.f32 %v819_v43, %v789_v54  ;;  %720 = vst [vmem:[%s1441_s22 + $0x48] sm:$0xff] %v619_v53  ;;  %v751_v58 = vadd.f32 %v750_v52, %v619_v53  ;;  %v790_v59 = vmul.f32 %v619_v53, %v619_v53  ;;  %736 = vst [vmem:[%s1441_s22 + $0xc8] sm:$0xff] %v1499_v40 }
 0x110   : > { %v752_v61 = vadd.f32 %v1183_v48, %v751_v58  ;;  %v821_v60 = vadd.f32 %v820_v57, %v790_v59  ;;  %v802_v48 = vmul.f32 %v1479_v38, %v1479_v38  ;;  %v806_v57 = vmul.f32 %v1499_v40, %v1499_v40 }
 0x112   : > { %v822_v0 = vadd.f32 %v821_v60, %v791_v56  ;;  %v1187_v63 = vpop.f32.mrb[12].mxu0  ;;  %v753_v1 = vadd.f32 %v1184_v44, %v752_v61  ;;  %v1504_v3 = vpop.f32.mrb[12].mxu1 }
 0x113   : > { %725 = vst [vmem:[%s1441_s22 + $0x70] sm:$0xff] %v1187_v63  ;;  %v632_v2 = vpop.f32.mrb[13].mxu0  ;;  %741 = vst [vmem:[%s1441_s22 + $0xf0] sm:$0xff] %v1504_v3  ;;  %v696_v8 = vpop.f32.mrb[13].mxu1  ;;  %v795_v19 = vmul.f32 %v1187_v63, %v1187_v63 }
 0x114   : > { %723 = vst [vmem:[%s1441_s22 + $0x60] sm:$0xff] %v632_v2  ;;  %v754_v4 = vadd.f32 %v753_v1, %v632_v2  ;;  %v793_v5 = vmul.f32 %v632_v2, %v632_v2  ;;  %v823_v6 = vadd.f32 %v822_v0, %v792_v62  ;;  %v1188_v7 = vpop.f32.mrb[14].mxu0  ;;  %739 = vst [vmem:[%s1441_s22 + $0xe0] sm:$0xff] %v696_v8  ;;  %v1204_v11 = vpop.f32.mrb[14].mxu1 }
 0x115   : > { %726 = vst [vmem:[%s1441_s22 + $0x78] sm:$0xff] %v1188_v7  ;;  %v635_v9 = vpop.f32.mrb[15].mxu0  ;;  %742 = vst [vmem:[%s1441_s22 + $0xf8] sm:$0xff] %v1204_v11  ;;  %v699_v17 = vpop.f32.mrb[15].mxu1  ;;  %v796_v22 = vmul.f32 %v1188_v7, %v1188_v7  ;;  %v809_v61 = vmul.f32 %v696_v8, %v696_v8  ;;  %v811_v1 = vmul.f32 %v1504_v3, %v1504_v3 }
 0x116   : > { %v824_v13 = vadd.f32 %v823_v6, %v793_v5  ;;  %724 = vst [vmem:[%s1441_s22 + $0x68] sm:$0xff] %v635_v9  ;;  %v755_v15 = vadd.f32 %v754_v4, %v635_v9  ;;  %v794_v16 = vmul.f32 %v635_v9, %v635_v9  ;;  %740 = vst [vmem:[%s1441_s22 + $0xe8] sm:$0xff] %v699_v17 }
 0x117   : > { %v812_v4 = vmul.f32 %v1204_v11, %v1204_v11 }
 0x118   : > { %v756_v20 = vadd.f32 %v1187_v63, %v755_v15  ;;  %v825_v21 = vadd.f32 %v824_v13, %v794_v16 }
 0x11a   : > { %v826_v23 = vadd.f32 %v825_v21, %v795_v19  ;;  %v757_v24 = vadd.f32 %v1188_v7, %v756_v20 }
 0x11c   : > { %v758_v26 = vadd.f32 %v757_v24, %v1449_v12  ;;  %v827_v28 = vadd.f32 %v826_v23, %v796_v22  ;;  %v801_v12 = vmul.f32 %v1469_v32, %v1469_v32 }
 0x11e   : > { %v828_v29 = vadd.f32 %v827_v28, %v797_v25  ;;  %v759_v30 = vadd.f32 %v758_v26, %v1459_v18 }
 0x120   : > { %v760_v35 = vadd.f32 %v1444_v10, %v759_v30  ;;  %v829_v36 = vadd.f32 %v828_v29, %v798_v31  ;;  %v803_v10 = vmul.f32 %v1464_v27, %v1464_v27 }
 0x122   : > { %v830_v41 = vadd.f32 %v829_v36, %v799_v33  ;;  %v761_v42 = vadd.f32 %v1454_v14, %v760_v35  ;;  %v804_v14 = vmul.f32 %v1474_v34, %v1474_v34 }
 0x124   : > { %v762_v45 = vadd.f32 %v761_v42, %v1469_v32  ;;  %v831_v46 = vadd.f32 %v830_v41, %v800_v37  ;;  %v805_v32 = vmul.f32 %v1489_v39, %v1489_v39 }
 0x126   : > { %v832_v47 = vadd.f32 %v831_v46, %v801_v12  ;;  %v763_v18 = vadd.f32 %v762_v45, %v1479_v38 }
 0x128   : > { %v764_v49 = vadd.f32 %v1464_v27, %v763_v18  ;;  %v833_v50 = vadd.f32 %v832_v47, %v802_v48  ;;  %v807_v27 = vmul.f32 %v1484_v51, %v1484_v51 }
 0x12a   : > { %v834_v52 = vadd.f32 %v833_v50, %v803_v10  ;;  %v765_v54 = vadd.f32 %v1474_v34, %v764_v49  ;;  %v808_v34 = vmul.f32 %v1494_v55, %v1494_v55 }
 0x12c   : > { %v766_v43 = vadd.f32 %v765_v54, %v1489_v39  ;;  %v835_v44 = vadd.f32 %v834_v52, %v804_v14 }
 0x12e   : > { %v836_v53 = vadd.f32 %v835_v44, %v805_v32  ;;  %v767_v38 = vadd.f32 %v766_v43, %v1499_v40  ;;  %v810_v40 = vmul.f32 %v699_v17, %v699_v17 }
 0x130   : > { %v768_v58 = vadd.f32 %v1484_v51, %v767_v38  ;;  %v837_v59 = vadd.f32 %v836_v53, %v806_v57 }
 0x132   : > { %v838_v56 = vadd.f32 %v837_v59, %v807_v27  ;;  %v769_v39 = vadd.f32 %v1494_v55, %v768_v58 }
 0x134   : > { %v770_v60 = vadd.f32 %v769_v39, %v696_v8  ;;  %v839_v62 = vadd.f32 %v838_v56, %v808_v34 }
 0x136   : > { %v840_v0 = vadd.f32 %v839_v62, %v809_v61  ;;  %v771_v63 = vadd.f32 %v770_v60, %v699_v17 }
 0x138   : > { %v772_v2 = vadd.f32 %v1504_v3, %v771_v63  ;;  %v841_v51 = vadd.f32 %v840_v0, %v810_v40 }
 0x13a   : > { %v773_v5 = vadd.f32 %v1204_v11, %v772_v2  ;;  %v842_v6 = vadd.f32 %v841_v51, %v811_v1 }
 0x13c   : > { %v774_v7 = vrot.slane %v773_v5, 4  ;;  %v843_v9 = vadd.f32 %v842_v6, %v812_v4 }
 0x13e   : > { %v775_v55 = vadd.f32 %v774_v7, %v773_v5  ;;  %v844_v13 = vrot.slane %v843_v9, 4 }
 0x140   : > { %v776_v8 = vrot.slane %v775_v55, 2  ;;  %v845_v15 = vadd.f32 %v844_v13, %v843_v9 }
 0x142   : > { %v777_v16 = vadd.f32 %v776_v8, %v775_v55  ;;  %v846_v17 = vrot.slane %v845_v15, 2 }
 0x144   : > { %v778_v19 = vrot.slane %v777_v16, 1  ;;  %v847_v20 = vadd.f32 %v846_v17, %v845_v15 }
 0x146   : > { %v779_v3 = vadd.f32 %v778_v19, %v777_v16  ;;  %v848_v21 = vrot.slane %v847_v20, 1 }
 0x148   : > { %780 = vst [vmem:[%s301_s25] sm:$0xff] %v779_v3  ;;  %v849_v11 = vadd.f32 %v848_v21, %v847_v20 }
 0x14a   : > { %850 = vst [vmem:[%s308_s28] sm:$0xff] %v849_v11 }
 0x14b PF: > { %s15_s17 = sadd.s32 1, %s1275_s17   ;;  %s1575_s15 = smov %s1271_s16 }
 0x14c   : > { %p12_p6 = scmp.ge.s32.totalorder %s15_s17, 4   ;;  %s1576_s16 = smov %s1578_s18 }
 0x14e   :  { %14 = sbr.rel (!%p12_p6) target bundleno = 2 (0x2), region = 85 }

// kernel: unet_apply.20
= control target key start
LH: loop header
LB: loop body
LE: loop exit
PB: predicated region body
PF: predicated region fallthrough
CT: control target
= control target key end

     0   :  { %s813_s1 = inlined_call_operand.vmem [shape: bf16[256,128], index: 1, kind: input, shape index: {}]   ;;  %s814_s0 = inlined_call_operand.vmem [shape: bf16[128,256], index: 0, kind: input, shape index: {}]   ;;  %s815_s2 = inlined_call_operand.vmem [shape: f32[128,128], index: 2, kind: output, shape index: {0}]   ;;  %s816_s3 = inlined_call_operand.vmem [shape: f32[8,128], index: 3, kind: output, shape index: {1}]   ;;  %s817_s4 = inlined_call_operand.vmem [shape: f32[8,128], index: 4, kind: output, shape index: {2}]  }
   0x1   :  { %v584_v0 = vld [vmem:[%s813_s1 + $0x40] sm:$0xff]   ;;  %v586_v2 = vld [vmem:[%s813_s1 + $0x48] sm:$0xff]   ;;  %v588_v4 = vld [vmem:[%s813_s1 + $0x50] sm:$0xff]  }
   0x2   :  { %v585_v1 = vld [vmem:[%s813_s1] sm:$0xff]   ;;  %504 = vmatprep.subr.bf16.mxu0 %v584_v0  ;;  %568 = vmatprep.subr.bf16.mxu1 %v584_v0  ;;  %v587_v3 = vld [vmem:[%s813_s1 + $0x8] sm:$0xff]   ;;  %v589_v5 = vld [vmem:[%s813_s1 + $0x10] sm:$0xff]  }
   0x3   :  { %505 = vmatpush3.bf16.msra.mxu0 %v585_v1  ;;  %576 = vmatpush3.bf16.msra.mxu1 %v585_v1  ;;  %v590_v6 = vld [vmem:[%s813_s1 + $0x58] sm:$0xff]   ;;  %v592_v8 = vld [vmem:[%s813_s1 + $0x60] sm:$0xff]   ;;  %v594_v10 = vld [vmem:[%s813_s1 + $0x68] sm:$0xff]  }
   0x4   :  { %506 = vmatprep.subr.bf16.mxu0 %v586_v2  ;;  %569 = vmatprep.subr.bf16.mxu1 %v586_v2  ;;  %v591_v7 = vld [vmem:[%s813_s1 + $0x18] sm:$0xff]   ;;  %v593_v9 = vld [vmem:[%s813_s1 + $0x20] sm:$0xff]   ;;  %v16_v12 = vld [vmem:[%s814_s0 + $0x8] sm:$0xff] }
   0x5   :  { %v15_v11 = vld [vmem:[%s814_s0] sm:$0xff]  ;;  %v17_v13 = vld [vmem:[%s814_s0 + $0x10] sm:$0xff]  ;;  %v33_v16 = vunpack.c.l.bf16 %v16_v12  ;;  %v34_v17 = vunpack.c.h.bf16 %v16_v12  ;;  %v18_v18 = vld [vmem:[%s814_s0 + $0x18] sm:$0xff] }
   0x6   :  { %v31_v14 = vunpack.c.l.bf16 %v15_v11  ;;  %v32_v15 = vunpack.c.h.bf16 %v15_v11  ;;  %v595_v19 = vld [vmem:[%s813_s1 + $0x28] sm:$0xff]   ;;  %v596_v20 = vld [vmem:[%s813_s1 + $0x70] sm:$0xff]   ;;  %v36_v21 = vunpack.c.h.bf16 %v17_v13  ;;  %v38_v22 = vunpack.c.h.bf16 %v18_v18  ;;  %v23_v31 = vld [vmem:[%s814_s0 + $0x40] sm:$0xff] }
   0x7   :  { %507 = vmatpush3.bf16.msra.mxu0 %v587_v3  ;;  %577 = vmatpush3.bf16.msra.mxu1 %v587_v3  ;;  %v35_v23 = vunpack.c.l.bf16 %v17_v13  ;;  %v37_v24 = vunpack.c.l.bf16 %v18_v18  ;;  %vm66_vm1 = vcmp.gt.f32.partialorder %v34_v17, 0.0  ;;  %v98_v26 = vmul.f32 0.2, %v34_v17  ;;  %v24_v35 = vld [vmem:[%s814_s0 + $0x48] sm:$0xff]  ;;  %v597_v36 = vld [vmem:[%s813_s1 + $0x30] sm:$0xff]   ;;  %v598_v39 = vld [vmem:[%s813_s1 + $0x78] sm:$0xff]  }
   0x8   :  { %508 = vmatprep.subr.bf16.mxu0 %v588_v4  ;;  %570 = vmatprep.subr.bf16.mxu1 %v588_v4  ;;  %vm64_vm0 = vcmp.gt.f32.partialorder %v32_v15, 0.0  ;;  %v96_v25 = vmul.f32 0.2, %v32_v15  ;;  %vm63_vm2 = vcmp.gt.f32.partialorder %v31_v14, 0.0  ;;  %vm65_vm3 = vcmp.gt.f32.partialorder %v33_v16, 0.0  ;;  %v19_v48 = vld [vmem:[%s814_s0 + $0x20] sm:$0xff] }
   0x9   :  { %v95_v27 = vmul.f32 0.2, %v31_v14  ;;  %v97_v28 = vmul.f32 0.2, %v33_v16  ;;  %v130_v30 = vsel %vm66_vm1, %v34_v17, %v98_v26  ;;  %vm68_vm4 = vcmp.gt.f32.partialorder %v36_v21, 0.0  ;;  %v20_v53 = vld [vmem:[%s814_s0 + $0x28] sm:$0xff] }
   0xa   :  { %v128_v29 = vsel %vm64_vm0, %v32_v15, %v96_v25  ;;  %vm70_vm5 = vcmp.gt.f32.partialorder %v38_v22, 0.0  ;;  %v100_v34 = vmul.f32 0.2, %v36_v21  ;;  %v102_v38 = vmul.f32 0.2, %v38_v22  ;;  %v599_v54 = vld [vmem:[%s813_s1 + $0x38] sm:$0xff]  }
   0xb   :  { %509 = vmatpush3.bf16.msra.mxu0 %v589_v5  ;;  %578 = vmatpush3.bf16.msra.mxu1 %v589_v5  ;;  %v160_v32 = vpack.c.bf16 %v130_v30, %v128_v29  ;;  %v679_v33 = vsel %vm63_vm2, %v31_v14, %v95_v27  ;;  %v129_v37 = vsel %vm65_vm3, %v33_v16, %v97_v28  ;;  %vm67_vm6 = vcmp.gt.f32.partialorder %v35_v23, 0.0  ;;  %v25_v2 = vld [vmem:[%s814_s0 + $0x50] sm:$0xff]  ;;  %v26_v3 = vld [vmem:[%s814_s0 + $0x58] sm:$0xff] }
   0xc   :  { %510 = vmatprep.subr.bf16.mxu0 %v590_v6  ;;  %571 = vmatprep.subr.bf16.mxu1 %v590_v6  ;;  %vm69_vm7 = vcmp.gt.f32.partialorder %v37_v24, 0.0  ;;  %v132_v40 = vsel %vm68_vm4, %v36_v21, %v100_v34  ;;  %v99_v41 = vmul.f32 0.2, %v35_v23  ;;  %v101_v42 = vmul.f32 0.2, %v37_v24  ;;  %v21_v17 = vld [vmem:[%s814_s0 + $0x30] sm:$0xff] }
   0xd   :  { %335 = vmatprep.mubr.bf16.mxu0 %v160_v32  ;;  %v47_v43 = vunpack.c.l.bf16 %v23_v31  ;;  %v134_v44 = vsel %vm70_vm5, %v38_v22, %v102_v38  ;;  %v48_v45 = vunpack.c.h.bf16 %v23_v31  ;;  %v49_v46 = vunpack.c.l.bf16 %v24_v35  ;;  %v27_v31 = vld [vmem:[%s814_s0 + $0x60] sm:$0xff] }
   0xe   :  { %v50_v47 = vunpack.c.h.bf16 %v24_v35  ;;  %v159_v49 = vpack.c.bf16 %v129_v37, %v679_v33  ;;  %v162_v50 = vpack.c.bf16 %v134_v44, %v132_v40  ;;  %v697_v51 = vsel %vm67_vm6, %v35_v23, %v99_v41  ;;  %v28_v35 = vld [vmem:[%s814_s0 + $0x68] sm:$0xff] }
   0xf   :  { %511 = vmatpush3.bf16.msra.mxu0 %v591_v7  ;;  %579 = vmatpush3.bf16.msra.mxu1 %v591_v7  ;;  %v700_v52 = vsel %vm69_vm7, %v37_v24, %v101_v42  ;;  %vm80_vm8 = vcmp.gt.f32.partialorder %v48_v45, 0.0  ;;  %v112_v55 = vmul.f32 0.2, %v48_v45  ;;  %vm79_vm10 = vcmp.gt.f32.partialorder %v47_v43, 0.0 }
  0x10   :  { %512 = vmatprep.subr.bf16.mxu0 %v592_v8  ;;  %572 = vmatprep.subr.bf16.mxu1 %v592_v8  ;;  %vm82_vm9 = vcmp.gt.f32.partialorder %v50_v47, 0.0  ;;  %v114_v56 = vmul.f32 0.2, %v50_v47  ;;  %vm81_vm11 = vcmp.gt.f32.partialorder %v49_v46, 0.0  ;;  %v111_v57 = vmul.f32 0.2, %v47_v43 }
  0x11   :  { %v40_v58 = vunpack.c.h.bf16 %v19_v48  ;;  %v144_v59 = vsel %vm80_vm8, %v48_v45, %v112_v55  ;;  %v113_v60 = vmul.f32 0.2, %v49_v46  ;;  %v42_v61 = vunpack.c.h.bf16 %v20_v53  ;;  %v29_v45 = vld [vmem:[%s814_s0 + $0x70] sm:$0xff] }
  0x12   :  { %v39_v62 = vunpack.c.l.bf16 %v19_v48  ;;  %v146_v63 = vsel %vm82_vm9, %v50_v47, %v114_v56  ;;  %v143_v0 = vsel %vm79_vm10, %v47_v43, %v111_v57  ;;  %v52_v12 = vunpack.c.h.bf16 %v25_v2  ;;  %v30_v48 = vld [vmem:[%s814_s0 + $0x78] sm:$0xff] }
  0x13   :  { %513 = vmatpush3.bf16.msra.mxu0 %v593_v9  ;;  %580 = vmatpush3.bf16.msra.mxu1 %v593_v9  ;;  %vm72_vm12 = vcmp.gt.f32.partialorder %v40_v58, 0.0  ;;  %v104_v1 = vmul.f32 0.2, %v40_v58  ;;  %v168_v4 = vpack.c.bf16 %v146_v63, %v144_v59  ;;  %v145_v5 = vsel %vm81_vm11, %v49_v46, %v113_v60 }
  0x14   :  { %514 = vmatprep.subr.bf16.mxu0 %v594_v10  ;;  %573 = vmatprep.subr.bf16.mxu1 %v594_v10  ;;  %vm74_vm13 = vcmp.gt.f32.partialorder %v42_v61, 0.0  ;;  %v106_v6 = vmul.f32 0.2, %v42_v61  ;;  %v167_v7 = vpack.c.bf16 %v145_v5, %v143_v0  ;;  %v41_v9 = vunpack.c.l.bf16 %v20_v53 }
  0x15   :  { %v136_v8 = vsel %vm72_vm12, %v40_v58, %v104_v1  ;;  %vm71_vm14 = vcmp.gt.f32.partialorder %v39_v62, 0.0  ;;  %367 = vmatprep.mubr.bf16.mxu1 %v168_v4  ;;  %v103_v11 = vmul.f32 0.2, %v39_v62  ;;  %v54_v13 = vunpack.c.h.bf16 %v26_v3 }
  0x16   :  { %v138_v10 = vsel %vm74_vm13, %v42_v61, %v106_v6  ;;  %v161_v14 = vpack.c.bf16 %v700_v52, %v697_v51  ;;  %vm73_vm15 = vcmp.gt.f32.partialorder %v41_v9, 0.0  ;;  %v105_v15 = vmul.f32 0.2, %v41_v9 }
  0x17   :  { %515 = vmatpush3.bf16.msra.mxu0 %v595_v19  ;;  %581 = vmatpush3.bf16.msra.mxu1 %v595_v19  ;;  %v51_v16 = vunpack.c.l.bf16 %v25_v2  ;;  %v164_v18 = vpack.c.bf16 %v138_v10, %v136_v8  ;;  %vm84_vm0 = vcmp.gt.f32.partialorder %v52_v12, 0.0  ;;  %vm86_vm1 = vcmp.gt.f32.partialorder %v54_v13, 0.0 }
  0x18   :  { %516 = vmatprep.subr.bf16.mxu0 %v596_v20  ;;  %574 = vmatprep.subr.bf16.mxu1 %v596_v20  ;;  %v116_v19 = vmul.f32 0.2, %v52_v12  ;;  %v22_v20 = vld [vmem:[%s814_s0 + $0x38] sm:$0xff]  ;;  %v724_v21 = vsel %vm71_vm14, %v39_v62, %v103_v11  ;;  %v118_v22 = vmul.f32 0.2, %v54_v13  ;;  %v53_v23 = vunpack.c.l.bf16 %v26_v3 }
  0x19   :  { %vm83_vm2 = vcmp.gt.f32.partialorder %v51_v16, 0.0  ;;  %v137_v24 = vsel %vm73_vm15, %v41_v9, %v105_v15  ;;  %v115_v26 = vmul.f32 0.2, %v51_v16  ;;  %v44_v27 = vunpack.c.h.bf16 %v21_v17 }
  0x1a   :  { %v148_v25 = vsel %vm84_vm0, %v52_v12, %v116_v19  ;;  %v150_v28 = vsel %vm86_vm1, %v54_v13, %v118_v22  ;;  %vm85_vm3 = vcmp.gt.f32.partialorder %v53_v23, 0.0  ;;  %v117_v29 = vmul.f32 0.2, %v53_v23 }
  0x1b   :  { %517 = vmatpush3.bf16.msra.mxu0 %v597_v36  ;;  %582 = vmatpush3.bf16.msra.mxu1 %v597_v36  ;;  %v46_v30 = vunpack.c.h.bf16 %v22_v20  ;;  %v170_v32 = vpack.c.bf16 %v150_v28, %v148_v25  ;;  %v147_v33 = vsel %vm83_vm2, %v51_v16, %v115_v26  ;;  %vm76_vm4 = vcmp.gt.f32.partialorder %v44_v27, 0.0 }
  0x1c   :  { %518 = vmatprep.subr.bf16.mxu0 %v598_v39  ;;  %575 = vmatprep.subr.bf16.mxu1 %v598_v39  ;;  %v108_v34 = vmul.f32 0.2, %v44_v27  ;;  %v149_v36 = vsel %vm85_vm3, %v53_v23, %v117_v29  ;;  %v43_v38 = vunpack.c.l.bf16 %v21_v17  ;;  %v45_v41 = vunpack.c.l.bf16 %v22_v20 }
  0x1d   :  { %vm78_vm5 = vcmp.gt.f32.partialorder %v46_v30, 0.0  ;;  %v110_v37 = vmul.f32 0.2, %v46_v30  ;;  %v169_v39 = vpack.c.bf16 %v149_v36, %v147_v33  ;;  %v56_v42 = vunpack.c.h.bf16 %v27_v31 }
  0x1e   :  { %v140_v40 = vsel %vm76_vm4, %v44_v27, %v108_v34  ;;  %v58_v44 = vunpack.c.h.bf16 %v28_v35  ;;  %v163_v46 = vpack.c.bf16 %v137_v24, %v724_v21  ;;  %vm75_vm6 = vcmp.gt.f32.partialorder %v43_v38, 0.0 }
  0x1f   :  { %519 = vmatpush3.bf16.msra.mxu0 %v599_v54  ;;  %583 = vmatpush3.bf16.msra.mxu1 %v599_v54  ;;  %v142_v43 = vsel %vm78_vm5, %v46_v30, %v110_v37  ;;  %v107_v47 = vmul.f32 0.2, %v43_v38  ;;  %vm88_vm7 = vcmp.gt.f32.partialorder %v56_v42, 0.0  ;;  %vm77_vm9 = vcmp.gt.f32.partialorder %v45_v41, 0.0 }
  0x20   :  { %vm90_vm8 = vcmp.gt.f32.partialorder %v58_v44, 0.0  ;;  %v122_v51 = vmul.f32 0.2, %v58_v44  ;;  %v55_v52 = vunpack.c.l.bf16 %v27_v31  ;;  %v57_v53 = vunpack.c.l.bf16 %v28_v35 }
  0x21   :  { %v60_v54 = vunpack.c.h.bf16 %v29_v45  ;;  %v109_v55 = vmul.f32 0.2, %v45_v41  ;;  %v62_v58 = vunpack.c.h.bf16 %v30_v48  ;;  %v59_v1 = vunpack.c.l.bf16 %v29_v45 }
  0x22   :  { %336 = vmatmul.mubr.bf16.vlgmr.msra.gmra.mrb[0].mxu0 %v159_v49  ;;  %368 = vmatmul.mubr.bf16.vlgmr.msra.gmra.mrb[0].mxu1 %v167_v7  ;;  %v166_v49 = vpack.c.bf16 %v142_v43, %v140_v40  ;;  %v154_v57 = vsel %vm90_vm8, %v58_v44, %v122_v51  ;;  %vm87_vm10 = vcmp.gt.f32.partialorder %v55_v52, 0.0  ;;  %vm89_vm11 = vcmp.gt.f32.partialorder %v57_v53, 0.0 }
  0x23   :  { %343 = vmatprep.mubr.bf16.mxu0 %v162_v50  ;;  %375 = vmatprep.mubr.bf16.mxu1 %v170_v32  ;;  %v120_v50 = vmul.f32 0.2, %v56_v42  ;;  %v119_v60 = vmul.f32 0.2, %v55_v52  ;;  %v121_v61 = vmul.f32 0.2, %v57_v53  ;;  %v61_v2 = vunpack.c.l.bf16 %v30_v48 }
  0x24   :  { %vm92_vm12 = vcmp.gt.f32.partialorder %v60_v54, 0.0  ;;  %vm94_vm13 = vcmp.gt.f32.partialorder %v62_v58, 0.0  ;;  %v124_v62 = vmul.f32 0.2, %v60_v54  ;;  %v126_v0 = vmul.f32 0.2, %v62_v58 }
  0x25   :  { %v152_v56 = vsel %vm88_vm7, %v56_v42, %v120_v50  ;;  %v151_v63 = vsel %vm87_vm10, %v55_v52, %v119_v60  ;;  %v139_v3 = vsel %vm75_vm6, %v43_v38, %v107_v47  ;;  %v141_v4 = vsel %vm77_vm9, %v45_v41, %v109_v55 }
  0x26   :  { %v172_v59 = vpack.c.bf16 %v154_v57, %v152_v56  ;;  %v153_v5 = vsel %vm89_vm11, %v57_v53, %v121_v61  ;;  %v156_v6 = vsel %vm92_vm12, %v60_v54, %v124_v62  ;;  %v158_v8 = vsel %vm94_vm13, %v62_v58, %v126_v0 }
  0x27   :  { %v171_v7 = vpack.c.bf16 %v153_v5, %v151_v63  ;;  %vm91_vm14 = vcmp.gt.f32.partialorder %v59_v1, 0.0  ;;  %vm93_vm15 = vcmp.gt.f32.partialorder %v61_v2, 0.0  ;;  %v174_v9 = vpack.c.bf16 %v158_v8, %v156_v6 }
  0x28   :  { %v123_v10 = vmul.f32 0.2, %v59_v1  ;;  %v125_v11 = vmul.f32 0.2, %v61_v2  ;;  %v165_v12 = vpack.c.bf16 %v141_v4, %v139_v3 }
  0x2a   :  { %344 = vmatmul.mubr.bf16.gmra.mrb[4].mxu0 %v161_v14  ;;  %376 = vmatmul.mubr.bf16.gmra.mrb[4].mxu1 %v169_v39  ;;  %v155_v13 = vsel %vm91_vm14, %v59_v1, %v123_v10  ;;  %v157_v14 = vsel %vm93_vm15, %v61_v2, %v125_v11 }
  0x2b   :  { %351 = vmatprep.mubr.bf16.mxu0 %v164_v18  ;;  %383 = vmatprep.mubr.bf16.mxu1 %v172_v59  ;;  %v173_v15 = vpack.c.bf16 %v157_v14, %v155_v13 }
  0x32   :  { %352 = vmatmul.mubr.bf16.gmra.mrb[8].mxu0 %v163_v46  ;;  %384 = vmatmul.mubr.bf16.gmra.mrb[8].mxu1 %v171_v7 }
  0x33   :  { %359 = vmatprep.mubr.bf16.mxu0 %v166_v49  ;;  %391 = vmatprep.mubr.bf16.mxu1 %v174_v9 }
  0x3a   :  { %360 = vmatmul.mubr.bf16.gmra.mrb[12].mxu0 %v165_v12  ;;  %392 = vmatmul.mubr.bf16.gmra.mrb[12].mxu1 %v173_v15 }
  0xf5   :  { %v520_v16 = vpop.f32.mrb[0].mxu0  ;;  %v544_v17 = vpop.f32.mrb[0].mxu1 }
  0xf6   :  { %v521_v18 = vpop.f32.mrb[1].mxu0  ;;  %v545_v19 = vpop.f32.mrb[1].mxu1 }
  0xf7   :  { %v522_v20 = vadd.f32 %v521_v18, %v520_v16  ;;  %v523_v21 = vpop.f32.mrb[2].mxu0  ;;  %v741_v22 = vadd.f32 %v545_v19, %v544_v17  ;;  %v547_v23 = vpop.f32.mrb[2].mxu1 }
  0xf8   :  { %v524_v24 = vpop.f32.mrb[3].mxu0  ;;  %v548_v25 = vpop.f32.mrb[3].mxu1 }
  0xf9   :  { %400 = vst [vmem:[%s815_s2] sm:$0xff] %v522_v20  ;;  %v525_v26 = vadd.f32 %v524_v24, %v523_v21  ;;  %408 = vst [vmem:[%s815_s2 + $0x40] sm:$0xff] %v741_v22  ;;  %v750_v27 = vadd.f32 %v548_v25, %v547_v23  ;;  %v438_v28 = vmul.f32 %v522_v20, %v522_v20 }
  0xfa   :  { %v446_v21 = vmul.f32 %v741_v22, %v741_v22 }
  0xfb   :  { %401 = vst [vmem:[%s815_s2 + $0x8] sm:$0xff] %v525_v26  ;;  %v416_v29 = vadd.f32 %v525_v26, %v522_v20  ;;  %v439_v30 = vmul.f32 %v525_v26, %v525_v26  ;;  %409 = vst [vmem:[%s815_s2 + $0x48] sm:$0xff] %v750_v27  ;;  %v447_v25 = vmul.f32 %v750_v27, %v750_v27 }
  0xfd   :  { %v454_v31 = vadd.f32 %v439_v30, %v438_v28  ;;  %v526_v32 = vpop.f32.mrb[4].mxu0  ;;  %v550_v34 = vpop.f32.mrb[4].mxu1 }
  0xfe   :  { %v527_v33 = vpop.f32.mrb[5].mxu0  ;;  %v551_v37 = vpop.f32.mrb[5].mxu1 }
  0xff   :  { %v528_v35 = vadd.f32 %v527_v33, %v526_v32  ;;  %v529_v36 = vpop.f32.mrb[6].mxu0  ;;  %v759_v39 = vadd.f32 %v551_v37, %v550_v34  ;;  %v553_v40 = vpop.f32.mrb[6].mxu1 }
 0x100   :  { %v530_v38 = vpop.f32.mrb[7].mxu0  ;;  %v554_v44 = vpop.f32.mrb[7].mxu1 }
 0x101   :  { %402 = vst [vmem:[%s815_s2 + $0x10] sm:$0xff] %v528_v35  ;;  %v417_v41 = vadd.f32 %v528_v35, %v416_v29  ;;  %v440_v42 = vmul.f32 %v528_v35, %v528_v35  ;;  %v531_v43 = vadd.f32 %v530_v38, %v529_v36  ;;  %410 = vst [vmem:[%s815_s2 + $0x50] sm:$0xff] %v759_v39 }
 0x102   :  { %v555_v45 = vadd.f32 %v554_v44, %v553_v40  ;;  %v448_v29 = vmul.f32 %v759_v39, %v759_v39 }
 0x103   :  { %v455_v46 = vadd.f32 %v454_v31, %v440_v42  ;;  %403 = vst [vmem:[%s815_s2 + $0x18] sm:$0xff] %v531_v43  ;;  %v418_v47 = vadd.f32 %v531_v43, %v417_v41  ;;  %v441_v48 = vmul.f32 %v531_v43, %v531_v43 }
 0x104   :  { %411 = vst [vmem:[%s815_s2 + $0x58] sm:$0xff] %v555_v45  ;;  %v449_v32 = vmul.f32 %v555_v45, %v555_v45 }
 0x105   :  { %v456_v49 = vadd.f32 %v455_v46, %v441_v48  ;;  %v532_v50 = vpop.f32.mrb[8].mxu0  ;;  %v556_v55 = vpop.f32.mrb[8].mxu1 }
 0x106   :  { %v533_v51 = vpop.f32.mrb[9].mxu0  ;;  %v557_v59 = vpop.f32.mrb[9].mxu1 }
 0x107   :  { %v534_v52 = vadd.f32 %v533_v51, %v532_v50  ;;  %v535_v53 = vpop.f32.mrb[10].mxu0  ;;  %v558_v60 = vadd.f32 %v557_v59, %v556_v55  ;;  %v559_v61 = vpop.f32.mrb[10].mxu1 }
 0x108   :  { %v536_v54 = vpop.f32.mrb[11].mxu0  ;;  %v560_v1 = vpop.f32.mrb[11].mxu1 }
 0x109   :  { %404 = vst [vmem:[%s815_s2 + $0x20] sm:$0xff] %v534_v52  ;;  %v419_v56 = vadd.f32 %v534_v52, %v418_v47  ;;  %v442_v57 = vmul.f32 %v534_v52, %v534_v52  ;;  %v537_v58 = vadd.f32 %v536_v54, %v535_v53  ;;  %412 = vst [vmem:[%s815_s2 + $0x60] sm:$0xff] %v558_v60 }
 0x10a   :  { %v561_v2 = vadd.f32 %v560_v1, %v559_v61  ;;  %v450_v35 = vmul.f32 %v558_v60, %v558_v60 }
 0x10b   :  { %v457_v62 = vadd.f32 %v456_v49, %v442_v57  ;;  %405 = vst [vmem:[%s815_s2 + $0x28] sm:$0xff] %v537_v58  ;;  %v420_v63 = vadd.f32 %v537_v58, %v419_v56  ;;  %v443_v0 = vmul.f32 %v537_v58, %v537_v58 }
 0x10c   :  { %413 = vst [vmem:[%s815_s2 + $0x68] sm:$0xff] %v561_v2  ;;  %v451_v40 = vmul.f32 %v561_v2, %v561_v2 }
 0x10d   :  { %v458_v3 = vadd.f32 %v457_v62, %v443_v0  ;;  %v538_v4 = vpop.f32.mrb[12].mxu0  ;;  %v562_v9 = vpop.f32.mrb[12].mxu1 }
 0x10e   :  { %v539_v5 = vpop.f32.mrb[13].mxu0  ;;  %v563_v13 = vpop.f32.mrb[13].mxu1 }
 0x10f   :  { %v540_v6 = vadd.f32 %v539_v5, %v538_v4  ;;  %v541_v7 = vpop.f32.mrb[14].mxu0  ;;  %v564_v14 = vadd.f32 %v563_v13, %v562_v9  ;;  %v565_v15 = vpop.f32.mrb[14].mxu1 }
 0x110   :  { %v542_v8 = vpop.f32.mrb[15].mxu0  ;;  %v566_v19 = vpop.f32.mrb[15].mxu1 }
 0x111   :  { %406 = vst [vmem:[%s815_s2 + $0x30] sm:$0xff] %v540_v6  ;;  %v421_v10 = vadd.f32 %v540_v6, %v420_v63  ;;  %v444_v11 = vmul.f32 %v540_v6, %v540_v6  ;;  %v543_v12 = vadd.f32 %v542_v8, %v541_v7  ;;  %414 = vst [vmem:[%s815_s2 + $0x70] sm:$0xff] %v564_v14 }
 0x112   :  { %v567_v20 = vadd.f32 %v566_v19, %v565_v15  ;;  %v452_v41 = vmul.f32 %v564_v14, %v564_v14 }
 0x113   :  { %v459_v16 = vadd.f32 %v458_v3, %v444_v11  ;;  %407 = vst [vmem:[%s815_s2 + $0x38] sm:$0xff] %v543_v12  ;;  %v422_v17 = vadd.f32 %v543_v12, %v421_v10  ;;  %v445_v18 = vmul.f32 %v543_v12, %v543_v12 }
 0x114   :  { %415 = vst [vmem:[%s815_s2 + $0x78] sm:$0xff] %v567_v20  ;;  %v453_v46 = vmul.f32 %v567_v20, %v567_v20 }
 0x115   :  { %v423_v23 = vadd.f32 %v741_v22, %v422_v17  ;;  %v460_v24 = vadd.f32 %v459_v16, %v445_v18 }
 0x117   :  { %v424_v26 = vadd.f32 %v750_v27, %v423_v23  ;;  %v461_v28 = vadd.f32 %v460_v24, %v446_v21 }
 0x119   :  { %v462_v30 = vadd.f32 %v461_v28, %v447_v25  ;;  %v425_v31 = vadd.f32 %v759_v39, %v424_v26 }
 0x11b   :  { %v426_v33 = vadd.f32 %v555_v45, %v425_v31  ;;  %v463_v22 = vadd.f32 %v462_v30, %v448_v29 }
 0x11d   :  { %v427_v34 = vadd.f32 %v558_v60, %v426_v33  ;;  %v464_v36 = vadd.f32 %v463_v22, %v449_v32 }
 0x11f   :  { %v465_v37 = vadd.f32 %v464_v36, %v450_v35  ;;  %v428_v38 = vadd.f32 %v561_v2, %v427_v34 }
 0x121   :  { %v466_v42 = vadd.f32 %v465_v37, %v451_v40  ;;  %v429_v43 = vadd.f32 %v564_v14, %v428_v38 }
 0x123   :  { %v467_v27 = vadd.f32 %v466_v42, %v452_v41  ;;  %v430_v44 = vadd.f32 %v567_v20, %v429_v43 }
 0x125   :  { %v431_v47 = vrot.slane %v430_v44, 4  ;;  %v468_v48 = vadd.f32 %v467_v27, %v453_v46 }
 0x127   :  { %v432_v49 = vadd.f32 %v431_v47, %v430_v44  ;;  %v469_v50 = vrot.slane %v468_v48, 4 }
 0x129   :  { %v433_v39 = vrot.slane %v432_v49, 2  ;;  %v470_v51 = vadd.f32 %v469_v50, %v468_v48 }
 0x12b   :  { %v434_v45 = vadd.f32 %v433_v39, %v432_v49  ;;  %v471_v52 = vrot.slane %v470_v51, 2 }
 0x12d   :  { %v435_v53 = vrot.slane %v434_v45, 1  ;;  %v472_v54 = vadd.f32 %v471_v52, %v470_v51 }
 0x12f   :  { %v436_v55 = vadd.f32 %v435_v53, %v434_v45  ;;  %v473_v56 = vrot.slane %v472_v54, 1 }
 0x131   :  { %437 = vst [vmem:[%s816_s3] sm:$0xff] %v436_v55  ;;  %v474_v57 = vadd.f32 %v473_v56, %v472_v54 }
 0x133   :  { %475 = vst [vmem:[%s817_s4] sm:$0xff] %v474_v57 }

// kernel: unet_apply.21
= control target key start
LH: loop header
LB: loop body
LE: loop exit
PB: predicated region body
PF: predicated region fallthrough
CT: control target
= control target key end

     0   :  { %s773_s1 = inlined_call_operand.vmem [shape: bf16[512,128], index: 1, kind: input, shape index: {}]   ;;  %s774_s0 = inlined_call_operand.vmem [shape: bf16[32,512], index: 0, kind: input, shape index: {}]   ;;  %s775_s2 = inlined_call_operand.vmem [shape: f32[32,128], index: 2, kind: output, shape index: {0}]   ;;  %s776_s3 = inlined_call_operand.vmem [shape: f32[8,128], index: 3, kind: output, shape index: {1}]   ;;  %s777_s4 = inlined_call_operand.vmem [shape: f32[8,128], index: 4, kind: output, shape index: {2}]  }
   0x1   :  { %v577_v0 = vld [vmem:[%s773_s1 + $0x40] sm:$0xff]   ;;  %v581_v4 = vld [vmem:[%s773_s1 + $0x48] sm:$0xff]   ;;  %v585_v8 = vld [vmem:[%s773_s1 + $0x50] sm:$0xff]  }
   0x2   :  { %v578_v1 = vld [vmem:[%s773_s1 + $0xc0] sm:$0xff]   ;;  %521 = vmatprep.subr.bf16.mxu0 %v577_v0  ;;  %v582_v5 = vld [vmem:[%s773_s1 + $0xc8] sm:$0xff]   ;;  %v586_v9 = vld [vmem:[%s773_s1 + $0xd0] sm:$0xff]  }
   0x3   :  { %v579_v2 = vld [vmem:[%s773_s1] sm:$0xff]   ;;  %549 = vmatprep.subr.bf16.mxu1 %v578_v1  ;;  %v583_v6 = vld [vmem:[%s773_s1 + $0x8] sm:$0xff]   ;;  %v587_v10 = vld [vmem:[%s773_s1 + $0x10] sm:$0xff]  }
   0x4   :  { %v580_v3 = vld [vmem:[%s773_s1 + $0x80] sm:$0xff]   ;;  %522 = vmatpush3.bf16.msra.mxu0 %v579_v2  ;;  %v584_v7 = vld [vmem:[%s773_s1 + $0x88] sm:$0xff]   ;;  %v588_v11 = vld [vmem:[%s773_s1 + $0x90] sm:$0xff]  }
   0x5   :  { %550 = vmatpush3.bf16.msra.mxu1 %v580_v3  ;;  %523 = vmatprep.subr.bf16.mxu0 %v581_v4  ;;  %v589_v12 = vld [vmem:[%s773_s1 + $0x58] sm:$0xff]   ;;  %v593_v16 = vld [vmem:[%s773_s1 + $0x60] sm:$0xff]   ;;  %v597_v20 = vld [vmem:[%s773_s1 + $0x68] sm:$0xff]  }
   0x6   :  { %551 = vmatprep.subr.bf16.mxu1 %v582_v5  ;;  %v590_v13 = vld [vmem:[%s773_s1 + $0xd8] sm:$0xff]   ;;  %v594_v17 = vld [vmem:[%s773_s1 + $0xe0] sm:$0xff]   ;;  %v598_v21 = vld [vmem:[%s773_s1 + $0xe8] sm:$0xff]  }
   0x7   :  { %v591_v14 = vld [vmem:[%s773_s1 + $0x18] sm:$0xff]   ;;  %v595_v18 = vld [vmem:[%s773_s1 + $0x20] sm:$0xff]   ;;  %v599_v22 = vld [vmem:[%s773_s1 + $0x28] sm:$0xff]  }
   0x8   :  { %524 = vmatpush3.bf16.msra.mxu0 %v583_v6  ;;  %v592_v15 = vld [vmem:[%s773_s1 + $0x98] sm:$0xff]   ;;  %v596_v19 = vld [vmem:[%s773_s1 + $0xa0] sm:$0xff]   ;;  %v600_v23 = vld [vmem:[%s773_s1 + $0xa8] sm:$0xff]  }
   0x9   :  { %552 = vmatpush3.bf16.msra.mxu1 %v584_v7  ;;  %525 = vmatprep.subr.bf16.mxu0 %v585_v8  ;;  %v601_v24 = vld [vmem:[%s773_s1 + $0x70] sm:$0xff]   ;;  %v605_v28 = vld [vmem:[%s773_s1 + $0x78] sm:$0xff]   ;;  %v15_v32 = vld [vmem:[%s774_s0] sm:$0xff] }
   0xa   :  { %553 = vmatprep.subr.bf16.mxu1 %v586_v9  ;;  %v602_v25 = vld [vmem:[%s773_s1 + $0xf0] sm:$0xff]   ;;  %v606_v29 = vld [vmem:[%s773_s1 + $0xf8] sm:$0xff]   ;;  %v16_v34 = vld [vmem:[%s774_s0 + $0x8] sm:$0xff]  ;;  %v23_v35 = vunpack.c.l.bf16 %v15_v32  ;;  %v24_v36 = vunpack.c.h.bf16 %v15_v32 }
   0xb   :  { %v603_v26 = vld [vmem:[%s773_s1 + $0x30] sm:$0xff]   ;;  %v607_v30 = vld [vmem:[%s773_s1 + $0x38] sm:$0xff]   ;;  %v25_v40 = vunpack.c.l.bf16 %v16_v34  ;;  %v26_v41 = vunpack.c.h.bf16 %v16_v34  ;;  %v19_v50 = vld [vmem:[%s774_s0 + $0x20] sm:$0xff] }
   0xc   :  { %526 = vmatpush3.bf16.msra.mxu0 %v587_v10  ;;  %v604_v27 = vld [vmem:[%s773_s1 + $0xb0] sm:$0xff]   ;;  %v608_v31 = vld [vmem:[%s773_s1 + $0xb8] sm:$0xff]   ;;  %vm40_vm0 = vcmp.gt.f32.partialorder %v24_v36, 0.0  ;;  %v56_v44 = vmul.f32 0.2, %v24_v36  ;;  %vm39_vm4 = vcmp.gt.f32.partialorder %v23_v35, 0.0  ;;  %v32_v63 = vunpack.c.h.bf16 %v19_v50 }
   0xd   :  { %554 = vmatpush3.bf16.msra.mxu1 %v588_v11  ;;  %527 = vmatprep.subr.bf16.mxu0 %v589_v12  ;;  %v17_v33 = vld [vmem:[%s774_s0 + $0x10] sm:$0xff]  ;;  %v18_v39 = vld [vmem:[%s774_s0 + $0x18] sm:$0xff]  ;;  %vm42_vm2 = vcmp.gt.f32.partialorder %v26_v41, 0.0  ;;  %v58_v46 = vmul.f32 0.2, %v26_v41  ;;  %v20_v56 = vld [vmem:[%s774_s0 + $0x28] sm:$0xff] }
   0xe   :  { %555 = vmatprep.subr.bf16.mxu1 %v590_v13  ;;  %v27_v37 = vunpack.c.l.bf16 %v17_v33  ;;  %v28_v38 = vunpack.c.h.bf16 %v17_v33  ;;  %v29_v42 = vunpack.c.l.bf16 %v18_v39  ;;  %v30_v43 = vunpack.c.h.bf16 %v18_v39  ;;  %v21_v55 = vld [vmem:[%s774_s0 + $0x30] sm:$0xff]  ;;  %v22_v57 = vld [vmem:[%s774_s0 + $0x38] sm:$0xff] }
   0xf   :  { %v72_v48 = vsel %vm40_vm0, %v24_v36, %v56_v44  ;;  %v74_v52 = vsel %vm42_vm2, %v26_v41, %v58_v46  ;;  %v55_v54 = vmul.f32 0.2, %v23_v35  ;;  %vm41_vm6 = vcmp.gt.f32.partialorder %v25_v40, 0.0 }
  0x10   :  { %528 = vmatpush3.bf16.msra.mxu0 %v591_v14  ;;  %vm44_vm1 = vcmp.gt.f32.partialorder %v28_v38, 0.0  ;;  %v60_v45 = vmul.f32 0.2, %v28_v38  ;;  %vm46_vm3 = vcmp.gt.f32.partialorder %v30_v43, 0.0  ;;  %v62_v47 = vmul.f32 0.2, %v30_v43 }
  0x11   :  { %556 = vmatpush3.bf16.msra.mxu1 %v592_v15  ;;  %529 = vmatprep.subr.bf16.mxu0 %v593_v16  ;;  %vm43_vm5 = vcmp.gt.f32.partialorder %v27_v37, 0.0  ;;  %v59_v59 = vmul.f32 0.2, %v27_v37  ;;  %vm45_vm7 = vcmp.gt.f32.partialorder %v29_v42, 0.0  ;;  %v71_v60 = vsel %vm39_vm4, %v23_v35, %v55_v54 }
  0x12   :  { %557 = vmatprep.subr.bf16.mxu1 %v594_v17  ;;  %v76_v49 = vsel %vm44_vm1, %v28_v38, %v60_v45  ;;  %v78_v53 = vsel %vm46_vm3, %v30_v43, %v62_v47  ;;  %v57_v61 = vmul.f32 0.2, %v25_v40  ;;  %v61_v62 = vmul.f32 0.2, %v29_v42 }
  0x13   :  { %v88_v51 = vpack.c.bf16 %v76_v49, %v72_v48  ;;  %v90_v58 = vpack.c.bf16 %v78_v53, %v74_v52  ;;  %v75_v0 = vsel %vm43_vm5, %v27_v37, %v59_v59  ;;  %v36_v1 = vunpack.c.h.bf16 %v21_v55 }
  0x14   :  { %530 = vmatpush3.bf16.msra.mxu0 %v595_v18  ;;  %v34_v2 = vunpack.c.h.bf16 %v20_v56  ;;  %v38_v3 = vunpack.c.h.bf16 %v22_v57  ;;  %v87_v4 = vpack.c.bf16 %v75_v0, %v71_v60  ;;  %v73_v5 = vsel %vm41_vm6, %v25_v40, %v57_v61 }
  0x15   :  { %558 = vmatpush3.bf16.msra.mxu1 %v596_v19  ;;  %531 = vmatprep.subr.bf16.mxu0 %v597_v20  ;;  %v77_v6 = vsel %vm45_vm7, %v29_v42, %v61_v62  ;;  %vm48_vm8 = vcmp.gt.f32.partialorder %v32_v63, 0.0  ;;  %vm52_vm9 = vcmp.gt.f32.partialorder %v36_v1, 0.0  ;;  %v64_v8 = vmul.f32 0.2, %v32_v63 }
  0x16   :  { %559 = vmatprep.subr.bf16.mxu1 %v598_v21  ;;  %383 = vmatprep.mubr.bf16.mxu0 %v88_v51  ;;  %v89_v7 = vpack.c.bf16 %v77_v6, %v73_v5  ;;  %v68_v9 = vmul.f32 0.2, %v36_v1  ;;  %vm50_vm10 = vcmp.gt.f32.partialorder %v34_v2, 0.0  ;;  %vm54_vm11 = vcmp.gt.f32.partialorder %v38_v3, 0.0 }
  0x17   :  { %432 = vmatprep.mubr.bf16.mxu1 %v90_v58  ;;  %v66_v10 = vmul.f32 0.2, %v34_v2  ;;  %v70_v11 = vmul.f32 0.2, %v38_v3  ;;  %v80_v12 = vsel %vm48_vm8, %v32_v63, %v64_v8  ;;  %v31_v14 = vunpack.c.l.bf16 %v19_v50 }
  0x18   :  { %532 = vmatpush3.bf16.msra.mxu0 %v599_v22  ;;  %v84_v13 = vsel %vm52_vm9, %v36_v1, %v68_v9  ;;  %v35_v15 = vunpack.c.l.bf16 %v21_v55  ;;  %v33_v19 = vunpack.c.l.bf16 %v20_v56 }
  0x19   :  { %560 = vmatpush3.bf16.msra.mxu1 %v600_v23  ;;  %533 = vmatprep.subr.bf16.mxu0 %v601_v24  ;;  %v92_v16 = vpack.c.bf16 %v84_v13, %v80_v12  ;;  %v82_v17 = vsel %vm50_vm10, %v34_v2, %v66_v10  ;;  %v86_v18 = vsel %vm54_vm11, %v38_v3, %v70_v11  ;;  %vm47_vm12 = vcmp.gt.f32.partialorder %v31_v14, 0.0 }
  0x1a   :  { %561 = vmatprep.subr.bf16.mxu1 %v602_v25  ;;  %v94_v20 = vpack.c.bf16 %v86_v18, %v82_v17  ;;  %vm51_vm13 = vcmp.gt.f32.partialorder %v35_v15, 0.0  ;;  %v63_v21 = vmul.f32 0.2, %v31_v14  ;;  %v67_v22 = vmul.f32 0.2, %v35_v15 }
  0x1b   :  { %v37_v23 = vunpack.c.l.bf16 %v22_v57  ;;  %vm49_vm14 = vcmp.gt.f32.partialorder %v33_v19, 0.0  ;;  %v65_v24 = vmul.f32 0.2, %v33_v19 }
  0x1c   :  { %534 = vmatpush3.bf16.msra.mxu0 %v603_v26  ;;  %v79_v25 = vsel %vm47_vm12, %v31_v14, %v63_v21  ;;  %v83_v26 = vsel %vm51_vm13, %v35_v15, %v67_v22 }
  0x1d   :  { %562 = vmatpush3.bf16.msra.mxu1 %v604_v27  ;;  %535 = vmatprep.subr.bf16.mxu0 %v605_v28  ;;  %vm53_vm15 = vcmp.gt.f32.partialorder %v37_v23, 0.0  ;;  %v69_v27 = vmul.f32 0.2, %v37_v23  ;;  %v81_v28 = vsel %vm49_vm14, %v33_v19, %v65_v24 }
  0x1e   :  { %563 = vmatprep.subr.bf16.mxu1 %v606_v29  ;;  %v91_v29 = vpack.c.bf16 %v83_v26, %v79_v25 }
  0x20   :  { %536 = vmatpush3.bf16.msra.mxu0 %v607_v30  ;;  %v85_v30 = vsel %vm53_vm15, %v37_v23, %v69_v27 }
  0x21   :  { %564 = vmatpush3.bf16.msra.mxu1 %v608_v31  ;;  %v93_v31 = vpack.c.bf16 %v85_v30, %v81_v28 }
  0x23   :  { %384 = vmatmul.mubr.bf16.vlgmr.msra.gmra.mrb[0].mxu0 %v87_v4 }
  0x24   :  { %433 = vmatmul.mubr.bf16.vlgmr.msra.gmra.mrb[0].mxu1 %v89_v7  ;;  %391 = vmatprep.mubr.bf16.mxu0 %v92_v16 }
  0x25   :  { %440 = vmatprep.mubr.bf16.mxu1 %v94_v20 }
  0x2b   :  { %392 = vmatmul.mubr.bf16.gmra.mrb[4].mxu0 %v91_v29 }
  0x2c   :  { %441 = vmatmul.mubr.bf16.gmra.mrb[4].mxu1 %v93_v31 }
  0xf6   :  { %v537_v32 = vpop.f32.mrb[0].mxu0 }
  0xf7   :  { %v565_v33 = vpop.f32.mrb[0].mxu1  ;;  %v538_v34 = vpop.f32.mrb[1].mxu0 }
  0xf8   :  { %v539_v35 = vadd.f32 %v538_v34, %v537_v32  ;;  %v566_v36 = vpop.f32.mrb[1].mxu1  ;;  %v540_v37 = vpop.f32.mrb[2].mxu0 }
  0xf9   :  { %v567_v38 = vadd.f32 %v566_v36, %v565_v33  ;;  %v568_v39 = vpop.f32.mrb[2].mxu1  ;;  %v541_v40 = vpop.f32.mrb[3].mxu0 }
  0xfa   :  { %v542_v41 = vadd.f32 %v541_v40, %v540_v37  ;;  %v569_v42 = vpop.f32.mrb[3].mxu1 }
  0xfb   :  { %v435_v43 = vadd.f32 %v567_v38, %v539_v35  ;;  %v570_v44 = vadd.f32 %v569_v42, %v568_v39 }
  0xfd   :  { %449 = vst [vmem:[%s775_s2] sm:$0xff] %v435_v43  ;;  %v438_v45 = vadd.f32 %v570_v44, %v542_v41  ;;  %v463_v46 = vmul.f32 %v435_v43, %v435_v43 }
  0xfe   :  { %v543_v49 = vpop.f32.mrb[4].mxu0 }
  0xff   :  { %450 = vst [vmem:[%s775_s2 + $0x8] sm:$0xff] %v438_v45  ;;  %v453_v47 = vadd.f32 %v438_v45, %v435_v43  ;;  %v464_v48 = vmul.f32 %v438_v45, %v438_v45  ;;  %v544_v50 = vpop.f32.mrb[5].mxu0  ;;  %v571_v52 = vpop.f32.mrb[4].mxu1 }
 0x100   :  { %v545_v53 = vadd.f32 %v544_v50, %v543_v49  ;;  %v546_v54 = vpop.f32.mrb[6].mxu0  ;;  %v572_v55 = vpop.f32.mrb[5].mxu1 }
 0x101   :  { %v467_v51 = vadd.f32 %v464_v48, %v463_v46  ;;  %v547_v56 = vpop.f32.mrb[7].mxu0  ;;  %v573_v57 = vadd.f32 %v572_v55, %v571_v52  ;;  %v574_v58 = vpop.f32.mrb[6].mxu1 }
 0x102   :  { %v548_v59 = vadd.f32 %v547_v56, %v546_v54  ;;  %v575_v60 = vpop.f32.mrb[7].mxu1 }
 0x103   :  { %v443_v61 = vadd.f32 %v573_v57, %v545_v53  ;;  %v576_v62 = vadd.f32 %v575_v60, %v574_v58 }
 0x105   :  { %451 = vst [vmem:[%s775_s2 + $0x10] sm:$0xff] %v443_v61  ;;  %v454_v63 = vadd.f32 %v453_v47, %v443_v61  ;;  %v465_v0 = vmul.f32 %v443_v61, %v443_v61  ;;  %v446_v1 = vadd.f32 %v576_v62, %v548_v59 }
 0x107   :  { %v468_v2 = vadd.f32 %v467_v51, %v465_v0  ;;  %452 = vst [vmem:[%s775_s2 + $0x18] sm:$0xff] %v446_v1  ;;  %v455_v3 = vadd.f32 %v454_v63, %v446_v1  ;;  %v466_v4 = vmul.f32 %v446_v1, %v446_v1 }
 0x109   :  { %v456_v5 = vrot.slane %v455_v3, 4  ;;  %v469_v6 = vadd.f32 %v468_v2, %v466_v4 }
 0x10b   :  { %v457_v7 = vadd.f32 %v456_v5, %v455_v3  ;;  %v470_v8 = vrot.slane %v469_v6, 4 }
 0x10d   :  { %v458_v9 = vrot.slane %v457_v7, 2  ;;  %v471_v10 = vadd.f32 %v470_v8, %v469_v6 }
 0x10f   :  { %v459_v11 = vadd.f32 %v458_v9, %v457_v7  ;;  %v472_v12 = vrot.slane %v471_v10, 2 }
 0x111   :  { %v460_v13 = vrot.slane %v459_v11, 1  ;;  %v473_v14 = vadd.f32 %v472_v12, %v471_v10 }
 0x113   :  { %v461_v15 = vadd.f32 %v460_v13, %v459_v11  ;;  %v474_v16 = vrot.slane %v473_v14, 1 }
 0x115   :  { %462 = vst [vmem:[%s776_s3] sm:$0xff] %v461_v15  ;;  %v475_v17 = vadd.f32 %v474_v16, %v473_v14 }
 0x117   :  { %476 = vst [vmem:[%s777_s4] sm:$0xff] %v475_v17 }

// kernel: unet_apply.22
= control target key start
LH: loop header
LB: loop body
LE: loop exit
PB: predicated region body
PF: predicated region fallthrough
CT: control target
= control target key end

     0   :  { %s1158_s15 = smov 0   ;;  %s1160_s16 = smov 0   ;;  %s1291_s0 = inlined_call_operand.vmem [shape: bf16[16,1024], index: 0, kind: input, shape index: {}]   ;;  %s1292_s1 = inlined_call_operand.vmem [shape: bf16[1024,128], index: 1, kind: input, shape index: {}]   ;;  %s1293_s2 = inlined_call_operand.vmem [shape: f32[16,128], index: 2, kind: output, shape index: {0}]   ;;  %s1294_s3 = inlined_call_operand.vmem [shape: f32[8,128], index: 3, kind: output, shape index: {1}]   ;;  %s1295_s4 = inlined_call_operand.vmem [shape: f32[8,128], index: 4, kind: output, shape index: {2}]  }
   0x1   :  { %s1162_s17 = smov 0   ;;  %s1164_s18 = smov 0  }
   0x2   :  { %s1166_s19 = smov 0  }
   0x3 LB: > { %s27_s20 = sadd.s32 1, %s1127_s18  ;;  %p50_p1 = scmp.ne.s32.totalorder %s1119_s16, %s1115_s15  ;;  %s1131_s19 = sphi %s1166_s19, %s15_s19   ;;  %s1127_s18 = sphi %s1164_s18, %s1299_s18   ;;  %s1123_s17 = sphi %s1162_s17, %s1298_s17   ;;  %s1119_s16 = sphi %s1160_s16, %s1297_s16   ;;  %s1115_s15 = sphi %s1158_s15, %s1296_s15  }
   0x4   : > { %p28_p0 = scmp.ge.s32.totalorder %s27_s20, 2  ;;  %p51_p2 = scmp.eq.s32.totalorder %s1131_s19, 0 }
   0x5   : > { %s43_s22 = sadd.s32 1, %s1119_s16  ;;  %p927_p5 = scmp.ge.s32.totalorder %s1131_s19, 2 }
   0x6   : > { %s1301_s20 = smov (%p28_p0, %s27_s20), 0  ;;  %p52_p3 = por %p51_p2, %p50_p1 }
   0x7   : > { %s39_s21 = ssub.s32 %s1127_s18, %s1301_s20  ;;  %188 = sbr.rel (%p927_p5) target bundleno = 21 (0x15), region = 16 }
   0x8   : > { %p41_p4 = scmp.eq.s32.totalorder %s39_s21, 0 }
   0xa   : > { %s1193_s23 = scalar_select %p41_p4, %s1119_s16, %s43_s22  }
   0xe   : > { %191 = sbr.rel (!%p52_p3) target bundleno = 21 (0x15), region = 20  ;;  %s193_s24 = sand.u32 (%p52_p3), 1, %s1119_s16  }
   0xf   : > { %s976_s25 = sshll.u32 (%p52_p3), %s1127_s18, 4  ;;  %s928_s26 = sshll.u32 (%p52_p3), %s193_s24, 5 }
  0x10   : > { %s201_s29 = scalar_lea.vmem (%p52_p3), %s1291_s0, %s976_s25  ;;  %s195_s30 = scalar_lea.vmem (%p52_p3), [#allocation3], %s928_s26 }
  0x11   : > { %v214_v0 = vld [vmem:[%s201_s29] sm:$0xff] (%p52_p3)  ;;  %v216_v1 = vld [vmem:[%s201_s29 + $0x8] sm:$0xff] (%p52_p3) }
  0x12   : > { %v218_v2 = vld [vmem:[%s201_s29 + $0x20] sm:$0xff] (%p52_p3)  ;;  %215 = vst [vmem:[%s195_s30] sm:$0xff] (%p52_p3), %v214_v0  ;;  %217 = vst [vmem:[%s195_s30 + $0x8] sm:$0xff] (%p52_p3), %v216_v1  ;;  %v220_v3 = vld [vmem:[%s201_s29 + $0x28] sm:$0xff] (%p52_p3) }
  0x13   : > { %219 = vst [vmem:[%s195_s30 + $0x10] sm:$0xff] (%p52_p3), %v218_v2  ;;  %221 = vst [vmem:[%s195_s30 + $0x18] sm:$0xff] (%p52_p3), %v220_v3 }
  0x15 PF: > { %p931_p6 = scmp.ge.s32.totalorder %s1131_s19, 1  ;;  %p238_p7 = scmp.lt.s32.totalorder %s1131_s19, 3 }
  0x17   : > { %p239_p8 = pnand %p931_p6, %p238_p7 }
  0x18   : > { %s933_s5 = sshll.u32 (!%p239_p8), %s1123_s17, 6  ;;  %s245_s6 = sand.u32 (!%p239_p8), 1, %s1115_s15  }
  0x19   : > { %242 = sbr.rel (%p239_p8) target bundleno = 324 (0x144), region = 47  ;;  %p298_p9 = scmp.lt.s32.totalorder (!%p239_p8), %s933_s5, 127 }
  0x1a   : > { %s932_s7 = sshll.u32 (!%p239_p8), %s245_s6, 5  ;;  %p967_p10 = scmp.ne.s32.totalorder (!%p239_p8), %s1123_s17, 0 }
  0x1b   : > { %s1205_s8 = scalar_lea.vmem (!%p239_p8), [#allocation3], %s932_s7 }
  0x1c   : > { %v1208_v4 = vld [vmem:[%s1205_s8] sm:$0xff] (!%p239_p8)  ;;  %v1211_v5 = vld [vmem:[%s1205_s8 + $0x10] sm:$0xff] (!%p239_p8)  ;;  %v331_v31 = vld [vmem:[%s1205_s8 + $0x8] sm:$0xff] (!%p239_p8) }
  0x1d   : > { %v335_v6 = vunpack.c.h.bf16 (!%p239_p8), %v1208_v4  ;;  %v339_v7 = vunpack.c.h.bf16 (!%p239_p8), %v1211_v5  ;;  %v333_v33 = vld [vmem:[%s1205_s8 + $0x18] sm:$0xff] (!%p239_p8)  ;;  %v337_v38 = vunpack.c.h.bf16 (!%p239_p8), %v331_v31  ;;  %v334_v42 = vunpack.c.l.bf16 (!%p239_p8), %v1208_v4 }
  0x1e   : > { %v341_v40 = vunpack.c.h.bf16 (!%p239_p8), %v333_v33  ;;  %v338_v44 = vunpack.c.l.bf16 (!%p239_p8), %v1211_v5  ;;  %v336_v46 = vunpack.c.l.bf16 (!%p239_p8), %v331_v31  ;;  %v340_v48 = vunpack.c.l.bf16 (!%p239_p8), %v333_v33 }
  0x1f   : > { %vm343_vm0 = vcmp.gt.f32.partialorder (!%p239_p8), %v335_v6, 0.0  ;;  %vm347_vm1 = vcmp.gt.f32.partialorder (!%p239_p8), %v339_v7, 0.0  ;;  %v351_v8 = vmul.f32 (!%p239_p8), 0.2, %v335_v6  ;;  %v355_v9 = vmul.f32 (!%p239_p8), 0.2, %v339_v7 }
  0x20   : > { %s1303_s5 = smov (!%p298_p9, %s933_s5), 127  ;;  %vm345_vm2 = vcmp.gt.f32.partialorder %v337_v38, 0.0  ;;  %vm349_vm3 = vcmp.gt.f32.partialorder %v341_v40, 0.0  ;;  %vm342_vm4 = vcmp.gt.f32.partialorder %v334_v42, 0.0  ;;  %vm346_vm5 = vcmp.gt.f32.partialorder %v338_v44, 0.0 }
  0x21   : > { %s934_s9 = sshll.u32 %s1303_s5, 2  ;;  %v359_v12 = vsel %vm343_vm0, %v335_v6, %v351_v8  ;;  %v363_v13 = vsel %vm347_vm1, %v339_v7, %v355_v9  ;;  %vm344_vm6 = vcmp.gt.f32.partialorder %v336_v46, 0.0  ;;  %vm348_vm7 = vcmp.gt.f32.partialorder %v340_v48, 0.0 }
  0x22   : > { %s1218_s12 = scalar_lea.vmem %s1292_s1, %s934_s9  ;;  %v367_v15 = vpack.c.bf16 %v363_v13, %v359_v12  ;;  %v353_v53 = vmul.f32 0.2, %v337_v38  ;;  %v357_v54 = vmul.f32 0.2, %v341_v40  ;;  %v350_v55 = vmul.f32 0.2, %v334_v42 }
  0x23   : > { %v1061_v10 = vld [vmem:[%s1218_s12 + $0x40] sm:$0xff]   ;;  %v1065_v17 = vld [vmem:[%s1218_s12 + $0x48] sm:$0xff]   ;;  %v1069_v21 = vld [vmem:[%s1218_s12 + $0x50] sm:$0xff]   ;;  %v354_v56 = vmul.f32 0.2, %v338_v44 }
  0x24   : > { %v1062_v11 = vld [vmem:[%s1218_s12 + $0xc0] sm:$0xff]   ;;  %977 = vmatprep.subr.bf16.mxu0 %v1061_v10  ;;  %658 = vmatprep.mubr.bf16.mxu0 %v367_v15  ;;  %v1066_v18 = vld [vmem:[%s1218_s12 + $0xc8] sm:$0xff]   ;;  %v1070_v22 = vld [vmem:[%s1218_s12 + $0xd0] sm:$0xff]   ;;  %v352_v57 = vmul.f32 0.2, %v336_v46  ;;  %v361_v59 = vsel %vm345_vm2, %v337_v38, %v353_v53  ;;  %v365_v60 = vsel %vm349_vm3, %v341_v40, %v357_v54  ;;  %v358_v61 = vsel %vm342_vm4, %v334_v42, %v350_v55 }
  0x25   : > { %v1063_v14 = vld [vmem:[%s1218_s12] sm:$0xff]   ;;  %999 = vmatprep.subr.bf16.mxu1 %v1062_v11  ;;  %v1067_v19 = vld [vmem:[%s1218_s12 + $0x8] sm:$0xff]   ;;  %v1071_v23 = vld [vmem:[%s1218_s12 + $0x10] sm:$0xff]   ;;  %v356_v58 = vmul.f32 0.2, %v340_v48  ;;  %v369_v62 = vpack.c.bf16 %v365_v60, %v361_v59  ;;  %v362_v63 = vsel %vm346_vm5, %v338_v44, %v354_v56 }
  0x26   : > { %v1064_v16 = vld [vmem:[%s1218_s12 + $0x80] sm:$0xff]   ;;  %978 = vmatpush3.bf16.msra.mxu0 %v1063_v14  ;;  %v1068_v20 = vld [vmem:[%s1218_s12 + $0x88] sm:$0xff]   ;;  %v1072_v24 = vld [vmem:[%s1218_s12 + $0x90] sm:$0xff]   ;;  %v360_v0 = vsel %vm344_vm6, %v336_v46, %v352_v57  ;;  %v366_v2 = vpack.c.bf16 %v362_v63, %v358_v61 }
  0x27   : > { %1000 = vmatpush3.bf16.msra.mxu1 %v1064_v16  ;;  %979 = vmatprep.subr.bf16.mxu0 %v1065_v17  ;;  %v1073_v25 = vld [vmem:[%s1218_s12 + $0x58] sm:$0xff]   ;;  %v1077_v29 = vld [vmem:[%s1218_s12 + $0x60] sm:$0xff]   ;;  %v1081_v35 = vld [vmem:[%s1218_s12 + $0x68] sm:$0xff]   ;;  %v364_v1 = vsel %vm348_vm7, %v340_v48, %v356_v58 }
  0x28   : > { %1001 = vmatprep.subr.bf16.mxu1 %v1066_v18  ;;  %v1074_v26 = vld [vmem:[%s1218_s12 + $0xd8] sm:$0xff]   ;;  %v1078_v30 = vld [vmem:[%s1218_s12 + $0xe0] sm:$0xff]   ;;  %v1082_v36 = vld [vmem:[%s1218_s12 + $0xe8] sm:$0xff]   ;;  %v368_v3 = vpack.c.bf16 %v364_v1, %v360_v0  ;;  %699 = vmatprep.mubr.bf16.mxu1 %v369_v62 }
  0x29   : > { %v1075_v27 = vld [vmem:[%s1218_s12 + $0x18] sm:$0xff]   ;;  %v1079_v32 = vld [vmem:[%s1218_s12 + $0x20] sm:$0xff]   ;;  %v1083_v37 = vld [vmem:[%s1218_s12 + $0x28] sm:$0xff]  }
  0x2a   : > { %980 = vmatpush3.bf16.msra.mxu0 %v1067_v19  ;;  %v1076_v28 = vld [vmem:[%s1218_s12 + $0x98] sm:$0xff]   ;;  %v1080_v34 = vld [vmem:[%s1218_s12 + $0xa0] sm:$0xff]   ;;  %v1084_v39 = vld [vmem:[%s1218_s12 + $0xa8] sm:$0xff]  }
  0x2b   : > { %1002 = vmatpush3.bf16.msra.mxu1 %v1068_v20  ;;  %981 = vmatprep.subr.bf16.mxu0 %v1069_v21  ;;  %v1085_v41 = vld [vmem:[%s1218_s12 + $0x70] sm:$0xff]   ;;  %v1089_v49 = vld [vmem:[%s1218_s12 + $0x78] sm:$0xff]  }
  0x2c   : > { %1003 = vmatprep.subr.bf16.mxu1 %v1070_v22  ;;  %v1086_v43 = vld [vmem:[%s1218_s12 + $0xf0] sm:$0xff]   ;;  %v1090_v50 = vld [vmem:[%s1218_s12 + $0xf8] sm:$0xff]  }
  0x2d   : > { %v1087_v45 = vld [vmem:[%s1218_s12 + $0x30] sm:$0xff]   ;;  %v1091_v51 = vld [vmem:[%s1218_s12 + $0x38] sm:$0xff]  }
  0x2e   : > { %982 = vmatpush3.bf16.msra.mxu0 %v1071_v23  ;;  %v1088_v47 = vld [vmem:[%s1218_s12 + $0xb0] sm:$0xff]   ;;  %v1092_v52 = vld [vmem:[%s1218_s12 + $0xb8] sm:$0xff]  }
  0x2f   : > { %1004 = vmatpush3.bf16.msra.mxu1 %v1072_v24  ;;  %983 = vmatprep.subr.bf16.mxu0 %v1073_v25 }
  0x30   : > { %1005 = vmatprep.subr.bf16.mxu1 %v1074_v26 }
  0x32   : > { %984 = vmatpush3.bf16.msra.mxu0 %v1075_v27 }
  0x33   : > { %1006 = vmatpush3.bf16.msra.mxu1 %v1076_v28  ;;  %985 = vmatprep.subr.bf16.mxu0 %v1077_v29 }
  0x34   : > { %1007 = vmatprep.subr.bf16.mxu1 %v1078_v30 }
  0x36   : > { %986 = vmatpush3.bf16.msra.mxu0 %v1079_v32 }
  0x37   : > { %1008 = vmatpush3.bf16.msra.mxu1 %v1080_v34  ;;  %987 = vmatprep.subr.bf16.mxu0 %v1081_v35 }
  0x38   : > { %1009 = vmatprep.subr.bf16.mxu1 %v1082_v36 }
  0x3a   : > { %988 = vmatpush3.bf16.msra.mxu0 %v1083_v37 }
  0x3b   : > { %1010 = vmatpush3.bf16.msra.mxu1 %v1084_v39  ;;  %989 = vmatprep.subr.bf16.mxu0 %v1085_v41 }
  0x3c   : > { %1011 = vmatprep.subr.bf16.mxu1 %v1086_v43 }
  0x3e   : > { %990 = vmatpush3.bf16.msra.mxu0 %v1087_v45 }
  0x3f   : > { %1012 = vmatpush3.bf16.msra.mxu1 %v1088_v47  ;;  %991 = vmatprep.subr.bf16.mxu0 %v1089_v49 }
  0x40   : > { %1013 = vmatprep.subr.bf16.mxu1 %v1090_v50 }
  0x42   : > { %992 = vmatpush3.bf16.msra.mxu0 %v1091_v51 }
  0x43   : > { %1014 = vmatpush3.bf16.msra.mxu1 %v1092_v52 }
  0x45   : > { %659 = vmatmul.mubr.bf16.vlgmr.msra.gmra.mrb[0].mxu0 %v366_v2 }
  0x46   : > { %700 = vmatmul.mubr.bf16.vlgmr.msra.gmra.mrb[0].mxu1 %v368_v3 }
 0x118   : > { %v993_v4 = vpop.f32.mrb[0].mxu0 }
 0x119   : > { %v1015_v5 = vpop.f32.mrb[0].mxu1  ;;  %v994_v6 = vpop.f32.mrb[1].mxu0  ;;  %711 = sbr.rel (%p967_p10) target bundleno = 290 (0x122), region = 55 }
 0x11a   : > { %v1016_v7 = vpop.f32.mrb[1].mxu1  ;;  %v995_v8 = vadd.f32 %v994_v6, %v993_v4  ;;  %v996_v10 = vpop.f32.mrb[2].mxu0 }
 0x11b   : > { %v1017_v9 = vadd.f32 %v1016_v7, %v1015_v5  ;;  %v1018_v11 = vpop.f32.mrb[2].mxu1  ;;  %v997_v12 = vpop.f32.mrb[3].mxu0 }
 0x11c   : > { %v1019_v13 = vpop.f32.mrb[3].mxu1  ;;  %v998_v15 = vadd.f32 %v997_v12, %v996_v10 }
 0x11d   : > { %v702_v14 = vadd.f32 %v1017_v9, %v995_v8  ;;  %v1020_v16 = vadd.f32 %v1019_v13, %v1018_v11 }
 0x11f   : > { %v705_v17 = vadd.f32 %v1020_v16, %v998_v15  ;;  %712 = vst [vmem:[#allocation2] sm:$0xff] (!%p967_p10), %v702_v14 }
 0x121   : > { %713 = vst [vmem:[#allocation2 + $0x8] sm:$0xff] %v705_v17 }
 0x122 PF: > { %p968_p11 = scmp.le.s32.totalorder %s1123_s17, 0 }
 0x124   : > { %717 = sbr.rel (%p968_p11) target bundleno = 300 (0x12c), region = 59 }
 0x128   : > { %v718_v18 = vld [vmem:[#allocation2] sm:$0xff] (!%p968_p11)  ;;  %v719_v19 = vld [vmem:[#allocation2 + $0x8] sm:$0xff] (!%p968_p11) }
 0x129   : > { %v720_v20 = vadd.f32 (!%p968_p11), %v718_v18, %v702_v14  ;;  %v721_v21 = vadd.f32 (!%p968_p11), %v719_v19, %v705_v17 }
 0x12b   : > { %722 = vst [vmem:[#allocation2] sm:$0xff] %v720_v20  ;;  %723 = vst [vmem:[#allocation2 + $0x8] sm:$0xff] %v721_v21 }
 0x12c PF: > { %p969_p12 = scmp.ne.s32.totalorder %s1123_s17, 1 }
 0x12e   : > { %727 = sbr.rel (%p969_p12) target bundleno = 324 (0x144), region = 63 }
 0x132   : > { %v728_v22 = vld [vmem:[#allocation2] sm:$0xff] (!%p969_p12)  ;;  %v729_v23 = vld [vmem:[#allocation2 + $0x8] sm:$0xff] (!%p969_p12) }
 0x133   : > { %730 = vst [vmem:[%s1293_s2] sm:$0xff] (!%p969_p12), %v728_v22  ;;  %v740_v24 = vmul.f32 (!%p969_p12), %v728_v22, %v728_v22  ;;  %731 = vst [vmem:[%s1293_s2 + $0x8] sm:$0xff] (!%p969_p12), %v729_v23  ;;  %v732_v25 = vadd.f32 (!%p969_p12), %v729_v23, %v728_v22  ;;  %v741_v26 = vmul.f32 (!%p969_p12), %v729_v23, %v729_v23 }
 0x135   : > { %v733_v27 = vrot.slane %v732_v25, 4  ;;  %v742_v28 = vadd.f32 %v741_v26, %v740_v24 }
 0x137   : > { %v734_v29 = vadd.f32 %v733_v27, %v732_v25  ;;  %v743_v30 = vrot.slane %v742_v28, 4 }
 0x139   : > { %v735_v31 = vrot.slane %v734_v29, 2  ;;  %v744_v32 = vadd.f32 %v743_v30, %v742_v28 }
 0x13b   : > { %v736_v33 = vadd.f32 %v735_v31, %v734_v29  ;;  %v745_v34 = vrot.slane %v744_v32, 2 }
 0x13d   : > { %v737_v35 = vrot.slane %v736_v33, 1  ;;  %v746_v36 = vadd.f32 %v745_v34, %v744_v32 }
 0x13f   : > { %v738_v37 = vadd.f32 %v737_v35, %v736_v33  ;;  %v747_v38 = vrot.slane %v746_v36, 1 }
 0x141   : > { %739 = vst [vmem:[%s1294_s3] sm:$0xff] %v738_v37  ;;  %v748_v39 = vadd.f32 %v747_v38, %v746_v36 }
 0x143   : > { %749 = vst [vmem:[%s1295_s4] sm:$0xff] %v748_v39 }
 0x144 PF: > { %s15_s19 = sadd.s32 1, %s1131_s19   ;;  %s1296_s15 = smov %s1119_s16 }
 0x145   : > { %p12_p13 = scmp.ge.s32.totalorder %s15_s19, 4   ;;  %s1297_s16 = smov %s1193_s23 }
 0x146   : > { %s1298_s17 = smov %s1127_s18  ;;  %s1299_s18 = smov %s1301_s20 }
 0x147   :  { %14 = sbr.rel (!%p12_p13) target bundleno = 3 (0x3), region = 125 }

// kernel: unet_apply.24
= control target key start
LH: loop header
LB: loop body
LE: loop exit
PB: predicated region body
PF: predicated region fallthrough
CT: control target
= control target key end

     0   :  { %s912_s9 = smov 0   ;;  %s914_s10 = smov 0   ;;  %s1111_s0 = inlined_call_operand.vmem [shape: bf16[16,128], index: 0, kind: input, shape index: {}]   ;;  %s1112_s1 = inlined_call_operand.vmem [shape: bf16[128,1024], index: 1, kind: input, shape index: {}]   ;;  %s1113_s2 = inlined_call_operand.vmem [shape: f32[16,1024], index: 2, kind: output, shape index: {}]  }
   0x1   :  { %s916_s11 = smov 0   ;;  %s918_s12 = smov 0  }
   0x2   :  { %s920_s13 = smov 0  }
   0x3 LB: > { %s27_s14 = sadd.s32 1, %s890_s12  ;;  %s713_s15 = sadd.s32 4294967295, %s894_s13   ;;  %s894_s13 = sphi %s920_s13, %s12_s13   ;;  %s890_s12 = sphi %s918_s12, %s1118_s12   ;;  %s886_s11 = sphi %s916_s11, %s1117_s11   ;;  %s882_s10 = sphi %s914_s10, %s1116_s10   ;;  %s878_s9 = sphi %s912_s9, %s1115_s9  }
   0x4   : > { %p29_p0 = scmp.ge.s32.totalorder %s27_s14, 2  ;;  %p75_p1 = scmp.ne.s32.totalorder %s882_s10, %s878_s9 }
   0x5   : > { %p76_p2 = scmp.eq.s32.totalorder %s894_s13, 0  ;;  %p107_p4 = scmp.eq.s32.totalorder %s713_s15, 1 }
   0x6   : > { %s1120_s14 = smov (%p29_p0, %s27_s14), 0  ;;  %s68_s17 = sadd.s32 1, %s882_s10 }
   0x7   : > { %p77_p3 = por %p76_p2, %p75_p1  ;;  %s64_s16 = ssub.s32 %s890_s12, %s1120_s14 }
   0x8   : > { %p66_p5 = scmp.eq.s32.totalorder %s64_s16, 0  ;;  %p947_p6 = por %p107_p4, %p75_p1 }
   0x9   : > { %p717_p7 = scmp.ge.s32.totalorder %s894_s13, 2 }
   0xa   : > { %s952_s19 = scalar_select %p66_p5, %s882_s10, %s68_s17  }
   0xb   : > { %141 = sbr.rel (%p717_p7) target bundleno = 38 (0x26), region = 20 }
  0x12   : > { %144 = sbr.rel (!%p77_p3) target bundleno = 38 (0x26), region = 24  ;;  %s146_s20 = sand.u32 (%p77_p3), 1, %s882_s10  }
  0x13   : > { %s761_s21 = sshll.u32 (%p77_p3), %s890_s12, 4  ;;  %s718_s22 = sshll.u32 (%p77_p3), %s146_s20, 8 }
  0x14   : > { %s960_s25 = scalar_lea.vmem (%p77_p3), %s1112_s1, %s761_s21  ;;  %s965_s26 = scalar_lea.vmem (%p77_p3), [#allocation2], %s718_s22 }
  0x15   : > { %v167_v0 = vld [vmem:[%s960_s25] sm:$0xff] (%p77_p3)  ;;  %v169_v1 = vld [vmem:[%s960_s25 + $0x8] sm:$0xff] (%p77_p3) }
  0x16   : > { %v171_v2 = vld [vmem:[%s960_s25 + $0x20] sm:$0xff] (%p77_p3)  ;;  %168 = vst [vmem:[%s965_s26] sm:$0xff] (%p77_p3), %v167_v0  ;;  %170 = vst [vmem:[%s965_s26 + $0x8] sm:$0xff] (%p77_p3), %v169_v1  ;;  %v173_v3 = vld [vmem:[%s960_s25 + $0x28] sm:$0xff] (%p77_p3) }
  0x17   : > { %172 = vst [vmem:[%s965_s26 + $0x10] sm:$0xff] (%p77_p3), %v171_v2  ;;  %v175_v4 = vld [vmem:[%s960_s25 + $0x40] sm:$0xff] (%p77_p3)  ;;  %v177_v5 = vld [vmem:[%s960_s25 + $0x48] sm:$0xff] (%p77_p3)  ;;  %174 = vst [vmem:[%s965_s26 + $0x18] sm:$0xff] (%p77_p3), %v173_v3 }
  0x18   : > { %176 = vst [vmem:[%s965_s26 + $0x20] sm:$0xff] (%p77_p3), %v175_v4  ;;  %178 = vst [vmem:[%s965_s26 + $0x28] sm:$0xff] (%p77_p3), %v177_v5  ;;  %v179_v6 = vld [vmem:[%s960_s25 + $0x60] sm:$0xff] (%p77_p3)  ;;  %v181_v7 = vld [vmem:[%s960_s25 + $0x68] sm:$0xff] (%p77_p3) }
  0x19   : > { %v183_v8 = vld [vmem:[%s960_s25 + $0x80] sm:$0xff]  ;;  %180 = vst [vmem:[%s965_s26 + $0x30] sm:$0xff] %v179_v6  ;;  %182 = vst [vmem:[%s965_s26 + $0x38] sm:$0xff] %v181_v7  ;;  %v185_v9 = vld [vmem:[%s960_s25 + $0x88] sm:$0xff] }
  0x1a   : > { %184 = vst [vmem:[%s965_s26 + $0x40] sm:$0xff] %v183_v8  ;;  %v187_v10 = vld [vmem:[%s960_s25 + $0xa0] sm:$0xff]  ;;  %v189_v11 = vld [vmem:[%s960_s25 + $0xa8] sm:$0xff]  ;;  %186 = vst [vmem:[%s965_s26 + $0x48] sm:$0xff] %v185_v9 }
  0x1b   : > { %188 = vst [vmem:[%s965_s26 + $0x50] sm:$0xff] %v187_v10  ;;  %190 = vst [vmem:[%s965_s26 + $0x58] sm:$0xff] %v189_v11  ;;  %v191_v12 = vld [vmem:[%s960_s25 + $0xc0] sm:$0xff]  ;;  %v193_v13 = vld [vmem:[%s960_s25 + $0xc8] sm:$0xff] }
  0x1c   : > { %v195_v14 = vld [vmem:[%s960_s25 + $0xe0] sm:$0xff]  ;;  %192 = vst [vmem:[%s965_s26 + $0x60] sm:$0xff] %v191_v12  ;;  %194 = vst [vmem:[%s965_s26 + $0x68] sm:$0xff] %v193_v13  ;;  %v197_v15 = vld [vmem:[%s960_s25 + $0xe8] sm:$0xff] }
  0x1d   : > { %196 = vst [vmem:[%s965_s26 + $0x70] sm:$0xff] %v195_v14  ;;  %v199_v16 = vld [vmem:[%s960_s25 + $0x100] sm:$0xff]  ;;  %v201_v17 = vld [vmem:[%s960_s25 + $0x108] sm:$0xff]  ;;  %198 = vst [vmem:[%s965_s26 + $0x78] sm:$0xff] %v197_v15 }
  0x1e   : > { %200 = vst [vmem:[%s965_s26 + $0x80] sm:$0xff] %v199_v16  ;;  %202 = vst [vmem:[%s965_s26 + $0x88] sm:$0xff] %v201_v17  ;;  %v203_v18 = vld [vmem:[%s960_s25 + $0x120] sm:$0xff]  ;;  %v205_v19 = vld [vmem:[%s960_s25 + $0x128] sm:$0xff] }
  0x1f   : > { %v207_v20 = vld [vmem:[%s960_s25 + $0x140] sm:$0xff]  ;;  %204 = vst [vmem:[%s965_s26 + $0x90] sm:$0xff] %v203_v18  ;;  %206 = vst [vmem:[%s965_s26 + $0x98] sm:$0xff] %v205_v19  ;;  %v209_v21 = vld [vmem:[%s960_s25 + $0x148] sm:$0xff] }
  0x20   : > { %208 = vst [vmem:[%s965_s26 + $0xa0] sm:$0xff] %v207_v20  ;;  %v211_v22 = vld [vmem:[%s960_s25 + $0x160] sm:$0xff]  ;;  %v213_v23 = vld [vmem:[%s960_s25 + $0x168] sm:$0xff]  ;;  %210 = vst [vmem:[%s965_s26 + $0xa8] sm:$0xff] %v209_v21 }
  0x21   : > { %212 = vst [vmem:[%s965_s26 + $0xb0] sm:$0xff] %v211_v22  ;;  %214 = vst [vmem:[%s965_s26 + $0xb8] sm:$0xff] %v213_v23  ;;  %v215_v24 = vld [vmem:[%s960_s25 + $0x180] sm:$0xff]  ;;  %v217_v25 = vld [vmem:[%s960_s25 + $0x188] sm:$0xff] }
  0x22   : > { %v219_v26 = vld [vmem:[%s960_s25 + $0x1a0] sm:$0xff]  ;;  %216 = vst [vmem:[%s965_s26 + $0xc0] sm:$0xff] %v215_v24  ;;  %218 = vst [vmem:[%s965_s26 + $0xc8] sm:$0xff] %v217_v25  ;;  %v221_v27 = vld [vmem:[%s960_s25 + $0x1a8] sm:$0xff] }
  0x23   : > { %220 = vst [vmem:[%s965_s26 + $0xd0] sm:$0xff] %v219_v26  ;;  %v223_v28 = vld [vmem:[%s960_s25 + $0x1c0] sm:$0xff]  ;;  %v225_v29 = vld [vmem:[%s960_s25 + $0x1c8] sm:$0xff]  ;;  %222 = vst [vmem:[%s965_s26 + $0xd8] sm:$0xff] %v221_v27 }
  0x24   : > { %224 = vst [vmem:[%s965_s26 + $0xe0] sm:$0xff] %v223_v28  ;;  %226 = vst [vmem:[%s965_s26 + $0xe8] sm:$0xff] %v225_v29  ;;  %v227_v30 = vld [vmem:[%s960_s25 + $0x1e0] sm:$0xff]  ;;  %v229_v31 = vld [vmem:[%s960_s25 + $0x1e8] sm:$0xff] }
  0x25   : > { %228 = vst [vmem:[%s965_s26 + $0xf0] sm:$0xff] %v227_v30  ;;  %230 = vst [vmem:[%s965_s26 + $0xf8] sm:$0xff] %v229_v31 }
  0x26 PF: > { %p721_p8 = scmp.ge.s32.totalorder %s894_s13, 1  ;;  %p235_p9 = scmp.lt.s32.totalorder %s894_s13, 3 }
  0x28   : > { %p236_p10 = pnand %p721_p8, %p235_p9 }
  0x29   : > { %s242_s27 = sand.u32 (!%p236_p10), 1, %s878_s9   ;;  %v896_v32 = vmov (!%p236_p10), 0   ;;  %v764_v55 = vld [vmem:[%s1111_s0] sm:$0xff] (!%p236_p10)  }
  0x2a   : > { %239 = sbr.rel (%p236_p10) target bundleno = 301 (0x12d), region = 47  ;;  %s722_s28 = sshll.u32 (!%p236_p10), %s242_s27, 8  ;;  %515 = vmatprep.mubr.bf16.mxu0 (!%p236_p10), %v896_v32  ;;  %558 = vmatprep.mubr.bf16.mxu1 (!%p236_p10), %v896_v32  ;;  %v765_v60 = vunpack.c.l.bf16 (!%p236_p10), %v764_v55  ;;  %v766_v61 = vunpack.c.h.bf16 (!%p236_p10), %v764_v55 }
  0x2b   : > { %s1033_s29 = scalar_lea.vmem (!%p236_p10), [#allocation2], %s722_s28  ;;  %s723_s4 = sshll.u32 (!%p236_p10), %s242_s27, 6 }
  0x2c   : > { %v808_v33 = vld [vmem:[%s1033_s29 + $0x4] ss:$16 sps:$4 sm:$0xff] (!%p236_p10)   ;;  %v810_v34 = vld [vmem:[%s1033_s29 + $0xc] ss:$16 sps:$4 sm:$0xff] (!%p236_p10)   ;;  %v812_v35 = vld [vmem:[%s1033_s29] ss:$16 sps:$4 sm:$0xff] (!%p236_p10)  }
  0x2d   : > { %483 = vmatprep.subr.bf16.mxu0 (!%p236_p10), %v808_v33  ;;  %v813_v36 = vld [vmem:[%s1033_s29 + $0x8] ss:$16 sps:$4 sm:$0xff] (!%p236_p10)   ;;  %526 = vmatprep.subr.bf16.mxu1 (!%p236_p10), %v810_v34  ;;  %v814_v37 = vld [vmem:[%s1033_s29 + $0x24] ss:$16 sps:$4 sm:$0xff] (!%p236_p10)   ;;  %v816_v38 = vld [vmem:[%s1033_s29 + $0x2c] ss:$16 sps:$4 sm:$0xff] (!%p236_p10)  }
  0x2e   : > { %484 = vmatpush1.bf16.msra.mxu0 (!%p236_p10), %v812_v35  ;;  %527 = vmatpush1.bf16.msra.mxu1 (!%p236_p10), %v813_v36  ;;  %v818_v39 = vld [vmem:[%s1033_s29 + $0x20] ss:$16 sps:$4 sm:$0xff] (!%p236_p10)   ;;  %v819_v40 = vld [vmem:[%s1033_s29 + $0x28] ss:$16 sps:$4 sm:$0xff] (!%p236_p10)   ;;  %v820_v41 = vld [vmem:[%s1033_s29 + $0x44] ss:$16 sps:$4 sm:$0xff] (!%p236_p10)  }
  0x2f   : > { %485 = vmatprep.subr.bf16.mxu0 (!%p236_p10), %v814_v37  ;;  %528 = vmatprep.subr.bf16.mxu1 (!%p236_p10), %v816_v38  ;;  %v822_v42 = vld [vmem:[%s1033_s29 + $0x4c] ss:$16 sps:$4 sm:$0xff] (!%p236_p10)   ;;  %v824_v43 = vld [vmem:[%s1033_s29 + $0x40] ss:$16 sps:$4 sm:$0xff] (!%p236_p10)   ;;  %v825_v44 = vld [vmem:[%s1033_s29 + $0x48] ss:$16 sps:$4 sm:$0xff] (!%p236_p10)  }
  0x30   : > { %v826_v45 = vld [vmem:[%s1033_s29 + $0x64] ss:$16 sps:$4 sm:$0xff] (!%p236_p10)   ;;  %v828_v46 = vld [vmem:[%s1033_s29 + $0x6c] ss:$16 sps:$4 sm:$0xff] (!%p236_p10)   ;;  %v830_v47 = vld [vmem:[%s1033_s29 + $0x60] ss:$16 sps:$4 sm:$0xff] (!%p236_p10)  }
  0x31   : > { %v831_v48 = vld [vmem:[%s1033_s29 + $0x68] ss:$16 sps:$4 sm:$0xff]   ;;  %v832_v49 = vld [vmem:[%s1033_s29 + $0x84] ss:$16 sps:$4 sm:$0xff]   ;;  %v834_v50 = vld [vmem:[%s1033_s29 + $0x8c] ss:$16 sps:$4 sm:$0xff]  }
  0x32   : > { %486 = vmatpush1.bf16.msra.mxu0 %v818_v39  ;;  %529 = vmatpush1.bf16.msra.mxu1 %v819_v40  ;;  %v836_v51 = vld [vmem:[%s1033_s29 + $0x80] ss:$16 sps:$4 sm:$0xff]   ;;  %v837_v52 = vld [vmem:[%s1033_s29 + $0x88] ss:$16 sps:$4 sm:$0xff]   ;;  %v838_v53 = vld [vmem:[%s1033_s29 + $0xa4] ss:$16 sps:$4 sm:$0xff]  }
  0x33   : > { %487 = vmatprep.subr.bf16.mxu0 %v820_v41  ;;  %530 = vmatprep.subr.bf16.mxu1 %v822_v42  ;;  %v840_v54 = vld [vmem:[%s1033_s29 + $0xac] ss:$16 sps:$4 sm:$0xff]   ;;  %v842_v56 = vld [vmem:[%s1033_s29 + $0xa0] ss:$16 sps:$4 sm:$0xff]   ;;  %v843_v57 = vld [vmem:[%s1033_s29 + $0xa8] ss:$16 sps:$4 sm:$0xff]  }
  0x34   : > { %v844_v58 = vld [vmem:[%s1033_s29 + $0xc4] ss:$16 sps:$4 sm:$0xff]   ;;  %v846_v59 = vld [vmem:[%s1033_s29 + $0xcc] ss:$16 sps:$4 sm:$0xff]   ;;  %v848_v62 = vld [vmem:[%s1033_s29 + $0xc0] ss:$16 sps:$4 sm:$0xff]  }
  0x35   : > { %v849_v63 = vld [vmem:[%s1033_s29 + $0xc8] ss:$16 sps:$4 sm:$0xff]   ;;  %v850_v0 = vld [vmem:[%s1033_s29 + $0xe4] ss:$16 sps:$4 sm:$0xff]   ;;  %v852_v1 = vld [vmem:[%s1033_s29 + $0xec] ss:$16 sps:$4 sm:$0xff]  }
  0x36   : > { %488 = vmatpush1.bf16.msra.mxu0 %v824_v43  ;;  %531 = vmatpush1.bf16.msra.mxu1 %v825_v44  ;;  %v288_v2 = vmax.f32 %v765_v60, 0.0  ;;  %v289_v3 = vmax.f32 %v766_v61, 0.0  ;;  %v854_v4 = vld [vmem:[%s1033_s29 + $0xe0] ss:$16 sps:$4 sm:$0xff]   ;;  %v855_v5 = vld [vmem:[%s1033_s29 + $0xe8] ss:$16 sps:$4 sm:$0xff]  }
  0x37   : > { %489 = vmatprep.subr.bf16.mxu0 %v826_v45  ;;  %532 = vmatprep.subr.bf16.mxu1 %v828_v46  ;;  %s1072_s5 = scalar_lea.vmem [#allocation3], %s723_s4  ;;  %s762_s6 = sshll.u32 (%p947_p6), %s886_s11, 5 }
  0x38   : > { %v290_v6 = vpack.c.bf16 %v289_v3, %v288_v2  ;;  %s589_s9 = scalar_lea.vmem (%p947_p6), %s1113_s2, %s762_s6 }
  0x3a   : > { %490 = vmatpush1.bf16.msra.mxu0 %v830_v47  ;;  %533 = vmatpush1.bf16.msra.mxu1 %v831_v48 }
  0x3b   : > { %491 = vmatprep.subr.bf16.mxu0 %v832_v49  ;;  %534 = vmatprep.subr.bf16.mxu1 %v834_v50 }
  0x3e   : > { %492 = vmatpush1.bf16.msra.mxu0 %v836_v51  ;;  %535 = vmatpush1.bf16.msra.mxu1 %v837_v52 }
  0x3f   : > { %493 = vmatprep.subr.bf16.mxu0 %v838_v53  ;;  %536 = vmatprep.subr.bf16.mxu1 %v840_v54 }
  0x42   : > { %494 = vmatpush1.bf16.msra.mxu0 %v842_v56  ;;  %537 = vmatpush1.bf16.msra.mxu1 %v843_v57 }
  0x43   : > { %495 = vmatprep.subr.bf16.mxu0 %v844_v58  ;;  %538 = vmatprep.subr.bf16.mxu1 %v846_v59 }
  0x46   : > { %496 = vmatpush1.bf16.msra.mxu0 %v848_v62  ;;  %539 = vmatpush1.bf16.msra.mxu1 %v849_v63 }
  0x47   : > { %497 = vmatprep.subr.bf16.mxu0 %v850_v0  ;;  %540 = vmatprep.subr.bf16.mxu1 %v852_v1 }
  0x4a   : > { %498 = vmatpush1.bf16.msra.mxu0 %v854_v4  ;;  %541 = vmatpush1.bf16.msra.mxu1 %v855_v5 }
  0x4d   : > { %516 = vmatmul.mubr.bf16.vlgmr.msra.gmra.mrb[0].mxu0 %v290_v6  ;;  %559 = vmatmul.mubr.bf16.vlgmr.msra.gmra.mrb[0].mxu1 %v290_v6 }
 0x11e   : > { %583 = sbr.rel (!%p947_p6) target bundleno = 301 (0x12d), region = 55 }
 0x120   : > { %v517_v7 = vpop.f32.mrb[0].mxu0  ;;  %v560_v8 = vpop.f32.mrb[0].mxu1 }
 0x121   : > { %569 = vst [vmem:[%s1072_s5] sm:$0xff] %v517_v7  ;;  %571 = vst [vmem:[%s1072_s5 + $0x10] sm:$0xff] %v560_v8  ;;  %v519_v9 = vpop.f32.mrb[1].mxu0  ;;  %v562_v10 = vpop.f32.mrb[1].mxu1 }
 0x122   : > { %570 = vst [vmem:[%s1072_s5 + $0x8] sm:$0xff] %v519_v9  ;;  %572 = vst [vmem:[%s1072_s5 + $0x18] sm:$0xff] %v562_v10  ;;  %v521_v11 = vpop.f32.mrb[2].mxu0  ;;  %v564_v12 = vpop.f32.mrb[2].mxu1 }
 0x123   : > { %573 = vst [vmem:[%s1072_s5 + $0x20] sm:$0xff] %v521_v11  ;;  %575 = vst [vmem:[%s1072_s5 + $0x30] sm:$0xff] %v564_v12  ;;  %v523_v13 = vpop.f32.mrb[3].mxu0  ;;  %v566_v14 = vpop.f32.mrb[3].mxu1 }
 0x124   : > { %574 = vst [vmem:[%s1072_s5 + $0x28] sm:$0xff] %v523_v13  ;;  %576 = vst [vmem:[%s1072_s5 + $0x38] sm:$0xff] %v566_v14 }
 0x128   : > { %v602_v15 = vld [vmem:[%s1072_s5] sm:$0xff]  ;;  %v606_v17 = vld [vmem:[%s1072_s5 + $0x10] sm:$0xff] }
 0x129   : > { %v604_v16 = vld [vmem:[%s1072_s5 + $0x8] sm:$0xff]  ;;  %v608_v18 = vld [vmem:[%s1072_s5 + $0x18] sm:$0xff]  ;;  %603 = vst [vmem:[%s589_s9] sm:$0xff] %v602_v15  ;;  %607 = vst [vmem:[%s589_s9 + $0x10] sm:$0xff] %v606_v17 }
 0x12a   : > { %v610_v19 = vld [vmem:[%s1072_s5 + $0x20] sm:$0xff]  ;;  %605 = vst [vmem:[%s589_s9 + $0x8] sm:$0xff] %v604_v16  ;;  %609 = vst [vmem:[%s589_s9 + $0x18] sm:$0xff] %v608_v18  ;;  %v614_v21 = vld [vmem:[%s1072_s5 + $0x30] sm:$0xff] }
 0x12b   : > { %v612_v20 = vld [vmem:[%s1072_s5 + $0x28] sm:$0xff]  ;;  %611 = vst [vmem:[%s589_s9 + $0x40] sm:$0xff] %v610_v19  ;;  %v616_v22 = vld [vmem:[%s1072_s5 + $0x38] sm:$0xff]  ;;  %615 = vst [vmem:[%s589_s9 + $0x50] sm:$0xff] %v614_v21 }
 0x12c   : > { %613 = vst [vmem:[%s589_s9 + $0x48] sm:$0xff] %v612_v20  ;;  %617 = vst [vmem:[%s589_s9 + $0x58] sm:$0xff] %v616_v22 }
 0x12d PF: > { %s12_s13 = sadd.s32 1, %s894_s13   ;;  %s1115_s9 = smov %s882_s10 }
 0x12e   : > { %p9_p11 = scmp.ge.s32.totalorder %s12_s13, 4   ;;  %s1116_s10 = smov %s952_s19 }
 0x12f   : > { %s1117_s11 = smov %s890_s12  ;;  %s1118_s12 = smov %s1120_s14 }
 0x130   :  { %11 = sbr.rel (!%p9_p11) target bundleno = 3 (0x3), region = 112 }

// kernel: unet_apply.23
= control target key start
LH: loop header
LB: loop body
LE: loop exit
PB: predicated region body
PF: predicated region fallthrough
CT: control target
= control target key end

     0   :  { %s961_s9 = smov 0   ;;  %s963_s10 = smov 0   ;;  %s1088_s0 = inlined_call_operand.vmem [shape: bf16[16,1024], index: 0, kind: input, shape index: {}]   ;;  %s1089_s1 = inlined_call_operand.vmem [shape: bf16[1024,128], index: 1, kind: input, shape index: {}]   ;;  %s1090_s2 = inlined_call_operand.vmem [shape: f32[16,128], index: 2, kind: output, shape index: {}]  }
   0x1   :  { %s965_s11 = smov 0   ;;  %s967_s12 = smov 0  }
   0x2   :  { %s969_s13 = smov 0  }
   0x3 LB: > { %s24_s14 = sadd.s32 1, %s940_s12  ;;  %p47_p1 = scmp.ne.s32.totalorder %s932_s10, %s928_s9  ;;  %s944_s13 = sphi %s969_s13, %s12_s13   ;;  %s940_s12 = sphi %s967_s12, %s1094_s12   ;;  %s936_s11 = sphi %s965_s11, %s1093_s11   ;;  %s932_s10 = sphi %s963_s10, %s1092_s10   ;;  %s928_s9 = sphi %s961_s9, %s1091_s9  }
   0x4   : > { %p25_p0 = scmp.ge.s32.totalorder %s24_s14, 2  ;;  %p48_p2 = scmp.eq.s32.totalorder %s944_s13, 0 }
   0x5   : > { %s40_s16 = sadd.s32 1, %s932_s10  ;;  %p742_p5 = scmp.ge.s32.totalorder %s944_s13, 2 }
   0x6   : > { %s1096_s14 = smov (%p25_p0, %s24_s14), 0  ;;  %p49_p3 = por %p48_p2, %p47_p1 }
   0x7   : > { %s36_s15 = ssub.s32 %s940_s12, %s1096_s14  ;;  %129 = sbr.rel (%p742_p5) target bundleno = 21 (0x15), region = 16 }
   0x8   : > { %p38_p4 = scmp.eq.s32.totalorder %s36_s15, 0 }
   0xa   : > { %s996_s17 = scalar_select %p38_p4, %s932_s10, %s40_s16  }
   0xe   : > { %132 = sbr.rel (!%p49_p3) target bundleno = 21 (0x15), region = 20  ;;  %s134_s18 = sand.u32 (%p49_p3), 1, %s932_s10  }
   0xf   : > { %s789_s19 = sshll.u32 (%p49_p3), %s940_s12, 4  ;;  %s743_s20 = sshll.u32 (%p49_p3), %s134_s18, 5 }
  0x10   : > { %s142_s23 = scalar_lea.vmem (%p49_p3), %s1088_s0, %s789_s19  ;;  %s136_s24 = scalar_lea.vmem (%p49_p3), [#allocation3], %s743_s20 }
  0x11   : > { %v155_v0 = vld [vmem:[%s142_s23] sm:$0xff] (%p49_p3)  ;;  %v157_v1 = vld [vmem:[%s142_s23 + $0x8] sm:$0xff] (%p49_p3) }
  0x12   : > { %v159_v2 = vld [vmem:[%s142_s23 + $0x20] sm:$0xff] (%p49_p3)  ;;  %156 = vst [vmem:[%s136_s24] sm:$0xff] (%p49_p3), %v155_v0  ;;  %158 = vst [vmem:[%s136_s24 + $0x8] sm:$0xff] (%p49_p3), %v157_v1  ;;  %v161_v3 = vld [vmem:[%s142_s23 + $0x28] sm:$0xff] (%p49_p3) }
  0x13   : > { %160 = vst [vmem:[%s136_s24 + $0x10] sm:$0xff] (%p49_p3), %v159_v2  ;;  %162 = vst [vmem:[%s136_s24 + $0x18] sm:$0xff] (%p49_p3), %v161_v3 }
  0x15 PF: > { %p746_p6 = scmp.ge.s32.totalorder %s944_s13, 1  ;;  %p179_p7 = scmp.lt.s32.totalorder %s944_s13, 3 }
  0x17   : > { %p180_p8 = pnand %p746_p6, %p179_p7 }
  0x18   : > { %s748_s25 = sshll.u32 (!%p180_p8), %s936_s11, 6  ;;  %s186_s26 = sand.u32 (!%p180_p8), 1, %s928_s9  }
  0x19   : > { %183 = sbr.rel (%p180_p8) target bundleno = 309 (0x135), region = 47  ;;  %p221_p9 = scmp.lt.s32.totalorder (!%p180_p8), %s748_s25, 127 }
  0x1a   : > { %s747_s27 = sshll.u32 (!%p180_p8), %s186_s26, 5  ;;  %p782_p10 = scmp.ne.s32.totalorder (!%p180_p8), %s936_s11, 0 }
  0x1b   : > { %s1008_s28 = scalar_lea.vmem (!%p180_p8), [#allocation3], %s747_s27 }
  0x1c   : > { %v1011_v4 = vld [vmem:[%s1008_s28] sm:$0xff] (!%p180_p8)  ;;  %v1014_v5 = vld [vmem:[%s1008_s28 + $0x10] sm:$0xff] (!%p180_p8)  ;;  %v240_v31 = vld [vmem:[%s1008_s28 + $0x8] sm:$0xff] (!%p180_p8) }
  0x1d   : > { %v244_v6 = vunpack.c.h.bf16 (!%p180_p8), %v1011_v4  ;;  %v248_v7 = vunpack.c.h.bf16 (!%p180_p8), %v1014_v5  ;;  %v242_v33 = vld [vmem:[%s1008_s28 + $0x18] sm:$0xff] (!%p180_p8)  ;;  %v246_v38 = vunpack.c.h.bf16 (!%p180_p8), %v240_v31  ;;  %v243_v42 = vunpack.c.l.bf16 (!%p180_p8), %v1011_v4 }
  0x1e   : > { %v250_v40 = vunpack.c.h.bf16 (!%p180_p8), %v242_v33  ;;  %v247_v44 = vunpack.c.l.bf16 (!%p180_p8), %v1014_v5  ;;  %v245_v46 = vunpack.c.l.bf16 (!%p180_p8), %v240_v31  ;;  %v249_v48 = vunpack.c.l.bf16 (!%p180_p8), %v242_v33 }
  0x1f   : > { %vm252_vm0 = vcmp.gt.f32.partialorder (!%p180_p8), %v244_v6, 0.0  ;;  %vm256_vm1 = vcmp.gt.f32.partialorder (!%p180_p8), %v248_v7, 0.0  ;;  %v260_v8 = vmul.f32 (!%p180_p8), 0.2, %v244_v6  ;;  %v264_v9 = vmul.f32 (!%p180_p8), 0.2, %v248_v7 }
  0x20   : > { %s1098_s25 = smov (!%p221_p9, %s748_s25), 127  ;;  %vm254_vm2 = vcmp.gt.f32.partialorder %v246_v38, 0.0  ;;  %vm258_vm3 = vcmp.gt.f32.partialorder %v250_v40, 0.0  ;;  %vm251_vm4 = vcmp.gt.f32.partialorder %v243_v42, 0.0  ;;  %vm255_vm5 = vcmp.gt.f32.partialorder %v247_v44, 0.0 }
  0x21   : > { %s749_s29 = sshll.u32 %s1098_s25, 2  ;;  %v268_v12 = vsel %vm252_vm0, %v244_v6, %v260_v8  ;;  %v272_v13 = vsel %vm256_vm1, %v248_v7, %v264_v9  ;;  %vm253_vm6 = vcmp.gt.f32.partialorder %v245_v46, 0.0  ;;  %vm257_vm7 = vcmp.gt.f32.partialorder %v249_v48, 0.0 }
  0x22   : > { %s1021_s4 = scalar_lea.vmem %s1089_s1, %s749_s29  ;;  %v276_v15 = vpack.c.bf16 %v272_v13, %v268_v12  ;;  %v262_v53 = vmul.f32 0.2, %v246_v38  ;;  %v266_v54 = vmul.f32 0.2, %v250_v40  ;;  %v259_v55 = vmul.f32 0.2, %v243_v42 }
  0x23   : > { %v874_v10 = vld [vmem:[%s1021_s4 + $0x40] sm:$0xff]   ;;  %v878_v17 = vld [vmem:[%s1021_s4 + $0x48] sm:$0xff]   ;;  %v882_v21 = vld [vmem:[%s1021_s4 + $0x50] sm:$0xff]   ;;  %v263_v56 = vmul.f32 0.2, %v247_v44 }
  0x24   : > { %v875_v11 = vld [vmem:[%s1021_s4 + $0xc0] sm:$0xff]   ;;  %790 = vmatprep.subr.bf16.mxu0 %v874_v10  ;;  %567 = vmatprep.mubr.bf16.mxu0 %v276_v15  ;;  %v879_v18 = vld [vmem:[%s1021_s4 + $0xc8] sm:$0xff]   ;;  %v883_v22 = vld [vmem:[%s1021_s4 + $0xd0] sm:$0xff]   ;;  %v261_v57 = vmul.f32 0.2, %v245_v46  ;;  %v270_v59 = vsel %vm254_vm2, %v246_v38, %v262_v53  ;;  %v274_v60 = vsel %vm258_vm3, %v250_v40, %v266_v54  ;;  %v267_v61 = vsel %vm251_vm4, %v243_v42, %v259_v55 }
  0x25   : > { %v876_v14 = vld [vmem:[%s1021_s4] sm:$0xff]   ;;  %812 = vmatprep.subr.bf16.mxu1 %v875_v11  ;;  %v880_v19 = vld [vmem:[%s1021_s4 + $0x8] sm:$0xff]   ;;  %v884_v23 = vld [vmem:[%s1021_s4 + $0x10] sm:$0xff]   ;;  %v265_v58 = vmul.f32 0.2, %v249_v48  ;;  %v278_v62 = vpack.c.bf16 %v274_v60, %v270_v59  ;;  %v271_v63 = vsel %vm255_vm5, %v247_v44, %v263_v56 }
  0x26   : > { %v877_v16 = vld [vmem:[%s1021_s4 + $0x80] sm:$0xff]   ;;  %791 = vmatpush3.bf16.msra.mxu0 %v876_v14  ;;  %v881_v20 = vld [vmem:[%s1021_s4 + $0x88] sm:$0xff]   ;;  %v885_v24 = vld [vmem:[%s1021_s4 + $0x90] sm:$0xff]   ;;  %v269_v0 = vsel %vm253_vm6, %v245_v46, %v261_v57  ;;  %v275_v2 = vpack.c.bf16 %v271_v63, %v267_v61 }
  0x27   : > { %813 = vmatpush3.bf16.msra.mxu1 %v877_v16  ;;  %792 = vmatprep.subr.bf16.mxu0 %v878_v17  ;;  %v886_v25 = vld [vmem:[%s1021_s4 + $0x58] sm:$0xff]   ;;  %v890_v29 = vld [vmem:[%s1021_s4 + $0x60] sm:$0xff]   ;;  %v894_v35 = vld [vmem:[%s1021_s4 + $0x68] sm:$0xff]   ;;  %v273_v1 = vsel %vm257_vm7, %v249_v48, %v265_v58 }
  0x28   : > { %814 = vmatprep.subr.bf16.mxu1 %v879_v18  ;;  %v887_v26 = vld [vmem:[%s1021_s4 + $0xd8] sm:$0xff]   ;;  %v891_v30 = vld [vmem:[%s1021_s4 + $0xe0] sm:$0xff]   ;;  %v895_v36 = vld [vmem:[%s1021_s4 + $0xe8] sm:$0xff]   ;;  %v277_v3 = vpack.c.bf16 %v273_v1, %v269_v0  ;;  %608 = vmatprep.mubr.bf16.mxu1 %v278_v62 }
  0x29   : > { %v888_v27 = vld [vmem:[%s1021_s4 + $0x18] sm:$0xff]   ;;  %v892_v32 = vld [vmem:[%s1021_s4 + $0x20] sm:$0xff]   ;;  %v896_v37 = vld [vmem:[%s1021_s4 + $0x28] sm:$0xff]  }
  0x2a   : > { %793 = vmatpush3.bf16.msra.mxu0 %v880_v19  ;;  %v889_v28 = vld [vmem:[%s1021_s4 + $0x98] sm:$0xff]   ;;  %v893_v34 = vld [vmem:[%s1021_s4 + $0xa0] sm:$0xff]   ;;  %v897_v39 = vld [vmem:[%s1021_s4 + $0xa8] sm:$0xff]  }
  0x2b   : > { %815 = vmatpush3.bf16.msra.mxu1 %v881_v20  ;;  %794 = vmatprep.subr.bf16.mxu0 %v882_v21  ;;  %v898_v41 = vld [vmem:[%s1021_s4 + $0x70] sm:$0xff]   ;;  %v902_v49 = vld [vmem:[%s1021_s4 + $0x78] sm:$0xff]  }
  0x2c   : > { %816 = vmatprep.subr.bf16.mxu1 %v883_v22  ;;  %v899_v43 = vld [vmem:[%s1021_s4 + $0xf0] sm:$0xff]   ;;  %v903_v50 = vld [vmem:[%s1021_s4 + $0xf8] sm:$0xff]  }
  0x2d   : > { %v900_v45 = vld [vmem:[%s1021_s4 + $0x30] sm:$0xff]   ;;  %v904_v51 = vld [vmem:[%s1021_s4 + $0x38] sm:$0xff]  }
  0x2e   : > { %795 = vmatpush3.bf16.msra.mxu0 %v884_v23  ;;  %v901_v47 = vld [vmem:[%s1021_s4 + $0xb0] sm:$0xff]   ;;  %v905_v52 = vld [vmem:[%s1021_s4 + $0xb8] sm:$0xff]  }
  0x2f   : > { %817 = vmatpush3.bf16.msra.mxu1 %v885_v24  ;;  %796 = vmatprep.subr.bf16.mxu0 %v886_v25 }
  0x30   : > { %818 = vmatprep.subr.bf16.mxu1 %v887_v26 }
  0x32   : > { %797 = vmatpush3.bf16.msra.mxu0 %v888_v27 }
  0x33   : > { %819 = vmatpush3.bf16.msra.mxu1 %v889_v28  ;;  %798 = vmatprep.subr.bf16.mxu0 %v890_v29 }
  0x34   : > { %820 = vmatprep.subr.bf16.mxu1 %v891_v30 }
  0x36   : > { %799 = vmatpush3.bf16.msra.mxu0 %v892_v32 }
  0x37   : > { %821 = vmatpush3.bf16.msra.mxu1 %v893_v34  ;;  %800 = vmatprep.subr.bf16.mxu0 %v894_v35 }
  0x38   : > { %822 = vmatprep.subr.bf16.mxu1 %v895_v36 }
  0x3a   : > { %801 = vmatpush3.bf16.msra.mxu0 %v896_v37 }
  0x3b   : > { %823 = vmatpush3.bf16.msra.mxu1 %v897_v39  ;;  %802 = vmatprep.subr.bf16.mxu0 %v898_v41 }
  0x3c   : > { %824 = vmatprep.subr.bf16.mxu1 %v899_v43 }
  0x3e   : > { %803 = vmatpush3.bf16.msra.mxu0 %v900_v45 }
  0x3f   : > { %825 = vmatpush3.bf16.msra.mxu1 %v901_v47  ;;  %804 = vmatprep.subr.bf16.mxu0 %v902_v49 }
  0x40   : > { %826 = vmatprep.subr.bf16.mxu1 %v903_v50 }
  0x42   : > { %805 = vmatpush3.bf16.msra.mxu0 %v904_v51 }
  0x43   : > { %827 = vmatpush3.bf16.msra.mxu1 %v905_v52 }
  0x45   : > { %568 = vmatmul.mubr.bf16.vlgmr.msra.gmra.mrb[0].mxu0 %v275_v2 }
  0x46   : > { %609 = vmatmul.mubr.bf16.vlgmr.msra.gmra.mrb[0].mxu1 %v277_v3 }
 0x118   : > { %v806_v4 = vpop.f32.mrb[0].mxu0 }
 0x119   : > { %v828_v5 = vpop.f32.mrb[0].mxu1  ;;  %v807_v6 = vpop.f32.mrb[1].mxu0  ;;  %620 = sbr.rel (%p782_p10) target bundleno = 290 (0x122), region = 55 }
 0x11a   : > { %v829_v7 = vpop.f32.mrb[1].mxu1  ;;  %v808_v8 = vadd.f32 %v807_v6, %v806_v4  ;;  %v809_v10 = vpop.f32.mrb[2].mxu0 }
 0x11b   : > { %v830_v9 = vadd.f32 %v829_v7, %v828_v5  ;;  %v831_v11 = vpop.f32.mrb[2].mxu1  ;;  %v810_v12 = vpop.f32.mrb[3].mxu0 }
 0x11c   : > { %v832_v13 = vpop.f32.mrb[3].mxu1  ;;  %v811_v15 = vadd.f32 %v810_v12, %v809_v10 }
 0x11d   : > { %v611_v14 = vadd.f32 %v830_v9, %v808_v8  ;;  %v833_v16 = vadd.f32 %v832_v13, %v831_v11 }
 0x11f   : > { %v614_v17 = vadd.f32 %v833_v16, %v811_v15  ;;  %621 = vst [vmem:[#allocation2] sm:$0xff] (!%p782_p10), %v611_v14 }
 0x121   : > { %622 = vst [vmem:[#allocation2 + $0x8] sm:$0xff] %v614_v17 }
 0x122 PF: > { %p783_p11 = scmp.le.s32.totalorder %s936_s11, 0 }
 0x124   : > { %626 = sbr.rel (%p783_p11) target bundleno = 300 (0x12c), region = 59 }
 0x128   : > { %v627_v18 = vld [vmem:[#allocation2] sm:$0xff] (!%p783_p11)  ;;  %v628_v19 = vld [vmem:[#allocation2 + $0x8] sm:$0xff] (!%p783_p11) }
 0x129   : > { %v629_v20 = vadd.f32 (!%p783_p11), %v627_v18, %v611_v14  ;;  %v630_v21 = vadd.f32 (!%p783_p11), %v628_v19, %v614_v17 }
 0x12b   : > { %631 = vst [vmem:[#allocation2] sm:$0xff] %v629_v20  ;;  %632 = vst [vmem:[#allocation2 + $0x8] sm:$0xff] %v630_v21 }
 0x12c PF: > { %p784_p12 = scmp.ne.s32.totalorder %s936_s11, 1 }
 0x12e   : > { %636 = sbr.rel (%p784_p12) target bundleno = 309 (0x135), region = 63 }
 0x132   : > { %v637_v22 = vld [vmem:[#allocation2] sm:$0xff] (!%p784_p12)  ;;  %v638_v23 = vld [vmem:[#allocation2 + $0x8] sm:$0xff] (!%p784_p12) }
 0x133   : > { %639 = vst [vmem:[%s1090_s2] sm:$0xff] (!%p784_p12), %v637_v22  ;;  %640 = vst [vmem:[%s1090_s2 + $0x8] sm:$0xff] (!%p784_p12), %v638_v23 }
 0x135 PF: > { %s12_s13 = sadd.s32 1, %s944_s13   ;;  %s1091_s9 = smov %s932_s10 }
 0x136   : > { %p9_p13 = scmp.ge.s32.totalorder %s12_s13, 4   ;;  %s1092_s10 = smov %s996_s17 }
 0x137   : > { %s1093_s11 = smov %s940_s12  ;;  %s1094_s12 = smov %s1096_s14 }
 0x138   :  { %11 = sbr.rel (!%p9_p13) target bundleno = 3 (0x3), region = 101 }

// kernel: unet_apply.25
= control target key start
LH: loop header
LB: loop body
LE: loop exit
PB: predicated region body
PF: predicated region fallthrough
CT: control target
= control target key end

     0   :  { %v45_v0 = vmov 0.0   ;;  %s82_s1 = inlined_call_operand.vmem [shape: f32[1,128], index: 1, kind: output, shape index: {0}]   ;;  %s83_s2 = inlined_call_operand.vmem [shape: f32[1,128], index: 2, kind: output, shape index: {1}]   ;;  %s84_s0 = inlined_call_operand.vmem [shape: f32[8,128], index: 0, kind: input, shape index: {}]  }
   0x1   :  { %14 = vst [vmem:[%s82_s1] sm:$0x1] %v45_v0  ;;  %15 = vst [vmem:[%s83_s2] sm:$0x1] %v45_v0  ;;  %v16_v1 = vld [vmem:[%s84_s0] sm:$0xff] }
   0x2   :  { %v18_v2 = vrot.slane %v16_v1, 4  ;;  %v27_v3 = vmul.f32 %v16_v1, %v16_v1 }
   0x4   :  { %v19_v4 = vadd.f32 %v18_v2, %v16_v1  ;;  %v28_v5 = vrot.slane %v27_v3, 4 }
   0x6   :  { %v20_v6 = vrot.slane %v19_v4, 2  ;;  %v29_v7 = vadd.f32 %v28_v5, %v27_v3 }
   0x8   :  { %v21_v8 = vadd.f32 %v20_v6, %v19_v4  ;;  %v30_v9 = vrot.slane %v29_v7, 2  ;;  %v17_v12 = vld [vmem:[%s82_s1] sm:$0x1] }
   0x9   :  { %v26_v15 = vld [vmem:[%s83_s2] sm:$0x1] }
   0xa   :  { %v22_v10 = vrot.slane %v21_v8, 1  ;;  %v31_v11 = vadd.f32 %v30_v9, %v29_v7 }
   0xc   :  { %v23_v13 = vadd.f32 %v22_v10, %v21_v8  ;;  %v32_v14 = vrot.slane %v31_v11, 1 }
   0xe   :  { %v24_v16 = vadd.f32 %v23_v13, %v17_v12  ;;  %v33_v17 = vadd.f32 %v32_v14, %v31_v11 }
  0x10   :  { %25 = vst [vmem:[%s82_s1] sm:$0x1] %v24_v16  ;;  %v34_v18 = vadd.f32 %v33_v17, %v26_v15 }
  0x12   :  { %35 = vst [vmem:[%s83_s2] sm:$0x1] %v34_v18 }

// kernel: unet_apply.27
= control target key start
LH: loop header
LB: loop body
LE: loop exit
PB: predicated region body
PF: predicated region fallthrough
CT: control target
= control target key end

     0   :  { %v49_v0 = vmov 0.0   ;;  %s89_s1 = inlined_call_operand.vmem [shape: f32[1,128], index: 1, kind: output, shape index: {0}]   ;;  %s90_s2 = inlined_call_operand.vmem [shape: f32[1,128], index: 2, kind: output, shape index: {1}]   ;;  %s91_s0 = inlined_call_operand.vmem [shape: f32[16,128], index: 0, kind: input, shape index: {}]  }
   0x1   :  { %14 = vst [vmem:[%s89_s1] sm:$0x1] %v49_v0  ;;  %15 = vst [vmem:[%s90_s2] sm:$0x1] %v49_v0  ;;  %v16_v1 = vld [vmem:[%s91_s0] sm:$0xff]  ;;  %v17_v2 = vld [vmem:[%s91_s0 + $0x8] sm:$0xff] }
   0x2   :  { %v19_v3 = vadd.f32 %v17_v2, %v16_v1  ;;  %v29_v4 = vmul.f32 %v16_v1, %v16_v1  ;;  %v30_v5 = vmul.f32 %v17_v2, %v17_v2 }
   0x4   :  { %v20_v6 = vrot.slane %v19_v3, 4  ;;  %v31_v7 = vadd.f32 %v30_v5, %v29_v4 }
   0x6   :  { %v21_v8 = vadd.f32 %v20_v6, %v19_v3  ;;  %v32_v9 = vrot.slane %v31_v7, 4 }
   0x8   :  { %v22_v10 = vrot.slane %v21_v8, 2  ;;  %v33_v11 = vadd.f32 %v32_v9, %v31_v7  ;;  %v18_v16 = vld [vmem:[%s89_s1] sm:$0x1] }
   0x9   :  { %v28_v19 = vld [vmem:[%s90_s2] sm:$0x1] }
   0xa   :  { %v23_v12 = vadd.f32 %v22_v10, %v21_v8  ;;  %v34_v13 = vrot.slane %v33_v11, 2 }
   0xc   :  { %v24_v14 = vrot.slane %v23_v12, 1  ;;  %v35_v15 = vadd.f32 %v34_v13, %v33_v11 }
   0xe   :  { %v25_v17 = vadd.f32 %v24_v14, %v23_v12  ;;  %v36_v18 = vrot.slane %v35_v15, 1 }
  0x10   :  { %v26_v20 = vadd.f32 %v25_v17, %v18_v16  ;;  %v37_v21 = vadd.f32 %v36_v18, %v35_v15 }
  0x12   :  { %27 = vst [vmem:[%s89_s1] sm:$0x1] %v26_v20  ;;  %v38_v22 = vadd.f32 %v37_v21, %v28_v19 }
  0x14   :  { %39 = vst [vmem:[%s90_s2] sm:$0x1] %v38_v22 }

// kernel: unet_apply.26
= control target key start
LH: loop header
LB: loop body
LE: loop exit
PB: predicated region body
PF: predicated region fallthrough
CT: control target
= control target key end

     0   :  { %s1816_s27 = smov 0   ;;  %s1818_s28 = smov 0   ;;  %s2153_s0 = inlined_call_operand.vmem [shape: bf16[16,128], index: 0, kind: input, shape index: {}]   ;;  %s2154_s1 = inlined_call_operand.vmem [shape: bf16[16,128], index: 1, kind: input, shape index: {}]   ;;  %s2155_s2 = inlined_call_operand.vmem [shape: f32[1,128], index: 2, kind: input, shape index: {}]   ;;  %s2156_s3 = inlined_call_operand.vmem [shape: f32[1,128], index: 3, kind: input, shape index: {}]   ;;  %s2157_s4 = inlined_call_operand.vmem [shape: f32[1,128], index: 4, kind: input, shape index: {}]   ;;  %s2158_s5 = inlined_call_operand.vmem [shape: f32[1,128], index: 5, kind: input, shape index: {}]   ;;  %s2159_s6 = inlined_call_operand.vmem [shape: bf16[128,1024], index: 6, kind: input, shape index: {}]   ;;  %s2160_s7 = inlined_call_operand.vmem [shape: bf16[128,1024], index: 7, kind: input, shape index: {}]   ;;  %s2161_s8 = inlined_call_operand.vmem [shape: f32[16,1024], index: 8, kind: output, shape index: {}]  }
   0x1   :  { %s1820_s29 = smov 0   ;;  %s1822_s30 = smov 0  }
   0x2   :  { %s1824_s9 = smov 0  }
   0x3 LB: > { %s33_s10 = sadd.s32 1, %s1764_s30  ;;  %s1481_s11 = sadd.s32 4294967295, %s1768_s9   ;;  %s1768_s9 = sphi %s1824_s9, %s18_s9   ;;  %s1764_s30 = sphi %s1822_s30, %s2167_s30   ;;  %s1760_s29 = sphi %s1820_s29, %s2166_s29   ;;  %s1756_s28 = sphi %s1818_s28, %s2165_s28   ;;  %s1752_s27 = sphi %s1816_s27, %s2164_s27  }
   0x4   : > { %p35_p0 = scmp.ge.s32.totalorder %s33_s10, 2  ;;  %p213_p1 = scmp.ne.s32.totalorder %s1756_s28, %s1752_s27 }
   0x5   : > { %p214_p2 = scmp.eq.s32.totalorder %s1768_s9, 0  ;;  %p273_p4 = scmp.eq.s32.totalorder %s1481_s11, 1 }
   0x6   : > { %s2169_s10 = smov (%p35_p0, %s33_s10), 0  ;;  %s206_s14 = sadd.s32 1, %s1756_s28 }
   0x7   : > { %p1848_p3 = por %p214_p2, %p213_p1  ;;  %s202_s13 = ssub.s32 %s1764_s30, %s2169_s10 }
   0x8   : > { %p204_p5 = scmp.eq.s32.totalorder %s202_s13, 0  ;;  %p1855_p6 = por %p273_p4, %p213_p1 }
   0x9   : > { %p1490_p7 = scmp.ge.s32.totalorder %s1768_s9, 2 }
   0xa   : > { %s1860_s16 = scalar_select %p204_p5, %s1756_s28, %s206_s14  }
   0xb   : > { %343 = sbr.rel (%p1490_p7) target bundleno = 58 (0x3a), region = 40 }
  0x12   : > { %346 = sbr.rel (!%p1848_p3) target bundleno = 38 (0x26), region = 44  ;;  %s348_s17 = sand.u32 (%p1848_p3), 1, %s1756_s28  }
  0x13   : > { %s1574_s18 = sshll.u32 (%p1848_p3), %s1764_s30, 4  ;;  %s1491_s19 = sshll.u32 (%p1848_p3), %s348_s17, 8 }
  0x14   : > { %s1870_s22 = scalar_lea.vmem (%p1848_p3), %s2159_s6, %s1574_s18  ;;  %s1875_s23 = scalar_lea.vmem (%p1848_p3), [#allocation2], %s1491_s19 }
  0x15   : > { %v369_v0 = vld [vmem:[%s1870_s22] sm:$0xff] (%p1848_p3)  ;;  %v371_v1 = vld [vmem:[%s1870_s22 + $0x8] sm:$0xff] (%p1848_p3) }
  0x16   : > { %v373_v2 = vld [vmem:[%s1870_s22 + $0x20] sm:$0xff] (%p1848_p3)  ;;  %370 = vst [vmem:[%s1875_s23] sm:$0xff] (%p1848_p3), %v369_v0  ;;  %372 = vst [vmem:[%s1875_s23 + $0x8] sm:$0xff] (%p1848_p3), %v371_v1  ;;  %v375_v3 = vld [vmem:[%s1870_s22 + $0x28] sm:$0xff] (%p1848_p3) }
  0x17   : > { %374 = vst [vmem:[%s1875_s23 + $0x10] sm:$0xff] (%p1848_p3), %v373_v2  ;;  %v377_v4 = vld [vmem:[%s1870_s22 + $0x40] sm:$0xff] (%p1848_p3)  ;;  %v379_v5 = vld [vmem:[%s1870_s22 + $0x48] sm:$0xff] (%p1848_p3)  ;;  %376 = vst [vmem:[%s1875_s23 + $0x18] sm:$0xff] (%p1848_p3), %v375_v3 }
  0x18   : > { %378 = vst [vmem:[%s1875_s23 + $0x20] sm:$0xff] (%p1848_p3), %v377_v4  ;;  %380 = vst [vmem:[%s1875_s23 + $0x28] sm:$0xff] (%p1848_p3), %v379_v5  ;;  %v381_v6 = vld [vmem:[%s1870_s22 + $0x60] sm:$0xff] (%p1848_p3)  ;;  %v383_v7 = vld [vmem:[%s1870_s22 + $0x68] sm:$0xff] (%p1848_p3) }
  0x19   : > { %v385_v8 = vld [vmem:[%s1870_s22 + $0x80] sm:$0xff]  ;;  %382 = vst [vmem:[%s1875_s23 + $0x30] sm:$0xff] %v381_v6  ;;  %384 = vst [vmem:[%s1875_s23 + $0x38] sm:$0xff] %v383_v7  ;;  %v387_v9 = vld [vmem:[%s1870_s22 + $0x88] sm:$0xff] }
  0x1a   : > { %386 = vst [vmem:[%s1875_s23 + $0x40] sm:$0xff] %v385_v8  ;;  %v389_v10 = vld [vmem:[%s1870_s22 + $0xa0] sm:$0xff]  ;;  %v391_v11 = vld [vmem:[%s1870_s22 + $0xa8] sm:$0xff]  ;;  %388 = vst [vmem:[%s1875_s23 + $0x48] sm:$0xff] %v387_v9 }
  0x1b   : > { %390 = vst [vmem:[%s1875_s23 + $0x50] sm:$0xff] %v389_v10  ;;  %392 = vst [vmem:[%s1875_s23 + $0x58] sm:$0xff] %v391_v11  ;;  %v393_v12 = vld [vmem:[%s1870_s22 + $0xc0] sm:$0xff]  ;;  %v395_v13 = vld [vmem:[%s1870_s22 + $0xc8] sm:$0xff] }
  0x1c   : > { %v397_v14 = vld [vmem:[%s1870_s22 + $0xe0] sm:$0xff]  ;;  %394 = vst [vmem:[%s1875_s23 + $0x60] sm:$0xff] %v393_v12  ;;  %396 = vst [vmem:[%s1875_s23 + $0x68] sm:$0xff] %v395_v13  ;;  %v399_v15 = vld [vmem:[%s1870_s22 + $0xe8] sm:$0xff] }
  0x1d   : > { %398 = vst [vmem:[%s1875_s23 + $0x70] sm:$0xff] %v397_v14  ;;  %v401_v16 = vld [vmem:[%s1870_s22 + $0x100] sm:$0xff]  ;;  %v403_v17 = vld [vmem:[%s1870_s22 + $0x108] sm:$0xff]  ;;  %400 = vst [vmem:[%s1875_s23 + $0x78] sm:$0xff] %v399_v15 }
  0x1e   : > { %402 = vst [vmem:[%s1875_s23 + $0x80] sm:$0xff] %v401_v16  ;;  %404 = vst [vmem:[%s1875_s23 + $0x88] sm:$0xff] %v403_v17  ;;  %v405_v18 = vld [vmem:[%s1870_s22 + $0x120] sm:$0xff]  ;;  %v407_v19 = vld [vmem:[%s1870_s22 + $0x128] sm:$0xff] }
  0x1f   : > { %v409_v20 = vld [vmem:[%s1870_s22 + $0x140] sm:$0xff]  ;;  %406 = vst [vmem:[%s1875_s23 + $0x90] sm:$0xff] %v405_v18  ;;  %408 = vst [vmem:[%s1875_s23 + $0x98] sm:$0xff] %v407_v19  ;;  %v411_v21 = vld [vmem:[%s1870_s22 + $0x148] sm:$0xff] }
  0x20   : > { %410 = vst [vmem:[%s1875_s23 + $0xa0] sm:$0xff] %v409_v20  ;;  %v413_v22 = vld [vmem:[%s1870_s22 + $0x160] sm:$0xff]  ;;  %v415_v23 = vld [vmem:[%s1870_s22 + $0x168] sm:$0xff]  ;;  %412 = vst [vmem:[%s1875_s23 + $0xa8] sm:$0xff] %v411_v21 }
  0x21   : > { %414 = vst [vmem:[%s1875_s23 + $0xb0] sm:$0xff] %v413_v22  ;;  %416 = vst [vmem:[%s1875_s23 + $0xb8] sm:$0xff] %v415_v23  ;;  %v417_v24 = vld [vmem:[%s1870_s22 + $0x180] sm:$0xff]  ;;  %v419_v25 = vld [vmem:[%s1870_s22 + $0x188] sm:$0xff] }
  0x22   : > { %v421_v26 = vld [vmem:[%s1870_s22 + $0x1a0] sm:$0xff]  ;;  %418 = vst [vmem:[%s1875_s23 + $0xc0] sm:$0xff] %v417_v24  ;;  %420 = vst [vmem:[%s1875_s23 + $0xc8] sm:$0xff] %v419_v25  ;;  %v423_v27 = vld [vmem:[%s1870_s22 + $0x1a8] sm:$0xff] }
  0x23   : > { %422 = vst [vmem:[%s1875_s23 + $0xd0] sm:$0xff] %v421_v26  ;;  %v425_v28 = vld [vmem:[%s1870_s22 + $0x1c0] sm:$0xff]  ;;  %v427_v29 = vld [vmem:[%s1870_s22 + $0x1c8] sm:$0xff]  ;;  %424 = vst [vmem:[%s1875_s23 + $0xd8] sm:$0xff] %v423_v27 }
  0x24   : > { %426 = vst [vmem:[%s1875_s23 + $0xe0] sm:$0xff] %v425_v28  ;;  %428 = vst [vmem:[%s1875_s23 + $0xe8] sm:$0xff] %v427_v29  ;;  %v429_v30 = vld [vmem:[%s1870_s22 + $0x1e0] sm:$0xff]  ;;  %v431_v31 = vld [vmem:[%s1870_s22 + $0x1e8] sm:$0xff] }
  0x25   : > { %430 = vst [vmem:[%s1875_s23 + $0xf0] sm:$0xff] %v429_v30  ;;  %432 = vst [vmem:[%s1875_s23 + $0xf8] sm:$0xff] %v431_v31 }
  0x26 PF: > { %438 = sbr.rel (!%p1848_p3) target bundleno = 58 (0x3a), region = 67  ;;  %s440_s24 = sand.u32 (%p1848_p3), 1, %s1756_s28  }
  0x27   : > { %s1575_s25 = sshll.u32 (%p1848_p3), %s1764_s30, 4  ;;  %s1494_s26 = sshll.u32 (%p1848_p3), %s440_s24, 8 }
  0x28   : > { %s1945_s14 = scalar_lea.vmem (%p1848_p3), %s2160_s7, %s1575_s25  ;;  %s1950_s12 = scalar_lea.vmem (%p1848_p3), [#allocation3], %s1494_s26 }
  0x29   : > { %v461_v32 = vld [vmem:[%s1945_s14] sm:$0xff] (%p1848_p3)  ;;  %v463_v33 = vld [vmem:[%s1945_s14 + $0x8] sm:$0xff] (%p1848_p3) }
  0x2a   : > { %v465_v34 = vld [vmem:[%s1945_s14 + $0x20] sm:$0xff] (%p1848_p3)  ;;  %462 = vst [vmem:[%s1950_s12] sm:$0xff] (%p1848_p3), %v461_v32  ;;  %464 = vst [vmem:[%s1950_s12 + $0x8] sm:$0xff] (%p1848_p3), %v463_v33  ;;  %v467_v35 = vld [vmem:[%s1945_s14 + $0x28] sm:$0xff] (%p1848_p3) }
  0x2b   : > { %466 = vst [vmem:[%s1950_s12 + $0x10] sm:$0xff] (%p1848_p3), %v465_v34  ;;  %v469_v36 = vld [vmem:[%s1945_s14 + $0x40] sm:$0xff] (%p1848_p3)  ;;  %v471_v37 = vld [vmem:[%s1945_s14 + $0x48] sm:$0xff] (%p1848_p3)  ;;  %468 = vst [vmem:[%s1950_s12 + $0x18] sm:$0xff] (%p1848_p3), %v467_v35 }
  0x2c   : > { %470 = vst [vmem:[%s1950_s12 + $0x20] sm:$0xff] (%p1848_p3), %v469_v36  ;;  %472 = vst [vmem:[%s1950_s12 + $0x28] sm:$0xff] (%p1848_p3), %v471_v37  ;;  %v473_v38 = vld [vmem:[%s1945_s14 + $0x60] sm:$0xff] (%p1848_p3)  ;;  %v475_v39 = vld [vmem:[%s1945_s14 + $0x68] sm:$0xff] (%p1848_p3) }
  0x2d   : > { %v477_v40 = vld [vmem:[%s1945_s14 + $0x80] sm:$0xff]  ;;  %474 = vst [vmem:[%s1950_s12 + $0x30] sm:$0xff] %v473_v38  ;;  %476 = vst [vmem:[%s1950_s12 + $0x38] sm:$0xff] %v475_v39  ;;  %v479_v41 = vld [vmem:[%s1945_s14 + $0x88] sm:$0xff] }
  0x2e   : > { %478 = vst [vmem:[%s1950_s12 + $0x40] sm:$0xff] %v477_v40  ;;  %v481_v42 = vld [vmem:[%s1945_s14 + $0xa0] sm:$0xff]  ;;  %v483_v43 = vld [vmem:[%s1945_s14 + $0xa8] sm:$0xff]  ;;  %480 = vst [vmem:[%s1950_s12 + $0x48] sm:$0xff] %v479_v41 }
  0x2f   : > { %482 = vst [vmem:[%s1950_s12 + $0x50] sm:$0xff] %v481_v42  ;;  %484 = vst [vmem:[%s1950_s12 + $0x58] sm:$0xff] %v483_v43  ;;  %v485_v44 = vld [vmem:[%s1945_s14 + $0xc0] sm:$0xff]  ;;  %v487_v45 = vld [vmem:[%s1945_s14 + $0xc8] sm:$0xff] }
  0x30   : > { %v489_v46 = vld [vmem:[%s1945_s14 + $0xe0] sm:$0xff]  ;;  %486 = vst [vmem:[%s1950_s12 + $0x60] sm:$0xff] %v485_v44  ;;  %488 = vst [vmem:[%s1950_s12 + $0x68] sm:$0xff] %v487_v45  ;;  %v491_v47 = vld [vmem:[%s1945_s14 + $0xe8] sm:$0xff] }
  0x31   : > { %490 = vst [vmem:[%s1950_s12 + $0x70] sm:$0xff] %v489_v46  ;;  %v493_v48 = vld [vmem:[%s1945_s14 + $0x100] sm:$0xff]  ;;  %v495_v49 = vld [vmem:[%s1945_s14 + $0x108] sm:$0xff]  ;;  %492 = vst [vmem:[%s1950_s12 + $0x78] sm:$0xff] %v491_v47 }
  0x32   : > { %494 = vst [vmem:[%s1950_s12 + $0x80] sm:$0xff] %v493_v48  ;;  %496 = vst [vmem:[%s1950_s12 + $0x88] sm:$0xff] %v495_v49  ;;  %v497_v50 = vld [vmem:[%s1945_s14 + $0x120] sm:$0xff]  ;;  %v499_v51 = vld [vmem:[%s1945_s14 + $0x128] sm:$0xff] }
  0x33   : > { %v501_v52 = vld [vmem:[%s1945_s14 + $0x140] sm:$0xff]  ;;  %498 = vst [vmem:[%s1950_s12 + $0x90] sm:$0xff] %v497_v50  ;;  %500 = vst [vmem:[%s1950_s12 + $0x98] sm:$0xff] %v499_v51  ;;  %v503_v53 = vld [vmem:[%s1945_s14 + $0x148] sm:$0xff] }
  0x34   : > { %502 = vst [vmem:[%s1950_s12 + $0xa0] sm:$0xff] %v501_v52  ;;  %v505_v54 = vld [vmem:[%s1945_s14 + $0x160] sm:$0xff]  ;;  %v507_v55 = vld [vmem:[%s1945_s14 + $0x168] sm:$0xff]  ;;  %504 = vst [vmem:[%s1950_s12 + $0xa8] sm:$0xff] %v503_v53 }
  0x35   : > { %506 = vst [vmem:[%s1950_s12 + $0xb0] sm:$0xff] %v505_v54  ;;  %508 = vst [vmem:[%s1950_s12 + $0xb8] sm:$0xff] %v507_v55  ;;  %v509_v56 = vld [vmem:[%s1945_s14 + $0x180] sm:$0xff]  ;;  %v511_v57 = vld [vmem:[%s1945_s14 + $0x188] sm:$0xff] }
  0x36   : > { %v513_v58 = vld [vmem:[%s1945_s14 + $0x1a0] sm:$0xff]  ;;  %510 = vst [vmem:[%s1950_s12 + $0xc0] sm:$0xff] %v509_v56  ;;  %512 = vst [vmem:[%s1950_s12 + $0xc8] sm:$0xff] %v511_v57  ;;  %v515_v59 = vld [vmem:[%s1945_s14 + $0x1a8] sm:$0xff] }
  0x37   : > { %514 = vst [vmem:[%s1950_s12 + $0xd0] sm:$0xff] %v513_v58  ;;  %v517_v60 = vld [vmem:[%s1945_s14 + $0x1c0] sm:$0xff]  ;;  %v519_v61 = vld [vmem:[%s1945_s14 + $0x1c8] sm:$0xff]  ;;  %516 = vst [vmem:[%s1950_s12 + $0xd8] sm:$0xff] %v515_v59 }
  0x38   : > { %518 = vst [vmem:[%s1950_s12 + $0xe0] sm:$0xff] %v517_v60  ;;  %520 = vst [vmem:[%s1950_s12 + $0xe8] sm:$0xff] %v519_v61  ;;  %v521_v62 = vld [vmem:[%s1945_s14 + $0x1e0] sm:$0xff]  ;;  %v523_v63 = vld [vmem:[%s1945_s14 + $0x1e8] sm:$0xff] }
  0x39   : > { %522 = vst [vmem:[%s1950_s12 + $0xf0] sm:$0xff] %v521_v62  ;;  %524 = vst [vmem:[%s1950_s12 + $0xf8] sm:$0xff] %v523_v63 }
  0x3a PF: > { %p1497_p8 = scmp.ge.s32.totalorder %s1768_s9, 1  ;;  %p529_p9 = scmp.lt.s32.totalorder %s1768_s9, 3 }
  0x3c   : > { %p530_p10 = pnand %p1497_p8, %p529_p9 }
  0x3d   : > { %s536_s17 = sand.u32 (!%p530_p10), 1, %s1752_s27   ;;  %v1770_v0 = vmov (!%p530_p10), 0   ;;  %v1582_v15 = vld [vmem:[%s2154_s1] sm:$0xff] (!%p530_p10)  }
  0x3e   : > { %533 = sbr.rel (%p530_p10) target bundleno = 353 (0x161), region = 90  ;;  %s2018_s18 = sshll.u32 (!%p530_p10), %s536_s17, 8  ;;  %950 = vmatprep.mubr.bf16.mxu0 (!%p530_p10), %v1770_v0  ;;  %993 = vmatprep.mubr.bf16.mxu1 (!%p530_p10), %v1770_v0  ;;  %v1583_v20 = vunpack.c.l.bf16 (!%p530_p10), %v1582_v15  ;;  %v1584_v23 = vunpack.c.h.bf16 (!%p530_p10), %v1582_v15  ;;  %v1503_v24 = vld [vmem:[%s2157_s4] ss:$0 sm:$0xff] (!%p530_p10) }
  0x3f   : > { %s2023_s19 = scalar_lea.vmem (!%p530_p10), [#allocation3], %s2018_s18  ;;  %v1504_v27 = vld [vmem:[%s2158_s5] ss:$0 sm:$0xff] (!%p530_p10)  ;;  %s2061_s26 = scalar_lea.vmem (!%p530_p10), [#allocation2], %s2018_s18 }
  0x40   : > { %v1634_v1 = vld [vmem:[%s2023_s19 + $0x4] ss:$16 sps:$4 sm:$0xff] (!%p530_p10)   ;;  %v1636_v2 = vld [vmem:[%s2023_s19 + $0xc] ss:$16 sps:$4 sm:$0xff] (!%p530_p10)   ;;  %v1638_v3 = vld [vmem:[%s2023_s19] ss:$16 sps:$4 sm:$0xff] (!%p530_p10)   ;;  %v713_v28 = vmul.f32 (!%p530_p10), %v1583_v20, %v1503_v24  ;;  %v714_v30 = vmul.f32 (!%p530_p10), %v1584_v23, %v1503_v24 }
  0x41   : > { %918 = vmatprep.subr.bf16.mxu0 (!%p530_p10), %v1634_v1  ;;  %v1639_v4 = vld [vmem:[%s2023_s19 + $0x8] ss:$16 sps:$4 sm:$0xff] (!%p530_p10)   ;;  %961 = vmatprep.subr.bf16.mxu1 (!%p530_p10), %v1636_v2  ;;  %v1640_v5 = vld [vmem:[%s2023_s19 + $0x24] ss:$16 sps:$4 sm:$0xff] (!%p530_p10)   ;;  %v1642_v6 = vld [vmem:[%s2023_s19 + $0x2c] ss:$16 sps:$4 sm:$0xff] (!%p530_p10)  }
  0x42   : > { %919 = vmatpush1.bf16.msra.mxu0 (!%p530_p10), %v1638_v3  ;;  %962 = vmatpush1.bf16.msra.mxu1 (!%p530_p10), %v1639_v4  ;;  %v1644_v7 = vld [vmem:[%s2023_s19 + $0x20] ss:$16 sps:$4 sm:$0xff] (!%p530_p10)   ;;  %v1645_v8 = vld [vmem:[%s2023_s19 + $0x28] ss:$16 sps:$4 sm:$0xff] (!%p530_p10)   ;;  %v1646_v9 = vld [vmem:[%s2023_s19 + $0x44] ss:$16 sps:$4 sm:$0xff] (!%p530_p10)   ;;  %v721_v34 = vadd.f32 (!%p530_p10), %v1504_v27, %v713_v28  ;;  %v722_v37 = vadd.f32 (!%p530_p10), %v1504_v27, %v714_v30 }
  0x43   : > { %920 = vmatprep.subr.bf16.mxu0 (!%p530_p10), %v1640_v5  ;;  %963 = vmatprep.subr.bf16.mxu1 (!%p530_p10), %v1642_v6  ;;  %v1648_v10 = vld [vmem:[%s2023_s19 + $0x4c] ss:$16 sps:$4 sm:$0xff] (!%p530_p10)   ;;  %v1650_v11 = vld [vmem:[%s2023_s19 + $0x40] ss:$16 sps:$4 sm:$0xff] (!%p530_p10)   ;;  %v1651_v12 = vld [vmem:[%s2023_s19 + $0x48] ss:$16 sps:$4 sm:$0xff] (!%p530_p10)  }
  0x44   : > { %v1652_v13 = vld [vmem:[%s2023_s19 + $0x64] ss:$16 sps:$4 sm:$0xff] (!%p530_p10)   ;;  %v1654_v14 = vld [vmem:[%s2023_s19 + $0x6c] ss:$16 sps:$4 sm:$0xff] (!%p530_p10)   ;;  %v1656_v16 = vld [vmem:[%s2023_s19 + $0x60] ss:$16 sps:$4 sm:$0xff] (!%p530_p10)  }
  0x45   : > { %v1657_v17 = vld [vmem:[%s2023_s19 + $0x68] ss:$16 sps:$4 sm:$0xff]   ;;  %v1658_v18 = vld [vmem:[%s2023_s19 + $0x84] ss:$16 sps:$4 sm:$0xff]   ;;  %v1660_v19 = vld [vmem:[%s2023_s19 + $0x8c] ss:$16 sps:$4 sm:$0xff]  }
  0x46   : > { %921 = vmatpush1.bf16.msra.mxu0 %v1644_v7  ;;  %964 = vmatpush1.bf16.msra.mxu1 %v1645_v8  ;;  %v1662_v21 = vld [vmem:[%s2023_s19 + $0x80] ss:$16 sps:$4 sm:$0xff]   ;;  %v1663_v22 = vld [vmem:[%s2023_s19 + $0x88] ss:$16 sps:$4 sm:$0xff]   ;;  %v1664_v25 = vld [vmem:[%s2023_s19 + $0xa4] ss:$16 sps:$4 sm:$0xff]  }
  0x47   : > { %922 = vmatprep.subr.bf16.mxu0 %v1646_v9  ;;  %965 = vmatprep.subr.bf16.mxu1 %v1648_v10  ;;  %v1666_v26 = vld [vmem:[%s2023_s19 + $0xac] ss:$16 sps:$4 sm:$0xff]   ;;  %v1668_v29 = vld [vmem:[%s2023_s19 + $0xa0] ss:$16 sps:$4 sm:$0xff]   ;;  %v1669_v31 = vld [vmem:[%s2023_s19 + $0xa8] ss:$16 sps:$4 sm:$0xff]  }
  0x48   : > { %v1670_v32 = vld [vmem:[%s2023_s19 + $0xc4] ss:$16 sps:$4 sm:$0xff]   ;;  %v1672_v33 = vld [vmem:[%s2023_s19 + $0xcc] ss:$16 sps:$4 sm:$0xff]   ;;  %v1674_v35 = vld [vmem:[%s2023_s19 + $0xc0] ss:$16 sps:$4 sm:$0xff]  }
  0x49   : > { %v1675_v36 = vld [vmem:[%s2023_s19 + $0xc8] ss:$16 sps:$4 sm:$0xff]   ;;  %v1676_v38 = vld [vmem:[%s2023_s19 + $0xe4] ss:$16 sps:$4 sm:$0xff]   ;;  %v1678_v39 = vld [vmem:[%s2023_s19 + $0xec] ss:$16 sps:$4 sm:$0xff]  }
  0x4a   : > { %923 = vmatpush1.bf16.msra.mxu0 %v1650_v11  ;;  %966 = vmatpush1.bf16.msra.mxu1 %v1651_v12  ;;  %v723_v40 = vmax.f32 %v721_v34, 0.0  ;;  %v1680_v41 = vld [vmem:[%s2023_s19 + $0xe0] ss:$16 sps:$4 sm:$0xff]   ;;  %v1681_v42 = vld [vmem:[%s2023_s19 + $0xe8] ss:$16 sps:$4 sm:$0xff]   ;;  %v724_v43 = vmax.f32 %v722_v37, 0.0 }
  0x4b   : > { %924 = vmatprep.subr.bf16.mxu0 %v1652_v13  ;;  %967 = vmatprep.subr.bf16.mxu1 %v1654_v14  ;;  %v1684_v44 = vld [vmem:[%s2061_s26 + $0x4] ss:$16 sps:$4 sm:$0xff]   ;;  %v1687_v45 = vld [vmem:[%s2061_s26 + $0xc] ss:$16 sps:$4 sm:$0xff]   ;;  %v1682_v46 = vld [vmem:[%s2061_s26] ss:$16 sps:$4 sm:$0xff]  }
  0x4c   : > { %v1685_v47 = vld [vmem:[%s2061_s26 + $0x8] ss:$16 sps:$4 sm:$0xff]   ;;  %v725_v48 = vpack.c.bf16 %v724_v43, %v723_v40  ;;  %v1690_v49 = vld [vmem:[%s2061_s26 + $0x24] ss:$16 sps:$4 sm:$0xff]   ;;  %v1693_v50 = vld [vmem:[%s2061_s26 + $0x2c] ss:$16 sps:$4 sm:$0xff]  }
  0x4d   : > { %v1688_v51 = vld [vmem:[%s2061_s26 + $0x20] ss:$16 sps:$4 sm:$0xff]   ;;  %v1691_v52 = vld [vmem:[%s2061_s26 + $0x28] ss:$16 sps:$4 sm:$0xff]   ;;  %v1696_v53 = vld [vmem:[%s2061_s26 + $0x44] ss:$16 sps:$4 sm:$0xff]  }
  0x4e   : > { %925 = vmatpush1.bf16.msra.mxu0 %v1656_v16  ;;  %968 = vmatpush1.bf16.msra.mxu1 %v1657_v17  ;;  %v1699_v54 = vld [vmem:[%s2061_s26 + $0x4c] ss:$16 sps:$4 sm:$0xff]   ;;  %v1694_v55 = vld [vmem:[%s2061_s26 + $0x40] ss:$16 sps:$4 sm:$0xff]   ;;  %v1697_v56 = vld [vmem:[%s2061_s26 + $0x48] ss:$16 sps:$4 sm:$0xff]  }
  0x4f   : > { %926 = vmatprep.subr.bf16.mxu0 %v1658_v18  ;;  %969 = vmatprep.subr.bf16.mxu1 %v1660_v19  ;;  %v1702_v57 = vld [vmem:[%s2061_s26 + $0x64] ss:$16 sps:$4 sm:$0xff]   ;;  %v1705_v58 = vld [vmem:[%s2061_s26 + $0x6c] ss:$16 sps:$4 sm:$0xff]   ;;  %v1700_v59 = vld [vmem:[%s2061_s26 + $0x60] ss:$16 sps:$4 sm:$0xff]  }
  0x50   : > { %v1703_v60 = vld [vmem:[%s2061_s26 + $0x68] ss:$16 sps:$4 sm:$0xff]   ;;  %v1578_v61 = vld [vmem:[%s2153_s0] sm:$0xff]   ;;  %v1711_v63 = vld [vmem:[%s2061_s26 + $0x8c] ss:$16 sps:$4 sm:$0xff]   ;;  %s1500_s20 = sshll.u32 %s536_s17, 6 }
  0x51   : > { %v1708_v62 = vld [vmem:[%s2061_s26 + $0x84] ss:$16 sps:$4 sm:$0xff]   ;;  %v1580_v1 = vunpack.c.h.bf16 %v1578_v61  ;;  %v1706_v2 = vld [vmem:[%s2061_s26 + $0x80] ss:$16 sps:$4 sm:$0xff]   ;;  %v1709_v3 = vld [vmem:[%s2061_s26 + $0x88] ss:$16 sps:$4 sm:$0xff]  }
  0x52   : > { %927 = vmatpush1.bf16.msra.mxu0 %v1662_v21  ;;  %970 = vmatpush1.bf16.msra.mxu1 %v1663_v22  ;;  %v1501_v4 = vld [vmem:[%s2155_s2] ss:$0 sm:$0xff]  ;;  %v1714_v5 = vld [vmem:[%s2061_s26 + $0xa4] ss:$16 sps:$4 sm:$0xff]   ;;  %v1717_v6 = vld [vmem:[%s2061_s26 + $0xac] ss:$16 sps:$4 sm:$0xff]  }
  0x53   : > { %928 = vmatprep.subr.bf16.mxu0 %v1664_v25  ;;  %971 = vmatprep.subr.bf16.mxu1 %v1666_v26  ;;  %v657_v8 = vmul.f32 %v1580_v1, %v1501_v4  ;;  %v1712_v9 = vld [vmem:[%s2061_s26 + $0xa0] ss:$16 sps:$4 sm:$0xff]   ;;  %v1715_v10 = vld [vmem:[%s2061_s26 + $0xa8] ss:$16 sps:$4 sm:$0xff]   ;;  %v1720_v12 = vld [vmem:[%s2061_s26 + $0xc4] ss:$16 sps:$4 sm:$0xff]  }
  0x54   : > { %v1502_v11 = vld [vmem:[%s2156_s3] ss:$0 sm:$0xff]  ;;  %v1723_v13 = vld [vmem:[%s2061_s26 + $0xcc] ss:$16 sps:$4 sm:$0xff]   ;;  %v1721_v17 = vld [vmem:[%s2061_s26 + $0xc8] ss:$16 sps:$4 sm:$0xff]  }
  0x55   : > { %v665_v15 = vadd.f32 %v1502_v11, %v657_v8  ;;  %v1718_v16 = vld [vmem:[%s2061_s26 + $0xc0] ss:$16 sps:$4 sm:$0xff]   ;;  %v1726_v18 = vld [vmem:[%s2061_s26 + $0xe4] ss:$16 sps:$4 sm:$0xff]   ;;  %v1729_v19 = vld [vmem:[%s2061_s26 + $0xec] ss:$16 sps:$4 sm:$0xff]  }
  0x56   : > { %929 = vmatpush1.bf16.msra.mxu0 %v1668_v29  ;;  %972 = vmatpush1.bf16.msra.mxu1 %v1669_v31  ;;  %v1724_v22 = vld [vmem:[%s2061_s26 + $0xe0] ss:$16 sps:$4 sm:$0xff]   ;;  %v1727_v23 = vld [vmem:[%s2061_s26 + $0xe8] ss:$16 sps:$4 sm:$0xff]   ;;  %s2114_s21 = scalar_lea.vmem [#allocation4], %s1500_s20  ;;  %s1576_s27 = sshll.u32 (%p1855_p6), %s1760_s29, 5 }
  0x57   : > { %930 = vmatprep.subr.bf16.mxu0 %v1670_v32  ;;  %973 = vmatprep.subr.bf16.mxu1 %v1672_v33  ;;  %v667_v21 = vmax.f32 %v665_v15, 0.0  ;;  %s1270_s23 = scalar_lea.vmem (%p1855_p6), %s2161_s8, %s1576_s27 }
  0x5a   : > { %931 = vmatpush1.bf16.msra.mxu0 %v1674_v35  ;;  %974 = vmatpush1.bf16.msra.mxu1 %v1675_v36 }
  0x5b   : > { %932 = vmatprep.subr.bf16.mxu0 %v1676_v38  ;;  %975 = vmatprep.subr.bf16.mxu1 %v1678_v39 }
  0x5e   : > { %933 = vmatpush1.bf16.msra.mxu0 %v1680_v41  ;;  %976 = vmatpush1.bf16.msra.mxu1 %v1681_v42 }
  0x5f   : > { %1164 = vmatprep.subr.bf16.mxu0 %v1684_v44  ;;  %1207 = vmatprep.subr.bf16.mxu1 %v1687_v45 }
  0x61   : > { %951 = vmatmul.mubr.bf16.vlgmr.msra.gmra.mrb[0].mxu0 %v725_v48  ;;  %994 = vmatmul.mubr.bf16.vlgmr.msra.gmra.mrb[0].mxu1 %v725_v48 }
  0x62   : > { %1165 = vmatpush1.bf16.msra.mxu0 %v1682_v46  ;;  %1208 = vmatpush1.bf16.msra.mxu1 %v1685_v47 }
  0x63   : > { %1166 = vmatprep.subr.bf16.mxu0 %v1690_v49  ;;  %1209 = vmatprep.subr.bf16.mxu1 %v1693_v50 }
  0x64   : > { %1196 = vmatprep.mubr.bf16.mxu0 %v1770_v0  ;;  %1239 = vmatprep.mubr.bf16.mxu1 %v1770_v0  ;;  %v1579_v0 = vunpack.c.l.bf16 %v1578_v61 }
  0x66   : > { %1167 = vmatpush1.bf16.msra.mxu0 %v1688_v51  ;;  %1210 = vmatpush1.bf16.msra.mxu1 %v1691_v52  ;;  %v656_v7 = vmul.f32 %v1579_v0, %v1501_v4 }
  0x67   : > { %1168 = vmatprep.subr.bf16.mxu0 %v1696_v53  ;;  %1211 = vmatprep.subr.bf16.mxu1 %v1699_v54 }
  0x68   : > { %v664_v14 = vadd.f32 %v1502_v11, %v656_v7 }
  0x6a   : > { %1169 = vmatpush1.bf16.msra.mxu0 %v1694_v55  ;;  %1212 = vmatpush1.bf16.msra.mxu1 %v1697_v56  ;;  %v666_v20 = vmax.f32 %v664_v14, 0.0 }
  0x6b   : > { %1170 = vmatprep.subr.bf16.mxu0 %v1702_v57  ;;  %1213 = vmatprep.subr.bf16.mxu1 %v1705_v58 }
  0x6c   : > { %v668_v24 = vpack.c.bf16 %v667_v21, %v666_v20 }
  0x6e   : > { %1171 = vmatpush1.bf16.msra.mxu0 %v1700_v59  ;;  %1214 = vmatpush1.bf16.msra.mxu1 %v1703_v60 }
  0x6f   : > { %1172 = vmatprep.subr.bf16.mxu0 %v1708_v62  ;;  %1215 = vmatprep.subr.bf16.mxu1 %v1711_v63 }
  0x72   : > { %1173 = vmatpush1.bf16.msra.mxu0 %v1706_v2  ;;  %1216 = vmatpush1.bf16.msra.mxu1 %v1709_v3 }
  0x73   : > { %1174 = vmatprep.subr.bf16.mxu0 %v1714_v5  ;;  %1217 = vmatprep.subr.bf16.mxu1 %v1717_v6 }
  0x76   : > { %1175 = vmatpush1.bf16.msra.mxu0 %v1712_v9  ;;  %1218 = vmatpush1.bf16.msra.mxu1 %v1715_v10 }
  0x77   : > { %1176 = vmatprep.subr.bf16.mxu0 %v1720_v12  ;;  %1219 = vmatprep.subr.bf16.mxu1 %v1723_v13 }
  0x7a   : > { %1177 = vmatpush1.bf16.msra.mxu0 %v1718_v16  ;;  %1220 = vmatpush1.bf16.msra.mxu1 %v1721_v17 }
  0x7b   : > { %1178 = vmatprep.subr.bf16.mxu0 %v1726_v18  ;;  %1221 = vmatprep.subr.bf16.mxu1 %v1729_v19 }
  0x7e   : > { %1179 = vmatpush1.bf16.msra.mxu0 %v1724_v22  ;;  %1222 = vmatpush1.bf16.msra.mxu1 %v1727_v23 }
  0x81   : > { %1197 = vmatmul.mubr.bf16.vlgmr.msra.gmra.mrb[0].mxu0 %v668_v24  ;;  %1240 = vmatmul.mubr.bf16.vlgmr.msra.gmra.mrb[0].mxu1 %v668_v24 }
 0x152   : > { %1264 = sbr.rel (!%p1855_p6) target bundleno = 353 (0x161), region = 102 }
 0x154   : > { %v1198_v25 = vpop.f32.mrb[0].mxu0  ;;  %v1241_v26 = vpop.f32.mrb[0].mxu1 }
 0x155   : > { %1250 = vst [vmem:[%s2114_s21] sm:$0xff] %v1198_v25  ;;  %1252 = vst [vmem:[%s2114_s21 + $0x10] sm:$0xff] %v1241_v26  ;;  %v1200_v27 = vpop.f32.mrb[1].mxu0  ;;  %v1243_v28 = vpop.f32.mrb[1].mxu1 }
 0x156   : > { %1251 = vst [vmem:[%s2114_s21 + $0x8] sm:$0xff] %v1200_v27  ;;  %1253 = vst [vmem:[%s2114_s21 + $0x18] sm:$0xff] %v1243_v28  ;;  %v1202_v29 = vpop.f32.mrb[2].mxu0  ;;  %v1245_v30 = vpop.f32.mrb[2].mxu1 }
 0x157   : > { %1254 = vst [vmem:[%s2114_s21 + $0x20] sm:$0xff] %v1202_v29  ;;  %1256 = vst [vmem:[%s2114_s21 + $0x30] sm:$0xff] %v1245_v30  ;;  %v1204_v31 = vpop.f32.mrb[3].mxu0  ;;  %v1247_v32 = vpop.f32.mrb[3].mxu1 }
 0x158   : > { %1255 = vst [vmem:[%s2114_s21 + $0x28] sm:$0xff] %v1204_v31  ;;  %1257 = vst [vmem:[%s2114_s21 + $0x38] sm:$0xff] %v1247_v32 }
 0x15c   : > { %v1283_v33 = vld [vmem:[%s2114_s21] sm:$0xff]  ;;  %v1287_v35 = vld [vmem:[%s2114_s21 + $0x10] sm:$0xff] }
 0x15d   : > { %v1285_v34 = vld [vmem:[%s2114_s21 + $0x8] sm:$0xff]  ;;  %v1289_v36 = vld [vmem:[%s2114_s21 + $0x18] sm:$0xff]  ;;  %1284 = vst [vmem:[%s1270_s23] sm:$0xff] %v1283_v33  ;;  %1288 = vst [vmem:[%s1270_s23 + $0x10] sm:$0xff] %v1287_v35 }
 0x15e   : > { %v1291_v37 = vld [vmem:[%s2114_s21 + $0x20] sm:$0xff]  ;;  %1286 = vst [vmem:[%s1270_s23 + $0x8] sm:$0xff] %v1285_v34  ;;  %1290 = vst [vmem:[%s1270_s23 + $0x18] sm:$0xff] %v1289_v36  ;;  %v1295_v39 = vld [vmem:[%s2114_s21 + $0x30] sm:$0xff] }
 0x15f   : > { %v1293_v38 = vld [vmem:[%s2114_s21 + $0x28] sm:$0xff]  ;;  %1292 = vst [vmem:[%s1270_s23 + $0x40] sm:$0xff] %v1291_v37  ;;  %v1297_v40 = vld [vmem:[%s2114_s21 + $0x38] sm:$0xff]  ;;  %1296 = vst [vmem:[%s1270_s23 + $0x50] sm:$0xff] %v1295_v39 }
 0x160   : > { %1294 = vst [vmem:[%s1270_s23 + $0x48] sm:$0xff] %v1293_v38  ;;  %1298 = vst [vmem:[%s1270_s23 + $0x58] sm:$0xff] %v1297_v40 }
 0x161 PF: > { %s18_s9 = sadd.s32 1, %s1768_s9   ;;  %s2164_s27 = smov %s1756_s28 }
 0x162   : > { %p15_p11 = scmp.ge.s32.totalorder %s18_s9, 4   ;;  %s2165_s28 = smov %s1860_s16 }
 0x163   : > { %s2166_s29 = smov %s1764_s30  ;;  %s2167_s30 = smov %s2169_s10 }
 0x164   :  { %17 = sbr.rel (!%p15_p11) target bundleno = 3 (0x3), region = 182 }

// kernel: unet_apply.28
= control target key start
LH: loop header
LB: loop body
LE: loop exit
PB: predicated region body
PF: predicated region fallthrough
CT: control target
= control target key end

     0   :  { %s1536_s27 = smov 0   ;;  %s1538_s28 = smov 0   ;;  %s1743_s0 = inlined_call_operand.vmem [shape: bf16[32,128], index: 0, kind: input, shape index: {}]   ;;  %s1744_s1 = inlined_call_operand.vmem [shape: bf16[32,128], index: 1, kind: input, shape index: {}]   ;;  %s1745_s2 = inlined_call_operand.vmem [shape: f32[1,128], index: 2, kind: input, shape index: {}]   ;;  %s1746_s3 = inlined_call_operand.vmem [shape: f32[1,128], index: 3, kind: input, shape index: {}]   ;;  %s1747_s4 = inlined_call_operand.vmem [shape: f32[1,128], index: 4, kind: input, shape index: {}]   ;;  %s1748_s5 = inlined_call_operand.vmem [shape: f32[1,128], index: 5, kind: input, shape index: {}]   ;;  %s1749_s6 = inlined_call_operand.vmem [shape: bf16[128,512], index: 6, kind: input, shape index: {}]   ;;  %s1750_s7 = inlined_call_operand.vmem [shape: bf16[128,512], index: 7, kind: input, shape index: {}]   ;;  %s1751_s8 = inlined_call_operand.vmem [shape: f32[32,512], index: 8, kind: output, shape index: {}]  }
   0x1   :  { %s1540_s29 = smov 0   ;;  %s1542_s30 = smov 0  }
   0x2   :  { %s1544_s9 = smov 0  }
   0x3 LB: > { %s33_s10 = sadd.s32 1, %s1484_s30  ;;  %s1271_s11 = sadd.s32 4294967295, %s1488_s9   ;;  %s1488_s9 = sphi %s1544_s9, %s18_s9   ;;  %s1484_s30 = sphi %s1542_s30, %s1757_s30   ;;  %s1480_s29 = sphi %s1540_s29, %s1756_s29   ;;  %s1476_s28 = sphi %s1538_s28, %s1755_s28   ;;  %s1472_s27 = sphi %s1536_s27, %s1754_s27  }
   0x4   : > { %p35_p0 = scmp.ge.s32.totalorder %s33_s10, 2  ;;  %p213_p1 = scmp.ne.s32.totalorder %s1476_s28, %s1472_s27 }
   0x5   : > { %p214_p2 = scmp.eq.s32.totalorder %s1488_s9, 0  ;;  %p273_p4 = scmp.eq.s32.totalorder %s1271_s11, 1 }
   0x6   : > { %s1759_s10 = smov (%p35_p0, %s33_s10), 0  ;;  %s206_s14 = sadd.s32 1, %s1476_s28 }
   0x7   : > { %p1568_p3 = por %p214_p2, %p213_p1  ;;  %s202_s13 = ssub.s32 %s1484_s30, %s1759_s10 }
   0x8   : > { %p204_p5 = scmp.eq.s32.totalorder %s202_s13, 0  ;;  %p1575_p6 = por %p273_p4, %p213_p1 }
   0x9   : > { %p1280_p7 = scmp.ge.s32.totalorder %s1488_s9, 2 }
   0xa   : > { %s1580_s16 = scalar_select %p204_p5, %s1476_s28, %s206_s14  }
   0xb   : > { %343 = sbr.rel (%p1280_p7) target bundleno = 42 (0x2a), region = 40 }
  0x12   : > { %346 = sbr.rel (!%p1568_p3) target bundleno = 30 (0x1e), region = 44  ;;  %s348_s17 = sand.u32 (%p1568_p3), 1, %s1476_s28  }
  0x13   : > { %s1332_s18 = sshll.u32 (%p1568_p3), %s1484_s30, 3  ;;  %s1281_s19 = sshll.u32 (%p1568_p3), %s348_s17, 7 }
  0x14   : > { %s1590_s22 = scalar_lea.vmem (%p1568_p3), %s1749_s6, %s1332_s18  ;;  %s350_s23 = scalar_lea.vmem (%p1568_p3), [#allocation2], %s1281_s19 }
  0x15   : > { %v414_v0 = vld [vmem:[%s1590_s22] sm:$0xff] (%p1568_p3)  ;;  %v416_v1 = vld [vmem:[%s1590_s22 + $0x10] sm:$0xff] (%p1568_p3) }
  0x16   : > { %v418_v2 = vld [vmem:[%s1590_s22 + $0x20] sm:$0xff] (%p1568_p3)  ;;  %415 = vst [vmem:[%s350_s23] sm:$0xff] (%p1568_p3), %v414_v0  ;;  %417 = vst [vmem:[%s350_s23 + $0x8] sm:$0xff] (%p1568_p3), %v416_v1  ;;  %v420_v3 = vld [vmem:[%s1590_s22 + $0x30] sm:$0xff] (%p1568_p3) }
  0x17   : > { %419 = vst [vmem:[%s350_s23 + $0x10] sm:$0xff] (%p1568_p3), %v418_v2  ;;  %v422_v4 = vld [vmem:[%s1590_s22 + $0x40] sm:$0xff] (%p1568_p3)  ;;  %v424_v5 = vld [vmem:[%s1590_s22 + $0x50] sm:$0xff] (%p1568_p3)  ;;  %421 = vst [vmem:[%s350_s23 + $0x18] sm:$0xff] (%p1568_p3), %v420_v3 }
  0x18   : > { %423 = vst [vmem:[%s350_s23 + $0x20] sm:$0xff] (%p1568_p3), %v422_v4  ;;  %425 = vst [vmem:[%s350_s23 + $0x28] sm:$0xff] (%p1568_p3), %v424_v5  ;;  %v426_v6 = vld [vmem:[%s1590_s22 + $0x60] sm:$0xff] (%p1568_p3)  ;;  %v428_v7 = vld [vmem:[%s1590_s22 + $0x70] sm:$0xff] (%p1568_p3) }
  0x19   : > { %v430_v8 = vld [vmem:[%s1590_s22 + $0x80] sm:$0xff]  ;;  %427 = vst [vmem:[%s350_s23 + $0x30] sm:$0xff] %v426_v6  ;;  %429 = vst [vmem:[%s350_s23 + $0x38] sm:$0xff] %v428_v7  ;;  %v432_v9 = vld [vmem:[%s1590_s22 + $0x90] sm:$0xff] }
  0x1a   : > { %431 = vst [vmem:[%s350_s23 + $0x40] sm:$0xff] %v430_v8  ;;  %v434_v10 = vld [vmem:[%s1590_s22 + $0xa0] sm:$0xff]  ;;  %v436_v11 = vld [vmem:[%s1590_s22 + $0xb0] sm:$0xff]  ;;  %433 = vst [vmem:[%s350_s23 + $0x48] sm:$0xff] %v432_v9 }
  0x1b   : > { %435 = vst [vmem:[%s350_s23 + $0x50] sm:$0xff] %v434_v10  ;;  %437 = vst [vmem:[%s350_s23 + $0x58] sm:$0xff] %v436_v11  ;;  %v438_v12 = vld [vmem:[%s1590_s22 + $0xc0] sm:$0xff]  ;;  %v440_v13 = vld [vmem:[%s1590_s22 + $0xd0] sm:$0xff] }
  0x1c   : > { %v442_v14 = vld [vmem:[%s1590_s22 + $0xe0] sm:$0xff]  ;;  %439 = vst [vmem:[%s350_s23 + $0x60] sm:$0xff] %v438_v12  ;;  %441 = vst [vmem:[%s350_s23 + $0x68] sm:$0xff] %v440_v13  ;;  %v444_v15 = vld [vmem:[%s1590_s22 + $0xf0] sm:$0xff] }
  0x1d   : > { %443 = vst [vmem:[%s350_s23 + $0x70] sm:$0xff] %v442_v14  ;;  %445 = vst [vmem:[%s350_s23 + $0x78] sm:$0xff] %v444_v15 }
  0x1e PF: > { %451 = sbr.rel (!%p1568_p3) target bundleno = 42 (0x2a), region = 82  ;;  %s453_s24 = sand.u32 (%p1568_p3), 1, %s1476_s28  }
  0x1f   : > { %s1333_s25 = sshll.u32 (%p1568_p3), %s1484_s30, 3  ;;  %s1284_s26 = sshll.u32 (%p1568_p3), %s453_s24, 7 }
  0x20   : > { %s1615_s14 = scalar_lea.vmem (%p1568_p3), %s1750_s7, %s1333_s25  ;;  %s455_s12 = scalar_lea.vmem (%p1568_p3), [#allocation3], %s1284_s26 }
  0x21   : > { %v519_v16 = vld [vmem:[%s1615_s14] sm:$0xff] (%p1568_p3)  ;;  %v521_v17 = vld [vmem:[%s1615_s14 + $0x10] sm:$0xff] (%p1568_p3) }
  0x22   : > { %v523_v18 = vld [vmem:[%s1615_s14 + $0x20] sm:$0xff] (%p1568_p3)  ;;  %520 = vst [vmem:[%s455_s12] sm:$0xff] (%p1568_p3), %v519_v16  ;;  %522 = vst [vmem:[%s455_s12 + $0x8] sm:$0xff] (%p1568_p3), %v521_v17  ;;  %v525_v19 = vld [vmem:[%s1615_s14 + $0x30] sm:$0xff] (%p1568_p3) }
  0x23   : > { %524 = vst [vmem:[%s455_s12 + $0x10] sm:$0xff] (%p1568_p3), %v523_v18  ;;  %v527_v20 = vld [vmem:[%s1615_s14 + $0x40] sm:$0xff] (%p1568_p3)  ;;  %v529_v21 = vld [vmem:[%s1615_s14 + $0x50] sm:$0xff] (%p1568_p3)  ;;  %526 = vst [vmem:[%s455_s12 + $0x18] sm:$0xff] (%p1568_p3), %v525_v19 }
  0x24   : > { %528 = vst [vmem:[%s455_s12 + $0x20] sm:$0xff] (%p1568_p3), %v527_v20  ;;  %530 = vst [vmem:[%s455_s12 + $0x28] sm:$0xff] (%p1568_p3), %v529_v21  ;;  %v531_v22 = vld [vmem:[%s1615_s14 + $0x60] sm:$0xff] (%p1568_p3)  ;;  %v533_v23 = vld [vmem:[%s1615_s14 + $0x70] sm:$0xff] (%p1568_p3) }
  0x25   : > { %v535_v24 = vld [vmem:[%s1615_s14 + $0x80] sm:$0xff]  ;;  %532 = vst [vmem:[%s455_s12 + $0x30] sm:$0xff] %v531_v22  ;;  %534 = vst [vmem:[%s455_s12 + $0x38] sm:$0xff] %v533_v23  ;;  %v537_v25 = vld [vmem:[%s1615_s14 + $0x90] sm:$0xff] }
  0x26   : > { %536 = vst [vmem:[%s455_s12 + $0x40] sm:$0xff] %v535_v24  ;;  %v539_v26 = vld [vmem:[%s1615_s14 + $0xa0] sm:$0xff]  ;;  %v541_v27 = vld [vmem:[%s1615_s14 + $0xb0] sm:$0xff]  ;;  %538 = vst [vmem:[%s455_s12 + $0x48] sm:$0xff] %v537_v25 }
  0x27   : > { %540 = vst [vmem:[%s455_s12 + $0x50] sm:$0xff] %v539_v26  ;;  %542 = vst [vmem:[%s455_s12 + $0x58] sm:$0xff] %v541_v27  ;;  %v543_v28 = vld [vmem:[%s1615_s14 + $0xc0] sm:$0xff]  ;;  %v545_v29 = vld [vmem:[%s1615_s14 + $0xd0] sm:$0xff] }
  0x28   : > { %v547_v30 = vld [vmem:[%s1615_s14 + $0xe0] sm:$0xff]  ;;  %544 = vst [vmem:[%s455_s12 + $0x60] sm:$0xff] %v543_v28  ;;  %546 = vst [vmem:[%s455_s12 + $0x68] sm:$0xff] %v545_v29  ;;  %v549_v31 = vld [vmem:[%s1615_s14 + $0xf0] sm:$0xff] }
  0x29   : > { %548 = vst [vmem:[%s455_s12 + $0x70] sm:$0xff] %v547_v30  ;;  %550 = vst [vmem:[%s455_s12 + $0x78] sm:$0xff] %v549_v31 }
  0x2a PF: > { %p1287_p8 = scmp.ge.s32.totalorder %s1488_s9, 1  ;;  %p555_p9 = scmp.lt.s32.totalorder %s1488_s9, 3 }
  0x2c   : > { %p556_p10 = pnand %p1287_p8, %p555_p9 }
  0x2d   : > { %s562_s17 = sand.u32 (!%p556_p10), 1, %s1472_s27   ;;  %v1490_v32 = vmov (!%p556_p10), 0   ;;  %v1344_v47 = vld [vmem:[%s1744_s1] sm:$0xff] (!%p556_p10)   ;;  %v1352_v1 = vld [vmem:[%s1744_s1 + $0x8] sm:$0xff] (!%p556_p10)  }
  0x2e   : > { %559 = sbr.rel (%p556_p10) target bundleno = 316 (0x13c), region = 120  ;;  %s1288_s18 = sshll.u32 (!%p556_p10), %s562_s17, 7  ;;  %886 = vmatprep.mubr.bf16.mxu1 (!%p556_p10), %v1490_v32  ;;  %1019 = vmatprep.mubr.bf16.mxu0 (!%p556_p10), %v1490_v32  ;;  %v1336_v48 = vld [vmem:[%s1743_s0] sm:$0xff] (!%p556_p10)   ;;  %v1345_v56 = vunpack.c.l.bf16 (!%p556_p10), %v1344_v47  ;;  %v1346_v57 = vunpack.c.h.bf16 (!%p556_p10), %v1344_v47  ;;  %v1351_v6 = vld [vmem:[%s1743_s0 + $0x8] sm:$0xff] (!%p556_p10)   ;;  %v1349_v11 = vunpack.c.l.bf16 (!%p556_p10), %v1352_v1  ;;  %v1350_v12 = vunpack.c.h.bf16 (!%p556_p10), %v1352_v1 }
  0x2f   : > { %s1640_s19 = scalar_lea.vmem (!%p556_p10), [#allocation3], %s1288_s18  ;;  %s1643_s20 = scalar_lea.vmem (!%p556_p10), [#allocation2], %s1288_s18  ;;  %v1293_v53 = vld [vmem:[%s1747_s4] ss:$0 sm:$0xff] (!%p556_p10)  ;;  %v1337_v58 = vunpack.c.l.bf16 (!%p556_p10), %v1336_v48  ;;  %v1338_v59 = vunpack.c.h.bf16 (!%p556_p10), %v1336_v48  ;;  %v1341_v13 = vunpack.c.l.bf16 (!%p556_p10), %v1351_v6  ;;  %v1342_v14 = vunpack.c.h.bf16 (!%p556_p10), %v1351_v6 }
  0x30   : > { %v1402_v33 = vld [vmem:[%s1640_s19 + $0x4] ss:$8 sps:$4 sm:$0xff] (!%p556_p10)   ;;  %v1406_v35 = vld [vmem:[%s1640_s19] ss:$8 sps:$4 sm:$0xff] (!%p556_p10)   ;;  %v1408_v37 = vld [vmem:[%s1640_s19 + $0x14] ss:$8 sps:$4 sm:$0xff] (!%p556_p10)   ;;  %v738_v2 = vmul.f32 (!%p556_p10), %v1345_v56, %v1293_v53  ;;  %v739_v3 = vmul.f32 (!%p556_p10), %v1346_v57, %v1293_v53  ;;  %v740_v23 = vmul.f32 (!%p556_p10), %v1349_v11, %v1293_v53  ;;  %v741_v24 = vmul.f32 (!%p556_p10), %v1350_v12, %v1293_v53 }
  0x31   : > { %v1404_v34 = vld [vmem:[%s1643_s20 + $0x4] ss:$8 sps:$4 sm:$0xff] (!%p556_p10)   ;;  %854 = vmatprep.subr.bf16.mxu1 (!%p556_p10), %v1402_v33  ;;  %v1407_v36 = vld [vmem:[%s1643_s20] ss:$8 sps:$4 sm:$0xff] (!%p556_p10)   ;;  %v1410_v38 = vld [vmem:[%s1643_s20 + $0x14] ss:$8 sps:$4 sm:$0xff] (!%p556_p10)  }
  0x32   : > { %987 = vmatprep.subr.bf16.mxu0 (!%p556_p10), %v1404_v34  ;;  %855 = vmatpush1.bf16.msra.mxu1 (!%p556_p10), %v1406_v35  ;;  %v1412_v39 = vld [vmem:[%s1640_s19 + $0x10] ss:$8 sps:$4 sm:$0xff] (!%p556_p10)   ;;  %v1414_v41 = vld [vmem:[%s1640_s19 + $0x24] ss:$8 sps:$4 sm:$0xff] (!%p556_p10)   ;;  %v1418_v43 = vld [vmem:[%s1640_s19 + $0x20] ss:$8 sps:$4 sm:$0xff] (!%p556_p10)  }
  0x33   : > { %988 = vmatpush1.bf16.msra.mxu0 (!%p556_p10), %v1407_v36  ;;  %856 = vmatprep.subr.bf16.mxu1 (!%p556_p10), %v1408_v37  ;;  %v1413_v40 = vld [vmem:[%s1643_s20 + $0x10] ss:$8 sps:$4 sm:$0xff] (!%p556_p10)   ;;  %v1416_v42 = vld [vmem:[%s1643_s20 + $0x24] ss:$8 sps:$4 sm:$0xff] (!%p556_p10)   ;;  %v1419_v44 = vld [vmem:[%s1643_s20 + $0x20] ss:$8 sps:$4 sm:$0xff] (!%p556_p10)  }
  0x34   : > { %989 = vmatprep.subr.bf16.mxu0 (!%p556_p10), %v1410_v38  ;;  %v1420_v45 = vld [vmem:[%s1640_s19 + $0x34] ss:$8 sps:$4 sm:$0xff] (!%p556_p10)   ;;  %v1424_v49 = vld [vmem:[%s1640_s19 + $0x30] ss:$8 sps:$4 sm:$0xff] (!%p556_p10)   ;;  %v1426_v51 = vld [vmem:[%s1640_s19 + $0x44] ss:$8 sps:$4 sm:$0xff] (!%p556_p10)  }
  0x35   : > { %v1422_v46 = vld [vmem:[%s1643_s20 + $0x34] ss:$8 sps:$4 sm:$0xff]   ;;  %v1425_v50 = vld [vmem:[%s1643_s20 + $0x30] ss:$8 sps:$4 sm:$0xff]   ;;  %v1428_v52 = vld [vmem:[%s1643_s20 + $0x44] ss:$8 sps:$4 sm:$0xff]  }
  0x36   : > { %857 = vmatpush1.bf16.msra.mxu1 %v1412_v39  ;;  %v1430_v54 = vld [vmem:[%s1640_s19 + $0x40] ss:$8 sps:$4 sm:$0xff]   ;;  %v1432_v61 = vld [vmem:[%s1640_s19 + $0x54] ss:$8 sps:$4 sm:$0xff]   ;;  %v1436_v7 = vld [vmem:[%s1640_s19 + $0x50] ss:$8 sps:$4 sm:$0xff]  }
  0x37   : > { %990 = vmatpush1.bf16.msra.mxu0 %v1413_v40  ;;  %858 = vmatprep.subr.bf16.mxu1 %v1414_v41  ;;  %v1431_v55 = vld [vmem:[%s1643_s20 + $0x40] ss:$8 sps:$4 sm:$0xff]   ;;  %v1434_v62 = vld [vmem:[%s1643_s20 + $0x54] ss:$8 sps:$4 sm:$0xff]   ;;  %v1437_v8 = vld [vmem:[%s1643_s20 + $0x50] ss:$8 sps:$4 sm:$0xff]  }
  0x38   : > { %991 = vmatprep.subr.bf16.mxu0 %v1416_v42  ;;  %v1291_v60 = vld [vmem:[%s1745_s2] ss:$0 sm:$0xff]  ;;  %v1438_v9 = vld [vmem:[%s1640_s19 + $0x64] ss:$8 sps:$4 sm:$0xff]   ;;  %v1444_v21 = vld [vmem:[%s1640_s19 + $0x74] ss:$8 sps:$4 sm:$0xff]  }
  0x39   : > { %v1294_v63 = vld [vmem:[%s1748_s5] ss:$0 sm:$0xff]  ;;  %v686_v4 = vmul.f32 %v1337_v58, %v1291_v60  ;;  %v687_v5 = vmul.f32 %v1338_v59, %v1291_v60  ;;  %v1440_v10 = vld [vmem:[%s1643_s20 + $0x64] ss:$8 sps:$4 sm:$0xff]   ;;  %v1446_v22 = vld [vmem:[%s1643_s20 + $0x74] ss:$8 sps:$4 sm:$0xff]   ;;  %v688_v25 = vmul.f32 %v1341_v13, %v1291_v60  ;;  %v689_v26 = vmul.f32 %v1342_v14, %v1291_v60 }
  0x3a   : > { %859 = vmatpush1.bf16.msra.mxu1 %v1418_v43  ;;  %v1292_v0 = vld [vmem:[%s1746_s3] ss:$0 sm:$0xff]  ;;  %v748_v15 = vadd.f32 %v1294_v63, %v738_v2  ;;  %v749_v16 = vadd.f32 %v1294_v63, %v739_v3  ;;  %v1448_v31 = vld [vmem:[%s1640_s19 + $0x70] ss:$8 sps:$4 sm:$0xff]   ;;  %v750_v34 = vadd.f32 %v1294_v63, %v740_v23  ;;  %v751_v35 = vadd.f32 %v1294_v63, %v741_v24  ;;  %s1334_s27 = sshll.u32 (%p1575_p6), %s1480_s29, 4 }
  0x3b   : > { %992 = vmatpush1.bf16.msra.mxu0 %v1419_v44  ;;  %860 = vmatprep.subr.bf16.mxu1 %v1420_v45  ;;  %v696_v17 = vadd.f32 %v1292_v0, %v686_v4  ;;  %v697_v18 = vadd.f32 %v1292_v0, %v687_v5  ;;  %v1442_v19 = vld [vmem:[%s1640_s19 + $0x60] ss:$8 sps:$4 sm:$0xff]   ;;  %v1449_v33 = vld [vmem:[%s1643_s20 + $0x70] ss:$8 sps:$4 sm:$0xff]   ;;  %v698_v38 = vadd.f32 %v1292_v0, %v688_v25  ;;  %s1290_s19 = sshll.u32 %s562_s17, 6  ;;  %s1060_s11 = scalar_lea.vmem (%p1575_p6), %s1751_s8, %s1334_s27 }
  0x3c   : > { %993 = vmatprep.subr.bf16.mxu0 %v1422_v46  ;;  %v1443_v20 = vld [vmem:[%s1643_s20 + $0x60] ss:$8 sps:$4 sm:$0xff]   ;;  %v752_v27 = vmax.f32 %v748_v15, 0.0  ;;  %v753_v28 = vmax.f32 %v749_v16, 0.0  ;;  %v699_v39 = vadd.f32 %v1292_v0, %v689_v26  ;;  %v754_v40 = vmax.f32 %v750_v34, 0.0  ;;  %s1704_s20 = scalar_lea.vmem [#allocation4], %s1290_s19 }
  0x3d   : > { %v700_v29 = vmax.f32 %v696_v17, 0.0  ;;  %v701_v30 = vmax.f32 %v697_v18, 0.0  ;;  %v755_v41 = vmax.f32 %v751_v35, 0.0  ;;  %v702_v42 = vmax.f32 %v698_v38, 0.0 }
  0x3e   : > { %861 = vmatpush1.bf16.msra.mxu1 %v1424_v49  ;;  %v756_v36 = vpack.c.bf16 %v753_v28, %v752_v27  ;;  %v703_v43 = vmax.f32 %v699_v39, 0.0 }
  0x3f   : > { %994 = vmatpush1.bf16.msra.mxu0 %v1425_v50  ;;  %862 = vmatprep.subr.bf16.mxu1 %v1426_v51  ;;  %v704_v37 = vpack.c.bf16 %v701_v30, %v700_v29  ;;  %v757_v44 = vpack.c.bf16 %v755_v41, %v754_v40 }
  0x40   : > { %995 = vmatprep.subr.bf16.mxu0 %v1428_v52  ;;  %v705_v45 = vpack.c.bf16 %v703_v43, %v702_v42 }
  0x42   : > { %863 = vmatpush1.bf16.msra.mxu1 %v1430_v54 }
  0x43   : > { %996 = vmatpush1.bf16.msra.mxu0 %v1431_v55  ;;  %864 = vmatprep.subr.bf16.mxu1 %v1432_v61 }
  0x44   : > { %997 = vmatprep.subr.bf16.mxu0 %v1434_v62 }
  0x46   : > { %865 = vmatpush1.bf16.msra.mxu1 %v1436_v7 }
  0x47   : > { %998 = vmatpush1.bf16.msra.mxu0 %v1437_v8  ;;  %866 = vmatprep.subr.bf16.mxu1 %v1438_v9 }
  0x48   : > { %999 = vmatprep.subr.bf16.mxu0 %v1440_v10 }
  0x4a   : > { %867 = vmatpush1.bf16.msra.mxu1 %v1442_v19 }
  0x4b   : > { %1000 = vmatpush1.bf16.msra.mxu0 %v1443_v20  ;;  %868 = vmatprep.subr.bf16.mxu1 %v1444_v21 }
  0x4c   : > { %1001 = vmatprep.subr.bf16.mxu0 %v1446_v22 }
  0x4e   : > { %869 = vmatpush1.bf16.msra.mxu1 %v1448_v31 }
  0x4f   : > { %1002 = vmatpush1.bf16.msra.mxu0 %v1449_v33 }
  0x51   : > { %887 = vmatmul.mubr.bf16.vlgmr.msra.gmra.mrb[0].mxu1 %v756_v36 }
  0x52   : > { %1020 = vmatmul.mubr.bf16.vlgmr.msra.gmra.mrb[0].mxu0 %v704_v37  ;;  %896 = vmatprep.mubr.bf16.mxu1 %v1490_v32 }
  0x53   : > { %1029 = vmatprep.mubr.bf16.mxu0 %v1490_v32 }
  0x59   : > { %897 = vmatmul.mubr.bf16.gmra.mrb[4].mxu1 %v757_v44 }
  0x5a   : > { %1030 = vmatmul.mubr.bf16.gmra.mrb[4].mxu0 %v705_v45 }
 0x124   : > { %v888_v46 = vpop.f32.mrb[0].mxu1 }
 0x125   : > { %v1021_v47 = vpop.f32.mrb[0].mxu0  ;;  %v890_v49 = vpop.f32.mrb[1].mxu1 }
 0x126   : > { %v1022_v48 = vadd.f32 %v1021_v47, %v888_v46  ;;  %v1023_v50 = vpop.f32.mrb[1].mxu0  ;;  %v892_v52 = vpop.f32.mrb[2].mxu1 }
 0x127   : > { %v1024_v51 = vadd.f32 %v1023_v50, %v890_v49  ;;  %v1025_v53 = vpop.f32.mrb[2].mxu0  ;;  %v894_v54 = vpop.f32.mrb[3].mxu1 }
 0x128   : > { %1040 = vst [vmem:[%s1704_s20] sm:$0xff] %v1022_v48  ;;  %v1026_v32 = vadd.f32 %v1025_v53, %v892_v52  ;;  %v1027_v55 = vpop.f32.mrb[3].mxu0 }
 0x129   : > { %1041 = vst [vmem:[%s1704_s20 + $0x8] sm:$0xff] %v1024_v51  ;;  %v1028_v56 = vadd.f32 %v1027_v55, %v894_v54 }
 0x12a   : > { %1042 = vst [vmem:[%s1704_s20 + $0x10] sm:$0xff] %v1026_v32 }
 0x12b   : > { %1043 = vst [vmem:[%s1704_s20 + $0x18] sm:$0xff] %v1028_v56 }
 0x12c   : > { %v898_v57 = vpop.f32.mrb[4].mxu1 }
 0x12d   : > { %v1031_v58 = vpop.f32.mrb[4].mxu0  ;;  %v900_v60 = vpop.f32.mrb[5].mxu1  ;;  %1054 = sbr.rel (!%p1575_p6) target bundleno = 316 (0x13c), region = 132 }
 0x12e   : > { %v1032_v59 = vadd.f32 %v1031_v58, %v898_v57  ;;  %v1033_v61 = vpop.f32.mrb[5].mxu0  ;;  %v902_v63 = vpop.f32.mrb[6].mxu1 }
 0x12f   : > { %v1034_v62 = vadd.f32 %v1033_v61, %v900_v60  ;;  %v1035_v0 = vpop.f32.mrb[6].mxu0  ;;  %v904_v2 = vpop.f32.mrb[7].mxu1  ;;  %v1073_v5 = vld [vmem:[%s1704_s20] sm:$0xff] (%p1575_p6) }
 0x130   : > { %1044 = vst [vmem:[%s1704_s20 + $0x20] sm:$0xff] %v1032_v59  ;;  %v1036_v1 = vadd.f32 %v1035_v0, %v902_v63  ;;  %v1037_v3 = vpop.f32.mrb[7].mxu0  ;;  %v1075_v6 = vld [vmem:[%s1704_s20 + $0x8] sm:$0xff] (%p1575_p6)  ;;  %1074 = vst [vmem:[%s1060_s11] sm:$0xff] (%p1575_p6), %v1073_v5 }
 0x131   : > { %1045 = vst [vmem:[%s1704_s20 + $0x28] sm:$0xff] %v1034_v62  ;;  %v1038_v4 = vadd.f32 %v1037_v3, %v904_v2  ;;  %v1077_v7 = vld [vmem:[%s1704_s20 + $0x10] sm:$0xff] (%p1575_p6)  ;;  %1076 = vst [vmem:[%s1060_s11 + $0x8] sm:$0xff] (%p1575_p6), %v1075_v6 }
 0x132   : > { %1046 = vst [vmem:[%s1704_s20 + $0x30] sm:$0xff] %v1036_v1  ;;  %v1079_v8 = vld [vmem:[%s1704_s20 + $0x18] sm:$0xff] (%p1575_p6)  ;;  %1078 = vst [vmem:[%s1060_s11 + $0x20] sm:$0xff] (%p1575_p6), %v1077_v7 }
 0x133   : > { %1047 = vst [vmem:[%s1704_s20 + $0x38] sm:$0xff] %v1038_v4  ;;  %1080 = vst [vmem:[%s1060_s11 + $0x28] sm:$0xff] (%p1575_p6), %v1079_v8 }
 0x137   : > { %v1081_v9 = vld [vmem:[%s1704_s20 + $0x20] sm:$0xff] }
 0x138   : > { %v1083_v10 = vld [vmem:[%s1704_s20 + $0x28] sm:$0xff]  ;;  %1082 = vst [vmem:[%s1060_s11 + $0x40] sm:$0xff] %v1081_v9 }
 0x139   : > { %1084 = vst [vmem:[%s1060_s11 + $0x48] sm:$0xff] %v1083_v10  ;;  %v1085_v11 = vld [vmem:[%s1704_s20 + $0x30] sm:$0xff] }
 0x13a   : > { %v1087_v12 = vld [vmem:[%s1704_s20 + $0x38] sm:$0xff]  ;;  %1086 = vst [vmem:[%s1060_s11 + $0x60] sm:$0xff] %v1085_v11 }
 0x13b   : > { %1088 = vst [vmem:[%s1060_s11 + $0x68] sm:$0xff] %v1087_v12 }
 0x13c PF: > { %s18_s9 = sadd.s32 1, %s1488_s9   ;;  %s1754_s27 = smov %s1476_s28 }
 0x13d   : > { %p15_p11 = scmp.ge.s32.totalorder %s18_s9, 4   ;;  %s1755_s28 = smov %s1580_s16 }
 0x13e   : > { %s1756_s29 = smov %s1484_s30  ;;  %s1757_s30 = smov %s1759_s10 }
 0x13f   :  { %17 = sbr.rel (!%p15_p11) target bundleno = 3 (0x3), region = 212 }

// kernel: unet_apply.29
= control target key start
LH: loop header
LB: loop body
LE: loop exit
PB: predicated region body
PF: predicated region fallthrough
CT: control target
= control target key end

     0   :  { %v57_v0 = vmov 0.0   ;;  %s103_s1 = inlined_call_operand.vmem [shape: f32[1,128], index: 1, kind: output, shape index: {0}]   ;;  %s104_s2 = inlined_call_operand.vmem [shape: f32[1,128], index: 2, kind: output, shape index: {1}]   ;;  %s105_s0 = inlined_call_operand.vmem [shape: f32[32,128], index: 0, kind: input, shape index: {}]  }
   0x1   :  { %14 = vst [vmem:[%s103_s1] sm:$0x1] %v57_v0  ;;  %15 = vst [vmem:[%s104_s2] sm:$0x1] %v57_v0  ;;  %v16_v1 = vld [vmem:[%s105_s0] sm:$0xff]  ;;  %v17_v2 = vld [vmem:[%s105_s0 + $0x8] sm:$0xff] }
   0x2   :  { %v18_v3 = vld [vmem:[%s105_s0 + $0x10] sm:$0xff]  ;;  %v19_v4 = vld [vmem:[%s105_s0 + $0x18] sm:$0xff]  ;;  %v21_v5 = vadd.f32 %v17_v2, %v16_v1  ;;  %v33_v6 = vmul.f32 %v16_v1, %v16_v1  ;;  %v34_v7 = vmul.f32 %v17_v2, %v17_v2 }
   0x3   :  { %v35_v8 = vmul.f32 %v18_v3, %v18_v3  ;;  %v36_v10 = vmul.f32 %v19_v4, %v19_v4 }
   0x4   :  { %v22_v9 = vadd.f32 %v21_v5, %v18_v3  ;;  %v37_v11 = vadd.f32 %v34_v7, %v33_v6 }
   0x6   :  { %v23_v12 = vadd.f32 %v22_v9, %v19_v4  ;;  %v38_v13 = vadd.f32 %v37_v11, %v35_v8 }
   0x8   :  { %v24_v14 = vrot.slane %v23_v12, 4  ;;  %v39_v15 = vadd.f32 %v38_v13, %v36_v10  ;;  %v20_v24 = vld [vmem:[%s103_s1] sm:$0x1] }
   0x9   :  { %v32_v27 = vld [vmem:[%s104_s2] sm:$0x1] }
   0xa   :  { %v25_v16 = vadd.f32 %v24_v14, %v23_v12  ;;  %v40_v17 = vrot.slane %v39_v15, 4 }
   0xc   :  { %v26_v18 = vrot.slane %v25_v16, 2  ;;  %v41_v19 = vadd.f32 %v40_v17, %v39_v15 }
   0xe   :  { %v27_v20 = vadd.f32 %v26_v18, %v25_v16  ;;  %v42_v21 = vrot.slane %v41_v19, 2 }
  0x10   :  { %v28_v22 = vrot.slane %v27_v20, 1  ;;  %v43_v23 = vadd.f32 %v42_v21, %v41_v19 }
  0x12   :  { %v29_v25 = vadd.f32 %v28_v22, %v27_v20  ;;  %v44_v26 = vrot.slane %v43_v23, 1 }
  0x14   :  { %v30_v28 = vadd.f32 %v29_v25, %v20_v24  ;;  %v45_v29 = vadd.f32 %v44_v26, %v43_v23 }
  0x16   :  { %31 = vst [vmem:[%s103_s1] sm:$0x1] %v30_v28  ;;  %v46_v30 = vadd.f32 %v45_v29, %v32_v27 }
  0x18   :  { %47 = vst [vmem:[%s104_s2] sm:$0x1] %v46_v30 }

// kernel: unet_apply.30
= control target key start
LH: loop header
LB: loop body
LE: loop exit
PB: predicated region body
PF: predicated region fallthrough
CT: control target
= control target key end

     0   :  { %s1874_s27 = smov 0   ;;  %s1876_s28 = smov 0   ;;  %s2185_s0 = inlined_call_operand.vmem [shape: bf16[128,128], index: 0, kind: input, shape index: {}]   ;;  %s2186_s1 = inlined_call_operand.vmem [shape: bf16[128,128], index: 1, kind: input, shape index: {}]   ;;  %s2187_s2 = inlined_call_operand.vmem [shape: f32[1,128], index: 2, kind: input, shape index: {}]   ;;  %s2188_s3 = inlined_call_operand.vmem [shape: f32[1,128], index: 3, kind: input, shape index: {}]   ;;  %s2189_s4 = inlined_call_operand.vmem [shape: f32[1,128], index: 4, kind: input, shape index: {}]   ;;  %s2190_s5 = inlined_call_operand.vmem [shape: f32[1,128], index: 5, kind: input, shape index: {}]   ;;  %s2191_s6 = inlined_call_operand.vmem [shape: bf16[128,256], index: 6, kind: input, shape index: {}]   ;;  %s2192_s7 = inlined_call_operand.vmem [shape: bf16[128,256], index: 7, kind: input, shape index: {}]   ;;  %s2193_s8 = inlined_call_operand.vmem [shape: f32[128,256], index: 8, kind: output, shape index: {}]  }
   0x1   :  { %s1878_s29 = smov 0   ;;  %s1880_s30 = smov 0  }
   0x2   :  { %s1882_s9 = smov 0  }
   0x3 LB: > { %s33_s10 = sadd.s32 1, %s1823_s30  ;;  %s1501_s11 = sadd.s32 4294967295, %s1827_s9   ;;  %s1827_s9 = sphi %s1882_s9, %s18_s9   ;;  %s1823_s30 = sphi %s1880_s30, %s2199_s30   ;;  %s1819_s29 = sphi %s1878_s29, %s2198_s29   ;;  %s1815_s28 = sphi %s1876_s28, %s2197_s28   ;;  %s1811_s27 = sphi %s1874_s27, %s2196_s27  }
   0x4   : > { %p35_p0 = scmp.ge.s32.totalorder %s33_s10, 2  ;;  %p213_p1 = scmp.ne.s32.totalorder %s1815_s28, %s1811_s27 }
   0x5   : > { %p214_p2 = scmp.eq.s32.totalorder %s1827_s9, 0  ;;  %p273_p4 = scmp.eq.s32.totalorder %s1501_s11, 1 }
   0x6   : > { %s2201_s10 = smov (%p35_p0, %s33_s10), 0  ;;  %s206_s14 = sadd.s32 1, %s1815_s28 }
   0x7   : > { %p1906_p3 = por %p214_p2, %p213_p1  ;;  %s202_s13 = ssub.s32 %s1823_s30, %s2201_s10 }
   0x8   : > { %p204_p5 = scmp.eq.s32.totalorder %s202_s13, 0  ;;  %p1913_p6 = por %p273_p4, %p213_p1 }
   0x9   : > { %p1510_p7 = scmp.ge.s32.totalorder %s1827_s9, 2 }
   0xa   : > { %s1918_s16 = scalar_select %p204_p5, %s1815_s28, %s206_s14  }
   0xb   : > { %343 = sbr.rel (%p1510_p7) target bundleno = 46 (0x2e), region = 40 }
  0x12   : > { %346 = sbr.rel (!%p1906_p3) target bundleno = 32 (0x20), region = 44  ;;  %s348_s17 = sand.u32 (%p1906_p3), 1, %s1815_s28  }
  0x13   : > { %s1512_s18 = sshll.u32 (%p1906_p3), %s1823_s30, 2  ;;  %s1511_s19 = sshll.u32 (%p1906_p3), %s348_s17, 6 }
  0x14   : > { %s1928_s22 = scalar_lea.vmem (%p1906_p3), %s2191_s6, %s1512_s18  ;;  %s350_s23 = scalar_lea.vmem (%p1906_p3), [#allocation2], %s1511_s19 }
  0x15   : > { %v371_v0 = vld [vmem:[%s1928_s22] sm:$0xf] (%p1906_p3)  ;;  %v373_v1 = vld [vmem:[%s1928_s22 + $0x8] sm:$0xf] (%p1906_p3)  ;;  %v375_v2 = vld [vmem:[%s1928_s22 + $0x10] sm:$0xf] (%p1906_p3) }
  0x16   : > { %372 = vst [vmem:[%s350_s23] sm:$0xf] (%p1906_p3), %v371_v0  ;;  %374 = vst [vmem:[%s350_s23 + $0x4] sm:$0xf] (%p1906_p3), %v373_v1  ;;  %v377_v3 = vld [vmem:[%s1928_s22 + $0x18] sm:$0xf] (%p1906_p3) }
  0x17   : > { %v379_v4 = vld [vmem:[%s1928_s22 + $0x20] sm:$0xf] (%p1906_p3)  ;;  %376 = vst [vmem:[%s350_s23 + $0x8] sm:$0xf] (%p1906_p3), %v375_v2  ;;  %378 = vst [vmem:[%s350_s23 + $0xc] sm:$0xf] (%p1906_p3), %v377_v3 }
  0x18   : > { %380 = vst [vmem:[%s350_s23 + $0x10] sm:$0xf] (%p1906_p3), %v379_v4  ;;  %v381_v5 = vld [vmem:[%s1928_s22 + $0x28] sm:$0xf] (%p1906_p3)  ;;  %v383_v6 = vld [vmem:[%s1928_s22 + $0x30] sm:$0xf] (%p1906_p3) }
  0x19   : > { %v385_v7 = vld [vmem:[%s1928_s22 + $0x38] sm:$0xf]  ;;  %382 = vst [vmem:[%s350_s23 + $0x14] sm:$0xf] %v381_v5  ;;  %384 = vst [vmem:[%s350_s23 + $0x18] sm:$0xf] %v383_v6 }
  0x1a   : > { %386 = vst [vmem:[%s350_s23 + $0x1c] sm:$0xf] %v385_v7  ;;  %v387_v8 = vld [vmem:[%s1928_s22 + $0x40] sm:$0xf]  ;;  %v389_v9 = vld [vmem:[%s1928_s22 + $0x48] sm:$0xf] }
  0x1b   : > { %v391_v10 = vld [vmem:[%s1928_s22 + $0x50] sm:$0xf]  ;;  %388 = vst [vmem:[%s350_s23 + $0x20] sm:$0xf] %v387_v8  ;;  %390 = vst [vmem:[%s350_s23 + $0x24] sm:$0xf] %v389_v9 }
  0x1c   : > { %392 = vst [vmem:[%s350_s23 + $0x28] sm:$0xf] %v391_v10  ;;  %v393_v11 = vld [vmem:[%s1928_s22 + $0x58] sm:$0xf]  ;;  %v395_v12 = vld [vmem:[%s1928_s22 + $0x60] sm:$0xf] }
  0x1d   : > { %v397_v13 = vld [vmem:[%s1928_s22 + $0x68] sm:$0xf]  ;;  %394 = vst [vmem:[%s350_s23 + $0x2c] sm:$0xf] %v393_v11  ;;  %396 = vst [vmem:[%s350_s23 + $0x30] sm:$0xf] %v395_v12 }
  0x1e   : > { %398 = vst [vmem:[%s350_s23 + $0x34] sm:$0xf] %v397_v13  ;;  %v399_v14 = vld [vmem:[%s1928_s22 + $0x70] sm:$0xf]  ;;  %v401_v15 = vld [vmem:[%s1928_s22 + $0x78] sm:$0xf] }
  0x1f   : > { %400 = vst [vmem:[%s350_s23 + $0x38] sm:$0xf] %v399_v14  ;;  %402 = vst [vmem:[%s350_s23 + $0x3c] sm:$0xf] %v401_v15 }
  0x20 PF: > { %457 = sbr.rel (!%p1906_p3) target bundleno = 46 (0x2e), region = 85  ;;  %s459_s24 = sand.u32 (%p1906_p3), 1, %s1815_s28  }
  0x21   : > { %s1514_s25 = sshll.u32 (%p1906_p3), %s1823_s30, 2  ;;  %s1513_s26 = sshll.u32 (%p1906_p3), %s459_s24, 6 }
  0x22   : > { %s1953_s14 = scalar_lea.vmem (%p1906_p3), %s2192_s7, %s1514_s25  ;;  %s461_s12 = scalar_lea.vmem (%p1906_p3), [#allocation3], %s1513_s26 }
  0x23   : > { %v482_v16 = vld [vmem:[%s1953_s14] sm:$0xf] (%p1906_p3)  ;;  %v484_v17 = vld [vmem:[%s1953_s14 + $0x8] sm:$0xf] (%p1906_p3)  ;;  %v486_v18 = vld [vmem:[%s1953_s14 + $0x10] sm:$0xf] (%p1906_p3) }
  0x24   : > { %483 = vst [vmem:[%s461_s12] sm:$0xf] (%p1906_p3), %v482_v16  ;;  %485 = vst [vmem:[%s461_s12 + $0x4] sm:$0xf] (%p1906_p3), %v484_v17  ;;  %v488_v19 = vld [vmem:[%s1953_s14 + $0x18] sm:$0xf] (%p1906_p3) }
  0x25   : > { %v490_v20 = vld [vmem:[%s1953_s14 + $0x20] sm:$0xf] (%p1906_p3)  ;;  %487 = vst [vmem:[%s461_s12 + $0x8] sm:$0xf] (%p1906_p3), %v486_v18  ;;  %489 = vst [vmem:[%s461_s12 + $0xc] sm:$0xf] (%p1906_p3), %v488_v19 }
  0x26   : > { %491 = vst [vmem:[%s461_s12 + $0x10] sm:$0xf] (%p1906_p3), %v490_v20  ;;  %v492_v21 = vld [vmem:[%s1953_s14 + $0x28] sm:$0xf] (%p1906_p3)  ;;  %v494_v22 = vld [vmem:[%s1953_s14 + $0x30] sm:$0xf] (%p1906_p3) }
  0x27   : > { %v496_v23 = vld [vmem:[%s1953_s14 + $0x38] sm:$0xf]  ;;  %493 = vst [vmem:[%s461_s12 + $0x14] sm:$0xf] %v492_v21  ;;  %495 = vst [vmem:[%s461_s12 + $0x18] sm:$0xf] %v494_v22 }
  0x28   : > { %497 = vst [vmem:[%s461_s12 + $0x1c] sm:$0xf] %v496_v23  ;;  %v498_v24 = vld [vmem:[%s1953_s14 + $0x40] sm:$0xf]  ;;  %v500_v25 = vld [vmem:[%s1953_s14 + $0x48] sm:$0xf] }
  0x29   : > { %v502_v26 = vld [vmem:[%s1953_s14 + $0x50] sm:$0xf]  ;;  %499 = vst [vmem:[%s461_s12 + $0x20] sm:$0xf] %v498_v24  ;;  %501 = vst [vmem:[%s461_s12 + $0x24] sm:$0xf] %v500_v25 }
  0x2a   : > { %503 = vst [vmem:[%s461_s12 + $0x28] sm:$0xf] %v502_v26  ;;  %v504_v27 = vld [vmem:[%s1953_s14 + $0x58] sm:$0xf]  ;;  %v506_v28 = vld [vmem:[%s1953_s14 + $0x60] sm:$0xf] }
  0x2b   : > { %v508_v29 = vld [vmem:[%s1953_s14 + $0x68] sm:$0xf]  ;;  %505 = vst [vmem:[%s461_s12 + $0x2c] sm:$0xf] %v504_v27  ;;  %507 = vst [vmem:[%s461_s12 + $0x30] sm:$0xf] %v506_v28 }
  0x2c   : > { %509 = vst [vmem:[%s461_s12 + $0x34] sm:$0xf] %v508_v29  ;;  %v510_v30 = vld [vmem:[%s1953_s14 + $0x70] sm:$0xf]  ;;  %v512_v31 = vld [vmem:[%s1953_s14 + $0x78] sm:$0xf] }
  0x2d   : > { %511 = vst [vmem:[%s461_s12 + $0x38] sm:$0xf] %v510_v30  ;;  %513 = vst [vmem:[%s461_s12 + $0x3c] sm:$0xf] %v512_v31 }
  0x2e PF: > { %p1515_p8 = scmp.ge.s32.totalorder %s1827_s9, 1  ;;  %p567_p9 = scmp.lt.s32.totalorder %s1827_s9, 3 }
  0x30   : > { %p568_p10 = pnand %p1515_p8, %p567_p9 }
  0x31   : > { %s574_s17 = sand.u32 (!%p568_p10), 1, %s1811_s27   ;;  %v1576_v32 = vld [vmem:[%s2186_s1] sm:$0xff] (!%p568_p10)   ;;  %v1614_v54 = vld [vmem:[%s2186_s1 + $0x8] sm:$0xff] (!%p568_p10)   ;;  %v1615_v63 = vld [vmem:[%s2186_s1 + $0x10] sm:$0xff] (!%p568_p10)  }
  0x32   : > { %571 = sbr.rel (%p568_p10) target bundleno = 339 (0x153), region = 126  ;;  %v1980_v33 = vld [vmem:[%s2189_s4] ss:$0 sm:$0xff] (!%p568_p10)  ;;  %s1516_s22 = sshll.u32 (!%p568_p10), %s574_s17, 6  ;;  %v1577_v34 = vunpack.c.l.bf16 (!%p568_p10), %v1576_v32  ;;  %v1578_v35 = vunpack.c.h.bf16 (!%p568_p10), %v1576_v32  ;;  %v1607_v60 = vld [vmem:[%s2185_s0 + $0x8] sm:$0xff] (!%p568_p10)   ;;  %v1581_v1 = vunpack.c.l.bf16 (!%p568_p10), %v1614_v54  ;;  %v1582_v4 = vunpack.c.h.bf16 (!%p568_p10), %v1614_v54  ;;  %v1608_v19 = vld [vmem:[%s2185_s0 + $0x10] sm:$0xff] (!%p568_p10)  }
  0x33   : > { %v1544_v36 = vld [vmem:[%s2185_s0] sm:$0xff] (!%p568_p10)   ;;  %s2002_s18 = scalar_lea.vmem (!%p568_p10), [#allocation3], %s1516_s22  ;;  %s2007_s19 = scalar_lea.vmem (!%p568_p10), [#allocation2], %s1516_s22  ;;  %v1549_v5 = vunpack.c.l.bf16 (!%p568_p10), %v1607_v60  ;;  %v1550_v6 = vunpack.c.h.bf16 (!%p568_p10), %v1607_v60  ;;  %v1585_v7 = vunpack.c.l.bf16 (!%p568_p10), %v1615_v63  ;;  %v1586_v8 = vunpack.c.h.bf16 (!%p568_p10), %v1615_v63  ;;  %v1616_v20 = vld [vmem:[%s2186_s1 + $0x18] sm:$0xff] (!%p568_p10)  }
  0x34   : > { %v1990_v37 = vld [vmem:[%s2187_s2] ss:$0 sm:$0xff] (!%p568_p10)  ;;  %v1545_v39 = vunpack.c.l.bf16 (!%p568_p10), %v1544_v36  ;;  %v1546_v40 = vunpack.c.h.bf16 (!%p568_p10), %v1544_v36  ;;  %v837_v43 = vmul.f32 (!%p568_p10), %v1577_v34, %v1980_v33  ;;  %v838_v44 = vmul.f32 (!%p568_p10), %v1578_v35, %v1980_v33  ;;  %v1775_v48 = vld [vmem:[%s2002_s18 + $0x8] sm:$0xff] (!%p568_p10)   ;;  %v1777_v55 = vld [vmem:[%s2002_s18 + $0x10] sm:$0xff] (!%p568_p10)   ;;  %s1518_s24 = sshll.u32 (!%p568_p10), %s574_s17, 7 }
  0x35   : > { %v1995_v38 = vld [vmem:[%s2190_s5] ss:$0 sm:$0xff] (!%p568_p10)  ;;  %v1776_v51 = vld [vmem:[%s2007_s19 + $0x8] sm:$0xff] (!%p568_p10)   ;;  %v1778_v57 = vld [vmem:[%s2007_s19 + $0x10] sm:$0xff] (!%p568_p10)   ;;  %v839_v10 = vmul.f32 (!%p568_p10), %v1581_v1, %v1980_v33  ;;  %v840_v12 = vmul.f32 (!%p568_p10), %v1582_v4, %v1980_v33  ;;  %v721_v13 = vmul.f32 (!%p568_p10), %v1549_v5, %v1990_v37  ;;  %v722_v14 = vmul.f32 (!%p568_p10), %v1550_v6, %v1990_v37  ;;  %s2130_s25 = scalar_lea.vmem (!%p568_p10), [#allocation4], %s1518_s24 }
  0x36   : > { %v2000_v41 = vld [vmem:[%s2188_s3] ss:$0 sm:$0xff] (!%p568_p10)  ;;  %v719_v46 = vmul.f32 (!%p568_p10), %v1545_v39, %v1990_v37  ;;  %v720_v47 = vmul.f32 (!%p568_p10), %v1546_v40, %v1990_v37  ;;  %v859_v49 = vadd.f32 (!%p568_p10), %v1995_v38, %v837_v43  ;;  %v860_v50 = vadd.f32 (!%p568_p10), %v1995_v38, %v838_v44  ;;  %v1779_v0 = vld [vmem:[%s2002_s18 + $0x18] sm:$0xff] (!%p568_p10)   ;;  %v1783_v15 = vld [vmem:[%s2002_s18 + $0x28] sm:$0xff] (!%p568_p10)  }
  0x37   : > { %v1773_v42 = vld [vmem:[%s2002_s18] sm:$0xff] (!%p568_p10)   ;;  %v1780_v2 = vld [vmem:[%s2007_s19 + $0x18] sm:$0xff] (!%p568_p10)   ;;  %v841_v16 = vmul.f32 (!%p568_p10), %v1585_v7, %v1980_v33  ;;  %v842_v17 = vmul.f32 (!%p568_p10), %v1586_v8, %v1980_v33  ;;  %v861_v18 = vadd.f32 (!%p568_p10), %v1995_v38, %v839_v10  ;;  %v1784_v22 = vld [vmem:[%s2007_s19 + $0x28] sm:$0xff] (!%p568_p10)   ;;  %v862_v23 = vadd.f32 (!%p568_p10), %v1995_v38, %v840_v12 }
  0x38   : > { %v1774_v45 = vld [vmem:[%s2007_s19] sm:$0xff] (!%p568_p10)   ;;  %1653 = vmatprep.subr.bf16.mxu1 (!%p568_p10), %v1773_v42  ;;  %v741_v52 = vadd.f32 (!%p568_p10), %v2000_v41, %v719_v46  ;;  %v742_v53 = vadd.f32 (!%p568_p10), %v2000_v41, %v720_v47  ;;  %v875_v56 = vmax.f32 (!%p568_p10), %v859_v49, 0.0  ;;  %v876_v58 = vmax.f32 (!%p568_p10), %v860_v50, 0.0  ;;  %v1609_v21 = vld [vmem:[%s2185_s0 + $0x18] sm:$0xff] (!%p568_p10)   ;;  %v1785_v39 = vld [vmem:[%s2002_s18 + $0x30] sm:$0xff] (!%p568_p10)  }
  0x39   : > { %1685 = vmatprep.subr.bf16.mxu0 %v1774_v45  ;;  %1654 = vmatpush3.bf16.msra.mxu1 %v1773_v42  ;;  %v1781_v9 = vld [vmem:[%s2002_s18 + $0x20] sm:$0xff]   ;;  %v1553_v24 = vunpack.c.l.bf16 %v1608_v19  ;;  %v1554_v25 = vunpack.c.h.bf16 %v1608_v19  ;;  %v1589_v26 = vunpack.c.l.bf16 %v1616_v20  ;;  %v743_v28 = vadd.f32 %v2000_v41, %v721_v13  ;;  %v1786_v43 = vld [vmem:[%s2007_s19 + $0x30] sm:$0xff]   ;;  %v1618_v4 = vld [vmem:[%s2186_s1 + $0x28] sm:$0xff]   ;;  %s1540_s27 = sshll.u32 (%p1913_p6), %s1819_s29, 3 }
  0x3a   : > { %1686 = vmatpush3.bf16.msra.mxu0 %v1774_v45  ;;  %1655 = vmatprep.subr.bf16.mxu1 %v1775_v48  ;;  %v757_v59 = vmax.f32 %v741_v52, 0.0  ;;  %v891_v61 = vpack.c.bf16 %v876_v58, %v875_v56  ;;  %v758_v62 = vmax.f32 %v742_v53, 0.0  ;;  %v1782_v11 = vld [vmem:[%s2007_s19 + $0x20] sm:$0xff]   ;;  %v744_v29 = vadd.f32 %v2000_v41, %v722_v14  ;;  %v1619_v14 = vld [vmem:[%s2186_s1 + $0x30] sm:$0xff]  }
  0x3b   : > { %1687 = vmatprep.subr.bf16.mxu0 %v1776_v51  ;;  %v1617_v27 = vld [vmem:[%s2186_s1 + $0x20] sm:$0xff]   ;;  %v1590_v30 = vunpack.c.h.bf16 %v1616_v20  ;;  %v1557_v31 = vunpack.c.l.bf16 %v1609_v21  ;;  %v863_v32 = vadd.f32 %v1995_v38, %v841_v16  ;;  %v864_v34 = vadd.f32 %v1995_v38, %v842_v17  ;;  %v1612_v19 = vld [vmem:[%s2185_s0 + $0x30] sm:$0xff]  }
  0x3c   : > { %1669 = vmatprep.mubr.bf16.mxu1 %v891_v61  ;;  %v773_v3 = vpack.c.bf16 %v758_v62, %v757_v59  ;;  %v1558_v35 = vunpack.c.h.bf16 %v1609_v21  ;;  %v1593_v36 = vunpack.c.l.bf16 %v1617_v27  ;;  %v723_v40 = vmul.f32 %v1553_v24, %v1990_v37  ;;  %v1788_v61 = vld [vmem:[%s2007_s19 + $0x38] sm:$0xff]  }
  0x3d   : > { %1656 = vmatpush3.bf16.msra.mxu1 %v1775_v48  ;;  %v724_v42 = vmul.f32 %v1554_v25, %v1990_v37  ;;  %v877_v44 = vmax.f32 %v861_v18, 0.0  ;;  %v878_v45 = vmax.f32 %v862_v23, 0.0  ;;  %v843_v46 = vmul.f32 %v1589_v26, %v1980_v33  ;;  %v1610_v48 = vld [vmem:[%s2185_s0 + $0x20] sm:$0xff]  }
  0x3e   : > { %1688 = vmatpush3.bf16.msra.mxu0 %v1776_v51  ;;  %1657 = vmatprep.subr.bf16.mxu1 %v1777_v55  ;;  %v1594_v47 = vunpack.c.h.bf16 %v1617_v27  ;;  %v759_v49 = vmax.f32 %v743_v28, 0.0  ;;  %v760_v50 = vmax.f32 %v744_v29, 0.0  ;;  %v844_v51 = vmul.f32 %v1590_v30, %v1980_v33 }
  0x3f   : > { %1689 = vmatprep.subr.bf16.mxu0 %v1778_v57  ;;  %1701 = vmatprep.mubr.bf16.mxu0 %v773_v3  ;;  %v725_v52 = vmul.f32 %v1557_v31, %v1990_v37  ;;  %v879_v53 = vmax.f32 %v863_v32, 0.0  ;;  %v880_v54 = vmax.f32 %v864_v34, 0.0  ;;  %v845_v56 = vmul.f32 %v1593_v36, %v1980_v33 }
  0x40   : > { %v745_v58 = vadd.f32 %v2000_v41, %v723_v40  ;;  %v746_v59 = vadd.f32 %v2000_v41, %v724_v42  ;;  %v1561_v60 = vunpack.c.l.bf16 %v1610_v48  ;;  %v865_v62 = vadd.f32 %v1995_v38, %v843_v46 }
  0x41   : > { %1658 = vmatpush3.bf16.msra.mxu1 %v1777_v55  ;;  %v726_v55 = vmul.f32 %v1558_v35, %v1990_v37  ;;  %v846_v63 = vmul.f32 %v1594_v47, %v1980_v33  ;;  %v892_v1 = vpack.c.bf16 %v878_v45, %v877_v44  ;;  %v747_v3 = vadd.f32 %v2000_v41, %v725_v52  ;;  %v1620_v45 = vld [vmem:[%s2186_s1 + $0x38] sm:$0xff]  }
  0x42   : > { %1690 = vmatpush3.bf16.msra.mxu0 %v1778_v57  ;;  %1659 = vmatprep.subr.bf16.mxu1 %v1779_v0  ;;  %v1787_v57 = vld [vmem:[%s2002_s18 + $0x38] sm:$0xff]   ;;  %v774_v5 = vpack.c.bf16 %v760_v50, %v759_v49  ;;  %v893_v6 = vpack.c.bf16 %v880_v54, %v879_v53  ;;  %v867_v8 = vadd.f32 %v1995_v38, %v845_v56  ;;  %v761_v10 = vmax.f32 %v745_v58, 0.0  ;;  %s1232_s18 = scalar_lea.vmem (%p1913_p6), %s2193_s8, %s1540_s27 }
  0x43   : > { %1691 = vmatprep.subr.bf16.mxu0 %v1780_v2  ;;  %v748_v7 = vadd.f32 %v2000_v41, %v726_v55  ;;  %v727_v12 = vmul.f32 %v1561_v60, %v1990_v37  ;;  %v868_v16 = vadd.f32 %v1995_v38, %v846_v63  ;;  %v1597_v17 = vunpack.c.l.bf16 %v1618_v4  ;;  %v1613_v50 = vld [vmem:[%s2185_s0 + $0x38] sm:$0xff]  }
  0x44   : > { %v1598_v18 = vunpack.c.h.bf16 %v1618_v4  ;;  %v763_v21 = vmax.f32 %v747_v3, 0.0  ;;  %v883_v25 = vmax.f32 %v867_v8, 0.0  ;;  %v1601_v26 = vunpack.c.l.bf16 %v1619_v14 }
  0x45   : > { %1660 = vmatpush3.bf16.msra.mxu1 %v1779_v0  ;;  %v1562_v0 = vunpack.c.h.bf16 %v1610_v48  ;;  %v764_v24 = vmax.f32 %v748_v7, 0.0  ;;  %v1602_v27 = vunpack.c.h.bf16 %v1619_v14  ;;  %v749_v29 = vadd.f32 %v2000_v41, %v727_v12 }
  0x46   : > { %1692 = vmatpush3.bf16.msra.mxu0 %v1780_v2  ;;  %1661 = vmatprep.subr.bf16.mxu1 %v1781_v9  ;;  %v866_v2 = vadd.f32 %v1995_v38, %v844_v51  ;;  %v1569_v31 = vunpack.c.l.bf16 %v1612_v19  ;;  %v884_v32 = vmax.f32 %v868_v16, 0.0  ;;  %v847_v34 = vmul.f32 %v1597_v17, %v1980_v33 }
  0x47   : > { %1693 = vmatprep.subr.bf16.mxu0 %v1782_v11  ;;  %v728_v13 = vmul.f32 %v1562_v0, %v1990_v37  ;;  %v848_v35 = vmul.f32 %v1598_v18, %v1980_v33  ;;  %v1570_v36 = vunpack.c.h.bf16 %v1612_v19  ;;  %v850_v44 = vmul.f32 %v1602_v27, %v1980_v33 }
  0x48   : > { %v882_v20 = vmax.f32 %v866_v2, 0.0  ;;  %v765_v46 = vmax.f32 %v749_v29, 0.0  ;;  %v731_v48 = vmul.f32 %v1569_v31, %v1990_v37  ;;  %v776_v51 = vpack.c.bf16 %v764_v24, %v763_v21 }
  0x49   : > { %1662 = vmatpush3.bf16.msra.mxu1 %v1781_v9  ;;  %v1611_v9 = vld [vmem:[%s2185_s0 + $0x28] sm:$0xff]   ;;  %v750_v30 = vadd.f32 %v2000_v41, %v728_v13  ;;  %v732_v49 = vmul.f32 %v1570_v36, %v1990_v37  ;;  %v895_v52 = vpack.c.bf16 %v884_v32, %v883_v25  ;;  %v869_v53 = vadd.f32 %v1995_v38, %v847_v34 }
  0x4a   : > { %1694 = vmatpush3.bf16.msra.mxu0 %v1782_v11  ;;  %1663 = vmatprep.subr.bf16.mxu1 %v1783_v15  ;;  %v762_v11 = vmax.f32 %v746_v59, 0.0  ;;  %v1566_v23 = vunpack.c.h.bf16 %v1611_v9  ;;  %v870_v54 = vadd.f32 %v1995_v38, %v848_v35  ;;  %v1606_v58 = vunpack.c.h.bf16 %v1620_v45 }
  0x4b   : > { %1695 = vmatprep.subr.bf16.mxu0 %v1784_v22  ;;  %v766_v47 = vmax.f32 %v750_v30, 0.0  ;;  %v872_v60 = vadd.f32 %v1995_v38, %v850_v44  ;;  %v753_v0 = vadd.f32 %v2000_v41, %v731_v48  ;;  %v885_v2 = vmax.f32 %v869_v53, 0.0 }
  0x4c   : > { %v775_v28 = vpack.c.bf16 %v762_v11, %v761_v10  ;;  %v730_v40 = vmul.f32 %v1566_v23, %v1990_v37  ;;  %v886_v3 = vmax.f32 %v870_v54, 0.0  ;;  %v852_v7 = vmul.f32 %v1606_v58, %v1980_v33 }
  0x4d   : > { %1664 = vmatpush3.bf16.msra.mxu1 %v1783_v15  ;;  %v881_v15 = vmax.f32 %v865_v62, 0.0  ;;  %v1574_v62 = vunpack.c.h.bf16 %v1613_v50  ;;  %v777_v63 = vpack.c.bf16 %v766_v47, %v765_v46  ;;  %v769_v12 = vmax.f32 %v753_v0, 0.0 }
  0x4e   : > { %1696 = vmatpush3.bf16.msra.mxu0 %v1784_v22  ;;  %1665 = vmatprep.subr.bf16.mxu1 %v1785_v39  ;;  %v1565_v22 = vunpack.c.l.bf16 %v1611_v9  ;;  %v752_v56 = vadd.f32 %v2000_v41, %v730_v40  ;;  %v888_v9 = vmax.f32 %v872_v60, 0.0  ;;  %v896_v14 = vpack.c.bf16 %v886_v3, %v885_v2 }
  0x4f   : > { %1697 = vmatprep.subr.bf16.mxu0 %v1786_v43  ;;  %v894_v42 = vpack.c.bf16 %v882_v20, %v881_v15  ;;  %v734_v11 = vmul.f32 %v1574_v62, %v1990_v37  ;;  %v874_v16 = vadd.f32 %v1995_v38, %v852_v7 }
  0x51   : > { %1666 = vmatpush3.bf16.msra.mxu1 %v1785_v39  ;;  %v729_v39 = vmul.f32 %v1565_v22, %v1990_v37  ;;  %v756_v19 = vadd.f32 %v2000_v41, %v734_v11  ;;  %v890_v22 = vmax.f32 %v874_v16, 0.0 }
  0x52   : > { %1698 = vmatpush3.bf16.msra.mxu0 %v1786_v43  ;;  %1667 = vmatprep.subr.bf16.mxu1 %v1787_v57  ;;  %v849_v43 = vmul.f32 %v1601_v26, %v1980_v33 }
  0x53   : > { %1699 = vmatprep.subr.bf16.mxu0 %v1788_v61  ;;  %v751_v55 = vadd.f32 %v2000_v41, %v729_v39  ;;  %v772_v23 = vmax.f32 %v756_v19, 0.0 }
  0x54   : > { %v871_v59 = vadd.f32 %v1995_v38, %v849_v43 }
  0x55   : > { %1668 = vmatpush3.bf16.msra.mxu1 %v1787_v57  ;;  %v1605_v57 = vunpack.c.l.bf16 %v1620_v45  ;;  %v767_v4 = vmax.f32 %v751_v55, 0.0 }
  0x56   : > { %1700 = vmatpush3.bf16.msra.mxu0 %v1788_v61  ;;  %v1573_v61 = vunpack.c.l.bf16 %v1613_v50  ;;  %v887_v8 = vmax.f32 %v871_v59, 0.0 }
  0x58   : > { %1670 = vmatmul.mubr.bf16.vlgmr.msra.gmra.mrb[0].mxu1 %v892_v1  ;;  %v754_v1 = vadd.f32 %v2000_v41, %v732_v49  ;;  %v733_v10 = vmul.f32 %v1573_v61, %v1990_v37  ;;  %v897_v18 = vpack.c.bf16 %v888_v9, %v887_v8 }
  0x59   : > { %1702 = vmatmul.mubr.bf16.vlgmr.msra.gmra.mrb[0].mxu0 %v774_v5  ;;  %1673 = vmatprep.mubr.bf16.mxu1 %v893_v6  ;;  %v768_v5 = vmax.f32 %v752_v56, 0.0  ;;  %v851_v6 = vmul.f32 %v1605_v57, %v1980_v33 }
  0x5a   : > { %1705 = vmatprep.mubr.bf16.mxu0 %v775_v28  ;;  %v770_v13 = vmax.f32 %v754_v1, 0.0  ;;  %v755_v33 = vadd.f32 %v2000_v41, %v733_v10 }
  0x5b   : > { %v873_v15 = vadd.f32 %v1995_v38, %v851_v6  ;;  %v778_v17 = vpack.c.bf16 %v768_v5, %v767_v4 }
  0x5c   : > { %v779_v20 = vpack.c.bf16 %v770_v13, %v769_v12  ;;  %v771_v37 = vmax.f32 %v755_v33, 0.0 }
  0x5d   : > { %v889_v21 = vmax.f32 %v873_v15, 0.0 }
  0x5e   : > { %v780_v25 = vpack.c.bf16 %v772_v23, %v771_v37 }
  0x5f   : > { %v898_v24 = vpack.c.bf16 %v890_v22, %v889_v21 }
  0x60   : > { %1674 = vmatmul.mubr.bf16.gmra.mrb[4].mxu1 %v894_v42 }
  0x61   : > { %1706 = vmatmul.mubr.bf16.gmra.mrb[4].mxu0 %v776_v51  ;;  %1677 = vmatprep.mubr.bf16.mxu1 %v895_v52 }
  0x62   : > { %1709 = vmatprep.mubr.bf16.mxu0 %v777_v63 }
  0x68   : > { %1678 = vmatmul.mubr.bf16.gmra.mrb[8].mxu1 %v896_v14 }
  0x69   : > { %1710 = vmatmul.mubr.bf16.gmra.mrb[8].mxu0 %v778_v17  ;;  %1681 = vmatprep.mubr.bf16.mxu1 %v897_v18 }
  0x6a   : > { %1713 = vmatprep.mubr.bf16.mxu0 %v779_v20 }
  0x70   : > { %1682 = vmatmul.mubr.bf16.gmra.mrb[12].mxu1 %v898_v24 }
  0x71   : > { %1714 = vmatmul.mubr.bf16.gmra.mrb[12].mxu0 %v780_v25 }
 0x12b   : > { %v1671_v38 = vpop.f32.mrb[0].mxu1 }
 0x12c   : > { %v1703_v26 = vpop.f32.mrb[0].mxu0  ;;  %v997_v27 = vpop.f32.mrb[1].mxu1 }
 0x12d   : > { %v1151_v28 = vadd.f32 %v1703_v26, %v1671_v38  ;;  %v1142_v41 = vpop.f32.mrb[1].mxu0  ;;  %v1672_v29 = vpop.f32.mrb[2].mxu1 }
 0x12e   : > { %v1143_v30 = vadd.f32 %v1142_v41, %v997_v27  ;;  %v1704_v31 = vpop.f32.mrb[2].mxu0  ;;  %v1000_v32 = vpop.f32.mrb[3].mxu1 }
 0x12f   : > { %1207 = vst [vmem:[%s2130_s25 + $0x10] sm:$0xff] %v1151_v28  ;;  %v1154_v34 = vadd.f32 %v1704_v31, %v1672_v29  ;;  %v1145_v35 = vpop.f32.mrb[3].mxu0 }
 0x130   : > { %1205 = vst [vmem:[%s2130_s25] sm:$0xff] %v1143_v30  ;;  %v1146_v36 = vadd.f32 %v1145_v35, %v1000_v32 }
 0x131   : > { %1208 = vst [vmem:[%s2130_s25 + $0x18] sm:$0xff] %v1154_v34 }
 0x132   : > { %1206 = vst [vmem:[%s2130_s25 + $0x8] sm:$0xff] %v1146_v36 }
 0x133   : > { %v1675_v39 = vpop.f32.mrb[4].mxu1 }
 0x134   : > { %v1707_v40 = vpop.f32.mrb[4].mxu0  ;;  %v1013_v42 = vpop.f32.mrb[5].mxu1 }
 0x135   : > { %v1167_v43 = vadd.f32 %v1707_v40, %v1675_v39  ;;  %v1158_v44 = vpop.f32.mrb[5].mxu0  ;;  %v1676_v45 = vpop.f32.mrb[6].mxu1 }
 0x136   : > { %v1159_v46 = vadd.f32 %v1158_v44, %v1013_v42  ;;  %v1708_v47 = vpop.f32.mrb[6].mxu0  ;;  %v1016_v48 = vpop.f32.mrb[7].mxu1  ;;  %v1294_v14 = vld [vmem:[%s2130_s25 + $0x10] sm:$0xff] (%p1913_p6) }
 0x137   : > { %1211 = vst [vmem:[%s2130_s25 + $0x30] sm:$0xff] %v1167_v43  ;;  %v1170_v49 = vadd.f32 %v1708_v47, %v1676_v45  ;;  %v1161_v50 = vpop.f32.mrb[7].mxu0  ;;  %v1290_v12 = vld [vmem:[%s2130_s25] sm:$0xff] (%p1913_p6)  ;;  %1295 = vst [vmem:[%s1232_s18 + $0x20] sm:$0xff] (%p1913_p6), %v1294_v14 }
 0x138   : > { %1209 = vst [vmem:[%s2130_s25 + $0x20] sm:$0xff] %v1159_v46  ;;  %v1162_v51 = vadd.f32 %v1161_v50, %v1016_v48  ;;  %v1296_v15 = vld [vmem:[%s2130_s25 + $0x18] sm:$0xff] (%p1913_p6)  ;;  %1291 = vst [vmem:[%s1232_s18] sm:$0xff] (%p1913_p6), %v1290_v12 }
 0x139   : > { %1212 = vst [vmem:[%s2130_s25 + $0x38] sm:$0xff] %v1170_v49  ;;  %v1292_v13 = vld [vmem:[%s2130_s25 + $0x8] sm:$0xff] (%p1913_p6)  ;;  %1297 = vst [vmem:[%s1232_s18 + $0x30] sm:$0xff] (%p1913_p6), %v1296_v15 }
 0x13a   : > { %1210 = vst [vmem:[%s2130_s25 + $0x28] sm:$0xff] %v1162_v51  ;;  %1293 = vst [vmem:[%s1232_s18 + $0x10] sm:$0xff] (%p1913_p6), %v1292_v13 }
 0x13b   : > { %v1679_v52 = vpop.f32.mrb[8].mxu1 }
 0x13c   : > { %v1711_v53 = vpop.f32.mrb[8].mxu0  ;;  %v1029_v54 = vpop.f32.mrb[9].mxu1 }
 0x13d   : > { %v1183_v55 = vadd.f32 %v1711_v53, %v1679_v52  ;;  %v1174_v56 = vpop.f32.mrb[9].mxu0  ;;  %v1680_v57 = vpop.f32.mrb[10].mxu1 }
 0x13e   : > { %v1175_v58 = vadd.f32 %v1174_v56, %v1029_v54  ;;  %v1712_v59 = vpop.f32.mrb[10].mxu0  ;;  %v1032_v60 = vpop.f32.mrb[11].mxu1  ;;  %v1302_v18 = vld [vmem:[%s2130_s25 + $0x30] sm:$0xff] (%p1913_p6) }
 0x13f   : > { %1215 = vst [vmem:[%s2130_s25 + $0x50] sm:$0xff] %v1183_v55  ;;  %v1186_v61 = vadd.f32 %v1712_v59, %v1680_v57  ;;  %v1177_v62 = vpop.f32.mrb[11].mxu0  ;;  %v1298_v16 = vld [vmem:[%s2130_s25 + $0x20] sm:$0xff] (%p1913_p6)  ;;  %1303 = vst [vmem:[%s1232_s18 + $0x60] sm:$0xff] (%p1913_p6), %v1302_v18 }
 0x140   : > { %1213 = vst [vmem:[%s2130_s25 + $0x40] sm:$0xff] %v1175_v58  ;;  %v1178_v63 = vadd.f32 %v1177_v62, %v1032_v60  ;;  %1299 = vst [vmem:[%s1232_s18 + $0x40] sm:$0xff] (%p1913_p6), %v1298_v16  ;;  %v1304_v33 = vld [vmem:[%s2130_s25 + $0x38] sm:$0xff] (%p1913_p6) }
 0x141   : > { %1216 = vst [vmem:[%s2130_s25 + $0x58] sm:$0xff] %v1186_v61  ;;  %v1300_v17 = vld [vmem:[%s2130_s25 + $0x28] sm:$0xff] (%p1913_p6)  ;;  %1305 = vst [vmem:[%s1232_s18 + $0x70] sm:$0xff] (%p1913_p6), %v1304_v33 }
 0x142   : > { %1214 = vst [vmem:[%s2130_s25 + $0x48] sm:$0xff] %v1178_v63  ;;  %1301 = vst [vmem:[%s1232_s18 + $0x50] sm:$0xff] (%p1913_p6), %v1300_v17 }
 0x143   : > { %v1683_v0 = vpop.f32.mrb[12].mxu1 }
 0x144   : > { %v1715_v1 = vpop.f32.mrb[12].mxu0  ;;  %v1045_v2 = vpop.f32.mrb[13].mxu1  ;;  %1227 = sbr.rel (!%p1913_p6) target bundleno = 339 (0x153), region = 138 }
 0x145   : > { %v1199_v3 = vadd.f32 %v1715_v1, %v1683_v0  ;;  %v1190_v4 = vpop.f32.mrb[13].mxu0  ;;  %v1684_v5 = vpop.f32.mrb[14].mxu1 }
 0x146   : > { %v1191_v6 = vadd.f32 %v1190_v4, %v1045_v2  ;;  %v1716_v7 = vpop.f32.mrb[14].mxu0  ;;  %v1048_v8 = vpop.f32.mrb[15].mxu1  ;;  %v1310_v21 = vld [vmem:[%s2130_s25 + $0x50] sm:$0xff] (%p1913_p6) }
 0x147   : > { %1219 = vst [vmem:[%s2130_s25 + $0x70] sm:$0xff] %v1199_v3  ;;  %v1202_v9 = vadd.f32 %v1716_v7, %v1684_v5  ;;  %v1193_v10 = vpop.f32.mrb[15].mxu0  ;;  %v1306_v19 = vld [vmem:[%s2130_s25 + $0x40] sm:$0xff] (%p1913_p6)  ;;  %1311 = vst [vmem:[%s1232_s18 + $0xa0] sm:$0xff] (%p1913_p6), %v1310_v21 }
 0x148   : > { %1217 = vst [vmem:[%s2130_s25 + $0x60] sm:$0xff] %v1191_v6  ;;  %v1194_v11 = vadd.f32 %v1193_v10, %v1048_v8  ;;  %1307 = vst [vmem:[%s1232_s18 + $0x80] sm:$0xff] (%p1913_p6), %v1306_v19  ;;  %v1312_v22 = vld [vmem:[%s2130_s25 + $0x58] sm:$0xff] (%p1913_p6) }
 0x149   : > { %1220 = vst [vmem:[%s2130_s25 + $0x78] sm:$0xff] %v1202_v9  ;;  %v1308_v20 = vld [vmem:[%s2130_s25 + $0x48] sm:$0xff] (%p1913_p6)  ;;  %1313 = vst [vmem:[%s1232_s18 + $0xb0] sm:$0xff] (%p1913_p6), %v1312_v22 }
 0x14a   : > { %1218 = vst [vmem:[%s2130_s25 + $0x68] sm:$0xff] %v1194_v11  ;;  %1309 = vst [vmem:[%s1232_s18 + $0x90] sm:$0xff] (%p1913_p6), %v1308_v20 }
 0x14e   : > { %v1318_v24 = vld [vmem:[%s2130_s25 + $0x70] sm:$0xff] }
 0x14f   : > { %v1314_v37 = vld [vmem:[%s2130_s25 + $0x60] sm:$0xff]  ;;  %1319 = vst [vmem:[%s1232_s18 + $0xe0] sm:$0xff] %v1318_v24 }
 0x150   : > { %1315 = vst [vmem:[%s1232_s18 + $0xc0] sm:$0xff] %v1314_v37  ;;  %v1320_v25 = vld [vmem:[%s2130_s25 + $0x78] sm:$0xff] }
 0x151   : > { %v1316_v23 = vld [vmem:[%s2130_s25 + $0x68] sm:$0xff]  ;;  %1321 = vst [vmem:[%s1232_s18 + $0xf0] sm:$0xff] %v1320_v25 }
 0x152   : > { %1317 = vst [vmem:[%s1232_s18 + $0xd0] sm:$0xff] %v1316_v23 }
 0x153 PF: > { %s18_s9 = sadd.s32 1, %s1827_s9   ;;  %s2196_s27 = smov %s1815_s28 }
 0x154   : > { %p15_p11 = scmp.ge.s32.totalorder %s18_s9, 4   ;;  %s2197_s28 = smov %s1918_s16 }
 0x155   : > { %s2198_s29 = smov %s1823_s30  ;;  %s2199_s30 = smov %s2201_s10 }
 0x156   :  { %17 = sbr.rel (!%p15_p11) target bundleno = 3 (0x3), region = 233 }

// kernel: unet_apply.31
= control target key start
LH: loop header
LB: loop body
LE: loop exit
PB: predicated region body
PF: predicated region fallthrough
CT: control target
= control target key end

     0   :  { %v73_v0 = vmov 0.0   ;;  %s131_s1 = inlined_call_operand.vmem [shape: f32[1,128], index: 1, kind: output, shape index: {0}]   ;;  %s132_s2 = inlined_call_operand.vmem [shape: f32[1,128], index: 2, kind: output, shape index: {1}]   ;;  %s133_s0 = inlined_call_operand.vmem [shape: f32[64,128], index: 0, kind: input, shape index: {}]  }
   0x1   :  { %14 = vst [vmem:[%s131_s1] sm:$0x1] %v73_v0  ;;  %15 = vst [vmem:[%s132_s2] sm:$0x1] %v73_v0  ;;  %v16_v1 = vld [vmem:[%s133_s0] sm:$0xff]  ;;  %v17_v2 = vld [vmem:[%s133_s0 + $0x8] sm:$0xff] }
   0x2   :  { %v18_v3 = vld [vmem:[%s133_s0 + $0x10] sm:$0xff]  ;;  %v19_v4 = vld [vmem:[%s133_s0 + $0x18] sm:$0xff]  ;;  %v25_v5 = vadd.f32 %v17_v2, %v16_v1  ;;  %v41_v6 = vmul.f32 %v16_v1, %v16_v1  ;;  %v42_v7 = vmul.f32 %v17_v2, %v17_v2  ;;  %v20_v9 = vld [vmem:[%s133_s0 + $0x20] sm:$0xff] }
   0x3   :  { %v43_v8 = vmul.f32 %v18_v3, %v18_v3  ;;  %v44_v11 = vmul.f32 %v19_v4, %v19_v4  ;;  %v21_v13 = vld [vmem:[%s133_s0 + $0x28] sm:$0xff]  ;;  %v45_v15 = vmul.f32 %v20_v9, %v20_v9  ;;  %v22_v17 = vld [vmem:[%s133_s0 + $0x30] sm:$0xff]  ;;  %v23_v21 = vld [vmem:[%s133_s0 + $0x38] sm:$0xff] }
   0x4   :  { %v26_v10 = vadd.f32 %v25_v5, %v18_v3  ;;  %v49_v12 = vadd.f32 %v42_v7, %v41_v6  ;;  %v46_v19 = vmul.f32 %v21_v13, %v21_v13  ;;  %v47_v23 = vmul.f32 %v22_v17, %v22_v17 }
   0x5   :  { %v48_v26 = vmul.f32 %v23_v21, %v23_v21 }
   0x6   :  { %v27_v14 = vadd.f32 %v26_v10, %v19_v4  ;;  %v50_v16 = vadd.f32 %v49_v12, %v43_v8 }
   0x8   :  { %v28_v18 = vadd.f32 %v27_v14, %v20_v9  ;;  %v51_v20 = vadd.f32 %v50_v16, %v44_v11  ;;  %v24_v40 = vld [vmem:[%s131_s1] sm:$0x1] }
   0x9   :  { %v40_v43 = vld [vmem:[%s132_s2] sm:$0x1] }
   0xa   :  { %v29_v22 = vadd.f32 %v28_v18, %v21_v13  ;;  %v52_v24 = vadd.f32 %v51_v20, %v45_v15 }
   0xc   :  { %v30_v25 = vadd.f32 %v29_v22, %v22_v17  ;;  %v53_v27 = vadd.f32 %v52_v24, %v46_v19 }
   0xe   :  { %v31_v28 = vadd.f32 %v30_v25, %v23_v21  ;;  %v54_v29 = vadd.f32 %v53_v27, %v47_v23 }
  0x10   :  { %v32_v30 = vrot.slane %v31_v28, 4  ;;  %v55_v31 = vadd.f32 %v54_v29, %v48_v26 }
  0x12   :  { %v33_v32 = vadd.f32 %v32_v30, %v31_v28  ;;  %v56_v33 = vrot.slane %v55_v31, 4 }
  0x14   :  { %v34_v34 = vrot.slane %v33_v32, 2  ;;  %v57_v35 = vadd.f32 %v56_v33, %v55_v31 }
  0x16   :  { %v35_v36 = vadd.f32 %v34_v34, %v33_v32  ;;  %v58_v37 = vrot.slane %v57_v35, 2 }
  0x18   :  { %v36_v38 = vrot.slane %v35_v36, 1  ;;  %v59_v39 = vadd.f32 %v58_v37, %v57_v35 }
  0x1a   :  { %v37_v41 = vadd.f32 %v36_v38, %v35_v36  ;;  %v60_v42 = vrot.slane %v59_v39, 1 }
  0x1c   :  { %v38_v44 = vadd.f32 %v37_v41, %v24_v40  ;;  %v61_v45 = vadd.f32 %v60_v42, %v59_v39 }
  0x1e   :  { %39 = vst [vmem:[%s131_s1] sm:$0x1] %v38_v44  ;;  %v62_v46 = vadd.f32 %v61_v45, %v40_v43 }
  0x20   :  { %63 = vst [vmem:[%s132_s2] sm:$0x1] %v62_v46 }

// kernel: unet_apply.32
= control target key start
LH: loop header
LB: loop body
LE: loop exit
PB: predicated region body
PF: predicated region fallthrough
CT: control target
= control target key end

     0   :  { %s2027_s27 = smov 0   ;;  %s2029_s28 = smov 0   ;;  %s2333_s0 = inlined_call_operand.vmem [shape: bf16[512,128], index: 0, kind: input, shape index: {}]   ;;  %s2334_s1 = inlined_call_operand.vmem [shape: bf16[512,128], index: 1, kind: input, shape index: {}]   ;;  %s2335_s2 = inlined_call_operand.vmem [shape: f32[1,128], index: 2, kind: input, shape index: {}]   ;;  %s2336_s3 = inlined_call_operand.vmem [shape: f32[1,128], index: 3, kind: input, shape index: {}]   ;;  %s2337_s4 = inlined_call_operand.vmem [shape: f32[1,128], index: 4, kind: input, shape index: {}]   ;;  %s2338_s5 = inlined_call_operand.vmem [shape: f32[1,128], index: 5, kind: input, shape index: {}]   ;;  %s2339_s6 = inlined_call_operand.vmem [shape: bf16[128,128], index: 6, kind: input, shape index: {}]   ;;  %s2340_s7 = inlined_call_operand.vmem [shape: bf16[128,128], index: 7, kind: input, shape index: {}]   ;;  %s2341_s8 = inlined_call_operand.vmem [shape: f32[512,128], index: 8, kind: output, shape index: {}]  }
   0x1   :  { %s2031_s29 = smov 0  }
   0x2 LB: > { %s37_s30 = sadd.s32 1, %s1976_s28  ;;  %p1555_p0 = scmp.ge.s32.totalorder %s1980_s29, 1  ;;  %s1980_s29 = sphi %s2031_s29, %s18_s29   ;;  %s1976_s28 = sphi %s2029_s28, %s2343_s28   ;;  %s1972_s27 = sphi %s2027_s27, %s2342_s27  }
   0x3   : > { %p39_p1 = scmp.ge.s32.totalorder %s37_s30, 2  ;;  %p369_p2 = scmp.lt.s32.totalorder %s1980_s29, 3 }
   0x5   : > { %s2345_s30 = smov (%p39_p1, %s37_s30), 0  ;;  %p370_p3 = pnand %p1555_p0, %p369_p2 }
   0x6   : > { %v1942_v0 = vld [vmem:[%s2340_s7] sm:$0xff] (!%p370_p3)   ;;  %s1556_s11 = sshll.u32 (!%p370_p3), %s1972_s27, 5  ;;  %v1944_v2 = vld [vmem:[%s2340_s7 + $0x8] sm:$0xff] (!%p370_p3)   ;;  %v1946_v4 = vld [vmem:[%s2340_s7 + $0x10] sm:$0xff] (!%p370_p3)  }
   0x7   : > { %373 = sbr.rel (%p370_p3) target bundleno = 314 (0x13a), region = 52  ;;  %v1943_v1 = vld [vmem:[%s2339_s6] sm:$0xff] (!%p370_p3)   ;;  %1790 = vmatprep.subr.bf16.mxu1 (!%p370_p3), %v1942_v0  ;;  %p446_p4 = scmp.lt.s32.totalorder (!%p370_p3), %s1556_s11, 63  ;;  %v1945_v3 = vld [vmem:[%s2339_s6 + $0x8] sm:$0xff] (!%p370_p3)   ;;  %v1947_v5 = vld [vmem:[%s2339_s6 + $0x10] sm:$0xff] (!%p370_p3)  }
   0x8   : > { %1838 = vmatprep.subr.bf16.mxu0 (!%p370_p3), %v1943_v1  ;;  %1791 = vmatpush3.bf16.msra.mxu1 (!%p370_p3), %v1942_v0  ;;  %v1948_v6 = vld [vmem:[%s2340_s7 + $0x18] sm:$0xff] (!%p370_p3)   ;;  %v1950_v8 = vld [vmem:[%s2340_s7 + $0x20] sm:$0xff] (!%p370_p3)   ;;  %v1952_v10 = vld [vmem:[%s2340_s7 + $0x28] sm:$0xff] (!%p370_p3)  }
   0x9   : > { %1839 = vmatpush3.bf16.msra.mxu0 (!%p370_p3), %v1943_v1  ;;  %1792 = vmatprep.subr.bf16.mxu1 (!%p370_p3), %v1944_v2  ;;  %v1949_v7 = vld [vmem:[%s2339_s6 + $0x18] sm:$0xff] (!%p370_p3)   ;;  %v1951_v9 = vld [vmem:[%s2339_s6 + $0x20] sm:$0xff] (!%p370_p3)   ;;  %v1953_v13 = vld [vmem:[%s2339_s6 + $0x28] sm:$0xff] (!%p370_p3)  }
   0xa   : > { %1840 = vmatprep.subr.bf16.mxu0 (!%p370_p3), %v1945_v3  ;;  %v2095_v12 = vld [vmem:[%s2337_s4] ss:$0 sm:$0xff] (!%p370_p3)  ;;  %v1954_v28 = vld [vmem:[%s2340_s7 + $0x30] sm:$0xff] (!%p370_p3)   ;;  %v1956_v47 = vld [vmem:[%s2340_s7 + $0x38] sm:$0xff] (!%p370_p3)  }
   0xb   : > { %v2104_v17 = vld [vmem:[%s2335_s2] ss:$0 sm:$0xff] (!%p370_p3)  ;;  %v1955_v33 = vld [vmem:[%s2339_s6 + $0x30] sm:$0xff] (!%p370_p3)   ;;  %v1957_v53 = vld [vmem:[%s2339_s6 + $0x38] sm:$0xff] (!%p370_p3)  }
   0xc   : > { %1793 = vmatpush3.bf16.msra.mxu1 (!%p370_p3), %v1944_v2  ;;  %v2109_v18 = vld [vmem:[%s2338_s5] ss:$0 sm:$0xff] (!%p370_p3) }
   0xd   : > { %1841 = vmatpush3.bf16.msra.mxu0 (!%p370_p3), %v1945_v3  ;;  %1794 = vmatprep.subr.bf16.mxu1 (!%p370_p3), %v1946_v4  ;;  %v2118_v25 = vld [vmem:[%s2336_s3] ss:$0 sm:$0xff] (!%p370_p3) }
   0xe   : > { %s2347_s11 = smov (!%p446_p4, %s1556_s11), 63  ;;  %1842 = vmatprep.subr.bf16.mxu0 %v1947_v5 }
   0xf   : > { %s1557_s26 = sshll.u32 %s2347_s11, 2 }
  0x10   : > { %1795 = vmatpush3.bf16.msra.mxu1 %v1946_v4  ;;  %s2081_s15 = scalar_lea.vmem %s2334_s1, %s1557_s26  ;;  %s2086_s18 = scalar_lea.vmem %s2333_s0, %s1557_s26 }
  0x11   : > { %1843 = vmatpush3.bf16.msra.mxu0 %v1947_v5  ;;  %1796 = vmatprep.subr.bf16.mxu1 %v1948_v6  ;;  %v1649_v11 = vld [vmem:[%s2081_s15] sm:$0xff]   ;;  %v1727_v21 = vld [vmem:[%s2081_s15 + $0x8] sm:$0xff]   ;;  %v1728_v42 = vld [vmem:[%s2081_s15 + $0x10] sm:$0xff]  }
  0x12   : > { %1844 = vmatprep.subr.bf16.mxu0 %v1949_v7  ;;  %v1650_v14 = vunpack.c.l.bf16 %v1649_v11  ;;  %v1651_v15 = vunpack.c.h.bf16 %v1649_v11  ;;  %v1585_v16 = vld [vmem:[%s2086_s18] sm:$0xff]   ;;  %v1712_v22 = vld [vmem:[%s2086_s18 + $0x8] sm:$0xff]   ;;  %v1654_v26 = vunpack.c.l.bf16 %v1727_v21  ;;  %v1655_v27 = vunpack.c.h.bf16 %v1727_v21  ;;  %v1713_v52 = vld [vmem:[%s2086_s18 + $0x10] sm:$0xff]  }
  0x13   : > { %v1586_v19 = vunpack.c.l.bf16 %v1585_v16  ;;  %v1587_v20 = vunpack.c.h.bf16 %v1585_v16  ;;  %v1590_v31 = vunpack.c.l.bf16 %v1712_v22  ;;  %v1591_v32 = vunpack.c.h.bf16 %v1712_v22  ;;  %v1729_v58 = vld [vmem:[%s2081_s15 + $0x18] sm:$0xff]  }
  0x14   : > { %1797 = vmatpush3.bf16.msra.mxu1 %v1948_v6  ;;  %v781_v23 = vmul.f32 %v1650_v14, %v2095_v12  ;;  %v782_v24 = vmul.f32 %v1651_v15, %v2095_v12  ;;  %v783_v36 = vmul.f32 %v1654_v26, %v2095_v12  ;;  %v784_v37 = vmul.f32 %v1655_v27, %v2095_v12  ;;  %v1714_v63 = vld [vmem:[%s2086_s18 + $0x18] sm:$0xff]  }
  0x15   : > { %1845 = vmatpush3.bf16.msra.mxu0 %v1949_v7  ;;  %1798 = vmatprep.subr.bf16.mxu1 %v1950_v8  ;;  %v575_v29 = vmul.f32 %v1586_v19, %v2104_v17  ;;  %v576_v30 = vmul.f32 %v1587_v20, %v2104_v17  ;;  %v577_v40 = vmul.f32 %v1590_v31, %v2104_v17  ;;  %v1658_v57 = vunpack.c.l.bf16 %v1728_v42  ;;  %v1730_v19 = vld [vmem:[%s2081_s15 + $0x20] sm:$0xff]  }
  0x16   : > { %1846 = vmatprep.subr.bf16.mxu0 %v1951_v9  ;;  %v819_v34 = vadd.f32 %v2109_v18, %v781_v23  ;;  %v820_v35 = vadd.f32 %v2109_v18, %v782_v24  ;;  %v578_v41 = vmul.f32 %v1591_v32, %v2104_v17  ;;  %v821_v45 = vadd.f32 %v2109_v18, %v783_v36 }
  0x17   : > { %v613_v38 = vadd.f32 %v2118_v25, %v575_v29  ;;  %v614_v39 = vadd.f32 %v2118_v25, %v576_v30  ;;  %v822_v46 = vadd.f32 %v2109_v18, %v784_v37  ;;  %v615_v50 = vadd.f32 %v2118_v25, %v577_v40 }
  0x18   : > { %1799 = vmatpush3.bf16.msra.mxu1 %v1950_v8  ;;  %v851_v43 = vmax.f32 %v819_v34, 0.0  ;;  %v852_v44 = vmax.f32 %v820_v35, 0.0  ;;  %v616_v51 = vadd.f32 %v2118_v25, %v578_v41  ;;  %v853_v55 = vmax.f32 %v821_v45, 0.0 }
  0x19   : > { %1847 = vmatpush3.bf16.msra.mxu0 %v1951_v9  ;;  %1800 = vmatprep.subr.bf16.mxu1 %v1952_v10  ;;  %v645_v48 = vmax.f32 %v613_v38, 0.0  ;;  %v646_v49 = vmax.f32 %v614_v39, 0.0  ;;  %v854_v56 = vmax.f32 %v822_v46, 0.0  ;;  %v647_v60 = vmax.f32 %v615_v50, 0.0  ;;  %v1731_v38 = vld [vmem:[%s2081_s15 + $0x28] sm:$0xff]  }
  0x1a   : > { %1848 = vmatprep.subr.bf16.mxu0 %v1953_v13  ;;  %v883_v54 = vpack.c.bf16 %v852_v44, %v851_v43  ;;  %v648_v61 = vmax.f32 %v616_v51, 0.0  ;;  %v1659_v62 = vunpack.c.h.bf16 %v1728_v42  ;;  %v785_v1 = vmul.f32 %v1658_v57, %v2095_v12  ;;  %v1716_v43 = vld [vmem:[%s2086_s18 + $0x28] sm:$0xff]  }
  0x1b   : > { %v677_v59 = vpack.c.bf16 %v646_v49, %v645_v48  ;;  %v884_v0 = vpack.c.bf16 %v854_v56, %v853_v55  ;;  %v1594_v2 = vunpack.c.l.bf16 %v1713_v52  ;;  %v1595_v3 = vunpack.c.h.bf16 %v1713_v52  ;;  %v1732_v56 = vld [vmem:[%s2081_s15 + $0x30] sm:$0xff]  }
  0x1c   : > { %1801 = vmatpush3.bf16.msra.mxu1 %v1952_v10  ;;  %1806 = vmatprep.mubr.bf16.mxu1 %v883_v54  ;;  %v678_v4 = vpack.c.bf16 %v648_v61, %v647_v60  ;;  %v786_v5 = vmul.f32 %v1659_v62, %v2095_v12  ;;  %v1662_v6 = vunpack.c.l.bf16 %v1729_v58  ;;  %v1663_v7 = vunpack.c.h.bf16 %v1729_v58 }
  0x1d   : > { %1849 = vmatpush3.bf16.msra.mxu0 %v1953_v13  ;;  %1802 = vmatprep.subr.bf16.mxu1 %v1954_v28  ;;  %v823_v8 = vadd.f32 %v2109_v18, %v785_v1  ;;  %v579_v9 = vmul.f32 %v1594_v2, %v2104_v17  ;;  %v580_v10 = vmul.f32 %v1595_v3, %v2104_v17  ;;  %v1598_v11 = vunpack.c.l.bf16 %v1714_v63 }
  0x1e   : > { %1850 = vmatprep.subr.bf16.mxu0 %v1955_v33  ;;  %1854 = vmatprep.mubr.bf16.mxu0 %v677_v59  ;;  %v824_v13 = vadd.f32 %v2109_v18, %v786_v5  ;;  %v787_v14 = vmul.f32 %v1662_v6, %v2095_v12  ;;  %v788_v15 = vmul.f32 %v1663_v7, %v2095_v12  ;;  %v1599_v16 = vunpack.c.h.bf16 %v1714_v63 }
  0x1f   : > { %v855_v20 = vmax.f32 %v823_v8, 0.0  ;;  %v617_v21 = vadd.f32 %v2118_v25, %v579_v9  ;;  %v618_v22 = vadd.f32 %v2118_v25, %v580_v10  ;;  %v581_v23 = vmul.f32 %v1598_v11, %v2104_v17  ;;  %v1717_v9 = vld [vmem:[%s2086_s18 + $0x30] sm:$0xff]  }
  0x20   : > { %1803 = vmatpush3.bf16.msra.mxu1 %v1954_v28  ;;  %v856_v24 = vmax.f32 %v824_v13, 0.0  ;;  %v825_v26 = vadd.f32 %v2109_v18, %v787_v14  ;;  %v826_v27 = vadd.f32 %v2109_v18, %v788_v15  ;;  %v582_v28 = vmul.f32 %v1599_v16, %v2104_v17  ;;  %v1733_v15 = vld [vmem:[%s2081_s15 + $0x38] sm:$0xff]  }
  0x21   : > { %1851 = vmatpush3.bf16.msra.mxu0 %v1955_v33  ;;  %1804 = vmatprep.subr.bf16.mxu1 %v1956_v47  ;;  %v649_v29 = vmax.f32 %v617_v21, 0.0  ;;  %v650_v30 = vmax.f32 %v618_v22, 0.0  ;;  %v619_v31 = vadd.f32 %v2118_v25, %v581_v23  ;;  %v1666_v32 = vunpack.c.l.bf16 %v1730_v19  ;;  %v1715_v33 = vld [vmem:[%s2086_s18 + $0x20] sm:$0xff]   ;;  %v1718_v22 = vld [vmem:[%s2086_s18 + $0x38] sm:$0xff]  }
  0x22   : > { %1852 = vmatprep.subr.bf16.mxu0 %v1957_v53  ;;  %v885_v34 = vpack.c.bf16 %v856_v24, %v855_v20  ;;  %v857_v35 = vmax.f32 %v825_v26, 0.0  ;;  %v858_v36 = vmax.f32 %v826_v27, 0.0  ;;  %v620_v37 = vadd.f32 %v2118_v25, %v582_v28 }
  0x23   : > { %v679_v39 = vpack.c.bf16 %v650_v30, %v649_v29  ;;  %v651_v40 = vmax.f32 %v619_v31, 0.0  ;;  %v1667_v41 = vunpack.c.h.bf16 %v1730_v19  ;;  %v789_v42 = vmul.f32 %v1666_v32, %v2095_v12 }
  0x24   : > { %1805 = vmatpush3.bf16.msra.mxu1 %v1956_v47  ;;  %v886_v44 = vpack.c.bf16 %v858_v36, %v857_v35  ;;  %v652_v45 = vmax.f32 %v620_v37, 0.0  ;;  %v1602_v46 = vunpack.c.l.bf16 %v1715_v33  ;;  %v1603_v47 = vunpack.c.h.bf16 %v1715_v33  ;;  %v1734_v36 = vld [vmem:[%s2081_s15 + $0x40] sm:$0xff]  }
  0x25   : > { %1853 = vmatpush3.bf16.msra.mxu0 %v1957_v53  ;;  %v790_v48 = vmul.f32 %v1667_v41, %v2095_v12  ;;  %v827_v49 = vadd.f32 %v2109_v18, %v789_v42  ;;  %v1670_v50 = vunpack.c.l.bf16 %v1731_v38  ;;  %v1671_v51 = vunpack.c.h.bf16 %v1731_v38 }
  0x26   : > { %v680_v52 = vpack.c.bf16 %v652_v45, %v651_v40  ;;  %v583_v53 = vmul.f32 %v1602_v46, %v2104_v17  ;;  %v584_v54 = vmul.f32 %v1603_v47, %v2104_v17  ;;  %v1606_v55 = vunpack.c.l.bf16 %v1716_v43 }
  0x27   : > { %1807 = vmatmul.mubr.bf16.vlgmr.msra.gmra.mrb[0].mxu1 %v884_v0  ;;  %v828_v57 = vadd.f32 %v2109_v18, %v790_v48  ;;  %v859_v58 = vmax.f32 %v827_v49, 0.0  ;;  %v791_v59 = vmul.f32 %v1670_v50, %v2095_v12  ;;  %v792_v60 = vmul.f32 %v1671_v51, %v2095_v12  ;;  %v1719_v49 = vld [vmem:[%s2086_s18 + $0x40] sm:$0xff]  }
  0x28   : > { %1855 = vmatmul.mubr.bf16.vlgmr.msra.gmra.mrb[0].mxu0 %v678_v4  ;;  %1810 = vmatprep.mubr.bf16.mxu1 %v885_v34  ;;  %v621_v61 = vadd.f32 %v2118_v25, %v583_v53  ;;  %v622_v62 = vadd.f32 %v2118_v25, %v584_v54  ;;  %v1607_v63 = vunpack.c.h.bf16 %v1716_v43  ;;  %v585_v0 = vmul.f32 %v1606_v55, %v2104_v17 }
  0x29   : > { %1858 = vmatprep.mubr.bf16.mxu0 %v679_v39  ;;  %v860_v1 = vmax.f32 %v828_v57, 0.0  ;;  %v829_v2 = vadd.f32 %v2109_v18, %v791_v59  ;;  %v830_v3 = vadd.f32 %v2109_v18, %v792_v60  ;;  %v1674_v4 = vunpack.c.l.bf16 %v1732_v56 }
  0x2a   : > { %v653_v5 = vmax.f32 %v621_v61, 0.0  ;;  %v654_v6 = vmax.f32 %v622_v62, 0.0  ;;  %v586_v7 = vmul.f32 %v1607_v63, %v2104_v17  ;;  %v623_v8 = vadd.f32 %v2118_v25, %v585_v0  ;;  %v1720_v63 = vld [vmem:[%s2086_s18 + $0x48] sm:$0xff]  }
  0x2b   : > { %v887_v10 = vpack.c.bf16 %v860_v1, %v859_v58  ;;  %v861_v11 = vmax.f32 %v829_v2, 0.0  ;;  %v862_v13 = vmax.f32 %v830_v3, 0.0  ;;  %v1675_v14 = vunpack.c.h.bf16 %v1732_v56  ;;  %v1735_v58 = vld [vmem:[%s2081_s15 + $0x48] sm:$0xff]  }
  0x2c   : > { %v681_v16 = vpack.c.bf16 %v654_v6, %v653_v5  ;;  %v624_v19 = vadd.f32 %v2118_v25, %v586_v7  ;;  %v655_v20 = vmax.f32 %v623_v8, 0.0  ;;  %v793_v21 = vmul.f32 %v1674_v4, %v2095_v12 }
  0x2d   : > { %v888_v23 = vpack.c.bf16 %v862_v13, %v861_v11  ;;  %v794_v24 = vmul.f32 %v1675_v14, %v2095_v12  ;;  %v1610_v26 = vunpack.c.l.bf16 %v1717_v9  ;;  %v1611_v27 = vunpack.c.h.bf16 %v1717_v9  ;;  %v1736_v13 = vld [vmem:[%s2081_s15 + $0x50] sm:$0xff]  }
  0x2e   : > { %v656_v28 = vmax.f32 %v624_v19, 0.0  ;;  %v831_v29 = vadd.f32 %v2109_v18, %v793_v21  ;;  %v1678_v30 = vunpack.c.l.bf16 %v1733_v15  ;;  %v1679_v31 = vunpack.c.h.bf16 %v1733_v15 }
  0x2f   : > { %1811 = vmatmul.mubr.bf16.gmra.mrb[4].mxu1 %v886_v44  ;;  %v832_v32 = vadd.f32 %v2109_v18, %v794_v24  ;;  %v587_v33 = vmul.f32 %v1610_v26, %v2104_v17  ;;  %v588_v34 = vmul.f32 %v1611_v27, %v2104_v17  ;;  %v1614_v35 = vunpack.c.l.bf16 %v1718_v22 }
  0x30   : > { %1859 = vmatmul.mubr.bf16.gmra.mrb[4].mxu0 %v680_v52  ;;  %1814 = vmatprep.mubr.bf16.mxu1 %v887_v10  ;;  %v682_v37 = vpack.c.bf16 %v656_v28, %v655_v20  ;;  %v863_v38 = vmax.f32 %v831_v29, 0.0  ;;  %v795_v39 = vmul.f32 %v1678_v30, %v2095_v12  ;;  %v796_v40 = vmul.f32 %v1679_v31, %v2095_v12  ;;  %v1721_v29 = vld [vmem:[%s2086_s18 + $0x50] sm:$0xff]  }
  0x31   : > { %1862 = vmatprep.mubr.bf16.mxu0 %v681_v16  ;;  %v864_v41 = vmax.f32 %v832_v32, 0.0  ;;  %v625_v42 = vadd.f32 %v2118_v25, %v587_v33  ;;  %v626_v43 = vadd.f32 %v2118_v25, %v588_v34  ;;  %v1615_v44 = vunpack.c.h.bf16 %v1718_v22 }
  0x32   : > { %v833_v45 = vadd.f32 %v2109_v18, %v795_v39  ;;  %v834_v46 = vadd.f32 %v2109_v18, %v796_v40  ;;  %v589_v47 = vmul.f32 %v1614_v35, %v2104_v17  ;;  %v1682_v48 = vunpack.c.l.bf16 %v1734_v36 }
  0x33   : > { %v889_v50 = vpack.c.bf16 %v864_v41, %v863_v38  ;;  %v657_v51 = vmax.f32 %v625_v42, 0.0  ;;  %v658_v52 = vmax.f32 %v626_v43, 0.0  ;;  %v590_v53 = vmul.f32 %v1615_v44, %v2104_v17  ;;  %v1737_v38 = vld [vmem:[%s2081_s15 + $0x58] sm:$0xff]  }
  0x34   : > { %v865_v54 = vmax.f32 %v833_v45, 0.0  ;;  %v866_v55 = vmax.f32 %v834_v46, 0.0  ;;  %v627_v56 = vadd.f32 %v2118_v25, %v589_v47  ;;  %v1683_v57 = vunpack.c.h.bf16 %v1734_v36  ;;  %v1722_v47 = vld [vmem:[%s2086_s18 + $0x58] sm:$0xff]  }
  0x35   : > { %v683_v59 = vpack.c.bf16 %v658_v52, %v657_v51  ;;  %v628_v60 = vadd.f32 %v2118_v25, %v590_v53  ;;  %v797_v61 = vmul.f32 %v1682_v48, %v2095_v12  ;;  %v1618_v62 = vunpack.c.l.bf16 %v1719_v49 }
  0x36   : > { %v890_v0 = vpack.c.bf16 %v866_v55, %v865_v54  ;;  %v659_v1 = vmax.f32 %v627_v56, 0.0  ;;  %v798_v2 = vmul.f32 %v1683_v57, %v2095_v12  ;;  %v1619_v3 = vunpack.c.h.bf16 %v1719_v49  ;;  %v1738_v56 = vld [vmem:[%s2081_s15 + $0x60] sm:$0xff]  }
  0x37   : > { %1815 = vmatmul.mubr.bf16.gmra.mrb[8].mxu1 %v888_v23  ;;  %v660_v4 = vmax.f32 %v628_v60, 0.0  ;;  %v835_v5 = vadd.f32 %v2109_v18, %v797_v61  ;;  %v591_v6 = vmul.f32 %v1618_v62, %v2104_v17  ;;  %v1686_v7 = vunpack.c.l.bf16 %v1735_v58 }
  0x38   : > { %1863 = vmatmul.mubr.bf16.gmra.mrb[8].mxu0 %v682_v37  ;;  %1818 = vmatprep.mubr.bf16.mxu1 %v889_v50  ;;  %v836_v8 = vadd.f32 %v2109_v18, %v798_v2  ;;  %v592_v9 = vmul.f32 %v1619_v3, %v2104_v17  ;;  %v1687_v10 = vunpack.c.h.bf16 %v1735_v58  ;;  %v1622_v11 = vunpack.c.l.bf16 %v1720_v63 }
  0x39   : > { %1866 = vmatprep.mubr.bf16.mxu0 %v683_v59  ;;  %v684_v14 = vpack.c.bf16 %v660_v4, %v659_v1  ;;  %v867_v15 = vmax.f32 %v835_v5, 0.0  ;;  %v629_v16 = vadd.f32 %v2118_v25, %v591_v6  ;;  %v799_v19 = vmul.f32 %v1686_v7, %v2095_v12  ;;  %v1723_v5 = vld [vmem:[%s2086_s18 + $0x60] sm:$0xff]  }
  0x3a   : > { %v868_v20 = vmax.f32 %v836_v8, 0.0  ;;  %v630_v21 = vadd.f32 %v2118_v25, %v592_v9  ;;  %v800_v22 = vmul.f32 %v1687_v10, %v2095_v12  ;;  %v1623_v23 = vunpack.c.h.bf16 %v1720_v63 }
  0x3b   : > { %v661_v24 = vmax.f32 %v629_v16, 0.0  ;;  %v837_v26 = vadd.f32 %v2109_v18, %v799_v19  ;;  %v593_v27 = vmul.f32 %v1622_v11, %v2104_v17  ;;  %v1690_v28 = vunpack.c.l.bf16 %v1736_v13 }
  0x3c   : > { %v891_v30 = vpack.c.bf16 %v868_v20, %v867_v15  ;;  %v662_v31 = vmax.f32 %v630_v21, 0.0  ;;  %v838_v32 = vadd.f32 %v2109_v18, %v800_v22  ;;  %v594_v33 = vmul.f32 %v1623_v23, %v2104_v17  ;;  %v1739_v15 = vld [vmem:[%s2081_s15 + $0x68] sm:$0xff]  }
  0x3d   : > { %v869_v34 = vmax.f32 %v837_v26, 0.0  ;;  %v631_v35 = vadd.f32 %v2118_v25, %v593_v27  ;;  %v1691_v36 = vunpack.c.h.bf16 %v1736_v13  ;;  %v801_v37 = vmul.f32 %v1690_v28, %v2095_v12  ;;  %v1724_v27 = vld [vmem:[%s2086_s18 + $0x68] sm:$0xff]  }
  0x3e   : > { %v685_v39 = vpack.c.bf16 %v662_v31, %v661_v24  ;;  %v870_v40 = vmax.f32 %v838_v32, 0.0  ;;  %v632_v41 = vadd.f32 %v2118_v25, %v594_v33  ;;  %v1626_v42 = vunpack.c.l.bf16 %v1721_v29 }
  0x3f   : > { %1819 = vmatmul.mubr.bf16.gmra.mrb[12].mxu1 %v890_v0  ;;  %v663_v43 = vmax.f32 %v631_v35, 0.0  ;;  %v802_v44 = vmul.f32 %v1691_v36, %v2095_v12  ;;  %v839_v45 = vadd.f32 %v2109_v18, %v801_v37  ;;  %v1627_v46 = vunpack.c.h.bf16 %v1721_v29  ;;  %v1740_v36 = vld [vmem:[%s2081_s15 + $0x70] sm:$0xff]  }
  0x40   : > { %1867 = vmatmul.mubr.bf16.gmra.mrb[12].mxu0 %v684_v14  ;;  %1822 = vmatprep.mubr.bf16.mxu1 %v891_v30  ;;  %v892_v48 = vpack.c.bf16 %v870_v40, %v869_v34  ;;  %v664_v49 = vmax.f32 %v632_v41, 0.0  ;;  %v595_v50 = vmul.f32 %v1626_v42, %v2104_v17  ;;  %v1694_v51 = vunpack.c.l.bf16 %v1737_v38 }
  0x41   : > { %1870 = vmatprep.mubr.bf16.mxu0 %v685_v39  ;;  %v840_v52 = vadd.f32 %v2109_v18, %v802_v44  ;;  %v871_v53 = vmax.f32 %v839_v45, 0.0  ;;  %v596_v54 = vmul.f32 %v1627_v46, %v2104_v17  ;;  %v1695_v55 = vunpack.c.h.bf16 %v1737_v38 }
  0x42   : > { %v686_v57 = vpack.c.bf16 %v664_v49, %v663_v43  ;;  %v633_v58 = vadd.f32 %v2118_v25, %v595_v50  ;;  %v803_v59 = vmul.f32 %v1694_v51, %v2095_v12  ;;  %v1630_v60 = vunpack.c.l.bf16 %v1722_v47  ;;  %v1725_v49 = vld [vmem:[%s2086_s18 + $0x70] sm:$0xff]  }
  0x43   : > { %v872_v61 = vmax.f32 %v840_v52, 0.0  ;;  %v634_v62 = vadd.f32 %v2118_v25, %v596_v54  ;;  %v804_v63 = vmul.f32 %v1695_v55, %v2095_v12  ;;  %v1631_v0 = vunpack.c.h.bf16 %v1722_v47 }
  0x44   : > { %v665_v1 = vmax.f32 %v633_v58, 0.0  ;;  %v841_v2 = vadd.f32 %v2109_v18, %v803_v59  ;;  %v597_v3 = vmul.f32 %v1630_v60, %v2104_v17  ;;  %v1698_v4 = vunpack.c.l.bf16 %v1738_v56  ;;  %v1741_v58 = vld [vmem:[%s2081_s15 + $0x78] sm:$0xff]   ;;  %s1561_s15 = sshll.u32 %s2347_s11, 3 }
  0x45   : > { %v893_v6 = vpack.c.bf16 %v872_v61, %v871_v53  ;;  %v666_v7 = vmax.f32 %v634_v62, 0.0  ;;  %v842_v8 = vadd.f32 %v2109_v18, %v804_v63  ;;  %v598_v9 = vmul.f32 %v1631_v0, %v2104_v17  ;;  %s2290_s24 = scalar_lea.vmem %s2341_s8, %s1561_s15 }
  0x46   : > { %v873_v10 = vmax.f32 %v841_v2, 0.0  ;;  %v635_v11 = vadd.f32 %v2118_v25, %v597_v3  ;;  %v1699_v13 = vunpack.c.h.bf16 %v1738_v56  ;;  %v805_v14 = vmul.f32 %v1698_v4, %v2095_v12  ;;  %v1726_v3 = vld [vmem:[%s2086_s18 + $0x78] sm:$0xff]  }
  0x47   : > { %1823 = vmatmul.mubr.bf16.gmra.mrb[16].mxu1 %v892_v48  ;;  %v687_v16 = vpack.c.bf16 %v666_v7, %v665_v1  ;;  %v874_v19 = vmax.f32 %v842_v8, 0.0  ;;  %v636_v20 = vadd.f32 %v2118_v25, %v598_v9  ;;  %v1634_v21 = vunpack.c.l.bf16 %v1723_v5 }
  0x48   : > { %1871 = vmatmul.mubr.bf16.gmra.mrb[16].mxu0 %v686_v57  ;;  %1826 = vmatprep.mubr.bf16.mxu1 %v893_v6  ;;  %v667_v22 = vmax.f32 %v635_v11, 0.0  ;;  %v806_v23 = vmul.f32 %v1699_v13, %v2095_v12  ;;  %v843_v24 = vadd.f32 %v2109_v18, %v805_v14  ;;  %v1635_v26 = vunpack.c.h.bf16 %v1723_v5 }
  0x49   : > { %1874 = vmatprep.mubr.bf16.mxu0 %v687_v16  ;;  %v894_v28 = vpack.c.bf16 %v874_v19, %v873_v10  ;;  %v668_v29 = vmax.f32 %v636_v20, 0.0  ;;  %v599_v30 = vmul.f32 %v1634_v21, %v2104_v17  ;;  %v1702_v31 = vunpack.c.l.bf16 %v1739_v15 }
  0x4a   : > { %v844_v32 = vadd.f32 %v2109_v18, %v806_v23  ;;  %v875_v33 = vmax.f32 %v843_v24, 0.0  ;;  %v600_v34 = vmul.f32 %v1635_v26, %v2104_v17  ;;  %v1703_v35 = vunpack.c.h.bf16 %v1739_v15 }
  0x4b   : > { %v688_v37 = vpack.c.bf16 %v668_v29, %v667_v22  ;;  %v637_v38 = vadd.f32 %v2118_v25, %v599_v30  ;;  %v807_v39 = vmul.f32 %v1702_v31, %v2095_v12  ;;  %v1638_v40 = vunpack.c.l.bf16 %v1724_v27 }
  0x4c   : > { %v876_v41 = vmax.f32 %v844_v32, 0.0  ;;  %v638_v42 = vadd.f32 %v2118_v25, %v600_v34  ;;  %v808_v43 = vmul.f32 %v1703_v35, %v2095_v12  ;;  %v1639_v44 = vunpack.c.h.bf16 %v1724_v27 }
  0x4d   : > { %v669_v45 = vmax.f32 %v637_v38, 0.0  ;;  %v845_v46 = vadd.f32 %v2109_v18, %v807_v39  ;;  %v601_v47 = vmul.f32 %v1638_v40, %v2104_v17  ;;  %v1706_v48 = vunpack.c.l.bf16 %v1740_v36 }
  0x4e   : > { %v895_v50 = vpack.c.bf16 %v876_v41, %v875_v33  ;;  %v670_v51 = vmax.f32 %v638_v42, 0.0  ;;  %v846_v52 = vadd.f32 %v2109_v18, %v808_v43  ;;  %v602_v53 = vmul.f32 %v1639_v44, %v2104_v17 }
  0x4f   : > { %1827 = vmatmul.mubr.bf16.gmra.mrb[20].mxu1 %v894_v28  ;;  %v877_v54 = vmax.f32 %v845_v46, 0.0  ;;  %v639_v55 = vadd.f32 %v2118_v25, %v601_v47  ;;  %v1707_v56 = vunpack.c.h.bf16 %v1740_v36  ;;  %v809_v57 = vmul.f32 %v1706_v48, %v2095_v12 }
  0x50   : > { %1875 = vmatmul.mubr.bf16.gmra.mrb[20].mxu0 %v688_v37  ;;  %1830 = vmatprep.mubr.bf16.mxu1 %v895_v50  ;;  %v689_v59 = vpack.c.bf16 %v670_v51, %v669_v45  ;;  %v878_v60 = vmax.f32 %v846_v52, 0.0  ;;  %v640_v61 = vadd.f32 %v2118_v25, %v602_v53  ;;  %v1642_v62 = vunpack.c.l.bf16 %v1725_v49 }
  0x51   : > { %v671_v63 = vmax.f32 %v639_v55, 0.0  ;;  %v810_v0 = vmul.f32 %v1707_v56, %v2095_v12  ;;  %v847_v1 = vadd.f32 %v2109_v18, %v809_v57  ;;  %v1643_v2 = vunpack.c.h.bf16 %v1725_v49 }
  0x52   : > { %1878 = vmatprep.mubr.bf16.mxu0 %v689_v59  ;;  %v896_v4 = vpack.c.bf16 %v878_v60, %v877_v54  ;;  %v672_v5 = vmax.f32 %v640_v61, 0.0  ;;  %v603_v6 = vmul.f32 %v1642_v62, %v2104_v17  ;;  %v1710_v7 = vunpack.c.l.bf16 %v1741_v58 }
  0x53   : > { %v848_v8 = vadd.f32 %v2109_v18, %v810_v0  ;;  %v879_v9 = vmax.f32 %v847_v1, 0.0  ;;  %v604_v10 = vmul.f32 %v1643_v2, %v2104_v17  ;;  %v1711_v11 = vunpack.c.h.bf16 %v1741_v58 }
  0x54   : > { %v690_v13 = vpack.c.bf16 %v672_v5, %v671_v63  ;;  %v641_v14 = vadd.f32 %v2118_v25, %v603_v6  ;;  %v811_v15 = vmul.f32 %v1710_v7, %v2095_v12  ;;  %v1646_v16 = vunpack.c.l.bf16 %v1726_v3 }
  0x55   : > { %v880_v19 = vmax.f32 %v848_v8, 0.0  ;;  %v642_v20 = vadd.f32 %v2118_v25, %v604_v10  ;;  %v812_v21 = vmul.f32 %v1711_v11, %v2095_v12  ;;  %v1647_v22 = vunpack.c.h.bf16 %v1726_v3 }
  0x56   : > { %v673_v23 = vmax.f32 %v641_v14, 0.0  ;;  %v849_v24 = vadd.f32 %v2109_v18, %v811_v15  ;;  %v605_v26 = vmul.f32 %v1646_v16, %v2104_v17 }
  0x57   : > { %1831 = vmatmul.mubr.bf16.gmra.mrb[24].mxu1 %v896_v4  ;;  %v897_v27 = vpack.c.bf16 %v880_v19, %v879_v9  ;;  %v674_v28 = vmax.f32 %v642_v20, 0.0  ;;  %v850_v29 = vadd.f32 %v2109_v18, %v812_v21  ;;  %v606_v30 = vmul.f32 %v1647_v22, %v2104_v17 }
  0x58   : > { %1879 = vmatmul.mubr.bf16.gmra.mrb[24].mxu0 %v690_v13  ;;  %v881_v31 = vmax.f32 %v849_v24, 0.0  ;;  %v643_v32 = vadd.f32 %v2118_v25, %v605_v26 }
  0x59   : > { %1834 = vmatprep.mubr.bf16.mxu1 %v897_v27  ;;  %v691_v33 = vpack.c.bf16 %v674_v28, %v673_v23  ;;  %v882_v12 = vmax.f32 %v850_v29, 0.0  ;;  %v644_v34 = vadd.f32 %v2118_v25, %v606_v30 }
  0x5a   : > { %v675_v35 = vmax.f32 %v643_v32, 0.0 }
  0x5b   : > { %1882 = vmatprep.mubr.bf16.mxu0 %v691_v33  ;;  %v898_v36 = vpack.c.bf16 %v882_v12, %v881_v31  ;;  %v676_v37 = vmax.f32 %v644_v34, 0.0 }
  0x5d   : > { %v692_v38 = vpack.c.bf16 %v676_v37, %v675_v35 }
  0x5f   : > { %1835 = vmatmul.mubr.bf16.gmra.mrb[28].mxu1 %v898_v36 }
  0x60   : > { %1883 = vmatmul.mubr.bf16.gmra.mrb[28].mxu0 %v692_v38 }
  0xfa   : > { %v1808_v39 = vpop.f32.mrb[0].mxu1 }
  0xfb   : > { %v1856_v17 = vpop.f32.mrb[0].mxu0  ;;  %v997_v18 = vpop.f32.mrb[1].mxu1 }
  0xfc   : > { %v1215_v25 = vadd.f32 %v1856_v17, %v1808_v39  ;;  %v1206_v40 = vpop.f32.mrb[1].mxu0  ;;  %v1809_v41 = vpop.f32.mrb[2].mxu1 }
  0xfd   : > { %v1207_v42 = vadd.f32 %v1206_v40, %v997_v18  ;;  %v1857_v43 = vpop.f32.mrb[2].mxu0  ;;  %v1000_v44 = vpop.f32.mrb[3].mxu1 }
  0xfe   : > { %1335 = vst [vmem:[%s2290_s24 + $0x10] sm:$0xff] %v1215_v25  ;;  %v1218_v45 = vadd.f32 %v1857_v43, %v1809_v41  ;;  %v1209_v46 = vpop.f32.mrb[3].mxu0 }
  0xff   : > { %1333 = vst [vmem:[%s2290_s24] sm:$0xff] %v1207_v42  ;;  %v1210_v47 = vadd.f32 %v1209_v46, %v1000_v44 }
 0x100   : > { %1336 = vst [vmem:[%s2290_s24 + $0x18] sm:$0xff] %v1218_v45 }
 0x101   : > { %1334 = vst [vmem:[%s2290_s24 + $0x8] sm:$0xff] %v1210_v47 }
 0x102   : > { %v1812_v48 = vpop.f32.mrb[4].mxu1 }
 0x103   : > { %v1860_v49 = vpop.f32.mrb[4].mxu0  ;;  %v1013_v50 = vpop.f32.mrb[5].mxu1 }
 0x104   : > { %v1231_v51 = vadd.f32 %v1860_v49, %v1812_v48  ;;  %v1222_v52 = vpop.f32.mrb[5].mxu0  ;;  %v1813_v53 = vpop.f32.mrb[6].mxu1 }
 0x105   : > { %v1223_v54 = vadd.f32 %v1222_v52, %v1013_v50  ;;  %v1861_v55 = vpop.f32.mrb[6].mxu0  ;;  %v1016_v56 = vpop.f32.mrb[7].mxu1 }
 0x106   : > { %1339 = vst [vmem:[%s2290_s24 + $0x30] sm:$0xff] %v1231_v51  ;;  %v1234_v57 = vadd.f32 %v1861_v55, %v1813_v53  ;;  %v1225_v58 = vpop.f32.mrb[7].mxu0 }
 0x107   : > { %1337 = vst [vmem:[%s2290_s24 + $0x20] sm:$0xff] %v1223_v54  ;;  %v1226_v59 = vadd.f32 %v1225_v58, %v1016_v56 }
 0x108   : > { %1340 = vst [vmem:[%s2290_s24 + $0x38] sm:$0xff] %v1234_v57 }
 0x109   : > { %1338 = vst [vmem:[%s2290_s24 + $0x28] sm:$0xff] %v1226_v59 }
 0x10a   : > { %v1816_v60 = vpop.f32.mrb[8].mxu1 }
 0x10b   : > { %v1864_v61 = vpop.f32.mrb[8].mxu0  ;;  %v1029_v62 = vpop.f32.mrb[9].mxu1 }
 0x10c   : > { %v1247_v63 = vadd.f32 %v1864_v61, %v1816_v60  ;;  %v1238_v0 = vpop.f32.mrb[9].mxu0  ;;  %v1817_v1 = vpop.f32.mrb[10].mxu1 }
 0x10d   : > { %v1239_v2 = vadd.f32 %v1238_v0, %v1029_v62  ;;  %v1865_v3 = vpop.f32.mrb[10].mxu0  ;;  %v1032_v4 = vpop.f32.mrb[11].mxu1 }
 0x10e   : > { %1343 = vst [vmem:[%s2290_s24 + $0x50] sm:$0xff] %v1247_v63  ;;  %v1250_v5 = vadd.f32 %v1865_v3, %v1817_v1  ;;  %v1241_v6 = vpop.f32.mrb[11].mxu0 }
 0x10f   : > { %1341 = vst [vmem:[%s2290_s24 + $0x40] sm:$0xff] %v1239_v2  ;;  %v1242_v7 = vadd.f32 %v1241_v6, %v1032_v4 }
 0x110   : > { %1344 = vst [vmem:[%s2290_s24 + $0x58] sm:$0xff] %v1250_v5 }
 0x111   : > { %1342 = vst [vmem:[%s2290_s24 + $0x48] sm:$0xff] %v1242_v7 }
 0x112   : > { %v1820_v8 = vpop.f32.mrb[12].mxu1 }
 0x113   : > { %v1868_v9 = vpop.f32.mrb[12].mxu0  ;;  %v1045_v10 = vpop.f32.mrb[13].mxu1 }
 0x114   : > { %v1263_v11 = vadd.f32 %v1868_v9, %v1820_v8  ;;  %v1254_v13 = vpop.f32.mrb[13].mxu0  ;;  %v1821_v14 = vpop.f32.mrb[14].mxu1 }
 0x115   : > { %v1255_v15 = vadd.f32 %v1254_v13, %v1045_v10  ;;  %v1869_v16 = vpop.f32.mrb[14].mxu0  ;;  %v1048_v19 = vpop.f32.mrb[15].mxu1 }
 0x116   : > { %1347 = vst [vmem:[%s2290_s24 + $0x70] sm:$0xff] %v1263_v11  ;;  %v1266_v20 = vadd.f32 %v1869_v16, %v1821_v14  ;;  %v1257_v21 = vpop.f32.mrb[15].mxu0 }
 0x117   : > { %1345 = vst [vmem:[%s2290_s24 + $0x60] sm:$0xff] %v1255_v15  ;;  %v1258_v22 = vadd.f32 %v1257_v21, %v1048_v19 }
 0x118   : > { %1348 = vst [vmem:[%s2290_s24 + $0x78] sm:$0xff] %v1266_v20 }
 0x119   : > { %1346 = vst [vmem:[%s2290_s24 + $0x68] sm:$0xff] %v1258_v22 }
 0x11a   : > { %v1824_v23 = vpop.f32.mrb[16].mxu1 }
 0x11b   : > { %v1061_v24 = vpop.f32.mrb[17].mxu1  ;;  %v1872_v26 = vpop.f32.mrb[16].mxu0 }
 0x11c   : > { %v1825_v27 = vpop.f32.mrb[18].mxu1  ;;  %v1279_v28 = vadd.f32 %v1872_v26, %v1824_v23  ;;  %v1270_v29 = vpop.f32.mrb[17].mxu0 }
 0x11d   : > { %v1064_v30 = vpop.f32.mrb[19].mxu1  ;;  %v1271_v31 = vadd.f32 %v1270_v29, %v1061_v24  ;;  %v1873_v32 = vpop.f32.mrb[18].mxu0 }
 0x11e   : > { %1351 = vst [vmem:[%s2290_s24 + $0x90] sm:$0xff] %v1279_v28  ;;  %v1282_v33 = vadd.f32 %v1873_v32, %v1825_v27  ;;  %v1273_v12 = vpop.f32.mrb[19].mxu0 }
 0x11f   : > { %1349 = vst [vmem:[%s2290_s24 + $0x80] sm:$0xff] %v1271_v31  ;;  %v1274_v34 = vadd.f32 %v1273_v12, %v1064_v30 }
 0x120   : > { %1352 = vst [vmem:[%s2290_s24 + $0x98] sm:$0xff] %v1282_v33 }
 0x121   : > { %1350 = vst [vmem:[%s2290_s24 + $0x88] sm:$0xff] %v1274_v34 }
 0x122   : > { %v1828_v35 = vpop.f32.mrb[20].mxu1 }
 0x123   : > { %v1077_v36 = vpop.f32.mrb[21].mxu1  ;;  %v1876_v37 = vpop.f32.mrb[20].mxu0 }
 0x124   : > { %v1829_v38 = vpop.f32.mrb[22].mxu1  ;;  %v1295_v39 = vadd.f32 %v1876_v37, %v1828_v35  ;;  %v1286_v17 = vpop.f32.mrb[21].mxu0 }
 0x125   : > { %v1080_v18 = vpop.f32.mrb[23].mxu1  ;;  %v1287_v25 = vadd.f32 %v1286_v17, %v1077_v36  ;;  %v1877_v40 = vpop.f32.mrb[22].mxu0 }
 0x126   : > { %1355 = vst [vmem:[%s2290_s24 + $0xb0] sm:$0xff] %v1295_v39  ;;  %v1298_v41 = vadd.f32 %v1877_v40, %v1829_v38  ;;  %v1289_v42 = vpop.f32.mrb[23].mxu0 }
 0x127   : > { %1353 = vst [vmem:[%s2290_s24 + $0xa0] sm:$0xff] %v1287_v25  ;;  %v1290_v43 = vadd.f32 %v1289_v42, %v1080_v18 }
 0x128   : > { %1356 = vst [vmem:[%s2290_s24 + $0xb8] sm:$0xff] %v1298_v41 }
 0x129   : > { %1354 = vst [vmem:[%s2290_s24 + $0xa8] sm:$0xff] %v1290_v43 }
 0x12a   : > { %v1832_v44 = vpop.f32.mrb[24].mxu1 }
 0x12b   : > { %v1093_v45 = vpop.f32.mrb[25].mxu1  ;;  %v1880_v46 = vpop.f32.mrb[24].mxu0 }
 0x12c   : > { %v1833_v47 = vpop.f32.mrb[26].mxu1  ;;  %v1311_v48 = vadd.f32 %v1880_v46, %v1832_v44  ;;  %v1302_v49 = vpop.f32.mrb[25].mxu0 }
 0x12d   : > { %v1096_v50 = vpop.f32.mrb[27].mxu1  ;;  %v1303_v51 = vadd.f32 %v1302_v49, %v1093_v45  ;;  %v1881_v52 = vpop.f32.mrb[26].mxu0 }
 0x12e   : > { %1359 = vst [vmem:[%s2290_s24 + $0xd0] sm:$0xff] %v1311_v48  ;;  %v1314_v53 = vadd.f32 %v1881_v52, %v1833_v47  ;;  %v1305_v54 = vpop.f32.mrb[27].mxu0 }
 0x12f   : > { %1357 = vst [vmem:[%s2290_s24 + $0xc0] sm:$0xff] %v1303_v51  ;;  %v1306_v55 = vadd.f32 %v1305_v54, %v1096_v50 }
 0x130   : > { %1360 = vst [vmem:[%s2290_s24 + $0xd8] sm:$0xff] %v1314_v53 }
 0x131   : > { %1358 = vst [vmem:[%s2290_s24 + $0xc8] sm:$0xff] %v1306_v55 }
 0x132   : > { %v1836_v56 = vpop.f32.mrb[28].mxu1 }
 0x133   : > { %v1109_v57 = vpop.f32.mrb[29].mxu1  ;;  %v1884_v58 = vpop.f32.mrb[28].mxu0 }
 0x134   : > { %v1837_v59 = vpop.f32.mrb[30].mxu1  ;;  %v1327_v60 = vadd.f32 %v1884_v58, %v1836_v56  ;;  %v1318_v61 = vpop.f32.mrb[29].mxu0 }
 0x135   : > { %v1112_v62 = vpop.f32.mrb[31].mxu1  ;;  %v1319_v63 = vadd.f32 %v1318_v61, %v1109_v57  ;;  %v1885_v0 = vpop.f32.mrb[30].mxu0 }
 0x136   : > { %1363 = vst [vmem:[%s2290_s24 + $0xf0] sm:$0xff] %v1327_v60  ;;  %v1330_v1 = vadd.f32 %v1885_v0, %v1837_v59  ;;  %v1321_v2 = vpop.f32.mrb[31].mxu0 }
 0x137   : > { %1361 = vst [vmem:[%s2290_s24 + $0xe0] sm:$0xff] %v1319_v63  ;;  %v1322_v3 = vadd.f32 %v1321_v2, %v1112_v62 }
 0x138   : > { %1364 = vst [vmem:[%s2290_s24 + $0xf8] sm:$0xff] %v1330_v1 }
 0x139   : > { %1362 = vst [vmem:[%s2290_s24 + $0xe8] sm:$0xff] %v1322_v3 }
 0x13a PF: > { %s18_s29 = sadd.s32 1, %s1980_s29   ;;  %s2342_s27 = smov %s1976_s28 }
 0x13b   : > { %p15_p5 = scmp.ge.s32.totalorder %s18_s29, 4   ;;  %s2343_s28 = smov %s2345_s30 }
 0x13d   :  { %17 = sbr.rel (!%p15_p5) target bundleno = 2 (0x2), region = 103 }

// kernel: unet_apply.33
= control target key start
LH: loop header
LB: loop body
LE: loop exit
PB: predicated region body
PF: predicated region fallthrough
CT: control target
= control target key end

     0   :  { %v105_v0 = vmov 0.0   ;;  %s187_s1 = inlined_call_operand.vmem [shape: f32[1,128], index: 1, kind: output, shape index: {0}]   ;;  %s188_s2 = inlined_call_operand.vmem [shape: f32[1,128], index: 2, kind: output, shape index: {1}]   ;;  %s189_s0 = inlined_call_operand.vmem [shape: f32[128,128], index: 0, kind: input, shape index: {}]  }
   0x1   :  { %14 = vst [vmem:[%s187_s1] sm:$0x1] %v105_v0  ;;  %15 = vst [vmem:[%s188_s2] sm:$0x1] %v105_v0  ;;  %v16_v1 = vld [vmem:[%s189_s0] sm:$0xff]  ;;  %v17_v2 = vld [vmem:[%s189_s0 + $0x8] sm:$0xff] }
   0x2   :  { %v18_v3 = vld [vmem:[%s189_s0 + $0x10] sm:$0xff]  ;;  %v19_v4 = vld [vmem:[%s189_s0 + $0x18] sm:$0xff]  ;;  %v33_v5 = vadd.f32 %v17_v2, %v16_v1  ;;  %v57_v6 = vmul.f32 %v16_v1, %v16_v1  ;;  %v58_v7 = vmul.f32 %v17_v2, %v17_v2  ;;  %v20_v9 = vld [vmem:[%s189_s0 + $0x20] sm:$0xff] }
   0x3   :  { %v59_v8 = vmul.f32 %v18_v3, %v18_v3  ;;  %v60_v11 = vmul.f32 %v19_v4, %v19_v4  ;;  %v21_v13 = vld [vmem:[%s189_s0 + $0x28] sm:$0xff]  ;;  %v61_v15 = vmul.f32 %v20_v9, %v20_v9  ;;  %v22_v17 = vld [vmem:[%s189_s0 + $0x30] sm:$0xff]  ;;  %v23_v21 = vld [vmem:[%s189_s0 + $0x38] sm:$0xff] }
   0x4   :  { %v34_v10 = vadd.f32 %v33_v5, %v18_v3  ;;  %v73_v12 = vadd.f32 %v58_v7, %v57_v6  ;;  %v62_v19 = vmul.f32 %v21_v13, %v21_v13  ;;  %v63_v23 = vmul.f32 %v22_v17, %v22_v17  ;;  %v24_v25 = vld [vmem:[%s189_s0 + $0x40] sm:$0xff]  ;;  %v25_v29 = vld [vmem:[%s189_s0 + $0x48] sm:$0xff]  ;;  %v26_v33 = vld [vmem:[%s189_s0 + $0x50] sm:$0xff] }
   0x5   :  { %v64_v27 = vmul.f32 %v23_v21, %v23_v21  ;;  %v65_v31 = vmul.f32 %v24_v25, %v24_v25  ;;  %v66_v35 = vmul.f32 %v25_v29, %v25_v29  ;;  %v27_v37 = vld [vmem:[%s189_s0 + $0x58] sm:$0xff]  ;;  %v67_v39 = vmul.f32 %v26_v33, %v26_v33  ;;  %v28_v41 = vld [vmem:[%s189_s0 + $0x60] sm:$0xff]  ;;  %v29_v45 = vld [vmem:[%s189_s0 + $0x68] sm:$0xff] }
   0x6   :  { %v35_v14 = vadd.f32 %v34_v10, %v19_v4  ;;  %v74_v16 = vadd.f32 %v73_v12, %v59_v8  ;;  %v68_v43 = vmul.f32 %v27_v37, %v27_v37  ;;  %v69_v47 = vmul.f32 %v28_v41, %v28_v41  ;;  %v30_v49 = vld [vmem:[%s189_s0 + $0x70] sm:$0xff]  ;;  %v31_v53 = vld [vmem:[%s189_s0 + $0x78] sm:$0xff] }
   0x7   :  { %v70_v51 = vmul.f32 %v29_v45, %v29_v45  ;;  %v71_v55 = vmul.f32 %v30_v49, %v30_v49  ;;  %v72_v58 = vmul.f32 %v31_v53, %v31_v53 }
   0x8   :  { %v36_v18 = vadd.f32 %v35_v14, %v20_v9  ;;  %v75_v20 = vadd.f32 %v74_v16, %v60_v11  ;;  %v32_v7 = vld [vmem:[%s187_s1] sm:$0x1] }
   0x9   :  { %v56_v12 = vld [vmem:[%s188_s2] sm:$0x1] }
   0xa   :  { %v37_v22 = vadd.f32 %v36_v18, %v21_v13  ;;  %v76_v24 = vadd.f32 %v75_v20, %v61_v15 }
   0xc   :  { %v38_v26 = vadd.f32 %v37_v22, %v22_v17  ;;  %v77_v28 = vadd.f32 %v76_v24, %v62_v19 }
   0xe   :  { %v39_v30 = vadd.f32 %v38_v26, %v23_v21  ;;  %v78_v32 = vadd.f32 %v77_v28, %v63_v23 }
  0x10   :  { %v40_v34 = vadd.f32 %v39_v30, %v24_v25  ;;  %v79_v36 = vadd.f32 %v78_v32, %v64_v27 }
  0x12   :  { %v41_v38 = vadd.f32 %v40_v34, %v25_v29  ;;  %v80_v40 = vadd.f32 %v79_v36, %v65_v31 }
  0x14   :  { %v42_v42 = vadd.f32 %v41_v38, %v26_v33  ;;  %v81_v44 = vadd.f32 %v80_v40, %v66_v35 }
  0x16   :  { %v43_v46 = vadd.f32 %v42_v42, %v27_v37  ;;  %v82_v48 = vadd.f32 %v81_v44, %v67_v39 }
  0x18   :  { %v44_v50 = vadd.f32 %v43_v46, %v28_v41  ;;  %v83_v52 = vadd.f32 %v82_v48, %v68_v43 }
  0x1a   :  { %v45_v54 = vadd.f32 %v44_v50, %v29_v45  ;;  %v84_v56 = vadd.f32 %v83_v52, %v69_v47 }
  0x1c   :  { %v46_v57 = vadd.f32 %v45_v54, %v30_v49  ;;  %v85_v59 = vadd.f32 %v84_v56, %v70_v51 }
  0x1e   :  { %v47_v60 = vadd.f32 %v46_v57, %v31_v53  ;;  %v86_v61 = vadd.f32 %v85_v59, %v71_v55 }
  0x20   :  { %v48_v62 = vrot.slane %v47_v60, 4  ;;  %v87_v63 = vadd.f32 %v86_v61, %v72_v58 }
  0x22   :  { %v49_v0 = vadd.f32 %v48_v62, %v47_v60  ;;  %v88_v1 = vrot.slane %v87_v63, 4 }
  0x24   :  { %v50_v2 = vrot.slane %v49_v0, 2  ;;  %v89_v3 = vadd.f32 %v88_v1, %v87_v63 }
  0x26   :  { %v51_v4 = vadd.f32 %v50_v2, %v49_v0  ;;  %v90_v5 = vrot.slane %v89_v3, 2 }
  0x28   :  { %v52_v6 = vrot.slane %v51_v4, 1  ;;  %v91_v8 = vadd.f32 %v90_v5, %v89_v3 }
  0x2a   :  { %v53_v9 = vadd.f32 %v52_v6, %v51_v4  ;;  %v92_v10 = vrot.slane %v91_v8, 1 }
  0x2c   :  { %v54_v11 = vadd.f32 %v53_v9, %v32_v7  ;;  %v93_v13 = vadd.f32 %v92_v10, %v91_v8 }
  0x2e   :  { %55 = vst [vmem:[%s187_s1] sm:$0x1] %v54_v11  ;;  %v94_v14 = vadd.f32 %v93_v13, %v56_v12 }
  0x30   :  { %95 = vst [vmem:[%s188_s2] sm:$0x1] %v94_v14 }

// kernel: unet_apply.34
= control target key start
LH: loop header
LB: loop body
LE: loop exit
PB: predicated region body
PF: predicated region fallthrough
CT: control target
= control target key end

     0   :  { %s1829_s21 = smov 0   ;;  %s1831_s22 = smov 0   ;;  %s2061_s0 = inlined_call_operand.vmem [shape: bf16[2048,128], index: 0, kind: input, shape index: {}]   ;;  %s2062_s1 = inlined_call_operand.vmem [shape: bf16[2048,128], index: 1, kind: input, shape index: {}]   ;;  %s2063_s2 = inlined_call_operand.vmem [shape: f32[1,128], index: 2, kind: input, shape index: {}]   ;;  %s2064_s3 = inlined_call_operand.vmem [shape: f32[1,128], index: 3, kind: input, shape index: {}]   ;;  %s2065_s4 = inlined_call_operand.vmem [shape: bf16[128,128], index: 4, kind: input, shape index: {}]   ;;  %s2066_s5 = inlined_call_operand.vmem [shape: bf16[128,128], index: 5, kind: input, shape index: {}]   ;;  %s2067_s6 = inlined_call_operand.vmem [shape: f32[2048,128], index: 6, kind: output, shape index: {}]  }
   0x1   :  { %s1833_s23 = smov 0  }
   0x2 LB: > { %s35_s24 = sadd.s32 1, %s1788_s22  ;;  %p1369_p0 = scmp.ge.s32.totalorder %s1792_s23, 1  ;;  %s1792_s23 = sphi %s1833_s23, %s16_s23   ;;  %s1788_s22 = sphi %s1831_s22, %s2069_s22   ;;  %s1784_s21 = sphi %s1829_s21, %s2068_s21  }
   0x3   : > { %p37_p1 = scmp.ge.s32.totalorder %s35_s24, 8  ;;  %p303_p2 = scmp.lt.s32.totalorder %s1792_s23, 9 }
   0x5   : > { %s2071_s24 = smov (%p37_p1, %s35_s24), 0  ;;  %p304_p3 = pnand %p1369_p0, %p303_p2 }
   0x6   : > { %v1754_v0 = vld [vmem:[%s2066_s5] sm:$0xff] (!%p304_p3)   ;;  %s1370_s27 = sshll.u32 (!%p304_p3), %s1784_s21, 5  ;;  %v1756_v2 = vld [vmem:[%s2066_s5 + $0x8] sm:$0xff] (!%p304_p3)   ;;  %v1758_v4 = vld [vmem:[%s2066_s5 + $0x10] sm:$0xff] (!%p304_p3)  }
   0x7   : > { %307 = sbr.rel (%p304_p3) target bundleno = 314 (0x13a), region = 44  ;;  %v1755_v1 = vld [vmem:[%s2065_s4] sm:$0xff] (!%p304_p3)   ;;  %1602 = vmatprep.subr.bf16.mxu1 (!%p304_p3), %v1754_v0  ;;  %p370_p4 = scmp.lt.s32.totalorder (!%p304_p3), %s1370_s27, 255  ;;  %v1757_v3 = vld [vmem:[%s2065_s4 + $0x8] sm:$0xff] (!%p304_p3)   ;;  %v1759_v5 = vld [vmem:[%s2065_s4 + $0x10] sm:$0xff] (!%p304_p3)  }
   0x8   : > { %1650 = vmatprep.subr.bf16.mxu0 (!%p304_p3), %v1755_v1  ;;  %1603 = vmatpush3.bf16.msra.mxu1 (!%p304_p3), %v1754_v0  ;;  %v1760_v6 = vld [vmem:[%s2066_s5 + $0x18] sm:$0xff] (!%p304_p3)   ;;  %v1762_v8 = vld [vmem:[%s2066_s5 + $0x20] sm:$0xff] (!%p304_p3)   ;;  %v1764_v10 = vld [vmem:[%s2066_s5 + $0x28] sm:$0xff] (!%p304_p3)  }
   0x9   : > { %1651 = vmatpush3.bf16.msra.mxu0 (!%p304_p3), %v1755_v1  ;;  %1604 = vmatprep.subr.bf16.mxu1 (!%p304_p3), %v1756_v2  ;;  %v1761_v7 = vld [vmem:[%s2065_s4 + $0x18] sm:$0xff] (!%p304_p3)   ;;  %v1763_v9 = vld [vmem:[%s2065_s4 + $0x20] sm:$0xff] (!%p304_p3)   ;;  %v1765_v13 = vld [vmem:[%s2065_s4 + $0x28] sm:$0xff] (!%p304_p3)  }
   0xa   : > { %1652 = vmatprep.subr.bf16.mxu0 (!%p304_p3), %v1757_v3  ;;  %v1897_v12 = vld [vmem:[%s2063_s2] ss:$0 sm:$0xff] (!%p304_p3)  ;;  %v1766_v27 = vld [vmem:[%s2066_s5 + $0x30] sm:$0xff] (!%p304_p3)   ;;  %v1768_v46 = vld [vmem:[%s2066_s5 + $0x38] sm:$0xff] (!%p304_p3)  }
   0xb   : > { %v1907_v18 = vld [vmem:[%s2064_s3] ss:$0 sm:$0xff] (!%p304_p3)  ;;  %v1767_v32 = vld [vmem:[%s2065_s4 + $0x30] sm:$0xff] (!%p304_p3)   ;;  %v1769_v51 = vld [vmem:[%s2065_s4 + $0x38] sm:$0xff] (!%p304_p3)  }
   0xc   : > { %1605 = vmatpush3.bf16.msra.mxu1 (!%p304_p3), %v1756_v2 }
   0xd   : > { %1653 = vmatpush3.bf16.msra.mxu0 (!%p304_p3), %v1757_v3  ;;  %1606 = vmatprep.subr.bf16.mxu1 (!%p304_p3), %v1758_v4 }
   0xe   : > { %s2073_s27 = smov (!%p370_p4, %s1370_s27), 255  ;;  %1654 = vmatprep.subr.bf16.mxu0 %v1759_v5 }
   0xf   : > { %s1371_s18 = sshll.u32 %s2073_s27, 2 }
  0x10   : > { %1607 = vmatpush3.bf16.msra.mxu1 %v1758_v4  ;;  %s1883_s29 = scalar_lea.vmem %s2062_s1, %s1371_s18  ;;  %s1888_s8 = scalar_lea.vmem %s2061_s0, %s1371_s18 }
  0x11   : > { %1655 = vmatpush3.bf16.msra.mxu0 %v1759_v5  ;;  %1608 = vmatprep.subr.bf16.mxu1 %v1760_v6  ;;  %v1461_v11 = vld [vmem:[%s1883_s29] sm:$0xff]   ;;  %v1539_v17 = vld [vmem:[%s1883_s29 + $0x8] sm:$0xff]   ;;  %v1540_v26 = vld [vmem:[%s1883_s29 + $0x10] sm:$0xff]  }
  0x12   : > { %1656 = vmatprep.subr.bf16.mxu0 %v1761_v7  ;;  %v1462_v14 = vunpack.c.l.bf16 %v1461_v11  ;;  %v1463_v15 = vunpack.c.h.bf16 %v1461_v11  ;;  %v1397_v16 = vld [vmem:[%s1888_s8] sm:$0xff]   ;;  %v1466_v21 = vunpack.c.l.bf16 %v1539_v17  ;;  %v1467_v22 = vunpack.c.h.bf16 %v1539_v17  ;;  %v1524_v23 = vld [vmem:[%s1888_s8 + $0x8] sm:$0xff]   ;;  %v1525_v36 = vld [vmem:[%s1888_s8 + $0x10] sm:$0xff]  }
  0x13   : > { %v1398_v19 = vunpack.c.l.bf16 %v1397_v16  ;;  %v1399_v20 = vunpack.c.h.bf16 %v1397_v16  ;;  %v1402_v35 = vunpack.c.l.bf16 %v1524_v23  ;;  %v1470_v40 = vunpack.c.l.bf16 %v1540_v26  ;;  %v1541_v41 = vld [vmem:[%s1883_s29 + $0x18] sm:$0xff]   ;;  %v1542_v56 = vld [vmem:[%s1883_s29 + $0x20] sm:$0xff]  }
  0x14   : > { %1609 = vmatpush3.bf16.msra.mxu1 %v1760_v6  ;;  %v621_v24 = vmul.f32 %v1462_v14, %v1897_v12  ;;  %v622_v25 = vmul.f32 %v1463_v15, %v1897_v12  ;;  %v623_v30 = vmul.f32 %v1466_v21, %v1897_v12  ;;  %v624_v31 = vmul.f32 %v1467_v22, %v1897_v12  ;;  %v1526_v60 = vld [vmem:[%s1888_s8 + $0x18] sm:$0xff]   ;;  %v1527_v5 = vld [vmem:[%s1888_s8 + $0x20] sm:$0xff]   ;;  %v1543_v15 = vld [vmem:[%s1883_s29 + $0x28] sm:$0xff]  }
  0x15   : > { %1657 = vmatpush3.bf16.msra.mxu0 %v1761_v7  ;;  %1610 = vmatprep.subr.bf16.mxu1 %v1762_v8  ;;  %v485_v28 = vmax.f32 %v1398_v19, 0.0  ;;  %v486_v29 = vmax.f32 %v1399_v20, 0.0  ;;  %v1403_v44 = vunpack.c.h.bf16 %v1524_v23  ;;  %v1471_v45 = vunpack.c.h.bf16 %v1540_v26 }
  0x16   : > { %1658 = vmatprep.subr.bf16.mxu0 %v1763_v9  ;;  %v659_v33 = vadd.f32 %v1907_v18, %v621_v24  ;;  %v660_v34 = vadd.f32 %v1907_v18, %v622_v25  ;;  %v661_v38 = vadd.f32 %v1907_v18, %v623_v30  ;;  %v662_v39 = vadd.f32 %v1907_v18, %v624_v31 }
  0x17   : > { %v517_v37 = vpack.c.bf16 %v486_v29, %v485_v28  ;;  %v625_v49 = vmul.f32 %v1470_v40, %v1897_v12  ;;  %v1406_v50 = vunpack.c.l.bf16 %v1525_v36  ;;  %v626_v53 = vmul.f32 %v1471_v45, %v1897_v12  ;;  %v1544_v28 = vld [vmem:[%s1883_s29 + $0x30] sm:$0xff]   ;;  %v1545_v45 = vld [vmem:[%s1883_s29 + $0x38] sm:$0xff]  }
  0x18   : > { %1611 = vmatpush3.bf16.msra.mxu1 %v1762_v8  ;;  %v691_v42 = vmax.f32 %v659_v33, 0.0  ;;  %v692_v43 = vmax.f32 %v660_v34, 0.0  ;;  %v693_v47 = vmax.f32 %v661_v38, 0.0  ;;  %v694_v48 = vmax.f32 %v662_v39, 0.0  ;;  %v1528_v33 = vld [vmem:[%s1888_s8 + $0x28] sm:$0xff]  }
  0x19   : > { %1659 = vmatpush3.bf16.msra.mxu0 %v1763_v9  ;;  %1612 = vmatprep.subr.bf16.mxu1 %v1764_v10  ;;  %v1407_v54 = vunpack.c.h.bf16 %v1525_v36  ;;  %v1474_v55 = vunpack.c.l.bf16 %v1541_v41  ;;  %v487_v57 = vmax.f32 %v1402_v35, 0.0  ;;  %v663_v58 = vadd.f32 %v1907_v18, %v625_v49 }
  0x1a   : > { %1660 = vmatprep.subr.bf16.mxu0 %v1765_v13  ;;  %v723_v52 = vpack.c.bf16 %v692_v43, %v691_v42  ;;  %1666 = vmatprep.mubr.bf16.mxu0 %v517_v37  ;;  %v1475_v59 = vunpack.c.h.bf16 %v1541_v41  ;;  %v488_v61 = vmax.f32 %v1403_v44, 0.0  ;;  %v664_v62 = vadd.f32 %v1907_v18, %v626_v53  ;;  %v1529_v41 = vld [vmem:[%s1888_s8 + $0x30] sm:$0xff]  }
  0x1b   : > { %v489_v63 = vmax.f32 %v1406_v50, 0.0  ;;  %v627_v0 = vmul.f32 %v1474_v55, %v1897_v12  ;;  %v695_v1 = vmax.f32 %v663_v58, 0.0  ;;  %v490_v2 = vmax.f32 %v1407_v54, 0.0  ;;  %v1530_v54 = vld [vmem:[%s1888_s8 + $0x38] sm:$0xff]  }
  0x1c   : > { %1613 = vmatpush3.bf16.msra.mxu1 %v1764_v10  ;;  %1618 = vmatprep.mubr.bf16.mxu1 %v723_v52  ;;  %v628_v3 = vmul.f32 %v1475_v59, %v1897_v12  ;;  %v1478_v4 = vunpack.c.l.bf16 %v1542_v56  ;;  %v724_v6 = vpack.c.bf16 %v694_v48, %v693_v47  ;;  %v696_v7 = vmax.f32 %v664_v62, 0.0  ;;  %v1546_v59 = vld [vmem:[%s1883_s29 + $0x40] sm:$0xff]  }
  0x1d   : > { %1661 = vmatpush3.bf16.msra.mxu0 %v1765_v13  ;;  %1614 = vmatprep.subr.bf16.mxu1 %v1766_v27  ;;  %v1410_v8 = vunpack.c.l.bf16 %v1526_v60  ;;  %v1411_v9 = vunpack.c.h.bf16 %v1526_v60  ;;  %v665_v10 = vadd.f32 %v1907_v18, %v627_v0  ;;  %v1479_v13 = vunpack.c.h.bf16 %v1542_v56 }
  0x1e   : > { %1662 = vmatprep.subr.bf16.mxu0 %v1767_v32  ;;  %v666_v11 = vadd.f32 %v1907_v18, %v628_v3  ;;  %v629_v14 = vmul.f32 %v1478_v4, %v1897_v12  ;;  %v518_v16 = vpack.c.bf16 %v488_v61, %v487_v57  ;;  %v725_v17 = vpack.c.bf16 %v696_v7, %v695_v1 }
  0x1f   : > { %v1414_v19 = vunpack.c.l.bf16 %v1527_v5  ;;  %v1415_v20 = vunpack.c.h.bf16 %v1527_v5  ;;  %v519_v21 = vpack.c.bf16 %v490_v2, %v489_v63  ;;  %v630_v22 = vmul.f32 %v1479_v13, %v1897_v12 }
  0x20   : > { %1615 = vmatpush3.bf16.msra.mxu1 %v1766_v27  ;;  %v667_v23 = vadd.f32 %v1907_v18, %v629_v14  ;;  %v491_v24 = vmax.f32 %v1410_v8, 0.0  ;;  %v492_v25 = vmax.f32 %v1411_v9, 0.0  ;;  %v1482_v26 = vunpack.c.l.bf16 %v1543_v15  ;;  %v1547_v8 = vld [vmem:[%s1883_s29 + $0x48] sm:$0xff]  }
  0x21   : > { %1663 = vmatpush3.bf16.msra.mxu0 %v1767_v32  ;;  %1616 = vmatprep.subr.bf16.mxu1 %v1768_v46  ;;  %v1483_v27 = vunpack.c.h.bf16 %v1543_v15  ;;  %v697_v29 = vmax.f32 %v665_v10, 0.0  ;;  %v698_v30 = vmax.f32 %v666_v11, 0.0  ;;  %v668_v31 = vadd.f32 %v1907_v18, %v630_v22 }
  0x22   : > { %1664 = vmatprep.subr.bf16.mxu0 %v1769_v51  ;;  %v493_v32 = vmax.f32 %v1414_v19, 0.0  ;;  %v699_v34 = vmax.f32 %v667_v23, 0.0  ;;  %v494_v35 = vmax.f32 %v1415_v20, 0.0  ;;  %v631_v36 = vmul.f32 %v1482_v26, %v1897_v12 }
  0x23   : > { %v632_v37 = vmul.f32 %v1483_v27, %v1897_v12  ;;  %v700_v38 = vmax.f32 %v668_v31, 0.0  ;;  %v1486_v39 = vunpack.c.l.bf16 %v1544_v28  ;;  %v1487_v40 = vunpack.c.h.bf16 %v1544_v28  ;;  %v1548_v31 = vld [vmem:[%s1883_s29 + $0x50] sm:$0xff]  }
  0x24   : > { %1617 = vmatpush3.bf16.msra.mxu1 %v1768_v46  ;;  %v669_v42 = vadd.f32 %v1907_v18, %v631_v36  ;;  %v1418_v44 = vunpack.c.l.bf16 %v1528_v33  ;;  %v726_v46 = vpack.c.bf16 %v698_v30, %v697_v29  ;;  %v1419_v47 = vunpack.c.h.bf16 %v1528_v33 }
  0x25   : > { %1665 = vmatpush3.bf16.msra.mxu0 %v1769_v51  ;;  %v670_v43 = vadd.f32 %v1907_v18, %v632_v37  ;;  %v633_v48 = vmul.f32 %v1486_v39, %v1897_v12  ;;  %v634_v49 = vmul.f32 %v1487_v40, %v1897_v12  ;;  %v520_v50 = vpack.c.bf16 %v492_v25, %v491_v24 }
  0x26   : > { %v727_v51 = vpack.c.bf16 %v700_v38, %v699_v34  ;;  %v521_v52 = vpack.c.bf16 %v494_v35, %v493_v32  ;;  %v1422_v53 = vunpack.c.l.bf16 %v1529_v41  ;;  %v1423_v57 = vunpack.c.h.bf16 %v1529_v41  ;;  %v1532_v35 = vld [vmem:[%s1888_s8 + $0x48] sm:$0xff]  }
  0x27   : > { %1619 = vmatmul.mubr.bf16.vlgmr.msra.gmra.mrb[0].mxu1 %v724_v6  ;;  %v671_v55 = vadd.f32 %v1907_v18, %v633_v48  ;;  %v672_v56 = vadd.f32 %v1907_v18, %v634_v49  ;;  %v1490_v58 = vunpack.c.l.bf16 %v1545_v45  ;;  %v701_v60 = vmax.f32 %v669_v42, 0.0  ;;  %v1533_v42 = vld [vmem:[%s1888_s8 + $0x50] sm:$0xff]  }
  0x28   : > { %1667 = vmatmul.mubr.bf16.vlgmr.msra.gmra.mrb[0].mxu0 %v518_v16  ;;  %1622 = vmatprep.mubr.bf16.mxu1 %v725_v17  ;;  %v702_v61 = vmax.f32 %v670_v43, 0.0  ;;  %v495_v62 = vmax.f32 %v1418_v44, 0.0  ;;  %v1491_v63 = vunpack.c.h.bf16 %v1545_v45  ;;  %v496_v0 = vmax.f32 %v1419_v47, 0.0  ;;  %v1531_v17 = vld [vmem:[%s1888_s8 + $0x40] sm:$0xff]   ;;  %v1549_v43 = vld [vmem:[%s1883_s29 + $0x58] sm:$0xff]  }
  0x29   : > { %1670 = vmatprep.mubr.bf16.mxu0 %v519_v21  ;;  %v635_v1 = vmul.f32 %v1490_v58, %v1897_v12  ;;  %v1426_v2 = vunpack.c.l.bf16 %v1530_v54  ;;  %v1427_v3 = vunpack.c.h.bf16 %v1530_v54  ;;  %v703_v4 = vmax.f32 %v671_v55, 0.0 }
  0x2a   : > { %v704_v5 = vmax.f32 %v672_v56, 0.0  ;;  %v636_v6 = vmul.f32 %v1491_v63, %v1897_v12  ;;  %v1494_v7 = vunpack.c.l.bf16 %v1546_v59  ;;  %v497_v9 = vmax.f32 %v1422_v53, 0.0  ;;  %v1550_v56 = vld [vmem:[%s1883_s29 + $0x60] sm:$0xff]  }
  0x2b   : > { %v498_v10 = vmax.f32 %v1423_v57, 0.0  ;;  %v1495_v11 = vunpack.c.h.bf16 %v1546_v59  ;;  %v728_v13 = vpack.c.bf16 %v702_v61, %v701_v60  ;;  %v673_v14 = vadd.f32 %v1907_v18, %v635_v1 }
  0x2c   : > { %v674_v15 = vadd.f32 %v1907_v18, %v636_v6  ;;  %v637_v16 = vmul.f32 %v1494_v7, %v1897_v12  ;;  %v499_v19 = vmax.f32 %v1426_v2, 0.0  ;;  %v500_v20 = vmax.f32 %v1427_v3, 0.0  ;;  %v1534_v2 = vld [vmem:[%s1888_s8 + $0x58] sm:$0xff]  }
  0x2d   : > { %v638_v21 = vmul.f32 %v1495_v11, %v1897_v12  ;;  %v1498_v22 = vunpack.c.l.bf16 %v1547_v8  ;;  %v522_v23 = vpack.c.bf16 %v496_v0, %v495_v62  ;;  %v729_v24 = vpack.c.bf16 %v704_v5, %v703_v4 }
  0x2e   : > { %v675_v25 = vadd.f32 %v1907_v18, %v637_v16  ;;  %v1499_v26 = vunpack.c.h.bf16 %v1547_v8  ;;  %v523_v27 = vpack.c.bf16 %v498_v10, %v497_v9  ;;  %v1430_v29 = vunpack.c.l.bf16 %v1531_v17 }
  0x2f   : > { %1623 = vmatmul.mubr.bf16.gmra.mrb[4].mxu1 %v726_v46  ;;  %v676_v28 = vadd.f32 %v1907_v18, %v638_v21  ;;  %v1431_v30 = vunpack.c.h.bf16 %v1531_v17  ;;  %v705_v32 = vmax.f32 %v673_v14, 0.0  ;;  %v706_v33 = vmax.f32 %v674_v15, 0.0  ;;  %v1552_v21 = vld [vmem:[%s1883_s29 + $0x70] sm:$0xff]  }
  0x30   : > { %1671 = vmatmul.mubr.bf16.gmra.mrb[4].mxu0 %v520_v50  ;;  %1626 = vmatprep.mubr.bf16.mxu1 %v727_v51  ;;  %v639_v34 = vmul.f32 %v1498_v22, %v1897_v12  ;;  %v524_v36 = vpack.c.bf16 %v500_v20, %v499_v19  ;;  %v640_v37 = vmul.f32 %v1499_v26, %v1897_v12  ;;  %v707_v38 = vmax.f32 %v675_v25, 0.0  ;;  %v1535_v20 = vld [vmem:[%s1888_s8 + $0x60] sm:$0xff]  }
  0x31   : > { %1674 = vmatprep.mubr.bf16.mxu0 %v521_v52  ;;  %v708_v39 = vmax.f32 %v676_v28, 0.0  ;;  %v1502_v40 = vunpack.c.l.bf16 %v1548_v31  ;;  %v1503_v41 = vunpack.c.h.bf16 %v1548_v31  ;;  %v501_v44 = vmax.f32 %v1430_v29, 0.0 }
  0x32   : > { %v502_v45 = vmax.f32 %v1431_v30, 0.0  ;;  %v1434_v46 = vunpack.c.l.bf16 %v1532_v35  ;;  %v1435_v47 = vunpack.c.h.bf16 %v1532_v35  ;;  %v730_v48 = vpack.c.bf16 %v706_v33, %v705_v32 }
  0x33   : > { %v677_v49 = vadd.f32 %v1907_v18, %v639_v34  ;;  %v641_v50 = vmul.f32 %v1502_v40, %v1897_v12  ;;  %v642_v51 = vmul.f32 %v1503_v41, %v1897_v12  ;;  %v678_v52 = vadd.f32 %v1907_v18, %v640_v37  ;;  %v1536_v40 = vld [vmem:[%s1888_s8 + $0x68] sm:$0xff]  }
  0x34   : > { %v1438_v53 = vunpack.c.l.bf16 %v1533_v42  ;;  %v1506_v54 = vunpack.c.l.bf16 %v1549_v43  ;;  %v1507_v55 = vunpack.c.h.bf16 %v1549_v43  ;;  %v731_v57 = vpack.c.bf16 %v708_v39, %v707_v38 }
  0x35   : > { %v679_v58 = vadd.f32 %v1907_v18, %v641_v50  ;;  %v680_v59 = vadd.f32 %v1907_v18, %v642_v51  ;;  %v1439_v60 = vunpack.c.h.bf16 %v1533_v42  ;;  %v525_v61 = vpack.c.bf16 %v502_v45, %v501_v44  ;;  %v1553_v45 = vld [vmem:[%s1883_s29 + $0x78] sm:$0xff]   ;;  %v1537_v51 = vld [vmem:[%s1888_s8 + $0x70] sm:$0xff]  }
  0x36   : > { %v503_v62 = vmax.f32 %v1434_v46, 0.0  ;;  %v504_v63 = vmax.f32 %v1435_v47, 0.0  ;;  %v643_v0 = vmul.f32 %v1506_v54, %v1897_v12  ;;  %v644_v1 = vmul.f32 %v1507_v55, %v1897_v12 }
  0x37   : > { %1627 = vmatmul.mubr.bf16.gmra.mrb[8].mxu1 %v728_v13  ;;  %v1510_v3 = vunpack.c.l.bf16 %v1550_v56  ;;  %v709_v4 = vmax.f32 %v677_v49, 0.0  ;;  %v710_v5 = vmax.f32 %v678_v52, 0.0  ;;  %v505_v6 = vmax.f32 %v1438_v53, 0.0  ;;  %v1551_v13 = vld [vmem:[%s1883_s29 + $0x68] sm:$0xff]   ;;  %s1375_s29 = sshll.u32 %s2073_s27, 3 }
  0x38   : > { %1675 = vmatmul.mubr.bf16.gmra.mrb[8].mxu0 %v522_v23  ;;  %1630 = vmatprep.mubr.bf16.mxu1 %v729_v24  ;;  %v1511_v7 = vunpack.c.h.bf16 %v1550_v56  ;;  %v711_v8 = vmax.f32 %v679_v58, 0.0  ;;  %v712_v9 = vmax.f32 %v680_v59, 0.0  ;;  %v506_v10 = vmax.f32 %v1439_v60, 0.0 }
  0x39   : > { %1678 = vmatprep.mubr.bf16.mxu0 %v523_v27  ;;  %v645_v11 = vmul.f32 %v1510_v3, %v1897_v12  ;;  %v1442_v14 = vunpack.c.l.bf16 %v1534_v2  ;;  %v681_v16 = vadd.f32 %v1907_v18, %v643_v0  ;;  %v682_v17 = vadd.f32 %v1907_v18, %v644_v1 }
  0x3a   : > { %v646_v15 = vmul.f32 %v1511_v7, %v1897_v12  ;;  %v1443_v19 = vunpack.c.h.bf16 %v1534_v2  ;;  %v732_v22 = vpack.c.bf16 %v710_v5, %v709_v4  ;;  %v526_v23 = vpack.c.bf16 %v504_v63, %v503_v62 }
  0x3b   : > { %v1514_v24 = vunpack.c.l.bf16 %v1551_v13  ;;  %v1515_v25 = vunpack.c.h.bf16 %v1551_v13  ;;  %v733_v26 = vpack.c.bf16 %v712_v9, %v711_v8  ;;  %v527_v27 = vpack.c.bf16 %v506_v10, %v505_v6  ;;  %v1538_v9 = vld [vmem:[%s1888_s8 + $0x78] sm:$0xff]   ;;  %s2018_s8 = scalar_lea.vmem %s2067_s6, %s1375_s29 }
  0x3c   : > { %v683_v28 = vadd.f32 %v1907_v18, %v645_v11  ;;  %v684_v29 = vadd.f32 %v1907_v18, %v646_v15  ;;  %v507_v30 = vmax.f32 %v1442_v14, 0.0  ;;  %v1446_v31 = vunpack.c.l.bf16 %v1535_v20 }
  0x3d   : > { %v1447_v32 = vunpack.c.h.bf16 %v1535_v20  ;;  %v1518_v33 = vunpack.c.l.bf16 %v1552_v21  ;;  %v713_v34 = vmax.f32 %v681_v16, 0.0  ;;  %v714_v35 = vmax.f32 %v682_v17, 0.0 }
  0x3e   : > { %v1519_v37 = vunpack.c.h.bf16 %v1552_v21  ;;  %v647_v38 = vmul.f32 %v1514_v24, %v1897_v12  ;;  %v648_v39 = vmul.f32 %v1515_v25, %v1897_v12  ;;  %v715_v41 = vmax.f32 %v683_v28, 0.0 }
  0x3f   : > { %1631 = vmatmul.mubr.bf16.gmra.mrb[12].mxu1 %v730_v48  ;;  %v716_v42 = vmax.f32 %v684_v29, 0.0  ;;  %v649_v43 = vmul.f32 %v1518_v33, %v1897_v12  ;;  %v509_v46 = vmax.f32 %v1446_v31, 0.0  ;;  %v510_v47 = vmax.f32 %v1447_v32, 0.0 }
  0x40   : > { %1679 = vmatmul.mubr.bf16.gmra.mrb[12].mxu0 %v524_v36  ;;  %1634 = vmatprep.mubr.bf16.mxu1 %v731_v57  ;;  %v508_v36 = vmax.f32 %v1443_v19, 0.0  ;;  %v650_v44 = vmul.f32 %v1519_v37, %v1897_v12  ;;  %v734_v48 = vpack.c.bf16 %v714_v35, %v713_v34  ;;  %v1450_v50 = vunpack.c.l.bf16 %v1536_v40 }
  0x41   : > { %1682 = vmatprep.mubr.bf16.mxu0 %v525_v61  ;;  %v685_v52 = vadd.f32 %v1907_v18, %v647_v38  ;;  %v686_v53 = vadd.f32 %v1907_v18, %v648_v39  ;;  %v1522_v54 = vunpack.c.l.bf16 %v1553_v45  ;;  %v1523_v55 = vunpack.c.h.bf16 %v1553_v45 }
  0x42   : > { %v528_v49 = vpack.c.bf16 %v508_v36, %v507_v30  ;;  %v735_v56 = vpack.c.bf16 %v716_v42, %v715_v41  ;;  %v1451_v57 = vunpack.c.h.bf16 %v1536_v40  ;;  %v687_v58 = vadd.f32 %v1907_v18, %v649_v43 }
  0x43   : > { %v688_v59 = vadd.f32 %v1907_v18, %v650_v44  ;;  %v529_v60 = vpack.c.bf16 %v510_v47, %v509_v46  ;;  %v1454_v61 = vunpack.c.l.bf16 %v1537_v51  ;;  %v1455_v62 = vunpack.c.h.bf16 %v1537_v51 }
  0x44   : > { %v717_v63 = vmax.f32 %v685_v52, 0.0  ;;  %v718_v0 = vmax.f32 %v686_v53, 0.0  ;;  %v651_v1 = vmul.f32 %v1522_v54, %v1897_v12  ;;  %v652_v2 = vmul.f32 %v1523_v55, %v1897_v12 }
  0x45   : > { %v511_v3 = vmax.f32 %v1450_v50, 0.0  ;;  %v512_v4 = vmax.f32 %v1451_v57, 0.0  ;;  %v719_v5 = vmax.f32 %v687_v58, 0.0  ;;  %v720_v6 = vmax.f32 %v688_v59, 0.0 }
  0x46   : > { %v513_v7 = vmax.f32 %v1454_v61, 0.0  ;;  %v514_v8 = vmax.f32 %v1455_v62, 0.0  ;;  %v736_v10 = vpack.c.bf16 %v718_v0, %v717_v63  ;;  %v689_v11 = vadd.f32 %v1907_v18, %v651_v1 }
  0x47   : > { %1635 = vmatmul.mubr.bf16.gmra.mrb[16].mxu1 %v732_v22  ;;  %v690_v13 = vadd.f32 %v1907_v18, %v652_v2  ;;  %v530_v14 = vpack.c.bf16 %v512_v4, %v511_v3  ;;  %v737_v15 = vpack.c.bf16 %v720_v6, %v719_v5  ;;  %v1458_v16 = vunpack.c.l.bf16 %v1538_v9 }
  0x48   : > { %1683 = vmatmul.mubr.bf16.gmra.mrb[16].mxu0 %v526_v23  ;;  %1638 = vmatprep.mubr.bf16.mxu1 %v733_v26  ;;  %v1459_v12 = vunpack.c.h.bf16 %v1538_v9  ;;  %v531_v17 = vpack.c.bf16 %v514_v8, %v513_v7  ;;  %v721_v19 = vmax.f32 %v689_v11, 0.0 }
  0x49   : > { %1686 = vmatprep.mubr.bf16.mxu0 %v527_v27  ;;  %v722_v20 = vmax.f32 %v690_v13, 0.0  ;;  %v515_v21 = vmax.f32 %v1458_v16, 0.0 }
  0x4a   : > { %v516_v22 = vmax.f32 %v1459_v12, 0.0 }
  0x4b   : > { %v738_v23 = vpack.c.bf16 %v722_v20, %v721_v19 }
  0x4c   : > { %v532_v24 = vpack.c.bf16 %v516_v22, %v515_v21 }
  0x4f   : > { %1639 = vmatmul.mubr.bf16.gmra.mrb[20].mxu1 %v734_v48 }
  0x50   : > { %1687 = vmatmul.mubr.bf16.gmra.mrb[20].mxu0 %v528_v49  ;;  %1642 = vmatprep.mubr.bf16.mxu1 %v735_v56 }
  0x51   : > { %1690 = vmatprep.mubr.bf16.mxu0 %v529_v60 }
  0x57   : > { %1643 = vmatmul.mubr.bf16.gmra.mrb[24].mxu1 %v736_v10 }
  0x58   : > { %1691 = vmatmul.mubr.bf16.gmra.mrb[24].mxu0 %v530_v14  ;;  %1646 = vmatprep.mubr.bf16.mxu1 %v737_v15 }
  0x59   : > { %1694 = vmatprep.mubr.bf16.mxu0 %v531_v17 }
  0x5f   : > { %1647 = vmatmul.mubr.bf16.gmra.mrb[28].mxu1 %v738_v23 }
  0x60   : > { %1695 = vmatmul.mubr.bf16.gmra.mrb[28].mxu0 %v532_v24 }
  0xfa   : > { %v1620_v18 = vpop.f32.mrb[0].mxu1 }
  0xfb   : > { %v1668_v25 = vpop.f32.mrb[0].mxu0  ;;  %v837_v26 = vpop.f32.mrb[1].mxu1 }
  0xfc   : > { %v1055_v27 = vadd.f32 %v1668_v25, %v1620_v18  ;;  %v1046_v28 = vpop.f32.mrb[1].mxu0  ;;  %v1621_v29 = vpop.f32.mrb[2].mxu1 }
  0xfd   : > { %v1047_v30 = vadd.f32 %v1046_v28, %v837_v26  ;;  %v1669_v31 = vpop.f32.mrb[2].mxu0  ;;  %v840_v32 = vpop.f32.mrb[3].mxu1 }
  0xfe   : > { %1175 = vst [vmem:[%s2018_s8 + $0x10] sm:$0xff] %v1055_v27  ;;  %v1058_v33 = vadd.f32 %v1669_v31, %v1621_v29  ;;  %v1049_v34 = vpop.f32.mrb[3].mxu0 }
  0xff   : > { %1173 = vst [vmem:[%s2018_s8] sm:$0xff] %v1047_v30  ;;  %v1050_v35 = vadd.f32 %v1049_v34, %v840_v32 }
 0x100   : > { %1176 = vst [vmem:[%s2018_s8 + $0x18] sm:$0xff] %v1058_v33 }
 0x101   : > { %1174 = vst [vmem:[%s2018_s8 + $0x8] sm:$0xff] %v1050_v35 }
 0x102   : > { %v1624_v36 = vpop.f32.mrb[4].mxu1 }
 0x103   : > { %v1672_v37 = vpop.f32.mrb[4].mxu0  ;;  %v853_v38 = vpop.f32.mrb[5].mxu1 }
 0x104   : > { %v1071_v39 = vadd.f32 %v1672_v37, %v1624_v36  ;;  %v1062_v40 = vpop.f32.mrb[5].mxu0  ;;  %v1625_v41 = vpop.f32.mrb[6].mxu1 }
 0x105   : > { %v1063_v42 = vadd.f32 %v1062_v40, %v853_v38  ;;  %v1673_v43 = vpop.f32.mrb[6].mxu0  ;;  %v856_v44 = vpop.f32.mrb[7].mxu1 }
 0x106   : > { %1179 = vst [vmem:[%s2018_s8 + $0x30] sm:$0xff] %v1071_v39  ;;  %v1074_v45 = vadd.f32 %v1673_v43, %v1625_v41  ;;  %v1065_v46 = vpop.f32.mrb[7].mxu0 }
 0x107   : > { %1177 = vst [vmem:[%s2018_s8 + $0x20] sm:$0xff] %v1063_v42  ;;  %v1066_v47 = vadd.f32 %v1065_v46, %v856_v44 }
 0x108   : > { %1180 = vst [vmem:[%s2018_s8 + $0x38] sm:$0xff] %v1074_v45 }
 0x109   : > { %1178 = vst [vmem:[%s2018_s8 + $0x28] sm:$0xff] %v1066_v47 }
 0x10a   : > { %v1628_v48 = vpop.f32.mrb[8].mxu1 }
 0x10b   : > { %v1676_v49 = vpop.f32.mrb[8].mxu0  ;;  %v869_v50 = vpop.f32.mrb[9].mxu1 }
 0x10c   : > { %v1087_v51 = vadd.f32 %v1676_v49, %v1628_v48  ;;  %v1078_v52 = vpop.f32.mrb[9].mxu0  ;;  %v1629_v53 = vpop.f32.mrb[10].mxu1 }
 0x10d   : > { %v1079_v54 = vadd.f32 %v1078_v52, %v869_v50  ;;  %v1677_v55 = vpop.f32.mrb[10].mxu0  ;;  %v872_v56 = vpop.f32.mrb[11].mxu1 }
 0x10e   : > { %1183 = vst [vmem:[%s2018_s8 + $0x50] sm:$0xff] %v1087_v51  ;;  %v1090_v57 = vadd.f32 %v1677_v55, %v1629_v53  ;;  %v1081_v58 = vpop.f32.mrb[11].mxu0 }
 0x10f   : > { %1181 = vst [vmem:[%s2018_s8 + $0x40] sm:$0xff] %v1079_v54  ;;  %v1082_v59 = vadd.f32 %v1081_v58, %v872_v56 }
 0x110   : > { %1184 = vst [vmem:[%s2018_s8 + $0x58] sm:$0xff] %v1090_v57 }
 0x111   : > { %1182 = vst [vmem:[%s2018_s8 + $0x48] sm:$0xff] %v1082_v59 }
 0x112   : > { %v1632_v60 = vpop.f32.mrb[12].mxu1 }
 0x113   : > { %v1680_v61 = vpop.f32.mrb[12].mxu0  ;;  %v885_v62 = vpop.f32.mrb[13].mxu1 }
 0x114   : > { %v1103_v63 = vadd.f32 %v1680_v61, %v1632_v60  ;;  %v1094_v0 = vpop.f32.mrb[13].mxu0  ;;  %v1633_v1 = vpop.f32.mrb[14].mxu1 }
 0x115   : > { %v1095_v2 = vadd.f32 %v1094_v0, %v885_v62  ;;  %v1681_v3 = vpop.f32.mrb[14].mxu0  ;;  %v888_v4 = vpop.f32.mrb[15].mxu1 }
 0x116   : > { %1187 = vst [vmem:[%s2018_s8 + $0x70] sm:$0xff] %v1103_v63  ;;  %v1106_v5 = vadd.f32 %v1681_v3, %v1633_v1  ;;  %v1097_v6 = vpop.f32.mrb[15].mxu0 }
 0x117   : > { %1185 = vst [vmem:[%s2018_s8 + $0x60] sm:$0xff] %v1095_v2  ;;  %v1098_v7 = vadd.f32 %v1097_v6, %v888_v4 }
 0x118   : > { %1188 = vst [vmem:[%s2018_s8 + $0x78] sm:$0xff] %v1106_v5 }
 0x119   : > { %1186 = vst [vmem:[%s2018_s8 + $0x68] sm:$0xff] %v1098_v7 }
 0x11a   : > { %v1636_v8 = vpop.f32.mrb[16].mxu1 }
 0x11b   : > { %v1684_v9 = vpop.f32.mrb[16].mxu0  ;;  %v901_v10 = vpop.f32.mrb[17].mxu1 }
 0x11c   : > { %v1119_v11 = vadd.f32 %v1684_v9, %v1636_v8  ;;  %v1110_v13 = vpop.f32.mrb[17].mxu0  ;;  %v1637_v14 = vpop.f32.mrb[18].mxu1 }
 0x11d   : > { %v1111_v15 = vadd.f32 %v1110_v13, %v901_v10  ;;  %v1685_v16 = vpop.f32.mrb[18].mxu0  ;;  %v904_v12 = vpop.f32.mrb[19].mxu1 }
 0x11e   : > { %1191 = vst [vmem:[%s2018_s8 + $0x90] sm:$0xff] %v1119_v11  ;;  %v1122_v17 = vadd.f32 %v1685_v16, %v1637_v14  ;;  %v1113_v19 = vpop.f32.mrb[19].mxu0 }
 0x11f   : > { %1189 = vst [vmem:[%s2018_s8 + $0x80] sm:$0xff] %v1111_v15  ;;  %v1114_v20 = vadd.f32 %v1113_v19, %v904_v12 }
 0x120   : > { %1192 = vst [vmem:[%s2018_s8 + $0x98] sm:$0xff] %v1122_v17 }
 0x121   : > { %1190 = vst [vmem:[%s2018_s8 + $0x88] sm:$0xff] %v1114_v20 }
 0x122   : > { %v1640_v21 = vpop.f32.mrb[20].mxu1 }
 0x123   : > { %v1688_v22 = vpop.f32.mrb[20].mxu0  ;;  %v917_v23 = vpop.f32.mrb[21].mxu1 }
 0x124   : > { %v1135_v24 = vadd.f32 %v1688_v22, %v1640_v21  ;;  %v1126_v18 = vpop.f32.mrb[21].mxu0  ;;  %v1641_v25 = vpop.f32.mrb[22].mxu1 }
 0x125   : > { %v1127_v26 = vadd.f32 %v1126_v18, %v917_v23  ;;  %v1689_v27 = vpop.f32.mrb[22].mxu0  ;;  %v920_v28 = vpop.f32.mrb[23].mxu1 }
 0x126   : > { %1195 = vst [vmem:[%s2018_s8 + $0xb0] sm:$0xff] %v1135_v24  ;;  %v1138_v29 = vadd.f32 %v1689_v27, %v1641_v25  ;;  %v1129_v30 = vpop.f32.mrb[23].mxu0 }
 0x127   : > { %1193 = vst [vmem:[%s2018_s8 + $0xa0] sm:$0xff] %v1127_v26  ;;  %v1130_v31 = vadd.f32 %v1129_v30, %v920_v28 }
 0x128   : > { %1196 = vst [vmem:[%s2018_s8 + $0xb8] sm:$0xff] %v1138_v29 }
 0x129   : > { %1194 = vst [vmem:[%s2018_s8 + $0xa8] sm:$0xff] %v1130_v31 }
 0x12a   : > { %v1644_v32 = vpop.f32.mrb[24].mxu1 }
 0x12b   : > { %v1692_v33 = vpop.f32.mrb[24].mxu0  ;;  %v933_v34 = vpop.f32.mrb[25].mxu1 }
 0x12c   : > { %v1151_v35 = vadd.f32 %v1692_v33, %v1644_v32  ;;  %v1142_v36 = vpop.f32.mrb[25].mxu0  ;;  %v1645_v37 = vpop.f32.mrb[26].mxu1 }
 0x12d   : > { %v1143_v38 = vadd.f32 %v1142_v36, %v933_v34  ;;  %v1693_v39 = vpop.f32.mrb[26].mxu0  ;;  %v936_v40 = vpop.f32.mrb[27].mxu1 }
 0x12e   : > { %1199 = vst [vmem:[%s2018_s8 + $0xd0] sm:$0xff] %v1151_v35  ;;  %v1154_v41 = vadd.f32 %v1693_v39, %v1645_v37  ;;  %v1145_v42 = vpop.f32.mrb[27].mxu0 }
 0x12f   : > { %1197 = vst [vmem:[%s2018_s8 + $0xc0] sm:$0xff] %v1143_v38  ;;  %v1146_v43 = vadd.f32 %v1145_v42, %v936_v40 }
 0x130   : > { %1200 = vst [vmem:[%s2018_s8 + $0xd8] sm:$0xff] %v1154_v41 }
 0x131   : > { %1198 = vst [vmem:[%s2018_s8 + $0xc8] sm:$0xff] %v1146_v43 }
 0x132   : > { %v1648_v44 = vpop.f32.mrb[28].mxu1 }
 0x133   : > { %v1696_v45 = vpop.f32.mrb[28].mxu0  ;;  %v949_v46 = vpop.f32.mrb[29].mxu1 }
 0x134   : > { %v1167_v47 = vadd.f32 %v1696_v45, %v1648_v44  ;;  %v1158_v48 = vpop.f32.mrb[29].mxu0  ;;  %v1649_v49 = vpop.f32.mrb[30].mxu1 }
 0x135   : > { %v1159_v50 = vadd.f32 %v1158_v48, %v949_v46  ;;  %v1697_v51 = vpop.f32.mrb[30].mxu0  ;;  %v952_v52 = vpop.f32.mrb[31].mxu1 }
 0x136   : > { %1203 = vst [vmem:[%s2018_s8 + $0xf0] sm:$0xff] %v1167_v47  ;;  %v1170_v53 = vadd.f32 %v1697_v51, %v1649_v49  ;;  %v1161_v54 = vpop.f32.mrb[31].mxu0 }
 0x137   : > { %1201 = vst [vmem:[%s2018_s8 + $0xe0] sm:$0xff] %v1159_v50  ;;  %v1162_v55 = vadd.f32 %v1161_v54, %v952_v52 }
 0x138   : > { %1204 = vst [vmem:[%s2018_s8 + $0xf8] sm:$0xff] %v1170_v53 }
 0x139   : > { %1202 = vst [vmem:[%s2018_s8 + $0xe8] sm:$0xff] %v1162_v55 }
 0x13a PF: > { %s16_s23 = sadd.s32 1, %s1792_s23   ;;  %s2068_s21 = smov %s1788_s22 }
 0x13b   : > { %p13_p5 = scmp.ge.s32.totalorder %s16_s23, 10   ;;  %s2069_s22 = smov %s2071_s24 }
 0x13d   :  { %15 = sbr.rel (!%p13_p5) target bundleno = 2 (0x2), region = 89 }

// kernel: tile.6
= control target key start
LH: loop header
LB: loop body
LE: loop exit
PB: predicated region body
PF: predicated region fallthrough
CT: control target
= control target key end

     0   :  { %s40_s0 = inlined_call_operand.vmem [shape: f32[3], index: 0, kind: input, shape index: {}]   ;;  %s41_s1 = inlined_call_operand.vmem [shape: f32[32,3], index: 1, kind: output, shape index: {}]  }
   0x1   :  { %v4_v0 = vld [vmem:[%s40_s0] ss:$0 sm:$0xff] }
   0x2   :  { %5 = vst [vmem:[%s41_s1] sm:$0xff] %v4_v0  ;;  %12 = vst [vmem:[%s41_s1 + $0x8] sm:$0xff] %v4_v0 }
   0x3   :  { %13 = vst [vmem:[%s41_s1 + $0x10] sm:$0xff] %v4_v0  ;;  %14 = vst [vmem:[%s41_s1 + $0x18] sm:$0xff] %v4_v0 }

// kernel: tile.7
= control target key start
LH: loop header
LB: loop body
LE: loop exit
PB: predicated region body
PF: predicated region fallthrough
CT: control target
= control target key end

     0   :  { %s259_s10 = smov 93   ;;  %s260_s11 = smov 87   ;;  %vm3_vm0 = vcmask 23552   ;;  %vm9_vm1 = vcmask 786152   ;;  %vm15_vm2 = vcmask 761552   ;;  %vm21_vm3 = vcmask 736952   ;;  %s399_s0 = inlined_call_operand.vmem [shape: f32[32,3], index: 0, kind: input, shape index: {}]   ;;  %s400_s1 = inlined_call_operand.vmem [shape: f32[1,96], index: 1, kind: output, shape index: {}]  }
   0x1   :  { %v197_v0 = vld [vmem:[%s399_s0 + $0x1f] sm:$0x1]   ;;  %v199_v1 = vld [vmem:[%s399_s0 + $0x1d] sm:$0x1]   ;;  %v198_v2 = vld [vmem:[%s399_s0 + $0x1e] sm:$0x1]  }
   0x2   :  { %7 = vrot.lane.b32.xlu0 %v197_v0, %s259_s10  ;;  %19 = vrot.lane.b32.xlu1 %v199_v1, %s260_s11  ;;  %v200_v3 = vld [vmem:[%s399_s0 + $0x1c] sm:$0x1]   ;;  %s261_s16 = smov 90   ;;  %s262_s17 = smov 84   ;;  %v201_v4 = vld [vmem:[%s399_s0 + $0x1b] sm:$0x1]  }
   0x3   :  { %v202_v5 = vld [vmem:[%s399_s0 + $0x1a] sm:$0x1]   ;;  %s263_s22 = smov 81   ;;  %s264_s23 = smov 78   ;;  %v203_v6 = vld [vmem:[%s399_s0 + $0x19] sm:$0x1]  }
   0x4   :  { %v204_v7 = vld [vmem:[%s399_s0 + $0x18] sm:$0x1]   ;;  %s265_s28 = smov 75   ;;  %s266_s29 = smov 72   ;;  %v205_v8 = vld [vmem:[%s399_s0 + $0x17] sm:$0x1]  }
   0x5   :  { %v206_v9 = vld [vmem:[%s399_s0 + $0x16] sm:$0x1]   ;;  %v2_v10 = vld [vmem:[%s399_s0] sm:$0x1]   ;;  %s267_s7 = smov 69   ;;  %s268_s8 = smov 66  }
   0x6   :  { %13 = vrot.lane.b32.xlu0 %v198_v2, %s261_s16  ;;  %25 = vrot.lane.b32.xlu1 %v200_v3, %s262_s17  ;;  %4 = vst.msk [vmem:[#allocation0] sm:$0x1] %vm3_vm0, %v2_v10   ;;  %v207_v11 = vld [vmem:[%s399_s0 + $0x15] sm:$0x1]   ;;  %v208_v12 = vld [vmem:[%s399_s0 + $0x14] sm:$0x1]  }
   0x7   :  { %s269_s13 = smov 63   ;;  %s270_s14 = smov 60   ;;  %v209_v13 = vld [vmem:[%s399_s0 + $0x13] sm:$0x1]   ;;  %v210_v14 = vld [vmem:[%s399_s0 + $0x12] sm:$0x1]  }
   0x8   :  { %s271_s19 = smov 57   ;;  %s272_s20 = smov 54   ;;  %v211_v15 = vld [vmem:[%s399_s0 + $0x11] sm:$0x1]   ;;  %v212_v16 = vld [vmem:[%s399_s0 + $0x10] sm:$0x1]  }
   0x9   :  { %s273_s25 = smov 51   ;;  %s274_s26 = smov 48   ;;  %v213_v17 = vld [vmem:[%s399_s0 + $0xf] sm:$0x1]   ;;  %v214_v18 = vld [vmem:[%s399_s0 + $0xe] sm:$0x1]  }
   0xa   :  { %31 = vrot.lane.b32.xlu0 %v201_v4, %s263_s22  ;;  %37 = vrot.lane.b32.xlu1 %v202_v5, %s264_s23  ;;  %s275_s2 = smov 45   ;;  %s276_s3 = smov 42   ;;  %v215_v19 = vld [vmem:[%s399_s0 + $0xd] sm:$0x1]   ;;  %v216_v20 = vld [vmem:[%s399_s0 + $0xc] sm:$0x1]  }
   0xb   :  { %s278_s9 = smov 36   ;;  %v217_v21 = vld [vmem:[%s399_s0 + $0xb] sm:$0x1]   ;;  %v218_v22 = vld [vmem:[%s399_s0 + $0xa] sm:$0x1]   ;;  %s280_s15 = smov 30  }
   0xc   :  { %v219_v23 = vld [vmem:[%s399_s0 + $0x9] sm:$0x1]   ;;  %v220_v24 = vld [vmem:[%s399_s0 + $0x8] sm:$0x1]   ;;  %s282_s21 = smov 24   ;;  %s284_s27 = smov 18  }
   0xd   :  { %v221_v25 = vld [vmem:[%s399_s0 + $0x7] sm:$0x1]   ;;  %v222_v26 = vld [vmem:[%s399_s0 + $0x6] sm:$0x1]   ;;  %v223_v27 = vld [vmem:[%s399_s0 + $0x5] sm:$0x1]  }
   0xe   :  { %43 = vrot.lane.b32.xlu0 %v203_v6, %s265_s28  ;;  %49 = vrot.lane.b32.xlu1 %v204_v7, %s266_s29  ;;  %v224_v28 = vld [vmem:[%s399_s0 + $0x4] sm:$0x1]   ;;  %s286_s4 = smov 12   ;;  %v225_v29 = vld [vmem:[%s399_s0 + $0x3] sm:$0x1]   ;;  %s288_s10 = smov 6  }
   0xf   :  { %v226_v30 = vld [vmem:[%s399_s0 + $0x2] sm:$0x1]   ;;  %v227_v31 = vld [vmem:[%s399_s0 + $0x1] sm:$0x1]   ;;  %s289_s0 = smov 3   ;;  %vm27_vm4 = vcmask 712352  }
  0x10   :  { %vm33_vm5 = vcmask 687752   ;;  %vm39_vm6 = vcmask 663152   ;;  %vm45_vm7 = vcmask 638552   ;;  %vm51_vm8 = vcmask 613952  }
  0x11   :  { %vm57_vm9 = vcmask 589352   ;;  %vm63_vm10 = vcmask 564752   ;;  %vm69_vm11 = vcmask 540152   ;;  %vm75_vm12 = vcmask 515552  }
  0x12   :  { %55 = vrot.lane.b32.xlu0 %v205_v8, %s267_s7  ;;  %61 = vrot.lane.b32.xlu1 %v206_v9, %s268_s8  ;;  %s277_s8 = smov 39   ;;  %vm81_vm13 = vcmask 490952   ;;  %vm87_vm14 = vcmask 466352   ;;  %vm93_vm15 = vcmask 441752   ;;  %vm99_vm0 = vcmask 417152  }
  0x16   :  { %67 = vrot.lane.b32.xlu0 %v207_v11, %s269_s13  ;;  %73 = vrot.lane.b32.xlu1 %v208_v12, %s270_s14  ;;  %s279_s14 = smov 33  }
  0x1a   :  { %79 = vrot.lane.b32.xlu0 %v209_v13, %s271_s19  ;;  %85 = vrot.lane.b32.xlu1 %v210_v14, %s272_s20  ;;  %s281_s20 = smov 27  }
  0x1e   :  { %91 = vrot.lane.b32.xlu0 %v211_v15, %s273_s25  ;;  %97 = vrot.lane.b32.xlu1 %v212_v16, %s274_s26  ;;  %s283_s26 = smov 21  }
  0x22   :  { %103 = vrot.lane.b32.xlu0 %v213_v17, %s275_s2  ;;  %109 = vrot.lane.b32.xlu1 %v214_v18, %s276_s3  ;;  %s285_s3 = smov 15  }
  0x26   :  { %115 = vrot.lane.b32.xlu0 %v215_v19, %s277_s8  ;;  %121 = vrot.lane.b32.xlu1 %v216_v20, %s278_s9  ;;  %s287_s9 = smov 9  }
  0x2a   :  { %127 = vrot.lane.b32.xlu0 %v217_v21, %s279_s14  ;;  %133 = vrot.lane.b32.xlu1 %v218_v22, %s280_s15 }
  0x2e   :  { %139 = vrot.lane.b32.xlu0 %v219_v23, %s281_s20  ;;  %145 = vrot.lane.b32.xlu1 %v220_v24, %s282_s21 }
  0x32   :  { %151 = vrot.lane.b32.xlu0 %v221_v25, %s283_s26  ;;  %157 = vrot.lane.b32.xlu1 %v222_v26, %s284_s27 }
  0x36   :  { %163 = vrot.lane.b32.xlu0 %v223_v27, %s285_s3  ;;  %169 = vrot.lane.b32.xlu1 %v224_v28, %s286_s4 }
  0x3a   :  { %175 = vrot.lane.b32.xlu0 %v225_v29, %s287_s9  ;;  %181 = vrot.lane.b32.xlu1 %v226_v30, %s288_s10 }
  0x3e   :  { %187 = vrot.lane.b32.xlu0 %v227_v31, %s289_s0 }
  0x74   :  { %v8_v32 = vpop.permute.xlu0 %7   ;;  %v20_v33 = vpop.permute.xlu1 %19  }
  0x75   :  { %10 = vst.msk [vmem:[#allocation0] sm:$0x1] %vm9_vm1, %v8_v32   ;;  %vm105_vm1 = vcmask 392552  }
  0x78   :  { %v14_v34 = vpop.permute.xlu0 %13   ;;  %v26_v35 = vpop.permute.xlu1 %25  }
  0x79   :  { %16 = vst.msk [vmem:[#allocation0] sm:$0x1] %vm15_vm2, %v14_v34   ;;  %vm111_vm2 = vcmask 367952  }
  0x7a   :  { %22 = vst.msk [vmem:[#allocation0] sm:$0x1] %vm21_vm3, %v20_v33   ;;  %vm117_vm3 = vcmask 343352  }
  0x7b   :  { %28 = vst.msk [vmem:[#allocation0] sm:$0x1] %vm27_vm4, %v26_v35   ;;  %vm123_vm4 = vcmask 318752  }
  0x7c   :  { %v32_v36 = vpop.permute.xlu0 %31   ;;  %v38_v37 = vpop.permute.xlu1 %37  }
  0x7d   :  { %34 = vst.msk [vmem:[#allocation0] sm:$0x1] %vm33_vm5, %v32_v36   ;;  %vm129_vm5 = vcmask 294152  }
  0x7e   :  { %40 = vst.msk [vmem:[#allocation0] sm:$0x1] %vm39_vm6, %v38_v37   ;;  %vm135_vm6 = vcmask 269552  }
  0x80   :  { %v44_v38 = vpop.permute.xlu0 %43   ;;  %v50_v39 = vpop.permute.xlu1 %49  }
  0x81   :  { %46 = vst.msk [vmem:[#allocation0] sm:$0x1] %vm45_vm7, %v44_v38   ;;  %vm141_vm7 = vcmask 244952  }
  0x82   :  { %52 = vst.msk [vmem:[#allocation0] sm:$0x1] %vm51_vm8, %v50_v39   ;;  %vm147_vm8 = vcmask 220352  }
  0x84   :  { %v56_v40 = vpop.permute.xlu0 %55   ;;  %v62_v41 = vpop.permute.xlu1 %61  }
  0x85   :  { %58 = vst.msk [vmem:[#allocation0] sm:$0x1] %vm57_vm9, %v56_v40   ;;  %vm153_vm9 = vcmask 195752  }
  0x86   :  { %64 = vst.msk [vmem:[#allocation0] sm:$0x1] %vm63_vm10, %v62_v41   ;;  %vm159_vm10 = vcmask 171152  }
  0x88   :  { %v68_v42 = vpop.permute.xlu0 %67   ;;  %v74_v43 = vpop.permute.xlu1 %73  }
  0x89   :  { %70 = vst.msk [vmem:[#allocation0] sm:$0x1] %vm69_vm11, %v68_v42   ;;  %vm165_vm11 = vcmask 146552  }
  0x8a   :  { %76 = vst.msk [vmem:[#allocation0] sm:$0x1] %vm75_vm12, %v74_v43   ;;  %vm171_vm12 = vcmask 121952  }
  0x8c   :  { %v80_v44 = vpop.permute.xlu0 %79   ;;  %v86_v45 = vpop.permute.xlu1 %85  }
  0x8d   :  { %82 = vst.msk [vmem:[#allocation0] sm:$0x1] %vm81_vm13, %v80_v44   ;;  %vm177_vm13 = vcmask 97352  }
  0x8e   :  { %88 = vst.msk [vmem:[#allocation0] sm:$0x1] %vm87_vm14, %v86_v45   ;;  %vm183_vm14 = vcmask 72752  }
  0x90   :  { %v92_v46 = vpop.permute.xlu0 %91   ;;  %v98_v47 = vpop.permute.xlu1 %97  }
  0x91   :  { %94 = vst.msk [vmem:[#allocation0] sm:$0x1] %vm93_vm15, %v92_v46   ;;  %vm189_vm15 = vcmask 48152  }
  0x92   :  { %100 = vst.msk [vmem:[#allocation0] sm:$0x1] %vm99_vm0, %v98_v47  }
  0x94   :  { %v104_v48 = vpop.permute.xlu0 %103   ;;  %v110_v49 = vpop.permute.xlu1 %109  }
  0x95   :  { %106 = vst.msk [vmem:[#allocation0] sm:$0x1] %vm105_vm1, %v104_v48  }
  0x96   :  { %112 = vst.msk [vmem:[#allocation0] sm:$0x1] %vm111_vm2, %v110_v49  }
  0x98   :  { %v116_v50 = vpop.permute.xlu0 %115   ;;  %v122_v51 = vpop.permute.xlu1 %121  }
  0x99   :  { %118 = vst.msk [vmem:[#allocation0] sm:$0x1] %vm117_vm3, %v116_v50  }
  0x9a   :  { %124 = vst.msk [vmem:[#allocation0] sm:$0x1] %vm123_vm4, %v122_v51  }
  0x9c   :  { %v128_v52 = vpop.permute.xlu0 %127   ;;  %v134_v53 = vpop.permute.xlu1 %133  }
  0x9d   :  { %130 = vst.msk [vmem:[#allocation0] sm:$0x1] %vm129_vm5, %v128_v52  }
  0x9e   :  { %136 = vst.msk [vmem:[#allocation0] sm:$0x1] %vm135_vm6, %v134_v53  }
  0xa0   :  { %v140_v54 = vpop.permute.xlu0 %139   ;;  %v146_v55 = vpop.permute.xlu1 %145  }
  0xa1   :  { %142 = vst.msk [vmem:[#allocation0] sm:$0x1] %vm141_vm7, %v140_v54  }
  0xa2   :  { %148 = vst.msk [vmem:[#allocation0] sm:$0x1] %vm147_vm8, %v146_v55  }
  0xa4   :  { %v152_v56 = vpop.permute.xlu0 %151   ;;  %v158_v57 = vpop.permute.xlu1 %157  }
  0xa5   :  { %154 = vst.msk [vmem:[#allocation0] sm:$0x1] %vm153_vm9, %v152_v56  }
  0xa6   :  { %160 = vst.msk [vmem:[#allocation0] sm:$0x1] %vm159_vm10, %v158_v57  }
  0xa8   :  { %v164_v58 = vpop.permute.xlu0 %163   ;;  %v170_v59 = vpop.permute.xlu1 %169  }
  0xa9   :  { %166 = vst.msk [vmem:[#allocation0] sm:$0x1] %vm165_vm11, %v164_v58  }
  0xaa   :  { %172 = vst.msk [vmem:[#allocation0] sm:$0x1] %vm171_vm12, %v170_v59  }
  0xac   :  { %v176_v60 = vpop.permute.xlu0 %175   ;;  %v182_v61 = vpop.permute.xlu1 %181  }
  0xad   :  { %178 = vst.msk [vmem:[#allocation0] sm:$0x1] %vm177_vm13, %v176_v60  }
  0xae   :  { %184 = vst.msk [vmem:[#allocation0] sm:$0x1] %vm183_vm14, %v182_v61  }
  0xb0   :  { %v188_v62 = vpop.permute.xlu0 %187  }
  0xb1   :  { %190 = vst.msk [vmem:[#allocation0] sm:$0x1] %vm189_vm15, %v188_v62  }
  0xb8   :  { %v194_v63 = vld [vmem:[#allocation0] sm:$0x1] }
  0xb9   :  { %196 = vst [vmem:[%s400_s1] sm:$0x1] %v194_v63 }

// kernel: unet_apply.35
= control target key start
LH: loop header
LB: loop body
LE: loop exit
PB: predicated region body
PF: predicated region fallthrough
CT: control target
= control target key end

     0   :  { %vm114_vm0 = vcmask 785408   ;;  %s492_s0 = inlined_call_operand.vmem [shape: f32[256,96], index: 0, kind: input, shape index: {}]   ;;  %s493_s1 = inlined_call_operand.vmem [shape: f32[1,96], index: 1, kind: input, shape index: {}]   ;;  %s494_s2 = inlined_call_operand.vmem [shape: f32[256,96], index: 2, kind: output, shape index: {}]  }
   0x1   :  { %v11_v0 = vld [vmem:[%s492_s0] sm:$0xff]  ;;  %v12_v2 = vld [vmem:[%s492_s0 + $0x8] sm:$0xff]  ;;  %v13_v5 = vld [vmem:[%s492_s0 + $0x10] sm:$0xff] }
   0x2   :  { %v237_v1 = vld [vmem:[%s493_s1] ss:$0 sm:$0xff]  ;;  %v14_v6 = vld [vmem:[%s492_s0 + $0x18] sm:$0xff]  ;;  %v16_v10 = vld [vmem:[%s492_s0 + $0x28] sm:$0xff] }
   0x3   :  { %v50_v3 = vadd.f32 %v237_v1, %v11_v0  ;;  %v51_v4 = vadd.f32 %v237_v1, %v12_v2  ;;  %v15_v7 = vld [vmem:[%s492_s0 + $0x20] sm:$0xff]  ;;  %v52_v8 = vadd.f32 %v237_v1, %v13_v5  ;;  %v53_v9 = vadd.f32 %v237_v1, %v14_v6  ;;  %v17_v11 = vld [vmem:[%s492_s0 + $0x30] sm:$0xff]  ;;  %v18_v13 = vld [vmem:[%s492_s0 + $0x38] sm:$0xff] }
   0x4   :  { %v54_v12 = vadd.f32 %v237_v1, %v15_v7  ;;  %v55_v14 = vadd.f32 %v237_v1, %v16_v10  ;;  %v19_v15 = vld [vmem:[%s492_s0 + $0x40] sm:$0xff]  ;;  %v56_v16 = vadd.f32 %v237_v1, %v17_v11  ;;  %v20_v17 = vld [vmem:[%s492_s0 + $0x48] sm:$0xff]  ;;  %v57_v18 = vadd.f32 %v237_v1, %v18_v13  ;;  %v21_v19 = vld [vmem:[%s492_s0 + $0x50] sm:$0xff] }
   0x5   :  { %152 = vtanh.f32 %v50_v3  ;;  %v58_v20 = vadd.f32 %v237_v1, %v19_v15  ;;  %v22_v21 = vld [vmem:[%s492_s0 + $0x58] sm:$0xff]  ;;  %v59_v22 = vadd.f32 %v237_v1, %v20_v17  ;;  %v23_v23 = vld [vmem:[%s492_s0 + $0x60] sm:$0xff]  ;;  %v60_v24 = vadd.f32 %v237_v1, %v21_v19  ;;  %v24_v25 = vld [vmem:[%s492_s0 + $0x68] sm:$0xff] }
   0x6   :  { %154 = vtanh.f32 %v51_v4  ;;  %v61_v26 = vadd.f32 %v237_v1, %v22_v21  ;;  %v25_v27 = vld [vmem:[%s492_s0 + $0x70] sm:$0xff]  ;;  %v62_v28 = vadd.f32 %v237_v1, %v23_v23  ;;  %v26_v29 = vld [vmem:[%s492_s0 + $0x78] sm:$0xff]  ;;  %v63_v30 = vadd.f32 %v237_v1, %v24_v25  ;;  %v27_v31 = vld [vmem:[%s492_s0 + $0x80] sm:$0xff] }
   0x7   :  { %156 = vtanh.f32 %v52_v8  ;;  %v64_v33 = vadd.f32 %v237_v1, %v25_v27  ;;  %v28_v34 = vld [vmem:[%s492_s0 + $0x88] sm:$0xff]  ;;  %v65_v36 = vadd.f32 %v237_v1, %v26_v29  ;;  %v29_v37 = vld [vmem:[%s492_s0 + $0x90] sm:$0xff]  ;;  %v66_v39 = vadd.f32 %v237_v1, %v27_v31  ;;  %v30_v40 = vld [vmem:[%s492_s0 + $0x98] sm:$0xff] }
   0x8   :  { %158 = vtanh.f32 %v53_v9  ;;  %v67_v42 = vadd.f32 %v237_v1, %v28_v34  ;;  %v31_v43 = vld [vmem:[%s492_s0 + $0xa0] sm:$0xff]  ;;  %v68_v45 = vadd.f32 %v237_v1, %v29_v37  ;;  %v32_v46 = vld [vmem:[%s492_s0 + $0xa8] sm:$0xff]  ;;  %v69_v48 = vadd.f32 %v237_v1, %v30_v40  ;;  %v33_v49 = vld [vmem:[%s492_s0 + $0xb0] sm:$0xff] }
   0x9   :  { %160 = vtanh.f32 %v54_v12  ;;  %v70_v51 = vadd.f32 %v237_v1, %v31_v43  ;;  %v34_v52 = vld [vmem:[%s492_s0 + $0xb8] sm:$0xff]  ;;  %v71_v54 = vadd.f32 %v237_v1, %v32_v46  ;;  %v35_v55 = vld [vmem:[%s492_s0 + $0xc0] sm:$0xff]  ;;  %v72_v57 = vadd.f32 %v237_v1, %v33_v49  ;;  %v36_v58 = vld [vmem:[%s492_s0 + $0xc8] sm:$0xff] }
   0xa   :  { %162 = vtanh.f32 %v55_v14  ;;  %v73_v60 = vadd.f32 %v237_v1, %v34_v52  ;;  %v37_v61 = vld [vmem:[%s492_s0 + $0xd0] sm:$0xff]  ;;  %v74_v63 = vadd.f32 %v237_v1, %v35_v55  ;;  %v38_v0 = vld [vmem:[%s492_s0 + $0xd8] sm:$0xff]  ;;  %v75_v3 = vadd.f32 %v237_v1, %v36_v58  ;;  %v39_v4 = vld [vmem:[%s492_s0 + $0xe0] sm:$0xff] }
   0xb   :  { %164 = vtanh.f32 %v56_v16  ;;  %v76_v6 = vadd.f32 %v237_v1, %v37_v61  ;;  %v40_v7 = vld [vmem:[%s492_s0 + $0xe8] sm:$0xff]  ;;  %v77_v9 = vadd.f32 %v237_v1, %v38_v0  ;;  %v41_v10 = vld [vmem:[%s492_s0 + $0xf0] sm:$0xff]  ;;  %v78_v12 = vadd.f32 %v237_v1, %v39_v4  ;;  %v42_v13 = vld [vmem:[%s492_s0 + $0xf8] sm:$0xff] }
   0xc   :  { %166 = vtanh.f32 %v57_v18  ;;  %v79_v15 = vadd.f32 %v237_v1, %v40_v7  ;;  %v80_v17 = vadd.f32 %v237_v1, %v41_v10  ;;  %v81_v19 = vadd.f32 %v237_v1, %v42_v13 }
   0xd   :  { %168 = vtanh.f32 %v58_v20 }
   0xe   :  { %170 = vtanh.f32 %v59_v22 }
   0xf   :  { %v153_v32 = vpop.eup %152  ;;  %172 = vtanh.f32 %v60_v24 }
  0x10   :  { %v155_v35 = vpop.eup %154  ;;  %115 = vst.msk [vmem:[%s494_s2] sm:$0xff] %vm114_vm0, %v153_v32  ;;  %174 = vtanh.f32 %v61_v26 }
  0x11   :  { %v157_v38 = vpop.eup %156  ;;  %116 = vst.msk [vmem:[%s494_s2 + $0x8] sm:$0xff] %vm114_vm0, %v155_v35  ;;  %176 = vtanh.f32 %v62_v28 }
  0x12   :  { %v159_v41 = vpop.eup %158  ;;  %117 = vst.msk [vmem:[%s494_s2 + $0x10] sm:$0xff] %vm114_vm0, %v157_v38  ;;  %178 = vtanh.f32 %v63_v30 }
  0x13   :  { %v161_v44 = vpop.eup %160  ;;  %118 = vst.msk [vmem:[%s494_s2 + $0x18] sm:$0xff] %vm114_vm0, %v159_v41  ;;  %180 = vtanh.f32 %v64_v33 }
  0x14   :  { %v163_v47 = vpop.eup %162  ;;  %119 = vst.msk [vmem:[%s494_s2 + $0x20] sm:$0xff] %vm114_vm0, %v161_v44  ;;  %182 = vtanh.f32 %v65_v36 }
  0x15   :  { %v165_v50 = vpop.eup %164  ;;  %120 = vst.msk [vmem:[%s494_s2 + $0x28] sm:$0xff] %vm114_vm0, %v163_v47  ;;  %184 = vtanh.f32 %v66_v39 }
  0x16   :  { %v167_v53 = vpop.eup %166  ;;  %121 = vst.msk [vmem:[%s494_s2 + $0x30] sm:$0xff] %vm114_vm0, %v165_v50  ;;  %186 = vtanh.f32 %v67_v42 }
  0x17   :  { %v169_v56 = vpop.eup %168  ;;  %122 = vst.msk [vmem:[%s494_s2 + $0x38] sm:$0xff] %vm114_vm0, %v167_v53  ;;  %188 = vtanh.f32 %v68_v45 }
  0x18   :  { %v171_v59 = vpop.eup %170  ;;  %123 = vst.msk [vmem:[%s494_s2 + $0x40] sm:$0xff] %vm114_vm0, %v169_v56  ;;  %190 = vtanh.f32 %v69_v48 }
  0x19   :  { %v173_v62 = vpop.eup %172  ;;  %124 = vst.msk [vmem:[%s494_s2 + $0x48] sm:$0xff] %vm114_vm0, %v171_v59  ;;  %192 = vtanh.f32 %v70_v51 }
  0x1a   :  { %v175_v2 = vpop.eup %174  ;;  %125 = vst.msk [vmem:[%s494_s2 + $0x50] sm:$0xff] %vm114_vm0, %v173_v62  ;;  %194 = vtanh.f32 %v71_v54 }
  0x1b   :  { %v177_v5 = vpop.eup %176  ;;  %126 = vst.msk [vmem:[%s494_s2 + $0x58] sm:$0xff] %vm114_vm0, %v175_v2  ;;  %196 = vtanh.f32 %v72_v57 }
  0x1c   :  { %v179_v8 = vpop.eup %178  ;;  %127 = vst.msk [vmem:[%s494_s2 + $0x60] sm:$0xff] %vm114_vm0, %v177_v5  ;;  %198 = vtanh.f32 %v73_v60 }
  0x1d   :  { %v181_v11 = vpop.eup %180  ;;  %128 = vst.msk [vmem:[%s494_s2 + $0x68] sm:$0xff] %vm114_vm0, %v179_v8  ;;  %200 = vtanh.f32 %v74_v63 }
  0x1e   :  { %v183_v14 = vpop.eup %182  ;;  %129 = vst.msk [vmem:[%s494_s2 + $0x70] sm:$0xff] %vm114_vm0, %v181_v11  ;;  %202 = vtanh.f32 %v75_v3 }
  0x1f   :  { %v185_v16 = vpop.eup %184  ;;  %130 = vst.msk [vmem:[%s494_s2 + $0x78] sm:$0xff] %vm114_vm0, %v183_v14  ;;  %204 = vtanh.f32 %v76_v6 }
  0x20   :  { %v187_v18 = vpop.eup %186  ;;  %131 = vst.msk [vmem:[%s494_s2 + $0x80] sm:$0xff] %vm114_vm0, %v185_v16  ;;  %206 = vtanh.f32 %v77_v9 }
  0x21   :  { %v189_v20 = vpop.eup %188  ;;  %132 = vst.msk [vmem:[%s494_s2 + $0x88] sm:$0xff] %vm114_vm0, %v187_v18  ;;  %208 = vtanh.f32 %v78_v12 }
  0x22   :  { %v191_v21 = vpop.eup %190  ;;  %133 = vst.msk [vmem:[%s494_s2 + $0x90] sm:$0xff] %vm114_vm0, %v189_v20  ;;  %210 = vtanh.f32 %v79_v15 }
  0x23   :  { %v193_v22 = vpop.eup %192  ;;  %134 = vst.msk [vmem:[%s494_s2 + $0x98] sm:$0xff] %vm114_vm0, %v191_v21  ;;  %212 = vtanh.f32 %v80_v17 }
  0x24   :  { %v195_v1 = vpop.eup %194  ;;  %135 = vst.msk [vmem:[%s494_s2 + $0xa0] sm:$0xff] %vm114_vm0, %v193_v22  ;;  %214 = vtanh.f32 %v81_v19 }
  0x25   :  { %v197_v23 = vpop.eup %196  ;;  %136 = vst.msk [vmem:[%s494_s2 + $0xa8] sm:$0xff] %vm114_vm0, %v195_v1 }
  0x26   :  { %v199_v24 = vpop.eup %198  ;;  %137 = vst.msk [vmem:[%s494_s2 + $0xb0] sm:$0xff] %vm114_vm0, %v197_v23 }
  0x27   :  { %v201_v25 = vpop.eup %200  ;;  %138 = vst.msk [vmem:[%s494_s2 + $0xb8] sm:$0xff] %vm114_vm0, %v199_v24 }
  0x28   :  { %v203_v26 = vpop.eup %202  ;;  %139 = vst.msk [vmem:[%s494_s2 + $0xc0] sm:$0xff] %vm114_vm0, %v201_v25 }
  0x29   :  { %v205_v27 = vpop.eup %204  ;;  %140 = vst.msk [vmem:[%s494_s2 + $0xc8] sm:$0xff] %vm114_vm0, %v203_v26 }
  0x2a   :  { %v207_v28 = vpop.eup %206  ;;  %141 = vst.msk [vmem:[%s494_s2 + $0xd0] sm:$0xff] %vm114_vm0, %v205_v27 }
  0x2b   :  { %v209_v29 = vpop.eup %208  ;;  %142 = vst.msk [vmem:[%s494_s2 + $0xd8] sm:$0xff] %vm114_vm0, %v207_v28 }
  0x2c   :  { %v211_v30 = vpop.eup %210  ;;  %143 = vst.msk [vmem:[%s494_s2 + $0xe0] sm:$0xff] %vm114_vm0, %v209_v29 }
  0x2d   :  { %v213_v31 = vpop.eup %212  ;;  %144 = vst.msk [vmem:[%s494_s2 + $0xe8] sm:$0xff] %vm114_vm0, %v211_v30 }
  0x2e   :  { %v215_v32 = vpop.eup %214  ;;  %145 = vst.msk [vmem:[%s494_s2 + $0xf0] sm:$0xff] %vm114_vm0, %v213_v31 }
  0x2f   :  { %146 = vst.msk [vmem:[%s494_s2 + $0xf8] sm:$0xff] %vm114_vm0, %v215_v32 }

</bundles_post_ra>
